<compile_context>
chip_gen: v7x
topology: tpu7x:2x2x1
jax: 0.10.0
libtpu: 0.0.40
codegen_flags: <defaults>
</compile_context>

<pallas_src>
from functools import partial

import jax
import jax.numpy as jnp
from jax import lax
from jax.experimental import pallas as pl
from jax.experimental.pallas import tpu as pltpu


# ------------------------------ tiling helpers ------------------------------


def _pick_tile(dim, target, multiple=1):
    """Largest divisor of `dim` that is <= target and a multiple of `multiple`.

    Falls back to the full dim (always legal for the TPU (8,128) layout rule).
    """
    for cand in range(min(dim, target), 0, -1):
        if dim % cand == 0 and cand % multiple == 0:
            return cand
    return dim


def _pick_head_block(bh, head_dim):
    """Pack heads per grid step so the MXU sees >= ~128 lanes worth of work."""
    target = max(1, min(4, 128 // max(head_dim, 1), bh))
    return _pick_tile(bh, target)


# ----------------------- tiled linear (matmul + bias) -----------------------


def _linear_kernel(x_ref, w_ref, b_ref, o_ref, acc_ref):
    k = pl.program_id(2)

    @pl.when(k == 0)
    def _():
        acc_ref[...] = jnp.zeros_like(acc_ref)

    acc_ref[...] += jnp.dot(
        x_ref[...], w_ref[...], preferred_element_type=jnp.float32
    )

    @pl.when(k == pl.num_programs(2) - 1)
    def _():
        o_ref[...] = (acc_ref[...] + b_ref[...].astype(jnp.float32)).astype(o_ref.dtype)


def _pallas_linear(x2d, w, b, *, tm=256, tn=256, tk=512):
    """x2d: (N, Din) @ w: (Din, Dout) + b: (Dout,) -> (N, Dout)."""
    N, Din = x2d.shape
    Dout = w.shape[1]
    tm = _pick_tile(N, tm, multiple=8)      # sublane dim of x / out blocks
    tn = _pick_tile(Dout, tn, multiple=128)  # lane dim of w / out blocks
    tk = _pick_tile(Din, tk, multiple=128)   # lane dim of x, sublane dim of w

    itemsize = jnp.dtype(x2d.dtype).itemsize
    cost = pl.CostEstimate(
        flops=2 * N * Din * Dout,
        transcendentals=0,
        bytes_accessed=(N * Din + Din * Dout + Dout + N * Dout) * itemsize,
    )

    return pl.pallas_call(
        _linear_kernel,
        out_shape=jax.ShapeDtypeStruct((N, Dout), x2d.dtype),
        grid_spec=pltpu.PrefetchScalarGridSpec(
            num_scalar_prefetch=0,
            grid=(N // tm, Dout // tn, Din // tk),
            in_specs=[
                pl.BlockSpec((tm, tk), lambda i, j, k: (i, k)),
                pl.BlockSpec((tk, tn), lambda i, j, k: (k, j)),
                pl.BlockSpec((1, tn), lambda i, j, k: (0, j)),
            ],
            out_specs=pl.BlockSpec((tm, tn), lambda i, j, k: (i, j)),
            scratch_shapes=[pltpu.VMEM((tm, tn), jnp.float32)],
        ),
        compiler_params=pltpu.CompilerParams(
            dimension_semantics=("parallel", "parallel", "arbitrary"),
        ),
        cost_estimate=cost,
    )(x2d, w, b.reshape(1, Dout))


# --------------------- flash attention (online softmax) ---------------------


def _flash_attn_kernel(q_ref, k_ref, v_ref, o_ref, m_sc, l_sc, acc_sc, *, scale):
    ki = pl.program_id(2)

    @pl.when(ki == 0)
    def _():
        m_sc[...] = jnp.full_like(m_sc, -jnp.inf)
        l_sc[...] = jnp.zeros_like(l_sc)
        acc_sc[...] = jnp.zeros_like(acc_sc)

    q = q_ref[...] * scale          # (hblk, tq, hd), input dtype
    k = k_ref[...]                  # (hblk, tkv, hd)
    v = v_ref[...]                  # (hblk, tkv, hd)

    # Batched q @ k^T: contract last dims directly (no materialized transpose).
    s = lax.dot_general(
        q, k, (((2,), (2,)), ((0,), (0,))), preferred_element_type=jnp.float32
    )                               # (hblk, tq, tkv), f32

    m_prev = m_sc[...]
    m_new = jnp.maximum(m_prev, jnp.max(s, axis=-1, keepdims=True))
    alpha = jnp.exp(m_prev - m_new)
    p = jnp.exp(s - m_new)
    l_sc[...] = alpha * l_sc[...] + jnp.sum(p, axis=-1, keepdims=True)

    pv = lax.dot_general(
        p.astype(v.dtype), v, (((2,), (1,)), ((0,), (0,))),
        preferred_element_type=jnp.float32,
    )                               # (hblk, tq, hd), f32
    acc_sc[...] = alpha * acc_sc[...] + pv
    m_sc[...] = m_new

    @pl.when(ki == pl.num_programs(2) - 1)
    def _():
        inv_l = pl.reciprocal(l_sc[...], approx=True)   # EUP slot, ~free
        o_ref[...] = (acc_sc[...] * inv_l).astype(o_ref.dtype)


def _pallas_attention(q, k, v, scale, *, tq=128, tkv=128):
    """q, k, v: (BH, S, Dh) -> softmax((q*scale) @ k^T) @ v, flash-style."""
    BH, S, Dh = q.shape
    hblk = _pick_head_block(BH, Dh)
    tq = _pick_tile(S, tq, multiple=8)
    tkv = _pick_tile(S, tkv, multiple=8)

    itemsize = jnp.dtype(q.dtype).itemsize
    cost = pl.CostEstimate(
        flops=4 * BH * S * S * Dh,          # QK^T + PV
        transcendentals=BH * S * S,         # exp
        bytes_accessed=4 * BH * S * Dh * itemsize,
    )

    q_spec = pl.BlockSpec((hblk, tq, Dh), lambda g, qi, ki: (g, qi, 0))
    kv_spec = pl.BlockSpec((hblk, tkv, Dh), lambda g, qi, ki: (g, ki, 0))
    o_spec = pl.BlockSpec((hblk, tq, Dh), lambda g, qi, ki: (g, qi, 0))

    return pl.pallas_call(
        partial(_flash_attn_kernel, scale=scale),
        out_shape=jax.ShapeDtypeStruct((BH, S, Dh), q.dtype),
        grid_spec=pltpu.PrefetchScalarGridSpec(
            num_scalar_prefetch=0,
            grid=(BH // hblk, S // tq, S // tkv),
            in_specs=[q_spec, kv_spec, kv_spec],
            out_specs=o_spec,
            scratch_shapes=[
                pltpu.VMEM((hblk, tq, 1), jnp.float32),    # running max m
                pltpu.VMEM((hblk, tq, 1), jnp.float32),    # running sum l
                pltpu.VMEM((hblk, tq, Dh), jnp.float32),   # output accumulator
            ],
        ),
        compiler_params=pltpu.CompilerParams(
            dimension_semantics=("parallel", "parallel", "arbitrary"),
        ),
        cost_estimate=cost,
    )(q, k, v)


# ----------------------------- Module wrapper ------------------------------


def init_attention_params(key, dim, num_heads, dtype=jnp.float32):
    """Deterministic synthetic init mirroring nn.Linear shapes (weights stored
    pre-transposed as (in, out))."""
    k1, k2, k3, k4 = jax.random.split(key, 4)
    s = 0.02
    return {
        "w_qkv": jax.random.normal(k1, (dim, 3 * dim), dtype) * s,
        "b_qkv": jax.random.normal(k2, (3 * dim,), dtype) * s,
        "w_proj": jax.random.normal(k3, (dim, dim), dtype) * s,
        "b_proj": jax.random.normal(k4, (dim,), dtype) * s,
    }


def attention_forward(x, params, num_heads):
    """Forward pass identical in semantics to the PyTorch module (use_rel_pos=False)."""
    B, H, W, C = x.shape
    head_dim = C // num_heads
    scale = head_dim ** (-0.5)
    S = H * W
    N = B * S

    # qkv projection: (B*H*W, C) @ (C, 3C) + b  (tiled Pallas matmul)
    qkv = _pallas_linear(x.reshape(N, C), params["w_qkv"], params["b_qkv"])
    # (B, S, 3, nh, hd) -> (3, B, nh, S, hd) -> (3, B*nh, S, hd)
    qkv = qkv.reshape(B, S, 3, num_heads, head_dim)
    qkv = jnp.transpose(qkv, (2, 0, 3, 1, 4)).reshape(3, B * num_heads, S, head_dim)
    q, k, v = qkv[0], qkv[1], qkv[2]

    # flash-style attention core in Pallas
    o = _pallas_attention(q, k, v, scale)                         # (B*nh, S, hd)

    # (B, nh, H, W, hd) -> (B, H, W, nh, hd) -> (B, H, W, C)
    o = o.reshape(B, num_heads, H, W, head_dim)
    o = jnp.transpose(o, (0, 2, 3, 1, 4)).reshape(B, H, W, C)

    # output projection (tiled Pallas matmul)
    out = _pallas_linear(o.reshape(N, C), params["w_proj"], params["b_proj"])
    return out.reshape(B, H, W, C)


# ------------------------------- reference ---------------------------------


def attention_reference(x, params, num_heads):
    """Pure-JAX reference replicating the PyTorch forward exactly."""
    B, H, W, C = x.shape
    head_dim = C // num_heads
    scale = head_dim ** (-0.5)
    S = H * W
    qkv = x.reshape(B * S, C) @ params["w_qkv"] + params["b_qkv"]
    qkv = qkv.reshape(B, S, 3, num_heads, head_dim)
    qkv = jnp.transpose(qkv, (2, 0, 3, 1, 4)).reshape(3, B * num_heads, S, head_dim)
    q, k, v = qkv[0], qkv[1], qkv[2]
    attn = (q * scale) @ jnp.swapaxes(k, -2, -1)
    attn = jax.nn.softmax(attn, axis=-1)
    o = (attn @ v).reshape(B, num_heads, H, W, head_dim)
    o = jnp.transpose(o, (0, 2, 3, 1, 4)).reshape(B, H, W, C)
    o = o.reshape(B * S, C) @ params["w_proj"] + params["b_proj"]
    return o.reshape(B, H, W, C)


# --------------------------------- main -------------------------------------


if __name__ == "__main__":
    # Small but non-trivial shapes: S = 16*16 = 256 tokens -> 2 q tiles x 2 kv
    # tiles (exercises the online-softmax accumulation), 4 heads packed per
    # attention grid step, and a multi-block tiled qkv/proj matmul.
    B, H, W, C = 2, 16, 16, 64
    num_heads = 4

    key = jax.random.PRNGKey(0)
    kx, kp = jax.random.split(key)
    x = jax.random.normal(kx, (B, H, W, C), jnp.float32)
    params = init_attention_params(kp, C, num_heads)

    fwd = jax.jit(lambda xx, pp: attention_forward(xx, pp, num_heads))
    out = jax.block_until_ready(fwd(x, params))

    ref = attention_reference(x, params, num_heads)
    assert out.shape == (B, H, W, C)
    # Tolerance relaxed vs a pure-f32 path because the softmax finalize uses the
    # EUP approximate reciprocal (pl.reciprocal(approx=True), ~1e-3 rel error).
    assert jnp.allclose(out, ref, atol=2e-3, rtol=2e-3), (
        f"max abs err = {jnp.max(jnp.abs(out - ref))}"
    )
    print("KERNEL_OK")
</pallas_src>

<mosaic_0001>
module attributes {stable_mosaic.version = 11 : i64} {
  func.func @_linear_kernel(%arg0: i32, %arg1: i32, %arg2: i32, %arg3: memref<256x64xf32, #tpu.memory_space<vmem>>, %arg4: memref<64x192xf32, #tpu.memory_space<vmem>>, %arg5: memref<1x192xf32, #tpu.memory_space<vmem>>, %arg6: memref<256x192xf32, #tpu.memory_space<vmem>>, %arg7: memref<256x192xf32, #tpu.memory_space<vmem>>) attributes {dimension_semantics = [#tpu.dimension_semantics<parallel>, #tpu.dimension_semantics<parallel>, #tpu.dimension_semantics<arbitrary>], iteration_bounds = array<i64: 2, 1, 1>, scalar_prefetch = 0 : i64, scratch_operands = 1 : i64, tpu.core_type = #tpu.core_type<tc>, window_params = [{transform_indices = @transform_0, window_bounds = array<i64: 256, 64>}, {transform_indices = @transform_1, window_bounds = array<i64: 64, 192>}, {transform_indices = @transform_2, window_bounds = array<i64: 1, 192>}, {transform_indices = @transform_3, window_bounds = array<i64: 256, 192>}]} {
    %c0_i32 = arith.constant 0 : i32
    %0 = arith.cmpi eq, %arg2, %c0_i32 : i32
    %1 = arith.extui %0 : i1 to i32
    %c0_i32_0 = arith.constant 0 : i32
    %2 = arith.cmpi ne, %1, %c0_i32_0 : i32
    scf.if %2 {
      %cst_10 = arith.constant 0.000000e+00 : f32
      %12 = vector.broadcast %cst_10 : f32 to vector<256x192xf32>
      %c0_11 = arith.constant 0 : index
      %c0_12 = arith.constant 0 : index
      %13 = vector.load %arg7[%c0_11, %c0_12] : memref<256x192xf32, #tpu.memory_space<vmem>>, vector<256x192xf32>
      tpu.vector_store %arg7[%c0_11, %c0_12], %12 {strides = array<i32>} : memref<256x192xf32, #tpu.memory_space<vmem>>, vector<256x192xf32>,
    } else {
    }
    %c0 = arith.constant 0 : index
    %c0_1 = arith.constant 0 : index
    %3 = vector.load %arg7[%c0, %c0_1] : memref<256x192xf32, #tpu.memory_space<vmem>>, vector<256x192xf32>
    %c0_2 = arith.constant 0 : index
    %c0_3 = arith.constant 0 : index
    %4 = vector.load %arg3[%c0_2, %c0_3] : memref<256x64xf32, #tpu.memory_space<vmem>>, vector<256x64xf32>
    %c0_4 = arith.constant 0 : index
    %c0_5 = arith.constant 0 : index
    %5 = vector.load %arg4[%c0_4, %c0_5] : memref<64x192xf32, #tpu.memory_space<vmem>>, vector<64x192xf32>
    %cst = arith.constant dense<0.000000e+00> : vector<256x192xf32>
    %6 = tpu.matmul %4, %5, %cst {dimension_numbers = #tpu.dot_dimension_numbers<[1], [0], [0], [1], [0, 0, 1, 1], [], []>} : vector<256x64xf32>, vector<64x192xf32>, vector<256x192xf32> -> vector<256x192xf32>
    %7 = arith.addf %3, %6 : vector<256x192xf32>
    %c0_6 = arith.constant 0 : index
    %c0_7 = arith.constant 0 : index
    %8 = vector.load %arg7[%c0_6, %c0_7] : memref<256x192xf32, #tpu.memory_space<vmem>>, vector<256x192xf32>
    tpu.vector_store %arg7[%c0_6, %c0_7], %7 {strides = array<i32>} : memref<256x192xf32, #tpu.memory_space<vmem>>, vector<256x192xf32>,
    %c0_i32_8 = arith.constant 0 : i32
    %9 = arith.cmpi eq, %arg2, %c0_i32_8 : i32
    %10 = arith.extui %9 : i1 to i32
    %c0_i32_9 = arith.constant 0 : i32
    %11 = arith.cmpi ne, %10, %c0_i32_9 : i32
    scf.if %11 {
      %c0_10 = arith.constant 0 : index
      %c0_11 = arith.constant 0 : index
      %12 = vector.load %arg7[%c0_10, %c0_11] : memref<256x192xf32, #tpu.memory_space<vmem>>, vector<256x192xf32>
      %c0_12 = arith.constant 0 : index
      %c0_13 = arith.constant 0 : index
      %13 = vector.load %arg5[%c0_12, %c0_13] : memref<1x192xf32, #tpu.memory_space<vmem>>, vector<1x192xf32>
      %14 = vector.broadcast %13 : vector<1x192xf32> to vector<256x192xf32>
      %15 = arith.addf %12, %14 : vector<256x192xf32>
      %c0_14 = arith.constant 0 : index
      %c0_15 = arith.constant 0 : index
      %16 = vector.load %arg6[%c0_14, %c0_15] : memref<256x192xf32, #tpu.memory_space<vmem>>, vector<256x192xf32>
      tpu.vector_store %arg6[%c0_14, %c0_15], %15 {strides = array<i32>} : memref<256x192xf32, #tpu.memory_space<vmem>>, vector<256x192xf32>,
    } else {
    }
    return
  }
  func.func @transform_0(%arg0: i32, %arg1: i32, %arg2: i32) -> (i32, i32) {
    %c0_i32 = arith.constant 0 : i32
    return %arg0, %arg2 : i32, i32
  }
  func.func @transform_1(%arg0: i32, %arg1: i32, %arg2: i32) -> (i32, i32) {
    %c0_i32 = arith.constant 0 : i32
    return %arg2, %arg1 : i32, i32
  }
  func.func @transform_2(%arg0: i32, %arg1: i32, %arg2: i32) -> (i32, i32) {
    %c0_i32 = arith.constant 0 : i32
    %c0_i32_0 = arith.constant 0 : i32
    return %c0_i32, %arg1 : i32, i32
  }
  func.func @transform_3(%arg0: i32, %arg1: i32, %arg2: i32) -> (i32, i32) {
    %c0_i32 = arith.constant 0 : i32
    return %arg0, %arg1 : i32, i32
  }
}

module attributes {stable_mosaic.version = 11 : i64} {
  func.func @_flash_attn_kernel(%arg0: i32, %arg1: i32, %arg2: i32, %arg3: memref<4x128x16xf32, #tpu.memory_space<vmem>>, %arg4: memref<4x128x16xf32, #tpu.memory_space<vmem>>, %arg5: memref<4x128x16xf32, #tpu.memory_space<vmem>>, %arg6: memref<4x128x16xf32, #tpu.memory_space<vmem>>, %arg7: memref<4x128x1xf32, #tpu.memory_space<vmem>>, %arg8: memref<4x128x1xf32, #tpu.memory_space<vmem>>, %arg9: memref<4x128x16xf32, #tpu.memory_space<vmem>>) attributes {dimension_semantics = [#tpu.dimension_semantics<parallel>, #tpu.dimension_semantics<parallel>, #tpu.dimension_semantics<arbitrary>], iteration_bounds = array<i64: 2, 2, 2>, scalar_prefetch = 0 : i64, scratch_operands = 3 : i64, tpu.core_type = #tpu.core_type<tc>, window_params = [{transform_indices = @transform_0, window_bounds = array<i64: 4, 128, 16>}, {transform_indices = @transform_1, window_bounds = array<i64: 4, 128, 16>}, {transform_indices = @transform_2, window_bounds = array<i64: 4, 128, 16>}, {transform_indices = @transform_3, window_bounds = array<i64: 4, 128, 16>}]} {
    %c0_i32 = arith.constant 0 : i32
    %0 = arith.cmpi eq, %arg2, %c0_i32 : i32
    %1 = arith.extui %0 : i1 to i32
    %c0_i32_0 = arith.constant 0 : i32
    %2 = arith.cmpi ne, %1, %c0_i32_0 : i32
    scf.if %2 {
      %cst_32 = arith.constant 0xFF800000 : f32
      %34 = vector.broadcast %cst_32 : f32 to vector<4x128x1xf32>
      %c0_33 = arith.constant 0 : index
      %c0_34 = arith.constant 0 : index
      %c0_35 = arith.constant 0 : index
      %35 = vector.load %arg7[%c0_33, %c0_34, %c0_35] : memref<4x128x1xf32, #tpu.memory_space<vmem>>, vector<4x128x1xf32>
      tpu.vector_store %arg7[%c0_33, %c0_34, %c0_35], %34 {strides = array<i32>} : memref<4x128x1xf32, #tpu.memory_space<vmem>>, vector<4x128x1xf32>,
      %cst_36 = arith.constant 0.000000e+00 : f32
      %36 = vector.broadcast %cst_36 : f32 to vector<4x128x1xf32>
      %c0_37 = arith.constant 0 : index
      %c0_38 = arith.constant 0 : index
      %c0_39 = arith.constant 0 : index
      %37 = vector.load %arg8[%c0_37, %c0_38, %c0_39] : memref<4x128x1xf32, #tpu.memory_space<vmem>>, vector<4x128x1xf32>
      tpu.vector_store %arg8[%c0_37, %c0_38, %c0_39], %36 {strides = array<i32>} : memref<4x128x1xf32, #tpu.memory_space<vmem>>, vector<4x128x1xf32>,
      %cst_40 = arith.constant 0.000000e+00 : f32
      %38 = vector.broadcast %cst_40 : f32 to vector<4x128x16xf32>
      %c0_41 = arith.constant 0 : index
      %c0_42 = arith.constant 0 : index
      %c0_43 = arith.constant 0 : index
      %39 = vector.load %arg9[%c0_41, %c0_42, %c0_43] : memref<4x128x16xf32, #tpu.memory_space<vmem>>, vector<4x128x16xf32>
      tpu.vector_store %arg9[%c0_41, %c0_42, %c0_43], %38 {strides = array<i32>} : memref<4x128x16xf32, #tpu.memory_space<vmem>>, vector<4x128x16xf32>,
    } else {
    }
    %c0 = arith.constant 0 : index
    %c0_1 = arith.constant 0 : index
    %c0_2 = arith.constant 0 : index
    %3 = vector.load %arg3[%c0, %c0_1, %c0_2] : memref<4x128x16xf32, #tpu.memory_space<vmem>>, vector<4x128x16xf32>
    %cst = arith.constant 2.500000e-01 : f32
    %4 = vector.broadcast %cst : f32 to vector<4x128x16xf32>
    %5 = arith.mulf %3, %4 : vector<4x128x16xf32>
    %c0_3 = arith.constant 0 : index
    %c0_4 = arith.constant 0 : index
    %c0_5 = arith.constant 0 : index
    %6 = vector.load %arg4[%c0_3, %c0_4, %c0_5] : memref<4x128x16xf32, #tpu.memory_space<vmem>>, vector<4x128x16xf32>
    %c0_6 = arith.constant 0 : index
    %c0_7 = arith.constant 0 : index
    %c0_8 = arith.constant 0 : index
    %7 = vector.load %arg5[%c0_6, %c0_7, %c0_8] : memref<4x128x16xf32, #tpu.memory_space<vmem>>, vector<4x128x16xf32>
    %cst_9 = arith.constant dense<0.000000e+00> : vector<4x128x128xf32>
    %8 = tpu.matmul %5, %6, %cst_9 {dimension_numbers = #tpu.dot_dimension_numbers<[2], [2], [1], [1], [0, 0, 0, 1, 1, 1], [0], [0]>} : vector<4x128x16xf32>, vector<4x128x16xf32>, vector<4x128x128xf32> -> vector<4x128x128xf32>
    %c0_10 = arith.constant 0 : index
    %c0_11 = arith.constant 0 : index
    %c0_12 = arith.constant 0 : index
    %9 = vector.load %arg7[%c0_10, %c0_11, %c0_12] : memref<4x128x1xf32, #tpu.memory_space<vmem>>, vector<4x128x1xf32>
    %cst_13 = arith.constant dense<0xFF800000> : vector<4x128xf32>
    %10 = vector.multi_reduction <maximumf>, %8, %cst_13 [2] : vector<4x128x128xf32> to vector<4x128xf32>
    %11 = vector.shape_cast %10 : vector<4x128xf32> to vector<4x128x1xf32>
    %12 = arith.maximumf %9, %11 : vector<4x128x1xf32>
    %13 = arith.subf %9, %12 : vector<4x128x1xf32>
    %14 = math.exp %13 : vector<4x128x1xf32>
    %15 = vector.broadcast %12 : vector<4x128x1xf32> to vector<4x128x128xf32>
    %16 = arith.subf %8, %15 : vector<4x128x128xf32>
    %17 = math.exp %16 : vector<4x128x128xf32>
    %c0_14 = arith.constant 0 : index
    %c0_15 = arith.constant 0 : index
    %c0_16 = arith.constant 0 : index
    %18 = vector.load %arg8[%c0_14, %c0_15, %c0_16] : memref<4x128x1xf32, #tpu.memory_space<vmem>>, vector<4x128x1xf32>
    %19 = arith.mulf %14, %18 : vector<4x128x1xf32>
    %cst_17 = arith.constant dense<0.000000e+00> : vector<4x128xf32>
    %20 = vector.multi_reduction <add>, %17, %cst_17 [2] : vector<4x128x128xf32> to vector<4x128xf32>
    %21 = vector.shape_cast %20 : vector<4x128xf32> to vector<4x128x1xf32>
    %22 = arith.addf %19, %21 : vector<4x128x1xf32>
    %c0_18 = arith.constant 0 : index
    %c0_19 = arith.constant 0 : index
    %c0_20 = arith.constant 0 : index
    %23 = vector.load %arg8[%c0_18, %c0_19, %c0_20] : memref<4x128x1xf32, #tpu.memory_space<vmem>>, vector<4x128x1xf32>
    tpu.vector_store %arg8[%c0_18, %c0_19, %c0_20], %22 {strides = array<i32>} : memref<4x128x1xf32, #tpu.memory_space<vmem>>, vector<4x128x1xf32>,
    %cst_21 = arith.constant dense<0.000000e+00> : vector<4x128x16xf32>
    %24 = tpu.matmul %17, %7, %cst_21 {dimension_numbers = #tpu.dot_dimension_numbers<[2], [1], [1], [2], [0, 0, 0, 1, 1, 2], [0], [0]>} : vector<4x128x128xf32>, vector<4x128x16xf32>, vector<4x128x16xf32> -> vector<4x128x16xf32>
    %c0_22 = arith.constant 0 : index
    %c0_23 = arith.constant 0 : index
    %c0_24 = arith.constant 0 : index
    %25 = vector.load %arg9[%c0_22, %c0_23, %c0_24] : memref<4x128x16xf32, #tpu.memory_space<vmem>>, vector<4x128x16xf32>
    %26 = vector.broadcast %14 : vector<4x128x1xf32> to vector<4x128x16xf32>
    %27 = arith.mulf %26, %25 : vector<4x128x16xf32>
    %28 = arith.addf %27, %24 : vector<4x128x16xf32>
    %c0_25 = arith.constant 0 : index
    %c0_26 = arith.constant 0 : index
    %c0_27 = arith.constant 0 : index
    %29 = vector.load %arg9[%c0_25, %c0_26, %c0_27] : memref<4x128x16xf32, #tpu.memory_space<vmem>>, vector<4x128x16xf32>
    tpu.vector_store %arg9[%c0_25, %c0_26, %c0_27], %28 {strides = array<i32>} : memref<4x128x16xf32, #tpu.memory_space<vmem>>, vector<4x128x16xf32>,
    %c0_28 = arith.constant 0 : index
    %c0_29 = arith.constant 0 : index
    %c0_30 = arith.constant 0 : index
    %30 = vector.load %arg7[%c0_28, %c0_29, %c0_30] : memref<4x128x1xf32, #tpu.memory_space<vmem>>, vector<4x128x1xf32>
    tpu.vector_store %arg7[%c0_28, %c0_29, %c0_30], %12 {strides = array<i32>} : memref<4x128x1xf32, #tpu.memory_space<vmem>>, vector<4x128x1xf32>,
    %c1_i32 = arith.constant 1 : i32
    %31 = arith.cmpi eq, %arg2, %c1_i32 : i32
    %32 = arith.extui %31 : i1 to i32
    %c0_i32_31 = arith.constant 0 : i32
    %33 = arith.cmpi ne, %32, %c0_i32_31 : i32
    scf.if %33 {
      %c0_32 = arith.constant 0 : index
      %c0_33 = arith.constant 0 : index
      %c0_34 = arith.constant 0 : index
      %34 = vector.load %arg8[%c0_32, %c0_33, %c0_34] : memref<4x128x1xf32, #tpu.memory_space<vmem>>, vector<4x128x1xf32>
      %35 = tpu.reciprocal %34 {approx = true} : vector<4x128x1xf32> -> vector<4x128x1xf32>
      %c0_35 = arith.constant 0 : index
      %c0_36 = arith.constant 0 : index
      %c0_37 = arith.constant 0 : index
      %36 = vector.load %arg9[%c0_35, %c0_36, %c0_37] : memref<4x128x16xf32, #tpu.memory_space<vmem>>, vector<4x128x16xf32>
      %37 = vector.broadcast %35 : vector<4x128x1xf32> to vector<4x128x16xf32>
      %38 = arith.mulf %36, %37 : vector<4x128x16xf32>
      %c0_38 = arith.constant 0 : index
      %c0_39 = arith.constant 0 : index
      %c0_40 = arith.constant 0 : index
      %39 = vector.load %arg6[%c0_38, %c0_39, %c0_40] : memref<4x128x16xf32, #tpu.memory_space<vmem>>, vector<4x128x16xf32>
      tpu.vector_store %arg6[%c0_38, %c0_39, %c0_40], %38 {strides = array<i32>} : memref<4x128x16xf32, #tpu.memory_space<vmem>>, vector<4x128x16xf32>,
    } else {
    }
    return
  }
  func.func @transform_0(%arg0: i32, %arg1: i32, %arg2: i32) -> (i32, i32, i32) {
    %c0_i32 = arith.constant 0 : i32
    %c0_i32_0 = arith.constant 0 : i32
    return %arg0, %arg1, %c0_i32 : i32, i32, i32
  }
  func.func @transform_1(%arg0: i32, %arg1: i32, %arg2: i32) -> (i32, i32, i32) {
    %c0_i32 = arith.constant 0 : i32
    %c0_i32_0 = arith.constant 0 : i32
    return %arg0, %arg2, %c0_i32 : i32, i32, i32
  }
  func.func @transform_2(%arg0: i32, %arg1: i32, %arg2: i32) -> (i32, i32, i32) {
    %c0_i32 = arith.constant 0 : i32
    %c0_i32_0 = arith.constant 0 : i32
    return %arg0, %arg2, %c0_i32 : i32, i32, i32
  }
  func.func @transform_3(%arg0: i32, %arg1: i32, %arg2: i32) -> (i32, i32, i32) {
    %c0_i32 = arith.constant 0 : i32
    %c0_i32_0 = arith.constant 0 : i32
    return %arg0, %arg1, %c0_i32 : i32, i32, i32
  }
}

module attributes {stable_mosaic.version = 11 : i64} {
  func.func @_linear_kernel(%arg0: i32, %arg1: i32, %arg2: i32, %arg3: memref<256x64xf32, #tpu.memory_space<vmem>>, %arg4: memref<64x64xf32, #tpu.memory_space<vmem>>, %arg5: memref<1x64xf32, #tpu.memory_space<vmem>>, %arg6: memref<256x64xf32, #tpu.memory_space<vmem>>, %arg7: memref<256x64xf32, #tpu.memory_space<vmem>>) attributes {dimension_semantics = [#tpu.dimension_semantics<parallel>, #tpu.dimension_semantics<parallel>, #tpu.dimension_semantics<arbitrary>], iteration_bounds = array<i64: 2, 1, 1>, scalar_prefetch = 0 : i64, scratch_operands = 1 : i64, tpu.core_type = #tpu.core_type<tc>, window_params = [{transform_indices = @transform_0, window_bounds = array<i64: 256, 64>}, {transform_indices = @transform_1, window_bounds = array<i64: 64, 64>}, {transform_indices = @transform_2, window_bounds = array<i64: 1, 64>}, {transform_indices = @transform_3, window_bounds = array<i64: 256, 64>}]} {
    %c0_i32 = arith.constant 0 : i32
    %0 = arith.cmpi eq, %arg2, %c0_i32 : i32
    %1 = arith.extui %0 : i1 to i32
    %c0_i32_0 = arith.constant 0 : i32
    %2 = arith.cmpi ne, %1, %c0_i32_0 : i32
    scf.if %2 {
      %cst_10 = arith.constant 0.000000e+00 : f32
      %12 = vector.broadcast %cst_10 : f32 to vector<256x64xf32>
      %c0_11 = arith.constant 0 : index
      %c0_12 = arith.constant 0 : index
      %13 = vector.load %arg7[%c0_11, %c0_12] : memref<256x64xf32, #tpu.memory_space<vmem>>, vector<256x64xf32>
      tpu.vector_store %arg7[%c0_11, %c0_12], %12 {strides = array<i32>} : memref<256x64xf32, #tpu.memory_space<vmem>>, vector<256x64xf32>,
    } else {
    }
    %c0 = arith.constant 0 : index
    %c0_1 = arith.constant 0 : index
    %3 = vector.load %arg7[%c0, %c0_1] : memref<256x64xf32, #tpu.memory_space<vmem>>, vector<256x64xf32>
    %c0_2 = arith.constant 0 : index
    %c0_3 = arith.constant 0 : index
    %4 = vector.load %arg3[%c0_2, %c0_3] : memref<256x64xf32, #tpu.memory_space<vmem>>, vector<256x64xf32>
    %c0_4 = arith.constant 0 : index
    %c0_5 = arith.constant 0 : index
    %5 = vector.load %arg4[%c0_4, %c0_5] : memref<64x64xf32, #tpu.memory_space<vmem>>, vector<64x64xf32>
    %cst = arith.constant dense<0.000000e+00> : vector<256x64xf32>
    %6 = tpu.matmul %4, %5, %cst {dimension_numbers = #tpu.dot_dimension_numbers<[1], [0], [0], [1], [0, 0, 1, 1], [], []>} : vector<256x64xf32>, vector<64x64xf32>, vector<256x64xf32> -> vector<256x64xf32>
    %7 = arith.addf %3, %6 : vector<256x64xf32>
    %c0_6 = arith.constant 0 : index
    %c0_7 = arith.constant 0 : index
    %8 = vector.load %arg7[%c0_6, %c0_7] : memref<256x64xf32, #tpu.memory_space<vmem>>, vector<256x64xf32>
    tpu.vector_store %arg7[%c0_6, %c0_7], %7 {strides = array<i32>} : memref<256x64xf32, #tpu.memory_space<vmem>>, vector<256x64xf32>,
    %c0_i32_8 = arith.constant 0 : i32
    %9 = arith.cmpi eq, %arg2, %c0_i32_8 : i32
    %10 = arith.extui %9 : i1 to i32
    %c0_i32_9 = arith.constant 0 : i32
    %11 = arith.cmpi ne, %10, %c0_i32_9 : i32
    scf.if %11 {
      %c0_10 = arith.constant 0 : index
      %c0_11 = arith.constant 0 : index
      %12 = vector.load %arg7[%c0_10, %c0_11] : memref<256x64xf32, #tpu.memory_space<vmem>>, vector<256x64xf32>
      %c0_12 = arith.constant 0 : index
      %c0_13 = arith.constant 0 : index
      %13 = vector.load %arg5[%c0_12, %c0_13] : memref<1x64xf32, #tpu.memory_space<vmem>>, vector<1x64xf32>
      %14 = vector.broadcast %13 : vector<1x64xf32> to vector<256x64xf32>
      %15 = arith.addf %12, %14 : vector<256x64xf32>
      %c0_14 = arith.constant 0 : index
      %c0_15 = arith.constant 0 : index
      %16 = vector.load %arg6[%c0_14, %c0_15] : memref<256x64xf32, #tpu.memory_space<vmem>>, vector<256x64xf32>
      tpu.vector_store %arg6[%c0_14, %c0_15], %15 {strides = array<i32>} : memref<256x64xf32, #tpu.memory_space<vmem>>, vector<256x64xf32>,
    } else {
    }
    return
  }
  func.func @transform_0(%arg0: i32, %arg1: i32, %arg2: i32) -> (i32, i32) {
    %c0_i32 = arith.constant 0 : i32
    return %arg0, %arg2 : i32, i32
  }
  func.func @transform_1(%arg0: i32, %arg1: i32, %arg2: i32) -> (i32, i32) {
    %c0_i32 = arith.constant 0 : i32
    return %arg2, %arg1 : i32, i32
  }
  func.func @transform_2(%arg0: i32, %arg1: i32, %arg2: i32) -> (i32, i32) {
    %c0_i32 = arith.constant 0 : i32
    %c0_i32_0 = arith.constant 0 : i32
    return %c0_i32, %arg1 : i32, i32
  }
  func.func @transform_3(%arg0: i32, %arg1: i32, %arg2: i32) -> (i32, i32) {
    %c0_i32 = arith.constant 0 : i32
    return %arg0, %arg1 : i32, i32
  }
}

</mosaic_0001>

<bundles_post_ra>
// kernel: _lambda_.3
= control target key start
LH: loop header
LB: loop body
LE: loop exit
PB: predicated region body
PF: predicated region fallthrough
CT: control target
= control target key end

     0   :  { %8 = vsyncpa [#allocation4], 0  ;;  %s2154_s0 = inlined_call_operand.hbm [shape: f32[512,64], index: 0, kind: input, shape index: {}]   ;;  %s2155_s1 = inlined_call_operand.hbm [shape: f32[64,192], index: 1, kind: input, shape index: {}]   ;;  %s2156_s2 = inlined_call_operand.hbm [shape: f32[1,192], index: 2, kind: input, shape index: {}]   ;;  %s2157_s3 = inlined_call_operand.vmem [shape: f32[512,192], index: 3, kind: output, shape index: {}]  }
   0x1   :  { %10 = vsyncpa [#allocation4 + $0x1], 0 }
   0x2   :  { %11 = vsyncpa [#allocation6], 0  ;;  %s1602_s12 = smov 0   ;;  %s1604_s13 = smov 0  }
   0x3   :  { %s1606_s14 = smov 0   ;;  %s1608_s15 = smov 0  }
   0x4   :  { %s1610_s16 = smov 0   ;;  %s1612_s17 = smov 0  }
   0x5 LB: > { %s1275_s18 = sadd.s32 4294967295, %s1572_s17   ;;  %p58_p0 = scmp.ne.s32.totalorder %s1556_s13, %s1552_s12  ;;  %s1572_s17 = sphi %s1612_s17, %s17_s17   ;;  %s1568_s16 = sphi %s1610_s16, %s2174_s16   ;;  %s1564_s15 = sphi %s1608_s15, %s2173_s15   ;;  %s1560_s14 = sphi %s1606_s14, %s2172_s14   ;;  %s1556_s13 = sphi %s1604_s13, %s2171_s13   ;;  %s1552_s12 = sphi %s1602_s12, %s2170_s12  }
   0x6   : > { %p1632_p1 = scmp.eq.s32.totalorder %s1275_s18, 0  ;;  %p1277_p2 = scmp.ge.s32.totalorder %s1572_s17, 1 }
   0x7   : > { %p151_p3 = scmp.lt.s32.totalorder %s1572_s17, 3  ;;  %s1574_s22 = smov [#allocation5]  }
   0x8   : > { %s2162_s19 = scalar_select %p1632_p1, 1, 0 }
   0x9   : > { %p1640_p4 = por %p1632_p1, %p58_p0  ;;  %p1644_p5 = pnand %p1277_p2, %p151_p3 }
   0xa   : > { %s169_s23 = sshll.u32 %s1574_s22, 4  ;;  %s1575_s25 = smov [#allocation7]   ;;  %s170_s23 = int_to_ptr.vmem [resolvable:$true] %s169_s23 }
   0xb   : > { %s2163_s20 = scalar_select %p1640_p4, 1, 0 }
   0xc   : > { %s2164_s21 = scalar_select %p1644_p5, 1, 0 }
   0xd   : > { %p1361_p6 = pneg %p1644_p5  ;;  %s186_s26 = sshll.u32 %s1575_s25, 4  ;;  %s1656_s26 = int_to_ptr.vmem [resolvable:$true] %s186_s26 }
   0xe   : > { %s1432_s29 = scalar_lea.hbm %s2155_s1, 2048 }
   0xf   : > { %p1652_p7 = pnand %p1361_p6, %p1632_p1  ;;  %p1433_p8 = scmp.ne.s32.totalorder %s2155_s1, %s1432_s29 }
  0x10   : > { %p1439_p12 = scmp.lt.u32.totalorder %s1432_s29, %s2155_s1 }
  0x11   : > { %p1434_p9 = pneg %p1652_p7 }
  0x13   : > { %p1435_p10 = pnand %p1434_p9, %p1433_p8 }
  0x15   : > { %p1436_p11 = pneg %p1435_p10 }
  0x17   : > { %p1441_p13 = pnand %p1439_p12, %p1436_p11 }
  0x19   : > { %1444 = shalt.err (!%p1441_p13)
}
  0x1a   : > { %s1445_s7 = scalar_lea.vmem %s170_s23, 2048  ;;  %p1453_p6 = scmp.lt.s32.totalorder %s170_s23, %s170_s23 }
  0x1b   : > { %p1446_p0 = scmp.ne.s32.totalorder %s170_s23, %s1445_s7  ;;  %p1454_p1 = scmp.lt.s32.totalorder %s1445_s7, %s1445_s7 }
  0x1d   : > { %p1448_p2 = pnand %p1446_p0, %p1434_p9  ;;  %p1455_p4 = por %p1454_p1, %p1453_p6 }
  0x1f   : > { %p1449_p3 = pneg %p1448_p2 }
  0x21   : > { %p1456_p5 = pnand %p1455_p4, %p1449_p3 }
  0x23   : > { %1459 = shalt.err (!%p1456_p5)
}
  0x24   : > { %s1576_s8 = smov 256   ;;  %s1577_s9 = smov 16  }
  0x25   : > { %1364 = dma.hbm_to_vmem [thread:$0]  (!%p1652_p7), %s2155_s1, 2048, %s170_s23, [#allocation6], %s1576_s8, %s1576_s8, %s1577_s9  }
  0x26   : > { %s1460_s22 = scalar_lea.hbm %s2156_s2, 32 }
  0x27   : > { %p1461_p8 = scmp.ne.s32.totalorder %s2156_s2, %s1460_s22  ;;  %p1467_p5 = scmp.lt.u32.totalorder %s1460_s22, %s2156_s2 }
  0x29   : > { %p1463_p1 = pnand %p1461_p8, %p1434_p9 }
  0x2b   : > { %p1464_p4 = pneg %p1463_p1 }
  0x2d   : > { %p1469_p10 = pnand %p1467_p5, %p1464_p4 }
  0x2f   : > { %1472 = shalt.err (!%p1469_p10)
}
  0x30   : > { %s1473_s23 = scalar_lea.vmem %s1656_s26, 32  ;;  %p1481_p0 = scmp.lt.s32.totalorder %s1656_s26, %s1656_s26 }
  0x31   : > { %p1474_p11 = scmp.ne.s32.totalorder %s1656_s26, %s1473_s23  ;;  %p1482_p2 = scmp.lt.s32.totalorder %s1473_s23, %s1473_s23 }
  0x33   : > { %p1476_p12 = pnand %p1474_p11, %p1434_p9  ;;  %p1483_p3 = por %p1482_p2, %p1481_p0 }
  0x35   : > { %p1477_p13 = pneg %p1476_p12 }
  0x37   : > { %p1484_p6 = pnand %p1483_p3, %p1477_p13 }
  0x39   : > { %1487 = shalt.err (!%p1484_p6)
}
  0x3a   : > { %1367 = dma.hbm_to_vmem [thread:$0]  (!%p1652_p7), %s2156_s2, 32, %s1656_s26, [#allocation6]  }
  0x3b   : > { %s36_s5 = sadd.s32 1, %s1568_s16  ;;  %s45_s6 = sadd.s32 1, %s1560_s14 }
  0x3c   : > { %p38_p9 = scmp.ge.s32.totalorder %s36_s5, 2  ;;  %p52_p8 = scmp.ne.s32.totalorder %s1560_s14, %s1556_s13 }
  0x3d   : > { %p53_p1 = scmp.eq.s32.totalorder %s1572_s17, 0  ;;  %p1374_p4 = scmp.lt.s32.totalorder %s1572_s17, 2 }
  0x3e   : > { %s2176_s5 = smov (%p38_p9, %s36_s5), 0  ;;  %s197_s24 = sand.u32 1, %s1560_s14  }
  0x3f   : > { %p54_p5 = por %p53_p1, %p52_p8  ;;  %s40_s7 = ssub.s32 %s1568_s16, %s2176_s5 }
  0x40   : > { %p43_p10 = scmp.eq.s32.totalorder %s40_s7, 0  ;;  %s1281_s8 = sshll.u32 %s197_s24, 8 }
  0x41   : > { %s1325_s9 = sshll.u32 %s1568_s16, 12  ;;  %s201_s18 = scalar_lea.vmem [#allocation3], %s1281_s8 }
  0x42   : > { %s1718_s10 = scalar_select %p43_p10, %s1560_s14, %s45_s6  }
  0x43   : > { %s1723_s12 = scalar_lea.hbm %s2154_s0, %s1325_s9  ;;  %s209_s22 = sshll.u32 %s201_s18, 4  ;;  %s1725_s22 = int_to_ptr.vmem [resolvable:$true] %s209_s22 }
  0x44   : > { %p1729_p7 = pnand %p1374_p4, %p54_p5  ;;  %s1733_s27 = scalar_lea.sflag [#allocation4], %s197_s24 }
  0x45   : > { %s1488_s28 = scalar_lea.hbm %s1723_s12, 4096  ;;  %s1493_s30 = scalar_lea.hbm %s2154_s0, 8192 }
  0x46   : > { %p1489_p11 = scmp.ne.s32.totalorder %s1723_s12, %s1488_s28  ;;  %p1490_p12 = pneg %p1729_p7 }
  0x47   : > { %p1494_p2 = scmp.lt.u32.totalorder %s1723_s12, %s2154_s0  ;;  %p1495_p3 = scmp.lt.u32.totalorder %s1493_s30, %s1488_s28 }
  0x48   : > { %p1491_p13 = pnand %p1490_p12, %p1489_p11  ;;  %p1497_p9 = scmp.lt.u32.totalorder %s1488_s28, %s1723_s12 }
  0x49   : > { %p1496_p6 = por %p1495_p3, %p1494_p2 }
  0x4a   : > { %p1492_p0 = pneg %p1491_p13 }
  0x4b   : > { %p1498_p8 = por %p1497_p9, %p1496_p6 }
  0x4d   : > { %p1499_p1 = pnand %p1498_p8, %p1492_p0 }
  0x4f   : > { %1502 = shalt.err (!%p1499_p1)
}
  0x50   : > { %s1503_s24 = scalar_lea.vmem %s1725_s22, 4096  ;;  %s1578_s7 = smov [#allocation3]  }
  0x51   : > { %p1504_p4 = scmp.ne.s32.totalorder %s1725_s22, %s1503_s24  ;;  %s1508_s8 = sshll.u32 %s1578_s7, 4  ;;  %s1509_s8 = int_to_ptr.vmem [resolvable:$false] %s1508_s8 }
  0x52   : > { %s1510_s9 = scalar_lea.vmem %s1509_s8, 8192  ;;  %p1511_p11 = scmp.lt.s32.totalorder %s1725_s22, %s1509_s8 }
  0x53   : > { %p1506_p5 = pnand %p1504_p4, %p1490_p12  ;;  %p1512_p13 = scmp.lt.s32.totalorder %s1510_s9, %s1503_s24 }
  0x55   : > { %p1507_p10 = pneg %p1506_p5  ;;  %p1513_p2 = por %p1512_p13, %p1511_p11 }
  0x57   : > { %p1514_p3 = pnand %p1513_p2, %p1507_p10 }
  0x59   : > { %1517 = shalt.err (!%p1514_p3)
}
  0x5a   : > { %s1579_s11 = smov 128   ;;  %s1580_s26 = smov 8  }
  0x5b   : > { %1371 = dma.hbm_to_vmem [thread:$0]  (!%p1729_p7), %s1723_s12, 4096, %s1725_s22, %s1733_s27, %s1579_s11, %s1579_s11, %s1580_s26  }
  0x5c   : > { %p2167_p12 = scmp.ne.s32.totalorder %s2164_s21, 0 }
  0x5d   : > { %s223_s18 = sand.u32 (!%p2167_p12), 1, %s1556_s13   ;;  %p2168_p0 = scmp.ne.s32.totalorder (!%p2167_p12), %s2163_s20, 0 }
  0x5e   : > { %221 = sbr.rel (%p2167_p12) target bundleno = 411 (0x19b), region = 32  ;;  %s1285_s28 = sshll.u32 (!%p2167_p12), %s223_s18, 8 }
  0x5f   : > { %s224_s29 = scalar_lea.sflag (!%p2167_p12), [#allocation4], %s223_s18  ;;  %s1764_s23 = scalar_lea.vmem (!%p2167_p12), [#allocation3], %s1285_s28 }
  0x65   : > { %1543 = dma.done.wait (%p2168_p0), %s224_s29, 4096  }
  0x66   : > { %1545 = vsyncadd (%p2168_p0), %s224_s29, 4294963200  ;;  %p2169_p6 = scmp.ne.s32.totalorder %s2162_s19, 0 }
  0x68   : > { %1547 = dma.done.wait (%p2169_p6), [#allocation6], 2080  }
  0x69   : > { %1549 = vsyncadd (%p2169_p6), [#allocation6], 4294965216  ;;  %vm284_vm0 = vcmask 523264   ;;  %v1581_v0 = vmov 0.0   ;;  %v445_v1 = vld [vmem:[#allocation5 + $0x8] sm:$0xff]  ;;  %v447_v2 = vld [vmem:[#allocation5 + $0x18] sm:$0xff]  ;;  %v1011_v57 = vlaneseq }
  0x6a   : > { %621 = vmatprep.mubr.f32.mxu0 %v1581_v0  ;;  %717 = vmatprep.mubr.f32.mxu1 %v1581_v0  ;;  %285 = vst.msk [vmem:[#allocation2 + $0x8] sm:$0xff] %vm284_vm0, %v1581_v0  ;;  %287 = vst.msk [vmem:[#allocation2 + $0x18] sm:$0xff] %vm284_vm0, %v1581_v0  ;;  %v444_v3 = vld [vmem:[#allocation5] sm:$0xff]  ;;  %v1327_v4 = vpack.c.bf16 %v447_v2, %v445_v1  ;;  %v446_v5 = vld [vmem:[#allocation5 + $0x10] sm:$0xff]  ;;  %s1288_s19 = sshll.u32 %s1564_s15, 5 }
  0x6b   : > { %289 = vst.msk [vmem:[#allocation2 + $0x28] sm:$0xff] %vm284_vm0, %v1581_v0  ;;  %291 = vst.msk [vmem:[#allocation2 + $0x38] sm:$0xff] %vm284_vm0, %v1581_v0  ;;  %v449_v6 = vld [vmem:[#allocation5 + $0x28] sm:$0xff]  ;;  %v451_v7 = vld [vmem:[#allocation5 + $0x38] sm:$0xff]  ;;  %v1329_v8 = vpack.c.bf16 %v446_v5, %v444_v3  ;;  %p269_p7 = scmp.lt.s32.totalorder %s1288_s19, 63  ;;  %v1012_v58 = vshrl.u32 %v1011_v57, 7 }
  0x6c   : > { %293 = vst.msk [vmem:[#allocation2 + $0x48] sm:$0xff] %vm284_vm0, %v1581_v0  ;;  %295 = vst.msk [vmem:[#allocation2 + $0x58] sm:$0xff] %vm284_vm0, %v1581_v0  ;;  %v1331_v9 = vpack.c.bf16 %v451_v7, %v449_v6  ;;  %v448_v10 = vld [vmem:[#allocation5 + $0x20] sm:$0xff]  ;;  %v450_v11 = vld [vmem:[#allocation5 + $0x30] sm:$0xff]  ;;  %1328 = vmatprep.subr.bf16.mxu0 %v1327_v4  ;;  %1343 = vmatprep.subr.bf16.mxu1 %v1327_v4 }
  0x6d   : > { %297 = vst.msk [vmem:[#allocation2 + $0x68] sm:$0xff] %vm284_vm0, %v1581_v0  ;;  %299 = vst.msk [vmem:[#allocation2 + $0x78] sm:$0xff] %vm284_vm0, %v1581_v0  ;;  %v453_v12 = vld [vmem:[#allocation5 + $0x48] sm:$0xff]  ;;  %v455_v13 = vld [vmem:[#allocation5 + $0x58] sm:$0xff]  ;;  %1330 = vmatpush1.bf16.msra.mxu0 %v1329_v8  ;;  %1347 = vmatpush1.bf16.msra.mxu1 %v1329_v8  ;;  %v1333_v14 = vpack.c.bf16 %v450_v11, %v448_v10  ;;  %s2178_s19 = smov (!%p269_p7, %s1288_s19), 63  ;;  %v1013_v59 = vsub.s32 0, %v1012_v58 }
  0x6e   : > { %301 = vst.msk [vmem:[#allocation2 + $0x88] sm:$0xff] %vm284_vm0, %v1581_v0  ;;  %303 = vst.msk [vmem:[#allocation2 + $0x98] sm:$0xff] %vm284_vm0, %v1581_v0  ;;  %1332 = vmatprep.subr.bf16.mxu0 %v1331_v9  ;;  %1344 = vmatprep.subr.bf16.mxu1 %v1331_v9  ;;  %v1335_v15 = vpack.c.bf16 %v455_v13, %v453_v12  ;;  %v452_v16 = vld [vmem:[#allocation5 + $0x40] sm:$0xff]  ;;  %v454_v17 = vld [vmem:[#allocation5 + $0x50] sm:$0xff]  ;;  %s1326_s20 = sshll.u32 %s2178_s19, 4  ;;  %v1017_v10 = vsub.s32 1, %v1012_v58 }
  0x6f   : > { %305 = vst.msk [vmem:[#allocation2 + $0xa8] sm:$0xff] %vm284_vm0, %v1581_v0  ;;  %307 = vst.msk [vmem:[#allocation2 + $0xb8] sm:$0xff] %vm284_vm0, %v1581_v0  ;;  %v457_v18 = vld [vmem:[#allocation5 + $0x68] sm:$0xff]  ;;  %v459_v19 = vld [vmem:[#allocation5 + $0x78] sm:$0xff]  ;;  %v1337_v20 = vpack.c.bf16 %v454_v17, %v452_v16  ;;  %s1940_s22 = scalar_lea.vmem %s2157_s3, %s1326_s20 }
  0x70   : > { %309 = vst.msk [vmem:[#allocation2 + $0xc8] sm:$0xff] %vm284_vm0, %v1581_v0  ;;  %311 = vst.msk [vmem:[#allocation2 + $0xd8] sm:$0xff] %vm284_vm0, %v1581_v0  ;;  %v1339_v21 = vpack.c.bf16 %v459_v19, %v457_v18  ;;  %v456_v22 = vld [vmem:[#allocation5 + $0x60] sm:$0xff]  ;;  %v458_v23 = vld [vmem:[#allocation5 + $0x70] sm:$0xff] }
  0x71   : > { %313 = vst.msk [vmem:[#allocation2 + $0xe8] sm:$0xff] %vm284_vm0, %v1581_v0  ;;  %315 = vst.msk [vmem:[#allocation2 + $0xf8] sm:$0xff] %vm284_vm0, %v1581_v0  ;;  %1334 = vmatpush1.bf16.msra.mxu0 %v1333_v14  ;;  %1348 = vmatpush1.bf16.msra.mxu1 %v1333_v14  ;;  %v1341_v24 = vpack.c.bf16 %v458_v23, %v456_v22  ;;  %v412_v25 = vld [vmem:[%s1764_s23] sm:$0xff]  ;;  %v413_v27 = vld [vmem:[%s1764_s23 + $0x8] sm:$0xff] }
  0x72   : > { %317 = vst.msk [vmem:[#allocation2 + $0x108] sm:$0xff] %vm284_vm0, %v1581_v0  ;;  %319 = vst.msk [vmem:[#allocation2 + $0x118] sm:$0xff] %vm284_vm0, %v1581_v0  ;;  %1336 = vmatprep.subr.bf16.mxu0 %v1335_v15  ;;  %1345 = vmatprep.subr.bf16.mxu1 %v1335_v15  ;;  %v428_v26 = vld [vmem:[%s1764_s23 + $0x80] sm:$0xff]  ;;  %v429_v28 = vld [vmem:[%s1764_s23 + $0x88] sm:$0xff] }
  0x73   : > { %321 = vst.msk [vmem:[#allocation2 + $0x128] sm:$0xff] %vm284_vm0, %v1581_v0  ;;  %323 = vst.msk [vmem:[#allocation2 + $0x138] sm:$0xff] %vm284_vm0, %v1581_v0  ;;  %v414_v29 = vld [vmem:[%s1764_s23 + $0x10] sm:$0xff]  ;;  %v415_v31 = vld [vmem:[%s1764_s23 + $0x18] sm:$0xff] }
  0x74   : > { %325 = vst.msk [vmem:[#allocation2 + $0x148] sm:$0xff] %vm284_vm0, %v1581_v0  ;;  %327 = vst.msk [vmem:[#allocation2 + $0x158] sm:$0xff] %vm284_vm0, %v1581_v0  ;;  %v430_v30 = vld [vmem:[%s1764_s23 + $0x90] sm:$0xff]  ;;  %v431_v32 = vld [vmem:[%s1764_s23 + $0x98] sm:$0xff] }
  0x75   : > { %329 = vst.msk [vmem:[#allocation2 + $0x168] sm:$0xff] %vm284_vm0, %v1581_v0  ;;  %331 = vst.msk [vmem:[#allocation2 + $0x178] sm:$0xff] %vm284_vm0, %v1581_v0  ;;  %1338 = vmatpush1.bf16.msra.mxu0 %v1337_v20  ;;  %1349 = vmatpush1.bf16.msra.mxu1 %v1337_v20  ;;  %v416_v33 = vld [vmem:[%s1764_s23 + $0x20] sm:$0xff]  ;;  %v417_v35 = vld [vmem:[%s1764_s23 + $0x28] sm:$0xff] }
  0x76   : > { %333 = vst.msk [vmem:[#allocation2 + $0x188] sm:$0xff] %vm284_vm0, %v1581_v0  ;;  %335 = vst.msk [vmem:[#allocation2 + $0x198] sm:$0xff] %vm284_vm0, %v1581_v0  ;;  %1340 = vmatprep.subr.bf16.mxu0 %v1339_v21  ;;  %1346 = vmatprep.subr.bf16.mxu1 %v1339_v21  ;;  %v432_v34 = vld [vmem:[%s1764_s23 + $0xa0] sm:$0xff]  ;;  %v433_v36 = vld [vmem:[%s1764_s23 + $0xa8] sm:$0xff] }
  0x77   : > { %337 = vst.msk [vmem:[#allocation2 + $0x1a8] sm:$0xff] %vm284_vm0, %v1581_v0  ;;  %339 = vst.msk [vmem:[#allocation2 + $0x1b8] sm:$0xff] %vm284_vm0, %v1581_v0  ;;  %v418_v37 = vld [vmem:[%s1764_s23 + $0x30] sm:$0xff]  ;;  %v419_v39 = vld [vmem:[%s1764_s23 + $0x38] sm:$0xff] }
  0x78   : > { %341 = vst.msk [vmem:[#allocation2 + $0x1c8] sm:$0xff] %vm284_vm0, %v1581_v0  ;;  %343 = vst.msk [vmem:[#allocation2 + $0x1d8] sm:$0xff] %vm284_vm0, %v1581_v0  ;;  %v434_v38 = vld [vmem:[%s1764_s23 + $0xb0] sm:$0xff]  ;;  %v435_v40 = vld [vmem:[%s1764_s23 + $0xb8] sm:$0xff] }
  0x79   : > { %345 = vst.msk [vmem:[#allocation2 + $0x1e8] sm:$0xff] %vm284_vm0, %v1581_v0  ;;  %347 = vst.msk [vmem:[#allocation2 + $0x1f8] sm:$0xff] %vm284_vm0, %v1581_v0  ;;  %1342 = vmatpush1.bf16.msra.mxu0 %v1341_v24  ;;  %1350 = vmatpush1.bf16.msra.mxu1 %v1341_v24  ;;  %v420_v41 = vld [vmem:[%s1764_s23 + $0x40] sm:$0xff]  ;;  %v421_v43 = vld [vmem:[%s1764_s23 + $0x48] sm:$0xff] }
  0x7a   : > { %v436_v42 = vld [vmem:[%s1764_s23 + $0xc0] sm:$0xff]  ;;  %v437_v44 = vld [vmem:[%s1764_s23 + $0xc8] sm:$0xff]  ;;  %v422_v45 = vld [vmem:[%s1764_s23 + $0x50] sm:$0xff] }
  0x7b   : > { %v438_v46 = vld [vmem:[%s1764_s23 + $0xd0] sm:$0xff]  ;;  %v423_v47 = vld [vmem:[%s1764_s23 + $0x58] sm:$0xff]  ;;  %v424_v49 = vld [vmem:[%s1764_s23 + $0x60] sm:$0xff] }
  0x7c   : > { %1291 = vmatmul.mubr.msk.f32.vlgmr.msra.gmra.mrb[0].mxu0 %vm284_vm0, %v412_v25  ;;  %1307 = vmatmul.mubr.msk.f32.vlgmr.msra.gmra.mrb[0].mxu1 %vm284_vm0, %v428_v26  ;;  %v439_v48 = vld [vmem:[%s1764_s23 + $0xd8] sm:$0xff]  ;;  %v440_v50 = vld [vmem:[%s1764_s23 + $0xe0] sm:$0xff]  ;;  %v425_v51 = vld [vmem:[%s1764_s23 + $0x68] sm:$0xff] }
  0x7d   : > { %627 = vmatprep.mubr.f32.mxu0 %v1581_v0  ;;  %723 = vmatprep.mubr.f32.mxu1 %v1581_v0  ;;  %v441_v52 = vld [vmem:[%s1764_s23 + $0xe8] sm:$0xff]  ;;  %v426_v53 = vld [vmem:[%s1764_s23 + $0x70] sm:$0xff]  ;;  %v427_v55 = vld [vmem:[%s1764_s23 + $0x78] sm:$0xff] }
  0x7e   : > { %v442_v54 = vld [vmem:[%s1764_s23 + $0xf0] sm:$0xff]  ;;  %v443_v56 = vld [vmem:[%s1764_s23 + $0xf8] sm:$0xff]  ;;  %v1009_v60 = vld [vmem:[#allocation7] sm:$0x3] }
  0x7f   : > { %v1935_v61 = vrot.slane %v1009_v60, %v1013_v59  ;;  %v349_v62 = vld [vmem:[#allocation2 + $0x8] sm:$0xff]  ;;  %v351_v8 = vld [vmem:[#allocation2 + $0x18] sm:$0xff]  ;;  %v1950_v21 = vrot.slane %v1009_v60, %v1017_v10 }
  0x80   : > { %1292 = vmatmul.mubr.msk.f32.gmra.mrb[2].mxu0 %vm284_vm0, %v413_v27  ;;  %1308 = vmatmul.mubr.msk.f32.gmra.mrb[2].mxu1 %vm284_vm0, %v429_v28  ;;  %v381_v63 = vld [vmem:[#allocation2 + $0x108] sm:$0xff]  ;;  %v383_v9 = vld [vmem:[#allocation2 + $0x118] sm:$0xff] }
  0x81   : > { %633 = vmatprep.mubr.f32.mxu0 %v1581_v0  ;;  %729 = vmatprep.mubr.f32.mxu1 %v1581_v0  ;;  %v353_v19 = vld [vmem:[#allocation2 + $0x28] sm:$0xff]  ;;  %v355_v28 = vld [vmem:[#allocation2 + $0x38] sm:$0xff] }
  0x82   : > { %v385_v20 = vld [vmem:[#allocation2 + $0x128] sm:$0xff] }
  0x84   : > { %1293 = vmatmul.mubr.msk.f32.gmra.mrb[4].mxu0 %vm284_vm0, %v414_v29  ;;  %1309 = vmatmul.mubr.msk.f32.gmra.mrb[4].mxu1 %vm284_vm0, %v430_v30 }
  0x85   : > { %639 = vmatprep.mubr.f32.mxu0 %v1581_v0  ;;  %735 = vmatprep.mubr.f32.mxu1 %v1581_v0 }
  0x88   : > { %1294 = vmatmul.mubr.msk.f32.gmra.mrb[6].mxu0 %vm284_vm0, %v415_v31  ;;  %1310 = vmatmul.mubr.msk.f32.gmra.mrb[6].mxu1 %vm284_vm0, %v431_v32 }
  0x89   : > { %645 = vmatprep.mubr.f32.mxu0 %v1581_v0  ;;  %741 = vmatprep.mubr.f32.mxu1 %v1581_v0 }
  0x8c   : > { %1295 = vmatmul.mubr.msk.f32.gmra.mrb[8].mxu0 %vm284_vm0, %v416_v33  ;;  %1311 = vmatmul.mubr.msk.f32.gmra.mrb[8].mxu1 %vm284_vm0, %v432_v34  ;;  %v387_v33 = vld [vmem:[#allocation2 + $0x138] sm:$0xff] }
  0x8d   : > { %651 = vmatprep.mubr.f32.mxu0 %v1581_v0  ;;  %747 = vmatprep.mubr.f32.mxu1 %v1581_v0 }
  0x90   : > { %1296 = vmatmul.mubr.msk.f32.gmra.mrb[10].mxu0 %vm284_vm0, %v417_v35  ;;  %1312 = vmatmul.mubr.msk.f32.gmra.mrb[10].mxu1 %vm284_vm0, %v433_v36 }
  0x91   : > { %657 = vmatprep.mubr.f32.mxu0 %v1581_v0  ;;  %753 = vmatprep.mubr.f32.mxu1 %v1581_v0 }
  0x94   : > { %1297 = vmatmul.mubr.msk.f32.gmra.mrb[12].mxu0 %vm284_vm0, %v418_v37  ;;  %1313 = vmatmul.mubr.msk.f32.gmra.mrb[12].mxu1 %vm284_vm0, %v434_v38 }
  0x95   : > { %663 = vmatprep.mubr.f32.mxu0 %v1581_v0  ;;  %759 = vmatprep.mubr.f32.mxu1 %v1581_v0 }
  0x98   : > { %1298 = vmatmul.mubr.msk.f32.gmra.mrb[14].mxu0 %vm284_vm0, %v419_v39  ;;  %1314 = vmatmul.mubr.msk.f32.gmra.mrb[14].mxu1 %vm284_vm0, %v435_v40 }
  0x99   : > { %669 = vmatprep.mubr.f32.mxu0 %v1581_v0  ;;  %765 = vmatprep.mubr.f32.mxu1 %v1581_v0 }
  0x9c   : > { %1299 = vmatmul.mubr.msk.f32.gmra.mrb[16].mxu0 %vm284_vm0, %v420_v41  ;;  %1315 = vmatmul.mubr.msk.f32.gmra.mrb[16].mxu1 %vm284_vm0, %v436_v42  ;;  %v357_v42 = vld [vmem:[#allocation2 + $0x48] sm:$0xff] }
  0x9d   : > { %675 = vmatprep.mubr.f32.mxu0 %v1581_v0  ;;  %771 = vmatprep.mubr.f32.mxu1 %v1581_v0 }
  0xa0   : > { %1300 = vmatmul.mubr.msk.f32.gmra.mrb[18].mxu0 %vm284_vm0, %v421_v43  ;;  %1316 = vmatmul.mubr.msk.f32.gmra.mrb[18].mxu1 %vm284_vm0, %v437_v44 }
  0xa1   : > { %681 = vmatprep.mubr.f32.mxu0 %v1581_v0  ;;  %777 = vmatprep.mubr.f32.mxu1 %v1581_v0 }
  0xa4   : > { %1301 = vmatmul.mubr.msk.f32.gmra.mrb[20].mxu0 %vm284_vm0, %v422_v45  ;;  %1317 = vmatmul.mubr.msk.f32.gmra.mrb[20].mxu1 %vm284_vm0, %v438_v46 }
  0xa5   : > { %687 = vmatprep.mubr.f32.mxu0 %v1581_v0  ;;  %783 = vmatprep.mubr.f32.mxu1 %v1581_v0 }
  0xa8   : > { %1302 = vmatmul.mubr.msk.f32.gmra.mrb[22].mxu0 %vm284_vm0, %v423_v47  ;;  %1318 = vmatmul.mubr.msk.f32.gmra.mrb[22].mxu1 %vm284_vm0, %v439_v48  ;;  %v389_v47 = vld [vmem:[#allocation2 + $0x148] sm:$0xff] }
  0xa9   : > { %693 = vmatprep.mubr.f32.mxu0 %v1581_v0  ;;  %789 = vmatprep.mubr.f32.mxu1 %v1581_v0 }
  0xac   : > { %1303 = vmatmul.mubr.msk.f32.gmra.mrb[24].mxu0 %vm284_vm0, %v424_v49  ;;  %1319 = vmatmul.mubr.msk.f32.gmra.mrb[24].mxu1 %vm284_vm0, %v440_v50 }
  0xad   : > { %699 = vmatprep.mubr.f32.mxu0 %v1581_v0  ;;  %795 = vmatprep.mubr.f32.mxu1 %v1581_v0 }
  0xb0   : > { %1304 = vmatmul.mubr.msk.f32.gmra.mrb[26].mxu0 %vm284_vm0, %v425_v51  ;;  %1320 = vmatmul.mubr.msk.f32.gmra.mrb[26].mxu1 %vm284_vm0, %v441_v52 }
  0xb1   : > { %705 = vmatprep.mubr.f32.mxu0 %v1581_v0  ;;  %801 = vmatprep.mubr.f32.mxu1 %v1581_v0 }
  0xb4   : > { %1305 = vmatmul.mubr.msk.f32.gmra.mrb[28].mxu0 %vm284_vm0, %v426_v53  ;;  %1321 = vmatmul.mubr.msk.f32.gmra.mrb[28].mxu1 %vm284_vm0, %v442_v54 }
  0xb5   : > { %711 = vmatprep.mubr.f32.mxu0 %v1581_v0  ;;  %807 = vmatprep.mubr.f32.mxu1 %v1581_v0 }
  0xb8   : > { %1306 = vmatmul.mubr.msk.f32.gmra.mrb[30].mxu0 %vm284_vm0, %v427_v55  ;;  %1322 = vmatmul.mubr.msk.f32.gmra.mrb[30].mxu1 %vm284_vm0, %v443_v56  ;;  %v359_v56 = vld [vmem:[#allocation2 + $0x58] sm:$0xff] }
 0x14f   : > { %v623_v1 = vpop.f32.mrb[0].mxu0  ;;  %v719_v0 = vpop.f32.mrb[0].mxu1 }
 0x150   : > { %v625_v2 = vpop.f32.mrb[1].mxu0  ;;  %v721_v3 = vpop.f32.mrb[1].mxu1  ;;  %v1021_v6 = vadd.f32 %v1935_v61, %v623_v1  ;;  %v1053_v7 = vadd.f32 %v1935_v61, %v719_v0 }
 0x151   : > { %v815_v4 = vadd.f32 %v625_v2, %v349_v62  ;;  %v847_v5 = vadd.f32 %v721_v3, %v381_v63  ;;  %v391_v62 = vld [vmem:[#allocation2 + $0x158] sm:$0xff] }
 0x152   : > { %1085 = vst [vmem:[%s1940_s22] sm:$0xff] %v1021_v6  ;;  %1117 = vst [vmem:[%s1940_s22 + $0x100] sm:$0xff] %v1053_v7  ;;  %v361_v7 = vld [vmem:[#allocation2 + $0x68] sm:$0xff] }
 0x153   : > { %879 = vst.msk [vmem:[#allocation2 + $0x8] sm:$0xff] %vm284_vm0, %v815_v4  ;;  %911 = vst.msk [vmem:[#allocation2 + $0x108] sm:$0xff] %vm284_vm0, %v847_v5  ;;  %v629_v11 = vpop.f32.mrb[2].mxu0  ;;  %v725_v12 = vpop.f32.mrb[2].mxu1 }
 0x154   : > { %v631_v13 = vpop.f32.mrb[3].mxu0  ;;  %v727_v14 = vpop.f32.mrb[3].mxu1  ;;  %v1023_v17 = vadd.f32 %v1935_v61, %v629_v11  ;;  %v1055_v18 = vadd.f32 %v1935_v61, %v725_v12  ;;  %v393_v12 = vld [vmem:[#allocation2 + $0x168] sm:$0xff] }
 0x155   : > { %v817_v15 = vadd.f32 %v631_v13, %v351_v8  ;;  %v849_v16 = vadd.f32 %v727_v14, %v383_v9 }
 0x156   : > { %1087 = vst [vmem:[%s1940_s22 + $0x10] sm:$0xff] %v1023_v17  ;;  %1119 = vst [vmem:[%s1940_s22 + $0x110] sm:$0xff] %v1055_v18 }
 0x157   : > { %881 = vst.msk [vmem:[#allocation2 + $0x18] sm:$0xff] %vm284_vm0, %v817_v15  ;;  %913 = vst.msk [vmem:[#allocation2 + $0x118] sm:$0xff] %vm284_vm0, %v849_v16  ;;  %v635_v22 = vpop.f32.mrb[4].mxu0  ;;  %v731_v23 = vpop.f32.mrb[4].mxu1 }
 0x158   : > { %v637_v24 = vpop.f32.mrb[5].mxu0  ;;  %v733_v25 = vpop.f32.mrb[5].mxu1  ;;  %v1025_v31 = vadd.f32 %v1935_v61, %v635_v22  ;;  %v1057_v32 = vadd.f32 %v1935_v61, %v731_v23  ;;  %v363_v22 = vld [vmem:[#allocation2 + $0x78] sm:$0xff] }
 0x159   : > { %v819_v26 = vadd.f32 %v637_v24, %v353_v19  ;;  %v851_v27 = vadd.f32 %v733_v25, %v385_v20 }
 0x15a   : > { %v946_v29 = vld [vmem:[#allocation2 + $0x8] sm:$0xff]  ;;  %1089 = vst [vmem:[%s1940_s22 + $0x20] sm:$0xff] %v1025_v31  ;;  %1121 = vst [vmem:[%s1940_s22 + $0x120] sm:$0xff] %v1057_v32 }
 0x15b   : > { %v978_v30 = vld [vmem:[#allocation2 + $0x108] sm:$0xff]  ;;  %v1022_v34 = vadd.f32 %v1950_v21, %v946_v29  ;;  %883 = vst.msk [vmem:[#allocation2 + $0x28] sm:$0xff] %vm284_vm0, %v819_v26  ;;  %915 = vst.msk [vmem:[#allocation2 + $0x128] sm:$0xff] %vm284_vm0, %v851_v27  ;;  %v641_v36 = vpop.f32.mrb[6].mxu0  ;;  %v737_v37 = vpop.f32.mrb[6].mxu1  ;;  %v395_v27 = vld [vmem:[#allocation2 + $0x178] sm:$0xff] }
 0x15c   : > { %v1054_v35 = vadd.f32 %v1950_v21, %v978_v30  ;;  %v643_v38 = vpop.f32.mrb[7].mxu0  ;;  %v739_v39 = vpop.f32.mrb[7].mxu1  ;;  %v1027_v45 = vadd.f32 %v1935_v61, %v641_v36  ;;  %v1059_v46 = vadd.f32 %v1935_v61, %v737_v37  ;;  %v365_v36 = vld [vmem:[#allocation2 + $0x88] sm:$0xff] }
 0x15d   : > { %1086 = vst.msk [vmem:[%s1940_s22 + $0x8] sm:$0xff] %vm284_vm0, %v1022_v34  ;;  %v821_v40 = vadd.f32 %v643_v38, %v355_v28  ;;  %v853_v41 = vadd.f32 %v739_v39, %v387_v33 }
 0x15e   : > { %1118 = vst.msk [vmem:[%s1940_s22 + $0x108] sm:$0xff] %vm284_vm0, %v1054_v35  ;;  %v948_v43 = vld [vmem:[#allocation2 + $0x18] sm:$0xff]  ;;  %1091 = vst [vmem:[%s1940_s22 + $0x30] sm:$0xff] %v1027_v45 }
 0x15f   : > { %v980_v44 = vld [vmem:[#allocation2 + $0x118] sm:$0xff]  ;;  %v1024_v48 = vadd.f32 %v1950_v21, %v948_v43  ;;  %885 = vst.msk [vmem:[#allocation2 + $0x38] sm:$0xff] %vm284_vm0, %v821_v40  ;;  %917 = vst.msk [vmem:[#allocation2 + $0x138] sm:$0xff] %vm284_vm0, %v853_v41  ;;  %v647_v50 = vpop.f32.mrb[8].mxu0  ;;  %v743_v51 = vpop.f32.mrb[8].mxu1  ;;  %v397_v41 = vld [vmem:[#allocation2 + $0x188] sm:$0xff] }
 0x160   : > { %v1056_v49 = vadd.f32 %v1950_v21, %v980_v44  ;;  %1123 = vst [vmem:[%s1940_s22 + $0x130] sm:$0xff] %v1059_v46  ;;  %v649_v52 = vpop.f32.mrb[9].mxu0  ;;  %v745_v53 = vpop.f32.mrb[9].mxu1  ;;  %v1029_v59 = vadd.f32 %v1935_v61, %v647_v50  ;;  %v1061_v60 = vadd.f32 %v1935_v61, %v743_v51  ;;  %v367_v50 = vld [vmem:[#allocation2 + $0x98] sm:$0xff] }
 0x161   : > { %1088 = vst.msk [vmem:[%s1940_s22 + $0x18] sm:$0xff] %vm284_vm0, %v1024_v48  ;;  %v823_v54 = vadd.f32 %v649_v52, %v357_v42  ;;  %v855_v55 = vadd.f32 %v745_v53, %v389_v47 }
 0x162   : > { %1120 = vst.msk [vmem:[%s1940_s22 + $0x118] sm:$0xff] %vm284_vm0, %v1056_v49  ;;  %v950_v57 = vld [vmem:[#allocation2 + $0x28] sm:$0xff]  ;;  %1093 = vst [vmem:[%s1940_s22 + $0x40] sm:$0xff] %v1029_v59 }
 0x163   : > { %v982_v58 = vld [vmem:[#allocation2 + $0x128] sm:$0xff]  ;;  %v1026_v63 = vadd.f32 %v1950_v21, %v950_v57  ;;  %887 = vst.msk [vmem:[#allocation2 + $0x48] sm:$0xff] %vm284_vm0, %v823_v54  ;;  %919 = vst.msk [vmem:[#allocation2 + $0x148] sm:$0xff] %vm284_vm0, %v855_v55  ;;  %v653_v0 = vpop.f32.mrb[10].mxu0  ;;  %v749_v2 = vpop.f32.mrb[10].mxu1  ;;  %v399_v55 = vld [vmem:[#allocation2 + $0x198] sm:$0xff] }
 0x164   : > { %v1058_v1 = vadd.f32 %v1950_v21, %v982_v58  ;;  %1125 = vst [vmem:[%s1940_s22 + $0x140] sm:$0xff] %v1061_v60  ;;  %v655_v3 = vpop.f32.mrb[11].mxu0  ;;  %v751_v4 = vpop.f32.mrb[11].mxu1  ;;  %v1031_v10 = vadd.f32 %v1935_v61, %v653_v0  ;;  %v1063_v11 = vadd.f32 %v1935_v61, %v749_v2  ;;  %v369_v0 = vld [vmem:[#allocation2 + $0xa8] sm:$0xff] }
 0x165   : > { %1090 = vst.msk [vmem:[%s1940_s22 + $0x28] sm:$0xff] %vm284_vm0, %v1026_v63  ;;  %v825_v5 = vadd.f32 %v655_v3, %v359_v56  ;;  %v857_v6 = vadd.f32 %v751_v4, %v391_v62 }
 0x166   : > { %1122 = vst.msk [vmem:[%s1940_s22 + $0x128] sm:$0xff] %vm284_vm0, %v1058_v1  ;;  %v952_v8 = vld [vmem:[#allocation2 + $0x38] sm:$0xff]  ;;  %1095 = vst [vmem:[%s1940_s22 + $0x50] sm:$0xff] %v1031_v10 }
 0x167   : > { %v984_v9 = vld [vmem:[#allocation2 + $0x138] sm:$0xff]  ;;  %v1028_v13 = vadd.f32 %v1950_v21, %v952_v8  ;;  %889 = vst.msk [vmem:[#allocation2 + $0x58] sm:$0xff] %vm284_vm0, %v825_v5  ;;  %921 = vst.msk [vmem:[#allocation2 + $0x158] sm:$0xff] %vm284_vm0, %v857_v6  ;;  %v659_v15 = vpop.f32.mrb[12].mxu0  ;;  %v755_v16 = vpop.f32.mrb[12].mxu1  ;;  %v401_v6 = vld [vmem:[#allocation2 + $0x1a8] sm:$0xff] }
 0x168   : > { %v1060_v14 = vadd.f32 %v1950_v21, %v984_v9  ;;  %1127 = vst [vmem:[%s1940_s22 + $0x150] sm:$0xff] %v1063_v11  ;;  %v661_v17 = vpop.f32.mrb[13].mxu0  ;;  %v757_v18 = vpop.f32.mrb[13].mxu1  ;;  %v1033_v25 = vadd.f32 %v1935_v61, %v659_v15  ;;  %v1065_v26 = vadd.f32 %v1935_v61, %v755_v16  ;;  %v371_v15 = vld [vmem:[#allocation2 + $0xb8] sm:$0xff] }
 0x169   : > { %1092 = vst.msk [vmem:[%s1940_s22 + $0x38] sm:$0xff] %vm284_vm0, %v1028_v13  ;;  %v827_v19 = vadd.f32 %v661_v17, %v361_v7  ;;  %v859_v20 = vadd.f32 %v757_v18, %v393_v12 }
 0x16a   : > { %1124 = vst.msk [vmem:[%s1940_s22 + $0x138] sm:$0xff] %vm284_vm0, %v1060_v14  ;;  %v954_v23 = vld [vmem:[#allocation2 + $0x48] sm:$0xff]  ;;  %1097 = vst [vmem:[%s1940_s22 + $0x60] sm:$0xff] %v1033_v25 }
 0x16b   : > { %v986_v24 = vld [vmem:[#allocation2 + $0x148] sm:$0xff]  ;;  %v1030_v28 = vadd.f32 %v1950_v21, %v954_v23  ;;  %891 = vst.msk [vmem:[#allocation2 + $0x68] sm:$0xff] %vm284_vm0, %v827_v19  ;;  %923 = vst.msk [vmem:[#allocation2 + $0x168] sm:$0xff] %vm284_vm0, %v859_v20  ;;  %v665_v30 = vpop.f32.mrb[14].mxu0  ;;  %v761_v31 = vpop.f32.mrb[14].mxu1  ;;  %v403_v20 = vld [vmem:[#allocation2 + $0x1b8] sm:$0xff] }
 0x16c   : > { %v1062_v29 = vadd.f32 %v1950_v21, %v986_v24  ;;  %1129 = vst [vmem:[%s1940_s22 + $0x160] sm:$0xff] %v1065_v26  ;;  %v667_v32 = vpop.f32.mrb[15].mxu0  ;;  %v763_v33 = vpop.f32.mrb[15].mxu1  ;;  %v1035_v39 = vadd.f32 %v1935_v61, %v665_v30  ;;  %v1067_v40 = vadd.f32 %v1935_v61, %v761_v31  ;;  %v373_v30 = vld [vmem:[#allocation2 + $0xc8] sm:$0xff] }
 0x16d   : > { %1094 = vst.msk [vmem:[%s1940_s22 + $0x48] sm:$0xff] %vm284_vm0, %v1030_v28  ;;  %v829_v34 = vadd.f32 %v667_v32, %v363_v22  ;;  %v861_v35 = vadd.f32 %v763_v33, %v395_v27 }
 0x16e   : > { %1126 = vst.msk [vmem:[%s1940_s22 + $0x148] sm:$0xff] %vm284_vm0, %v1062_v29  ;;  %v956_v37 = vld [vmem:[#allocation2 + $0x58] sm:$0xff]  ;;  %1099 = vst [vmem:[%s1940_s22 + $0x70] sm:$0xff] %v1035_v39 }
 0x16f   : > { %v988_v38 = vld [vmem:[#allocation2 + $0x158] sm:$0xff]  ;;  %v1032_v42 = vadd.f32 %v1950_v21, %v956_v37  ;;  %893 = vst.msk [vmem:[#allocation2 + $0x78] sm:$0xff] %vm284_vm0, %v829_v34  ;;  %925 = vst.msk [vmem:[#allocation2 + $0x178] sm:$0xff] %vm284_vm0, %v861_v35  ;;  %v671_v44 = vpop.f32.mrb[16].mxu0  ;;  %v767_v45 = vpop.f32.mrb[16].mxu1  ;;  %v405_v35 = vld [vmem:[#allocation2 + $0x1c8] sm:$0xff] }
 0x170   : > { %v1064_v43 = vadd.f32 %v1950_v21, %v988_v38  ;;  %1131 = vst [vmem:[%s1940_s22 + $0x170] sm:$0xff] %v1067_v40  ;;  %v673_v46 = vpop.f32.mrb[17].mxu0  ;;  %v769_v47 = vpop.f32.mrb[17].mxu1  ;;  %v1037_v53 = vadd.f32 %v1935_v61, %v671_v44  ;;  %v1069_v54 = vadd.f32 %v1935_v61, %v767_v45  ;;  %v375_v44 = vld [vmem:[#allocation2 + $0xd8] sm:$0xff] }
 0x171   : > { %1096 = vst.msk [vmem:[%s1940_s22 + $0x58] sm:$0xff] %vm284_vm0, %v1032_v42  ;;  %v831_v48 = vadd.f32 %v673_v46, %v365_v36  ;;  %v863_v49 = vadd.f32 %v769_v47, %v397_v41 }
 0x172   : > { %1128 = vst.msk [vmem:[%s1940_s22 + $0x158] sm:$0xff] %vm284_vm0, %v1064_v43  ;;  %v958_v51 = vld [vmem:[#allocation2 + $0x68] sm:$0xff]  ;;  %1101 = vst [vmem:[%s1940_s22 + $0x80] sm:$0xff] %v1037_v53 }
 0x173   : > { %v990_v52 = vld [vmem:[#allocation2 + $0x168] sm:$0xff]  ;;  %v1034_v56 = vadd.f32 %v1950_v21, %v958_v51  ;;  %895 = vst.msk [vmem:[#allocation2 + $0x88] sm:$0xff] %vm284_vm0, %v831_v48  ;;  %927 = vst.msk [vmem:[#allocation2 + $0x188] sm:$0xff] %vm284_vm0, %v863_v49  ;;  %v677_v58 = vpop.f32.mrb[18].mxu0  ;;  %v773_v59 = vpop.f32.mrb[18].mxu1  ;;  %v407_v49 = vld [vmem:[#allocation2 + $0x1d8] sm:$0xff] }
 0x174   : > { %v1066_v57 = vadd.f32 %v1950_v21, %v990_v52  ;;  %1133 = vst [vmem:[%s1940_s22 + $0x180] sm:$0xff] %v1069_v54  ;;  %v679_v60 = vpop.f32.mrb[19].mxu0  ;;  %v775_v62 = vpop.f32.mrb[19].mxu1  ;;  %v1039_v4 = vadd.f32 %v1935_v61, %v677_v58  ;;  %v1071_v5 = vadd.f32 %v1935_v61, %v773_v59  ;;  %v377_v58 = vld [vmem:[#allocation2 + $0xe8] sm:$0xff] }
 0x175   : > { %1098 = vst.msk [vmem:[%s1940_s22 + $0x68] sm:$0xff] %vm284_vm0, %v1034_v56  ;;  %v833_v63 = vadd.f32 %v679_v60, %v367_v50  ;;  %v865_v1 = vadd.f32 %v775_v62, %v399_v55 }
 0x176   : > { %1130 = vst.msk [vmem:[%s1940_s22 + $0x168] sm:$0xff] %vm284_vm0, %v1066_v57  ;;  %v960_v2 = vld [vmem:[#allocation2 + $0x78] sm:$0xff]  ;;  %1103 = vst [vmem:[%s1940_s22 + $0x90] sm:$0xff] %v1039_v4 }
 0x177   : > { %v992_v3 = vld [vmem:[#allocation2 + $0x178] sm:$0xff]  ;;  %v1036_v7 = vadd.f32 %v1950_v21, %v960_v2  ;;  %897 = vst.msk [vmem:[#allocation2 + $0x98] sm:$0xff] %vm284_vm0, %v833_v63  ;;  %929 = vst.msk [vmem:[#allocation2 + $0x198] sm:$0xff] %vm284_vm0, %v865_v1  ;;  %v683_v9 = vpop.f32.mrb[20].mxu0  ;;  %v779_v10 = vpop.f32.mrb[20].mxu1  ;;  %v409_v1 = vld [vmem:[#allocation2 + $0x1e8] sm:$0xff] }
 0x178   : > { %v1068_v8 = vadd.f32 %v1950_v21, %v992_v3  ;;  %1135 = vst [vmem:[%s1940_s22 + $0x190] sm:$0xff] %v1071_v5  ;;  %v685_v11 = vpop.f32.mrb[21].mxu0  ;;  %v781_v12 = vpop.f32.mrb[21].mxu1  ;;  %v1041_v18 = vadd.f32 %v1935_v61, %v683_v9  ;;  %v1073_v19 = vadd.f32 %v1935_v61, %v779_v10  ;;  %v379_v9 = vld [vmem:[#allocation2 + $0xf8] sm:$0xff] }
 0x179   : > { %1100 = vst.msk [vmem:[%s1940_s22 + $0x78] sm:$0xff] %vm284_vm0, %v1036_v7  ;;  %v835_v13 = vadd.f32 %v685_v11, %v369_v0  ;;  %v867_v14 = vadd.f32 %v781_v12, %v401_v6 }
 0x17a   : > { %1132 = vst.msk [vmem:[%s1940_s22 + $0x178] sm:$0xff] %vm284_vm0, %v1068_v8  ;;  %v962_v16 = vld [vmem:[#allocation2 + $0x88] sm:$0xff]  ;;  %1105 = vst [vmem:[%s1940_s22 + $0xa0] sm:$0xff] %v1041_v18 }
 0x17b   : > { %v994_v17 = vld [vmem:[#allocation2 + $0x188] sm:$0xff]  ;;  %v1038_v22 = vadd.f32 %v1950_v21, %v962_v16  ;;  %899 = vst.msk [vmem:[#allocation2 + $0xa8] sm:$0xff] %vm284_vm0, %v835_v13  ;;  %931 = vst.msk [vmem:[#allocation2 + $0x1a8] sm:$0xff] %vm284_vm0, %v867_v14  ;;  %v689_v24 = vpop.f32.mrb[22].mxu0  ;;  %v785_v25 = vpop.f32.mrb[22].mxu1  ;;  %v411_v14 = vld [vmem:[#allocation2 + $0x1f8] sm:$0xff] }
 0x17c   : > { %v1070_v23 = vadd.f32 %v1950_v21, %v994_v17  ;;  %1137 = vst [vmem:[%s1940_s22 + $0x1a0] sm:$0xff] %v1073_v19  ;;  %v691_v26 = vpop.f32.mrb[23].mxu0  ;;  %v787_v27 = vpop.f32.mrb[23].mxu1  ;;  %v1043_v33 = vadd.f32 %v1935_v61, %v689_v24  ;;  %v1075_v34 = vadd.f32 %v1935_v61, %v785_v25 }
 0x17d   : > { %1102 = vst.msk [vmem:[%s1940_s22 + $0x88] sm:$0xff] %vm284_vm0, %v1038_v22  ;;  %v837_v28 = vadd.f32 %v691_v26, %v371_v15  ;;  %v869_v29 = vadd.f32 %v787_v27, %v403_v20 }
 0x17e   : > { %1134 = vst.msk [vmem:[%s1940_s22 + $0x188] sm:$0xff] %vm284_vm0, %v1070_v23  ;;  %v964_v31 = vld [vmem:[#allocation2 + $0x98] sm:$0xff]  ;;  %1107 = vst [vmem:[%s1940_s22 + $0xb0] sm:$0xff] %v1043_v33 }
 0x17f   : > { %v996_v32 = vld [vmem:[#allocation2 + $0x198] sm:$0xff]  ;;  %v1040_v36 = vadd.f32 %v1950_v21, %v964_v31  ;;  %901 = vst.msk [vmem:[#allocation2 + $0xb8] sm:$0xff] %vm284_vm0, %v837_v28  ;;  %933 = vst.msk [vmem:[#allocation2 + $0x1b8] sm:$0xff] %vm284_vm0, %v869_v29  ;;  %v695_v38 = vpop.f32.mrb[24].mxu0  ;;  %v791_v39 = vpop.f32.mrb[24].mxu1 }
 0x180   : > { %v1072_v37 = vadd.f32 %v1950_v21, %v996_v32  ;;  %1139 = vst [vmem:[%s1940_s22 + $0x1b0] sm:$0xff] %v1075_v34  ;;  %v697_v40 = vpop.f32.mrb[25].mxu0  ;;  %v793_v41 = vpop.f32.mrb[25].mxu1  ;;  %v1045_v47 = vadd.f32 %v1935_v61, %v695_v38  ;;  %v1077_v48 = vadd.f32 %v1935_v61, %v791_v39 }
 0x181   : > { %1104 = vst.msk [vmem:[%s1940_s22 + $0x98] sm:$0xff] %vm284_vm0, %v1040_v36  ;;  %v839_v42 = vadd.f32 %v697_v40, %v373_v30  ;;  %v871_v43 = vadd.f32 %v793_v41, %v405_v35 }
 0x182   : > { %1136 = vst.msk [vmem:[%s1940_s22 + $0x198] sm:$0xff] %vm284_vm0, %v1072_v37  ;;  %v966_v45 = vld [vmem:[#allocation2 + $0xa8] sm:$0xff]  ;;  %1109 = vst [vmem:[%s1940_s22 + $0xc0] sm:$0xff] %v1045_v47 }
 0x183   : > { %v998_v46 = vld [vmem:[#allocation2 + $0x1a8] sm:$0xff]  ;;  %v1042_v50 = vadd.f32 %v1950_v21, %v966_v45  ;;  %903 = vst.msk [vmem:[#allocation2 + $0xc8] sm:$0xff] %vm284_vm0, %v839_v42  ;;  %935 = vst.msk [vmem:[#allocation2 + $0x1c8] sm:$0xff] %vm284_vm0, %v871_v43  ;;  %v701_v52 = vpop.f32.mrb[26].mxu0  ;;  %v797_v53 = vpop.f32.mrb[26].mxu1 }
 0x184   : > { %v1074_v51 = vadd.f32 %v1950_v21, %v998_v46  ;;  %1141 = vst [vmem:[%s1940_s22 + $0x1c0] sm:$0xff] %v1077_v48  ;;  %v703_v54 = vpop.f32.mrb[27].mxu0  ;;  %v799_v55 = vpop.f32.mrb[27].mxu1  ;;  %v1047_v62 = vadd.f32 %v1935_v61, %v701_v52  ;;  %v1079_v63 = vadd.f32 %v1935_v61, %v797_v53 }
 0x185   : > { %1106 = vst.msk [vmem:[%s1940_s22 + $0xa8] sm:$0xff] %vm284_vm0, %v1042_v50  ;;  %v841_v56 = vadd.f32 %v703_v54, %v375_v44  ;;  %v873_v57 = vadd.f32 %v799_v55, %v407_v49 }
 0x186   : > { %1138 = vst.msk [vmem:[%s1940_s22 + $0x1a8] sm:$0xff] %vm284_vm0, %v1074_v51  ;;  %v968_v59 = vld [vmem:[#allocation2 + $0xb8] sm:$0xff]  ;;  %1111 = vst [vmem:[%s1940_s22 + $0xd0] sm:$0xff] %v1047_v62 }
 0x187   : > { %v1000_v60 = vld [vmem:[#allocation2 + $0x1b8] sm:$0xff]  ;;  %v1044_v0 = vadd.f32 %v1950_v21, %v968_v59  ;;  %905 = vst.msk [vmem:[#allocation2 + $0xd8] sm:$0xff] %vm284_vm0, %v841_v56  ;;  %937 = vst.msk [vmem:[#allocation2 + $0x1d8] sm:$0xff] %vm284_vm0, %v873_v57  ;;  %v707_v3 = vpop.f32.mrb[28].mxu0  ;;  %v803_v4 = vpop.f32.mrb[28].mxu1 }
 0x188   : > { %v1076_v2 = vadd.f32 %v1950_v21, %v1000_v60  ;;  %1143 = vst [vmem:[%s1940_s22 + $0x1d0] sm:$0xff] %v1079_v63  ;;  %v709_v5 = vpop.f32.mrb[29].mxu0  ;;  %v805_v6 = vpop.f32.mrb[29].mxu1  ;;  %v1049_v12 = vadd.f32 %v1935_v61, %v707_v3  ;;  %v1081_v13 = vadd.f32 %v1935_v61, %v803_v4 }
 0x189   : > { %1108 = vst.msk [vmem:[%s1940_s22 + $0xb8] sm:$0xff] %vm284_vm0, %v1044_v0  ;;  %v843_v7 = vadd.f32 %v709_v5, %v377_v58  ;;  %v875_v8 = vadd.f32 %v805_v6, %v409_v1 }
 0x18a   : > { %1140 = vst.msk [vmem:[%s1940_s22 + $0x1b8] sm:$0xff] %vm284_vm0, %v1076_v2  ;;  %v970_v10 = vld [vmem:[#allocation2 + $0xc8] sm:$0xff]  ;;  %1113 = vst [vmem:[%s1940_s22 + $0xe0] sm:$0xff] %v1049_v12 }
 0x18b   : > { %v1002_v11 = vld [vmem:[#allocation2 + $0x1c8] sm:$0xff]  ;;  %v1046_v15 = vadd.f32 %v1950_v21, %v970_v10  ;;  %907 = vst.msk [vmem:[#allocation2 + $0xe8] sm:$0xff] %vm284_vm0, %v843_v7  ;;  %939 = vst.msk [vmem:[#allocation2 + $0x1e8] sm:$0xff] %vm284_vm0, %v875_v8  ;;  %v713_v17 = vpop.f32.mrb[30].mxu0  ;;  %v809_v18 = vpop.f32.mrb[30].mxu1 }
 0x18c   : > { %v1078_v16 = vadd.f32 %v1950_v21, %v1002_v11  ;;  %1145 = vst [vmem:[%s1940_s22 + $0x1e0] sm:$0xff] %v1081_v13  ;;  %v715_v19 = vpop.f32.mrb[31].mxu0  ;;  %v811_v20 = vpop.f32.mrb[31].mxu1  ;;  %v1051_v26 = vadd.f32 %v1935_v61, %v713_v17  ;;  %v1083_v27 = vadd.f32 %v1935_v61, %v809_v18 }
 0x18d   : > { %1110 = vst.msk [vmem:[%s1940_s22 + $0xc8] sm:$0xff] %vm284_vm0, %v1046_v15  ;;  %v845_v22 = vadd.f32 %v715_v19, %v379_v9  ;;  %v877_v23 = vadd.f32 %v811_v20, %v411_v14 }
 0x18e   : > { %1142 = vst.msk [vmem:[%s1940_s22 + $0x1c8] sm:$0xff] %vm284_vm0, %v1078_v16  ;;  %v972_v24 = vld [vmem:[#allocation2 + $0xd8] sm:$0xff]  ;;  %1115 = vst [vmem:[%s1940_s22 + $0xf0] sm:$0xff] %v1051_v26 }
 0x18f   : > { %v1004_v25 = vld [vmem:[#allocation2 + $0x1d8] sm:$0xff]  ;;  %v1048_v28 = vadd.f32 %v1950_v21, %v972_v24  ;;  %909 = vst.msk [vmem:[#allocation2 + $0xf8] sm:$0xff] %vm284_vm0, %v845_v22  ;;  %941 = vst.msk [vmem:[#allocation2 + $0x1f8] sm:$0xff] %vm284_vm0, %v877_v23 }
 0x190   : > { %v1080_v29 = vadd.f32 %v1950_v21, %v1004_v25  ;;  %1147 = vst [vmem:[%s1940_s22 + $0x1f0] sm:$0xff] %v1083_v27 }
 0x191   : > { %1112 = vst.msk [vmem:[%s1940_s22 + $0xd8] sm:$0xff] %vm284_vm0, %v1048_v28 }
 0x192   : > { %1144 = vst.msk [vmem:[%s1940_s22 + $0x1d8] sm:$0xff] %vm284_vm0, %v1080_v29  ;;  %v974_v30 = vld [vmem:[#allocation2 + $0xe8] sm:$0xff] }
 0x193   : > { %v1006_v31 = vld [vmem:[#allocation2 + $0x1e8] sm:$0xff]  ;;  %v1050_v61 = vadd.f32 %v1950_v21, %v974_v30 }
 0x194   : > { %v1082_v32 = vadd.f32 %v1950_v21, %v1006_v31 }
 0x195   : > { %1114 = vst.msk [vmem:[%s1940_s22 + $0xe8] sm:$0xff] %vm284_vm0, %v1050_v61 }
 0x196   : > { %1146 = vst.msk [vmem:[%s1940_s22 + $0x1e8] sm:$0xff] %vm284_vm0, %v1082_v32  ;;  %v976_v33 = vld [vmem:[#allocation2 + $0xf8] sm:$0xff] }
 0x197   : > { %v1008_v34 = vld [vmem:[#allocation2 + $0x1f8] sm:$0xff]  ;;  %v1052_v35 = vadd.f32 %v1950_v21, %v976_v33 }
 0x198   : > { %v1084_v36 = vadd.f32 %v1950_v21, %v1008_v34 }
 0x199   : > { %1116 = vst.msk [vmem:[%s1940_s22 + $0xf8] sm:$0xff] %vm284_vm0, %v1052_v35 }
 0x19a   : > { %1148 = vst.msk [vmem:[%s1940_s22 + $0x1f8] sm:$0xff] %vm284_vm0, %v1084_v36 }
 0x19b PF: > { %s17_s17 = sadd.s32 1, %s1572_s17   ;;  %s2170_s12 = smov %s1556_s13 }
 0x19c   : > { %p14_p9 = scmp.ge.s32.totalorder %s17_s17, 4   ;;  %s2171_s13 = smov %s1560_s14 }
 0x19d   : > { %s2172_s14 = smov %s1718_s10  ;;  %s2173_s15 = smov %s1568_s16 }
 0x19e   : > { %s2174_s16 = smov %s2176_s5  ;;  %16 = sbr.rel (!%p14_p9) target bundleno = 5 (0x5), region = 90 }
 0x1a5   :  { %1182 = vsyncpa [#allocation4], 1 }
 0x1a6   :  { %1184 = vsyncpa [#allocation4 + $0x1], 1 }
 0x1a7   :  { %1185 = vsyncpa [#allocation6], 1 }

// kernel: _lambda_.5
= control target key start
LH: loop header
LB: loop body
LE: loop exit
PB: predicated region body
PF: predicated region fallthrough
CT: control target
= control target key end

     0   :  { %8 = vsyncpa [#allocation4], 0  ;;  %s1703_s0 = inlined_call_operand.vmem [shape: f32[512,64], index: 0, kind: input, shape index: {}]   ;;  %s1704_s1 = inlined_call_operand.vmem [shape: f32[64,64], index: 1, kind: input, shape index: {}]   ;;  %s1705_s2 = inlined_call_operand.vmem [shape: f32[1,64], index: 2, kind: input, shape index: {}]   ;;  %s1706_s3 = inlined_call_operand.hbm [shape: f32[512,64], index: 3, kind: output, shape index: {}]  }
   0x1   :  { %10 = vsyncpa [#allocation4 + $0x1], 0  ;;  %s1314_s12 = smov 0   ;;  %s1316_s13 = smov 0  }
   0x2   :  { %s1318_s14 = smov 0   ;;  %s1320_s15 = smov 0  }
   0x3   :  { %s1322_s16 = smov 0   ;;  %s1324_s17 = smov 0  }
   0x4 LB: > { %s975_s18 = sadd.s32 4294967295, %s1288_s17   ;;  %s976_s19 = sadd.s32 4294967294, %s1288_s17   ;;  %s1288_s17 = sphi %s1324_s17, %s16_s17   ;;  %s1284_s16 = sphi %s1322_s16, %s1714_s16   ;;  %s1280_s15 = sphi %s1320_s15, %s1713_s15   ;;  %s1276_s14 = sphi %s1318_s14, %s1712_s14   ;;  %s1272_s13 = sphi %s1316_s13, %s1711_s13   ;;  %s1268_s12 = sphi %s1314_s12, %s1710_s12  }
   0x5   : > { %s35_s20 = sadd.s32 1, %s1284_s16  ;;  %s126_s21 = sadd.s32 1, %s1276_s14 }
   0x6   : > { %p37_p0 = scmp.ge.s32.totalorder %s35_s20, 2  ;;  %p136_p1 = scmp.ne.s32.totalorder %s1276_s14, %s1272_s13 }
   0x7   : > { %p137_p2 = scmp.eq.s32.totalorder %s975_s18, 1  ;;  %p142_p3 = scmp.ne.s32.totalorder %s1272_s13, %s1268_s12 }
   0x8   : > { %s1716_s20 = smov (%p37_p0, %s35_s20), 0  ;;  %p143_p5 = scmp.eq.s32.totalorder %s976_s19, 1 }
   0x9   : > { %p1354_p4 = por %p137_p2, %p136_p1  ;;  %s121_s23 = ssub.s32 %s1284_s16, %s1716_s20 }
   0xa   : > { %p981_p6 = scmp.ge.s32.totalorder %s1288_s17, 1  ;;  %p124_p7 = scmp.eq.s32.totalorder %s121_s23, 0 }
   0xb   : > { %p1361_p8 = por %p143_p5, %p142_p3  ;;  %p191_p9 = scmp.lt.s32.totalorder %s1288_s17, 3 }
   0xc   : > { %s1367_s25 = scalar_select %p124_p7, %s1276_s14, %s126_s21  }
   0xd   : > { %p192_p10 = pnand %p981_p6, %p191_p9 }
   0xe   : > { %v352_v0 = vld [vmem:[%s1704_s1] sm:$0xff] (!%p192_p10)  ;;  %v353_v1 = vld [vmem:[%s1704_s1 + $0x8] sm:$0xff] (!%p192_p10)  ;;  %v354_v2 = vld [vmem:[%s1704_s1 + $0x10] sm:$0xff] (!%p192_p10)  ;;  %s983_s5 = sshll.u32 (!%p192_p10), %s1280_s15, 5  ;;  %vm255_vm0 = vcmask (!%p192_p10), 523264   ;;  %v1290_v8 = vmov (!%p192_p10), 0.0  }
   0xf   : > { %195 = sbr.rel (%p192_p10) target bundleno = 302 (0x12e), region = 32  ;;  %v1128_v3 = vpack.c.bf16 (!%p192_p10), %v353_v1, %v352_v0  ;;  %v355_v4 = vld [vmem:[%s1704_s1 + $0x18] sm:$0xff] (!%p192_p10)  ;;  %p1384_p11 = scmp.lt.s32.totalorder (!%p192_p10), %s983_s5, 63  ;;  %v356_v6 = vld [vmem:[%s1704_s1 + $0x20] sm:$0xff] (!%p192_p10)  ;;  %v357_v7 = vld [vmem:[%s1704_s1 + $0x28] sm:$0xff] (!%p192_p10)  ;;  %257 = vst.msk [vmem:[#allocation2 + $0x8] sm:$0xff] (!%p192_p10), %vm255_vm0, %v1290_v8 }
  0x10   : > { %v1132_v5 = vpack.c.bf16 (!%p192_p10), %v355_v4, %v354_v2  ;;  %256 = vst.msk [vmem:[#allocation2] sm:$0xff] (!%p192_p10), %vm255_vm0, %v1290_v8  ;;  %258 = vst.msk [vmem:[#allocation2 + $0x10] sm:$0xff] (!%p192_p10), %vm255_vm0, %v1290_v8  ;;  %v1136_v9 = vpack.c.bf16 (!%p192_p10), %v357_v7, %v356_v6  ;;  %v358_v10 = vld [vmem:[%s1704_s1 + $0x30] sm:$0xff] (!%p192_p10)  ;;  %v359_v11 = vld [vmem:[%s1704_s1 + $0x38] sm:$0xff] (!%p192_p10)  ;;  %s226_s4 = sand.u32 (!%p192_p10), 1, %s1272_s13   ;;  %s1023_s9 = sshll.u32 (!%p192_p10), %s1280_s15, 12 }
  0x11   : > { %259 = vst.msk [vmem:[#allocation2 + $0x18] sm:$0xff] (!%p192_p10), %vm255_vm0, %v1290_v8  ;;  %260 = vst.msk [vmem:[#allocation2 + $0x20] sm:$0xff] (!%p192_p10), %vm255_vm0, %v1290_v8  ;;  %1129 = vmatprep.subr.bf16.mxu0 (!%p192_p10), %v1128_v3  ;;  %1144 = vmatprep.subr.bf16.mxu1 (!%p192_p10), %v1128_v3  ;;  %v1140_v14 = vpack.c.bf16 (!%p192_p10), %v359_v11, %v358_v10  ;;  %s1641_s18 = scalar_lea.hbm (!%p192_p10), %s1706_s3, %s1023_s9  ;;  %s1291_s23 = smov (!%p192_p10), [#allocation3]  }
  0x12   : > { %261 = vst.msk [vmem:[#allocation2 + $0x28] sm:$0xff] (!%p192_p10), %vm255_vm0, %v1290_v8  ;;  %262 = vst.msk [vmem:[#allocation2 + $0x30] sm:$0xff] (!%p192_p10), %vm255_vm0, %v1290_v8  ;;  %1131 = vmatpush3.bf16.msra.mxu0 (!%p192_p10), %v1128_v3  ;;  %1148 = vmatpush3.bf16.msra.mxu1 (!%p192_p10), %v1128_v3  ;;  %s1214_s26 = sshll.u32 (!%p192_p10), %s1291_s23, 4  ;;  %s1215_s26 = int_to_ptr.vmem [resolvable:$false] %s1214_s26 }
  0x13   : > { %263 = vst.msk [vmem:[#allocation2 + $0x38] sm:$0xff] (!%p192_p10), %vm255_vm0, %v1290_v8  ;;  %264 = vst.msk [vmem:[#allocation2 + $0x40] sm:$0xff] (!%p192_p10), %vm255_vm0, %v1290_v8  ;;  %1133 = vmatprep.subr.bf16.mxu0 (!%p192_p10), %v1132_v5  ;;  %1145 = vmatprep.subr.bf16.mxu1 (!%p192_p10), %v1132_v5  ;;  %s1216_s27 = scalar_lea.vmem (!%p192_p10), %s1215_s26, 8192 }
  0x14   : > { %265 = vst.msk [vmem:[#allocation2 + $0x48] sm:$0xff] (!%p192_p10), %vm255_vm0, %v1290_v8  ;;  %266 = vst.msk [vmem:[#allocation2 + $0x50] sm:$0xff] (!%p192_p10), %vm255_vm0, %v1290_v8 }
  0x15   : > { %267 = vst.msk [vmem:[#allocation2 + $0x58] sm:$0xff] (!%p192_p10), %vm255_vm0, %v1290_v8  ;;  %268 = vst.msk [vmem:[#allocation2 + $0x60] sm:$0xff] (!%p192_p10), %vm255_vm0, %v1290_v8 }
  0x16   : > { %269 = vst.msk [vmem:[#allocation2 + $0x68] sm:$0xff] %vm255_vm0, %v1290_v8  ;;  %270 = vst.msk [vmem:[#allocation2 + $0x70] sm:$0xff] %vm255_vm0, %v1290_v8  ;;  %s1718_s5 = smov (!%p1384_p11, %s983_s5), 63  ;;  %1135 = vmatpush3.bf16.msra.mxu0 %v1132_v5  ;;  %1149 = vmatpush3.bf16.msra.mxu1 %v1132_v5  ;;  %v289_v45 = vld [vmem:[#allocation2 + $0x8] sm:$0xff] }
  0x17   : > { %271 = vst.msk [vmem:[#allocation2 + $0x78] sm:$0xff] %vm255_vm0, %v1290_v8  ;;  %272 = vst.msk [vmem:[#allocation2 + $0x80] sm:$0xff] %vm255_vm0, %v1290_v8  ;;  %s984_s19 = sshll.u32 %s1718_s5, 3  ;;  %1137 = vmatprep.subr.bf16.mxu0 %v1136_v9  ;;  %1146 = vmatprep.subr.bf16.mxu1 %v1136_v9  ;;  %v288_v47 = vld [vmem:[#allocation2] sm:$0xff]  ;;  %v290_v59 = vld [vmem:[#allocation2 + $0x10] sm:$0xff]  ;;  %s1512_s5 = sshll.u32 %s226_s4, 8 }
  0x18   : > { %273 = vst.msk [vmem:[#allocation2 + $0x88] sm:$0xff] %vm255_vm0, %v1290_v8  ;;  %274 = vst.msk [vmem:[#allocation2 + $0x90] sm:$0xff] %vm255_vm0, %v1290_v8  ;;  %s1439_s30 = scalar_lea.vmem %s1703_s0, %s984_s19  ;;  %v291_v57 = vld [vmem:[#allocation2 + $0x18] sm:$0xff]  ;;  %v292_v7 = vld [vmem:[#allocation2 + $0x20] sm:$0xff]  ;;  %s1532_s8 = scalar_lea.vmem [#allocation3], %s1512_s5 }
  0x19   : > { %275 = vst.msk [vmem:[#allocation2 + $0x98] sm:$0xff] %vm255_vm0, %v1290_v8  ;;  %276 = vst.msk [vmem:[#allocation2 + $0xa0] sm:$0xff] %vm255_vm0, %v1290_v8  ;;  %v320_v12 = vld [vmem:[%s1439_s30] sm:$0xff]  ;;  %v321_v15 = vld [vmem:[%s1439_s30 + $0x8] sm:$0xff]  ;;  %s867_s10 = sshll.u32 %s1532_s8, 4  ;;  %s1657_s19 = scalar_lea.sflag [#allocation4], %s226_s4  ;;  %s1643_s10 = int_to_ptr.vmem [resolvable:$true] %s867_s10 }
  0x1a   : > { %277 = vst.msk [vmem:[#allocation2 + $0xa8] sm:$0xff] %vm255_vm0, %v1290_v8  ;;  %278 = vst.msk [vmem:[#allocation2 + $0xb0] sm:$0xff] %vm255_vm0, %v1290_v8  ;;  %v336_v13 = vld [vmem:[%s1439_s30 + $0x80] sm:$0xff]  ;;  %1080 = vmatprep.mubr.msk.f32.mxu0 %vm255_vm0, %v320_v12  ;;  %1139 = vmatpush3.bf16.msra.mxu0 %v1136_v9  ;;  %v337_v16 = vld [vmem:[%s1439_s30 + $0x88] sm:$0xff]  ;;  %s1210_s21 = scalar_lea.vmem %s1643_s10, 4096  ;;  %p1217_p1 = scmp.lt.s32.totalorder %s1643_s10, %s1215_s26 }
  0x1b   : > { %279 = vst.msk [vmem:[#allocation2 + $0xb8] sm:$0xff] %vm255_vm0, %v1290_v8  ;;  %280 = vst.msk [vmem:[#allocation2 + $0xc0] sm:$0xff] %vm255_vm0, %v1290_v8  ;;  %1104 = vmatprep.mubr.msk.f32.mxu1 %vm255_vm0, %v336_v13  ;;  %1150 = vmatpush3.bf16.msra.mxu1 %v1136_v9  ;;  %v322_v17 = vld [vmem:[%s1439_s30 + $0x10] sm:$0xff]  ;;  %v323_v19 = vld [vmem:[%s1439_s30 + $0x18] sm:$0xff]  ;;  %p1211_p12 = scmp.ne.s32.totalorder %s1643_s10, %s1210_s21  ;;  %p1218_p2 = scmp.lt.s32.totalorder %s1216_s27, %s1210_s21 }
  0x1c   : > { %281 = vst.msk [vmem:[#allocation2 + $0xc8] sm:$0xff] %vm255_vm0, %v1290_v8  ;;  %282 = vst.msk [vmem:[#allocation2 + $0xd0] sm:$0xff] %vm255_vm0, %v1290_v8  ;;  %1141 = vmatprep.subr.bf16.mxu0 %v1140_v14  ;;  %1147 = vmatprep.subr.bf16.mxu1 %v1140_v14  ;;  %v338_v18 = vld [vmem:[%s1439_s30 + $0x90] sm:$0xff]  ;;  %v339_v20 = vld [vmem:[%s1439_s30 + $0x98] sm:$0xff] }
  0x1d   : > { %283 = vst.msk [vmem:[#allocation2 + $0xd8] sm:$0xff] %vm255_vm0, %v1290_v8  ;;  %284 = vst.msk [vmem:[#allocation2 + $0xe0] sm:$0xff] %vm255_vm0, %v1290_v8  ;;  %v324_v21 = vld [vmem:[%s1439_s30 + $0x20] sm:$0xff]  ;;  %v325_v23 = vld [vmem:[%s1439_s30 + $0x28] sm:$0xff]  ;;  %p1212_p13 = pnand %p1211_p12, %p1354_p4  ;;  %p1219_p3 = por %p1218_p2, %p1217_p1 }
  0x1e   : > { %285 = vst.msk [vmem:[#allocation2 + $0xe8] sm:$0xff] %vm255_vm0, %v1290_v8  ;;  %286 = vst.msk [vmem:[#allocation2 + $0xf0] sm:$0xff] %vm255_vm0, %v1290_v8  ;;  %1143 = vmatpush3.bf16.msra.mxu0 %v1140_v14  ;;  %v340_v22 = vld [vmem:[%s1439_s30 + $0xa0] sm:$0xff]  ;;  %v341_v24 = vld [vmem:[%s1439_s30 + $0xa8] sm:$0xff] }
  0x1f   : > { %287 = vst.msk [vmem:[#allocation2 + $0xf8] sm:$0xff] %vm255_vm0, %v1290_v8  ;;  %1151 = vmatpush3.bf16.msra.mxu1 %v1140_v14  ;;  %v326_v25 = vld [vmem:[%s1439_s30 + $0x30] sm:$0xff]  ;;  %v327_v27 = vld [vmem:[%s1439_s30 + $0x38] sm:$0xff]  ;;  %v328_v29 = vld [vmem:[%s1439_s30 + $0x40] sm:$0xff]  ;;  %p1213_p0 = pneg %p1212_p13 }
  0x20   : > { %v342_v26 = vld [vmem:[%s1439_s30 + $0xb0] sm:$0xff]  ;;  %v343_v28 = vld [vmem:[%s1439_s30 + $0xb8] sm:$0xff]  ;;  %v344_v30 = vld [vmem:[%s1439_s30 + $0xc0] sm:$0xff] }
  0x21   : > { %1081 = vmatmul.mubr.msk.f32.vlgmr.msra.gmra.mrb[0].mxu0 %vm255_vm0, %v321_v15  ;;  %v329_v31 = vld [vmem:[%s1439_s30 + $0x48] sm:$0xff]  ;;  %v330_v33 = vld [vmem:[%s1439_s30 + $0x50] sm:$0xff]  ;;  %v331_v35 = vld [vmem:[%s1439_s30 + $0x58] sm:$0xff]  ;;  %p1220_p5 = pnand %p1219_p3, %p1213_p0 }
  0x22   : > { %1105 = vmatmul.mubr.msk.f32.vlgmr.msra.gmra.mrb[0].mxu1 %vm255_vm0, %v337_v16  ;;  %1083 = vmatprep.mubr.msk.f32.mxu0 %vm255_vm0, %v322_v17  ;;  %v345_v32 = vld [vmem:[%s1439_s30 + $0xc8] sm:$0xff]  ;;  %v346_v34 = vld [vmem:[%s1439_s30 + $0xd0] sm:$0xff]  ;;  %v347_v36 = vld [vmem:[%s1439_s30 + $0xd8] sm:$0xff] }
  0x23   : > { %1107 = vmatprep.mubr.msk.f32.mxu1 %vm255_vm0, %v338_v18  ;;  %v332_v37 = vld [vmem:[%s1439_s30 + $0x60] sm:$0xff]  ;;  %v333_v39 = vld [vmem:[%s1439_s30 + $0x68] sm:$0xff]  ;;  %v334_v41 = vld [vmem:[%s1439_s30 + $0x70] sm:$0xff] }
  0x24   : > { %v348_v38 = vld [vmem:[%s1439_s30 + $0xe0] sm:$0xff]  ;;  %v349_v40 = vld [vmem:[%s1439_s30 + $0xe8] sm:$0xff]  ;;  %v350_v42 = vld [vmem:[%s1439_s30 + $0xf0] sm:$0xff] }
  0x25   : > { %1084 = vmatmul.mubr.msk.f32.gmra.mrb[2].mxu0 %vm255_vm0, %v323_v19  ;;  %v335_v43 = vld [vmem:[%s1439_s30 + $0x78] sm:$0xff]  ;;  %v305_v46 = vld [vmem:[#allocation2 + $0x88] sm:$0xff]  ;;  %v304_v48 = vld [vmem:[#allocation2 + $0x80] sm:$0xff] }
  0x26   : > { %1108 = vmatmul.mubr.msk.f32.gmra.mrb[2].mxu1 %vm255_vm0, %v339_v20  ;;  %1086 = vmatprep.mubr.msk.f32.mxu0 %vm255_vm0, %v324_v21  ;;  %v351_v44 = vld [vmem:[%s1439_s30 + $0xf8] sm:$0xff]  ;;  %v306_v60 = vld [vmem:[#allocation2 + $0x90] sm:$0xff]  ;;  %v293_v5 = vld [vmem:[#allocation2 + $0x28] sm:$0xff] }
  0x27   : > { %1110 = vmatprep.mubr.msk.f32.mxu1 %vm255_vm0, %v340_v22  ;;  %v307_v58 = vld [vmem:[#allocation2 + $0x98] sm:$0xff]  ;;  %v309_v6 = vld [vmem:[#allocation2 + $0xa8] sm:$0xff]  ;;  %v308_v8 = vld [vmem:[#allocation2 + $0xa0] sm:$0xff] }
  0x28   : > { %v1519_v9 = vld [vmem:[%s1705_s2] ss:$0 sm:$0xff]  ;;  %v295_v16 = vld [vmem:[#allocation2 + $0x38] sm:$0xff]  ;;  %v294_v22 = vld [vmem:[#allocation2 + $0x30] sm:$0xff] }
  0x29   : > { %1087 = vmatmul.mubr.msk.f32.gmra.mrb[4].mxu0 %vm255_vm0, %v325_v23  ;;  %v311_v17 = vld [vmem:[#allocation2 + $0xb8] sm:$0xff] }
  0x2a   : > { %1111 = vmatmul.mubr.msk.f32.gmra.mrb[4].mxu1 %vm255_vm0, %v341_v24  ;;  %1089 = vmatprep.mubr.msk.f32.mxu0 %vm255_vm0, %v326_v25 }
  0x2b   : > { %1113 = vmatprep.mubr.msk.f32.mxu1 %vm255_vm0, %v342_v26 }
  0x2d   : > { %1090 = vmatmul.mubr.msk.f32.gmra.mrb[6].mxu0 %vm255_vm0, %v327_v27  ;;  %v310_v27 = vld [vmem:[#allocation2 + $0xb0] sm:$0xff] }
  0x2e   : > { %1114 = vmatmul.mubr.msk.f32.gmra.mrb[6].mxu1 %vm255_vm0, %v343_v28  ;;  %1092 = vmatprep.mubr.msk.f32.mxu0 %vm255_vm0, %v328_v29 }
  0x2f   : > { %1116 = vmatprep.mubr.msk.f32.mxu1 %vm255_vm0, %v344_v30 }
  0x31   : > { %1093 = vmatmul.mubr.msk.f32.gmra.mrb[8].mxu0 %vm255_vm0, %v329_v31 }
  0x32   : > { %1117 = vmatmul.mubr.msk.f32.gmra.mrb[8].mxu1 %vm255_vm0, %v345_v32  ;;  %1095 = vmatprep.mubr.msk.f32.mxu0 %vm255_vm0, %v330_v33 }
  0x33   : > { %1119 = vmatprep.mubr.msk.f32.mxu1 %vm255_vm0, %v346_v34 }
  0x35   : > { %1096 = vmatmul.mubr.msk.f32.gmra.mrb[10].mxu0 %vm255_vm0, %v331_v35 }
  0x36   : > { %1120 = vmatmul.mubr.msk.f32.gmra.mrb[10].mxu1 %vm255_vm0, %v347_v36  ;;  %1098 = vmatprep.mubr.msk.f32.mxu0 %vm255_vm0, %v332_v37  ;;  %v297_v36 = vld [vmem:[#allocation2 + $0x48] sm:$0xff] }
  0x37   : > { %1122 = vmatprep.mubr.msk.f32.mxu1 %vm255_vm0, %v348_v38  ;;  %v313_v37 = vld [vmem:[#allocation2 + $0xc8] sm:$0xff] }
  0x39   : > { %1099 = vmatmul.mubr.msk.f32.gmra.mrb[12].mxu0 %vm255_vm0, %v333_v39 }
  0x3a   : > { %1123 = vmatmul.mubr.msk.f32.gmra.mrb[12].mxu1 %vm255_vm0, %v349_v40  ;;  %1101 = vmatprep.mubr.msk.f32.mxu0 %vm255_vm0, %v334_v41 }
  0x3b   : > { %1125 = vmatprep.mubr.msk.f32.mxu1 %vm255_vm0, %v350_v42  ;;  %v296_v42 = vld [vmem:[#allocation2 + $0x40] sm:$0xff] }
  0x3d   : > { %1102 = vmatmul.mubr.msk.f32.gmra.mrb[14].mxu0 %vm255_vm0, %v335_v43 }
  0x3e   : > { %1126 = vmatmul.mubr.msk.f32.gmra.mrb[14].mxu1 %vm255_vm0, %v351_v44 }
  0xf4   : > { %v1082_v49 = vpop.f32.mrb[0].mxu0 }
  0xf5   : > { %v1106_v50 = vpop.f32.mrb[0].mxu1  ;;  %v683_v51 = vadd.f32 %v1082_v49, %v289_v45  ;;  %v523_v53 = vpop.f32.mrb[1].mxu0 }
  0xf6   : > { %v699_v52 = vadd.f32 %v1106_v50, %v305_v46  ;;  %v603_v54 = vpop.f32.mrb[1].mxu1  ;;  %v682_v55 = vadd.f32 %v523_v53, %v288_v47  ;;  %v312_v47 = vld [vmem:[#allocation2 + $0xc0] sm:$0xff] }
  0xf7   : > { %v698_v56 = vadd.f32 %v603_v54, %v304_v48  ;;  %715 = vst.msk [vmem:[#allocation2 + $0x8] sm:$0xff] %vm255_vm0, %v683_v51 }
  0xf8   : > { %731 = vst.msk [vmem:[#allocation2 + $0x88] sm:$0xff] %vm255_vm0, %v699_v52  ;;  %714 = vst.msk [vmem:[#allocation2] sm:$0xff] %vm255_vm0, %v682_v55  ;;  %v1085_v61 = vpop.f32.mrb[2].mxu0 }
  0xf9   : > { %730 = vst.msk [vmem:[#allocation2 + $0x80] sm:$0xff] %vm255_vm0, %v698_v56  ;;  %v1109_v62 = vpop.f32.mrb[2].mxu1  ;;  %v685_v63 = vadd.f32 %v1085_v61, %v291_v57  ;;  %v533_v1 = vpop.f32.mrb[3].mxu0  ;;  %v299_v56 = vld [vmem:[#allocation2 + $0x58] sm:$0xff] }
  0xfa   : > { %v701_v0 = vadd.f32 %v1109_v62, %v307_v58  ;;  %v613_v2 = vpop.f32.mrb[3].mxu1  ;;  %v684_v3 = vadd.f32 %v533_v1, %v290_v59  ;;  %v315_v57 = vld [vmem:[#allocation2 + $0xd8] sm:$0xff]  ;;  %v298_v62 = vld [vmem:[#allocation2 + $0x50] sm:$0xff] }
  0xfb   : > { %v700_v4 = vadd.f32 %v613_v2, %v306_v60  ;;  %717 = vst.msk [vmem:[#allocation2 + $0x18] sm:$0xff] %vm255_vm0, %v685_v63 }
  0xfc   : > { %733 = vst.msk [vmem:[#allocation2 + $0x98] sm:$0xff] %vm255_vm0, %v701_v0  ;;  %716 = vst.msk [vmem:[#allocation2 + $0x10] sm:$0xff] %vm255_vm0, %v684_v3  ;;  %v1088_v10 = vpop.f32.mrb[4].mxu0  ;;  %v314_v3 = vld [vmem:[#allocation2 + $0xd0] sm:$0xff] }
  0xfd   : > { %732 = vst.msk [vmem:[#allocation2 + $0x90] sm:$0xff] %vm255_vm0, %v700_v4  ;;  %v1112_v11 = vpop.f32.mrb[4].mxu1  ;;  %v687_v12 = vadd.f32 %v1088_v10, %v293_v5  ;;  %v543_v14 = vpop.f32.mrb[5].mxu0 }
  0xfe   : > { %v703_v13 = vadd.f32 %v1112_v11, %v309_v6  ;;  %v623_v15 = vpop.f32.mrb[5].mxu1  ;;  %v750_v18 = vld [vmem:[#allocation2 + $0x8] sm:$0xff]  ;;  %v686_v20 = vadd.f32 %v543_v14, %v292_v7 }
  0xff   : > { %v766_v19 = vld [vmem:[#allocation2 + $0x88] sm:$0xff]  ;;  %v702_v21 = vadd.f32 %v623_v15, %v308_v8  ;;  %v789_v23 = vadd.f32 %v1519_v9, %v750_v18  ;;  %v749_v25 = vld [vmem:[#allocation2] sm:$0xff]  ;;  %719 = vst.msk [vmem:[#allocation2 + $0x28] sm:$0xff] %vm255_vm0, %v687_v12 }
 0x100   : > { %v805_v24 = vadd.f32 %v1519_v9, %v766_v19  ;;  %v765_v26 = vld [vmem:[#allocation2 + $0x80] sm:$0xff]  ;;  %735 = vst.msk [vmem:[#allocation2 + $0xa8] sm:$0xff] %vm255_vm0, %v703_v13  ;;  %v788_v28 = vadd.f32 %v1519_v9, %v749_v25  ;;  %718 = vst.msk [vmem:[#allocation2 + $0x20] sm:$0xff] %vm255_vm0, %v686_v20  ;;  %v1091_v30 = vpop.f32.mrb[6].mxu0  ;;  %v301_v13 = vld [vmem:[#allocation2 + $0x68] sm:$0xff] }
 0x101   : > { %v804_v29 = vadd.f32 %v1519_v9, %v765_v26  ;;  %734 = vst.msk [vmem:[#allocation2 + $0xa0] sm:$0xff] %vm255_vm0, %v702_v21  ;;  %v1115_v31 = vpop.f32.mrb[6].mxu1  ;;  %821 = vst.msk [vmem:[%s1532_s8 + $0x8] sm:$0xff] %vm255_vm0, %v789_v23  ;;  %v689_v32 = vadd.f32 %v1091_v30, %v295_v16  ;;  %v553_v34 = vpop.f32.mrb[7].mxu0  ;;  %v317_v14 = vld [vmem:[#allocation2 + $0xe8] sm:$0xff]  ;;  %v300_v19 = vld [vmem:[#allocation2 + $0x60] sm:$0xff] }
 0x102   : > { %837 = vst.msk [vmem:[%s1532_s8 + $0x88] sm:$0xff] %vm255_vm0, %v805_v24  ;;  %v705_v33 = vadd.f32 %v1115_v31, %v311_v17  ;;  %v633_v35 = vpop.f32.mrb[7].mxu1  ;;  %820 = vst.msk [vmem:[%s1532_s8] sm:$0xff] %vm255_vm0, %v788_v28  ;;  %v752_v38 = vld [vmem:[#allocation2 + $0x18] sm:$0xff]  ;;  %v688_v40 = vadd.f32 %v553_v34, %v294_v22  ;;  %v316_v24 = vld [vmem:[#allocation2 + $0xe0] sm:$0xff] }
 0x103   : > { %836 = vst.msk [vmem:[%s1532_s8 + $0x80] sm:$0xff] %vm255_vm0, %v804_v29  ;;  %v768_v39 = vld [vmem:[#allocation2 + $0x98] sm:$0xff]  ;;  %v704_v41 = vadd.f32 %v633_v35, %v310_v27  ;;  %v791_v43 = vadd.f32 %v1519_v9, %v752_v38  ;;  %v751_v45 = vld [vmem:[#allocation2 + $0x10] sm:$0xff]  ;;  %721 = vst.msk [vmem:[#allocation2 + $0x38] sm:$0xff] %vm255_vm0, %v689_v32 }
 0x104   : > { %v807_v44 = vadd.f32 %v1519_v9, %v768_v39  ;;  %v767_v46 = vld [vmem:[#allocation2 + $0x90] sm:$0xff]  ;;  %737 = vst.msk [vmem:[#allocation2 + $0xb8] sm:$0xff] %vm255_vm0, %v705_v33  ;;  %v790_v48 = vadd.f32 %v1519_v9, %v751_v45  ;;  %720 = vst.msk [vmem:[#allocation2 + $0x30] sm:$0xff] %vm255_vm0, %v688_v40  ;;  %v1094_v50 = vpop.f32.mrb[8].mxu0  ;;  %v303_v33 = vld [vmem:[#allocation2 + $0x78] sm:$0xff] }
 0x105   : > { %v806_v49 = vadd.f32 %v1519_v9, %v767_v46  ;;  %736 = vst.msk [vmem:[#allocation2 + $0xb0] sm:$0xff] %vm255_vm0, %v704_v41  ;;  %v1118_v51 = vpop.f32.mrb[8].mxu1  ;;  %823 = vst.msk [vmem:[%s1532_s8 + $0x18] sm:$0xff] %vm255_vm0, %v791_v43  ;;  %v691_v52 = vadd.f32 %v1094_v50, %v297_v36  ;;  %v563_v54 = vpop.f32.mrb[9].mxu0  ;;  %v319_v34 = vld [vmem:[#allocation2 + $0xf8] sm:$0xff]  ;;  %v302_v39 = vld [vmem:[#allocation2 + $0x70] sm:$0xff] }
 0x106   : > { %839 = vst.msk [vmem:[%s1532_s8 + $0x98] sm:$0xff] %vm255_vm0, %v807_v44  ;;  %v707_v53 = vadd.f32 %v1118_v51, %v313_v37  ;;  %v643_v55 = vpop.f32.mrb[9].mxu1  ;;  %822 = vst.msk [vmem:[%s1532_s8 + $0x10] sm:$0xff] %vm255_vm0, %v790_v48  ;;  %v754_v58 = vld [vmem:[#allocation2 + $0x28] sm:$0xff]  ;;  %v690_v60 = vadd.f32 %v563_v54, %v296_v42  ;;  %v318_v44 = vld [vmem:[#allocation2 + $0xf0] sm:$0xff] }
 0x107   : > { %838 = vst.msk [vmem:[%s1532_s8 + $0x90] sm:$0xff] %vm255_vm0, %v806_v49  ;;  %v770_v59 = vld [vmem:[#allocation2 + $0xa8] sm:$0xff]  ;;  %v706_v61 = vadd.f32 %v643_v55, %v312_v47  ;;  %v793_v63 = vadd.f32 %v1519_v9, %v754_v58  ;;  %v753_v1 = vld [vmem:[#allocation2 + $0x20] sm:$0xff]  ;;  %723 = vst.msk [vmem:[#allocation2 + $0x48] sm:$0xff] %vm255_vm0, %v691_v52 }
 0x108   : > { %v809_v0 = vadd.f32 %v1519_v9, %v770_v59  ;;  %v769_v2 = vld [vmem:[#allocation2 + $0xa0] sm:$0xff]  ;;  %739 = vst.msk [vmem:[#allocation2 + $0xc8] sm:$0xff] %vm255_vm0, %v707_v53  ;;  %v792_v4 = vadd.f32 %v1519_v9, %v753_v1  ;;  %722 = vst.msk [vmem:[#allocation2 + $0x40] sm:$0xff] %vm255_vm0, %v690_v60  ;;  %v1097_v6 = vpop.f32.mrb[10].mxu0 }
 0x109   : > { %v808_v5 = vadd.f32 %v1519_v9, %v769_v2  ;;  %738 = vst.msk [vmem:[#allocation2 + $0xc0] sm:$0xff] %vm255_vm0, %v706_v61  ;;  %v1121_v7 = vpop.f32.mrb[10].mxu1  ;;  %825 = vst.msk [vmem:[%s1532_s8 + $0x28] sm:$0xff] %vm255_vm0, %v793_v63  ;;  %v693_v8 = vadd.f32 %v1097_v6, %v299_v56  ;;  %v573_v11 = vpop.f32.mrb[11].mxu0 }
 0x10a   : > { %841 = vst.msk [vmem:[%s1532_s8 + $0xa8] sm:$0xff] %vm255_vm0, %v809_v0  ;;  %v709_v10 = vadd.f32 %v1121_v7, %v315_v57  ;;  %v653_v12 = vpop.f32.mrb[11].mxu1  ;;  %824 = vst.msk [vmem:[%s1532_s8 + $0x20] sm:$0xff] %vm255_vm0, %v792_v4  ;;  %v756_v15 = vld [vmem:[#allocation2 + $0x38] sm:$0xff]  ;;  %v692_v17 = vadd.f32 %v573_v11, %v298_v62 }
 0x10b   : > { %840 = vst.msk [vmem:[%s1532_s8 + $0xa0] sm:$0xff] %vm255_vm0, %v808_v5  ;;  %v772_v16 = vld [vmem:[#allocation2 + $0xb8] sm:$0xff]  ;;  %v708_v18 = vadd.f32 %v653_v12, %v314_v3  ;;  %v795_v20 = vadd.f32 %v1519_v9, %v756_v15  ;;  %v755_v22 = vld [vmem:[#allocation2 + $0x30] sm:$0xff]  ;;  %725 = vst.msk [vmem:[#allocation2 + $0x58] sm:$0xff] %vm255_vm0, %v693_v8 }
 0x10c   : > { %v811_v21 = vadd.f32 %v1519_v9, %v772_v16  ;;  %v771_v23 = vld [vmem:[#allocation2 + $0xb0] sm:$0xff]  ;;  %741 = vst.msk [vmem:[#allocation2 + $0xd8] sm:$0xff] %vm255_vm0, %v709_v10  ;;  %v794_v25 = vadd.f32 %v1519_v9, %v755_v22  ;;  %724 = vst.msk [vmem:[#allocation2 + $0x50] sm:$0xff] %vm255_vm0, %v692_v17  ;;  %v1100_v27 = vpop.f32.mrb[12].mxu0 }
 0x10d   : > { %v810_v26 = vadd.f32 %v1519_v9, %v771_v23  ;;  %740 = vst.msk [vmem:[#allocation2 + $0xd0] sm:$0xff] %vm255_vm0, %v708_v18  ;;  %v1124_v28 = vpop.f32.mrb[12].mxu1  ;;  %827 = vst.msk [vmem:[%s1532_s8 + $0x38] sm:$0xff] %vm255_vm0, %v795_v20  ;;  %v695_v29 = vadd.f32 %v1100_v27, %v301_v13  ;;  %v583_v31 = vpop.f32.mrb[13].mxu0 }
 0x10e   : > { %843 = vst.msk [vmem:[%s1532_s8 + $0xb8] sm:$0xff] %vm255_vm0, %v811_v21  ;;  %v711_v30 = vadd.f32 %v1124_v28, %v317_v14  ;;  %v663_v32 = vpop.f32.mrb[13].mxu1  ;;  %826 = vst.msk [vmem:[%s1532_s8 + $0x30] sm:$0xff] %vm255_vm0, %v794_v25  ;;  %v758_v35 = vld [vmem:[#allocation2 + $0x48] sm:$0xff]  ;;  %v694_v37 = vadd.f32 %v583_v31, %v300_v19 }
 0x10f   : > { %842 = vst.msk [vmem:[%s1532_s8 + $0xb0] sm:$0xff] %vm255_vm0, %v810_v26  ;;  %v774_v36 = vld [vmem:[#allocation2 + $0xc8] sm:$0xff]  ;;  %v710_v38 = vadd.f32 %v663_v32, %v316_v24  ;;  %v797_v40 = vadd.f32 %v1519_v9, %v758_v35  ;;  %v757_v42 = vld [vmem:[#allocation2 + $0x40] sm:$0xff]  ;;  %727 = vst.msk [vmem:[#allocation2 + $0x68] sm:$0xff] %vm255_vm0, %v695_v29 }
 0x110   : > { %v813_v41 = vadd.f32 %v1519_v9, %v774_v36  ;;  %v773_v43 = vld [vmem:[#allocation2 + $0xc0] sm:$0xff]  ;;  %743 = vst.msk [vmem:[#allocation2 + $0xe8] sm:$0xff] %vm255_vm0, %v711_v30  ;;  %v796_v45 = vadd.f32 %v1519_v9, %v757_v42  ;;  %726 = vst.msk [vmem:[#allocation2 + $0x60] sm:$0xff] %vm255_vm0, %v694_v37  ;;  %v1103_v47 = vpop.f32.mrb[14].mxu0 }
 0x111   : > { %v812_v46 = vadd.f32 %v1519_v9, %v773_v43  ;;  %742 = vst.msk [vmem:[#allocation2 + $0xe0] sm:$0xff] %vm255_vm0, %v710_v38  ;;  %v1127_v48 = vpop.f32.mrb[14].mxu1  ;;  %829 = vst.msk [vmem:[%s1532_s8 + $0x48] sm:$0xff] %vm255_vm0, %v797_v40  ;;  %v697_v49 = vadd.f32 %v1103_v47, %v303_v33  ;;  %v593_v51 = vpop.f32.mrb[15].mxu0 }
 0x112   : > { %845 = vst.msk [vmem:[%s1532_s8 + $0xc8] sm:$0xff] %vm255_vm0, %v813_v41  ;;  %v713_v50 = vadd.f32 %v1127_v48, %v319_v34  ;;  %v673_v52 = vpop.f32.mrb[15].mxu1  ;;  %828 = vst.msk [vmem:[%s1532_s8 + $0x40] sm:$0xff] %vm255_vm0, %v796_v45  ;;  %v760_v53 = vld [vmem:[#allocation2 + $0x58] sm:$0xff]  ;;  %v696_v55 = vadd.f32 %v593_v51, %v302_v39 }
 0x113   : > { %844 = vst.msk [vmem:[%s1532_s8 + $0xc0] sm:$0xff] %vm255_vm0, %v812_v46  ;;  %v776_v54 = vld [vmem:[#allocation2 + $0xd8] sm:$0xff]  ;;  %v712_v56 = vadd.f32 %v673_v52, %v318_v44  ;;  %v799_v57 = vadd.f32 %v1519_v9, %v760_v53  ;;  %v759_v59 = vld [vmem:[#allocation2 + $0x50] sm:$0xff]  ;;  %729 = vst.msk [vmem:[#allocation2 + $0x78] sm:$0xff] %vm255_vm0, %v697_v49 }
 0x114   : > { %v815_v58 = vadd.f32 %v1519_v9, %v776_v54  ;;  %v775_v60 = vld [vmem:[#allocation2 + $0xd0] sm:$0xff]  ;;  %745 = vst.msk [vmem:[#allocation2 + $0xf8] sm:$0xff] %vm255_vm0, %v713_v50  ;;  %v798_v61 = vadd.f32 %v1519_v9, %v759_v59  ;;  %728 = vst.msk [vmem:[#allocation2 + $0x70] sm:$0xff] %vm255_vm0, %v696_v55 }
 0x115   : > { %v814_v62 = vadd.f32 %v1519_v9, %v775_v60  ;;  %744 = vst.msk [vmem:[#allocation2 + $0xf0] sm:$0xff] %vm255_vm0, %v712_v56  ;;  %831 = vst.msk [vmem:[%s1532_s8 + $0x58] sm:$0xff] %vm255_vm0, %v799_v57 }
 0x116   : > { %847 = vst.msk [vmem:[%s1532_s8 + $0xd8] sm:$0xff] %vm255_vm0, %v815_v58  ;;  %830 = vst.msk [vmem:[%s1532_s8 + $0x50] sm:$0xff] %vm255_vm0, %v798_v61  ;;  %v762_v63 = vld [vmem:[#allocation2 + $0x68] sm:$0xff] }
 0x117   : > { %846 = vst.msk [vmem:[%s1532_s8 + $0xd0] sm:$0xff] %vm255_vm0, %v814_v62  ;;  %v778_v0 = vld [vmem:[#allocation2 + $0xe8] sm:$0xff]  ;;  %v801_v1 = vadd.f32 %v1519_v9, %v762_v63  ;;  %v761_v3 = vld [vmem:[#allocation2 + $0x60] sm:$0xff] }
 0x118   : > { %v817_v2 = vadd.f32 %v1519_v9, %v778_v0  ;;  %v777_v4 = vld [vmem:[#allocation2 + $0xe0] sm:$0xff]  ;;  %v800_v5 = vadd.f32 %v1519_v9, %v761_v3 }
 0x119   : > { %v816_v6 = vadd.f32 %v1519_v9, %v777_v4  ;;  %833 = vst.msk [vmem:[%s1532_s8 + $0x68] sm:$0xff] %vm255_vm0, %v801_v1 }
 0x11a   : > { %849 = vst.msk [vmem:[%s1532_s8 + $0xe8] sm:$0xff] %vm255_vm0, %v817_v2  ;;  %832 = vst.msk [vmem:[%s1532_s8 + $0x60] sm:$0xff] %vm255_vm0, %v800_v5  ;;  %v764_v7 = vld [vmem:[#allocation2 + $0x78] sm:$0xff] }
 0x11b   : > { %848 = vst.msk [vmem:[%s1532_s8 + $0xe0] sm:$0xff] %vm255_vm0, %v816_v6  ;;  %v780_v8 = vld [vmem:[#allocation2 + $0xf8] sm:$0xff]  ;;  %v803_v10 = vadd.f32 %v1519_v9, %v764_v7  ;;  %v763_v12 = vld [vmem:[#allocation2 + $0x70] sm:$0xff] }
 0x11c   : > { %v819_v11 = vadd.f32 %v1519_v9, %v780_v8  ;;  %v779_v13 = vld [vmem:[#allocation2 + $0xf0] sm:$0xff]  ;;  %v802_v14 = vadd.f32 %v1519_v9, %v763_v12 }
 0x11d   : > { %v818_v15 = vadd.f32 %v1519_v9, %v779_v13  ;;  %835 = vst.msk [vmem:[%s1532_s8 + $0x78] sm:$0xff] %vm255_vm0, %v803_v10 }
 0x11e   : > { %851 = vst.msk [vmem:[%s1532_s8 + $0xf8] sm:$0xff] %vm255_vm0, %v819_v11  ;;  %834 = vst.msk [vmem:[%s1532_s8 + $0x70] sm:$0xff] %vm255_vm0, %v802_v14 }
 0x11f   : > { %850 = vst.msk [vmem:[%s1532_s8 + $0xf0] sm:$0xff] %vm255_vm0, %v818_v15 }
 0x120   : > { %1223 = shalt.err (!%p1220_p5)
}
 0x121   : > { %s1224_s28 = scalar_lea.hbm %s1641_s18, 4096  ;;  %s1228_s4 = scalar_lea.hbm %s1706_s3, 8192 }
 0x122   : > { %p1225_p6 = scmp.ne.s32.totalorder %s1641_s18, %s1224_s28  ;;  %p1229_p10 = scmp.lt.u32.totalorder %s1641_s18, %s1706_s3 }
 0x123   : > { %p1230_p11 = scmp.lt.u32.totalorder %s1228_s4, %s1224_s28  ;;  %p1232_p13 = scmp.lt.u32.totalorder %s1224_s28, %s1641_s18 }
 0x124   : > { %p1226_p7 = pnand %p1225_p6, %p1354_p4 }
 0x125   : > { %p1231_p12 = por %p1230_p11, %p1229_p10 }
 0x126   : > { %p1227_p9 = pneg %p1226_p7 }
 0x127   : > { %p1233_p0 = por %p1232_p13, %p1231_p12 }
 0x129   : > { %p1234_p1 = pnand %p1233_p0, %p1227_p9 }
 0x12b   : > { %1237 = shalt.err (!%p1234_p1)
}
 0x12c   : > { %s1292_s7 = smov 128   ;;  %s1293_s8 = smov 8  }
 0x12d   : > { %1152 = dma.vmem_to_hbm [thread:$0]  (%p1354_p4), %s1643_s10, 4096, %s1641_s18, %s1657_s19, %s1292_s7, %s1292_s7, %s1293_s8  }
 0x12e PF: > { %p1158_p2 = scmp.ge.s32.totalorder %s1288_s17, 2  ;;  %s882_s9 = sand.u32 1, %s1268_s12  }
 0x12f   : > { %s883_s15 = scalar_lea.sflag [#allocation4], %s882_s9 }
 0x130   : > { %p1155_p3 = pnand %p1158_p2, %p1361_p8 }
 0x132   : > { %1263 = dma.done.wait (!%p1155_p3), %s883_s15, 4096  }
 0x133   : > { %1265 = vsyncadd (!%p1155_p3), %s883_s15, 4294963200  ;;  %s16_s17 = sadd.s32 1, %s1288_s17   ;;  %s1710_s12 = smov %s1272_s13 }
 0x134   : > { %p13_p5 = scmp.ge.s32.totalorder %s16_s17, 4   ;;  %s1711_s13 = smov %s1276_s14 }
 0x135   : > { %s1712_s14 = smov %s1367_s25  ;;  %s1713_s15 = smov %s1284_s16 }
 0x136   : > { %s1714_s16 = smov %s1716_s20  ;;  %15 = sbr.rel (!%p13_p5) target bundleno = 4 (0x4), region = 81 }
 0x13d   :  { %888 = vsyncpa [#allocation4], 1 }
 0x13e   :  { %890 = vsyncpa [#allocation4 + $0x1], 1 }

// kernel: _lambda_.4
= control target key start
LH: loop header
LB: loop body
LE: loop exit
PB: predicated region body
PF: predicated region fallthrough
CT: control target
= control target key end

     0   :  { %s7938_s12 = smov 0   ;;  %s7940_s13 = smov 0   ;;  %s11348_s0 = inlined_call_operand.vmem [shape: f32[8,256,16], index: 0, kind: input, shape index: {}]   ;;  %s11349_s1 = inlined_call_operand.vmem [shape: f32[8,256,16], index: 1, kind: input, shape index: {}]   ;;  %s11350_s2 = inlined_call_operand.vmem [shape: f32[8,256,16], index: 2, kind: input, shape index: {}]   ;;  %s11351_s3 = inlined_call_operand.vmem [shape: f32[8,256,16], index: 3, kind: output, shape index: {}]  }
   0x1   :  { %s7942_s14 = smov 0   ;;  %s7944_s15 = smov 0  }
   0x2   :  { %s7946_s16 = smov 0   ;;  %s7948_s17 = smov 0  }
   0x3   :  { %s7950_s18 = smov 0   ;;  %s7952_s19 = smov 0  }
   0x4   :  { %s7954_s20 = smov 0   ;;  %s7956_s21 = smov 0  }
   0x5   :  { %s7958_s22 = smov 0  }
   0x6 LB: > { %s25_s23 = sadd.s32 1, %s7900_s19  ;;  %s28_s24 = sadd.s32 1, %s7904_s20  ;;  %s7912_s22 = sphi %s7958_s22, %s13_s22   ;;  %s7908_s21 = sphi %s7956_s21, %s11875_s21   ;;  %s7904_s20 = sphi %s7954_s20, %s11874_s20   ;;  %s7900_s19 = sphi %s7952_s19, %s11873_s19   ;;  %s7896_s18 = sphi %s7950_s18, %s11872_s18   ;;  %s7892_s17 = sphi %s7948_s17, %s11871_s17   ;;  %s7888_s16 = sphi %s7946_s16, %s11870_s16   ;;  %s7884_s15 = sphi %s7944_s15, %s11869_s15   ;;  %s7880_s14 = sphi %s7942_s14, %s11868_s14   ;;  %s7876_s13 = sphi %s7940_s13, %s11867_s13   ;;  %s7872_s12 = sphi %s7938_s12, %s11866_s12  }
   0x7   : > { %p26_p0 = scmp.ge.s32.totalorder %s25_s23, 2  ;;  %p48_p1 = scmp.ne.s32.totalorder %s7884_s15, %s7880_s14 }
   0x8   : > { %p49_p2 = scmp.eq.s32.totalorder %s7912_s22, 0  ;;  %s32_s25 = sadd.s32 1, %s7908_s21 }
   0x9   : > { %s11877_s23 = smov (%p26_p0, %s25_s23), 0  ;;  %s11879_s24 = smov (!%p26_p0, %s28_s24), %s7904_s20 }
   0xa   : > { %p30_p3 = scmp.ge.s32.totalorder %s11879_s24, 2  ;;  %s6157_s26 = sadd.s32 4294967295, %s7912_s22  }
   0xb   : > { %p8006_p4 = por %p49_p2, %p48_p1  ;;  %s65_s28 = ssub.s32 %s7900_s19, %s11877_s23 }
   0xc   : > { %s11881_s24 = smov (%p30_p3, %s11879_s24), 0  ;;  %s11883_s25 = smov (!%p30_p3, %s32_s25), %s7908_s21 }
   0xd   : > { %11504 = sst [smem:[#allocation9_spill]] %s11881_s24  ;;  %p76_p5 = scmp.ne.s32.totalorder %s7876_s13, %s7872_s12 }
   0xe   : > { %p34_p6 = scmp.ge.s32.totalorder %s11883_s25, 2  ;;  %p136_p7 = scmp.eq.s32.totalorder %s6157_s26, 7 }
   0xf   : > { %s37_s29 = ssub.s32 %s7904_s20, %s11881_s24  ;;  %p8019_p8 = por %p76_p5, %p49_p2 }
  0x10   : > { %s11885_s25 = smov (%p34_p6, %s11883_s25), 0  ;;  %s41_s4 = sadd.s32 1, %s7884_s15 }
  0x11   : > { %11506 = sst [smem:[#allocation10_spill]] %s11885_s25  ;;  %p8029_p9 = por %p136_p7, %p48_p1 }
  0x12   : > { %s36_s6 = ssub.s32 %s7908_s21, %s11885_s25  ;;  %s69_s7 = sadd.s32 1, %s7876_s13 }
  0x13   : > { %s38_s8 = sor.u32 %s37_s29, %s36_s6  ;;  %s66_s9 = sor.u32 %s65_s28, %s36_s6 }
  0x14   : > { %p39_p10 = scmp.eq.s32.totalorder %s38_s8, 0  ;;  %p67_p11 = scmp.eq.s32.totalorder %s66_s9, 0 }
  0x15   : > { %p6160_p12 = scmp.ge.s32.totalorder %s7912_s22, 8 }
  0x16   : > { %s8037_s10 = scalar_select %p39_p10, %s7884_s15, %s41_s4  }
  0x17   : > { %s8040_s11 = scalar_select %p67_p11, %s7876_s13, %s69_s7  }
  0x18   : > { %158 = sbr.rel (%p6160_p12) target bundleno = 148 (0x94), region = 16 }
  0x1f   : > { %161 = sbr.rel (!%p8006_p4) target bundleno = 70 (0x46), region = 20  ;;  %s163_s26 = sand.u32 (%p8006_p4), 1, %s7884_s15  }
  0x20   : > { %s6163_s25 = sshll.u32 (%p8006_p4), %s7904_s20, 4  ;;  %s6161_s24 = sshll.u32 (%p8006_p4), %s163_s26, 9 }
  0x21   : > { %s6318_s29 = sshll.u32 (%p8006_p4), %s7908_s21, 7  ;;  %s8056_s27 = scalar_lea.vmem (%p8006_p4), [#allocation5], %s6161_s24 }
  0x22   : > { %s169_s28 = sadd.s32 (%p8006_p4), %s6318_s29, %s6163_s25 }
  0x23   : > { %s6165_s6 = sshll.u32 (%p8006_p4), %s169_s28, 3 }
  0x24   : > { %s8051_s7 = scalar_lea.vmem (%p8006_p4), %s11348_s0, %s6165_s6 }
  0x25   : > { %v325_v0 = vld [vmem:[%s8051_s7] sm:$0xff] (%p8006_p4)  ;;  %v327_v1 = vld [vmem:[%s8051_s7 + $0x8] sm:$0xff] (%p8006_p4)  ;;  %v329_v2 = vld [vmem:[%s8051_s7 + $0x10] sm:$0xff] (%p8006_p4) }
  0x26   : > { %326 = vst [vmem:[%s8056_s27] sm:$0xff] %v325_v0  ;;  %328 = vst [vmem:[%s8056_s27 + $0x8] sm:$0xff] %v327_v1  ;;  %v331_v3 = vld [vmem:[%s8051_s7 + $0x18] sm:$0xff]  ;;  %v333_v4 = vld [vmem:[%s8051_s7 + $0x20] sm:$0xff] }
  0x27   : > { %330 = vst [vmem:[%s8056_s27 + $0x10] sm:$0xff] %v329_v2  ;;  %v335_v5 = vld [vmem:[%s8051_s7 + $0x28] sm:$0xff]  ;;  %332 = vst [vmem:[%s8056_s27 + $0x18] sm:$0xff] %v331_v3  ;;  %v337_v6 = vld [vmem:[%s8051_s7 + $0x30] sm:$0xff] }
  0x28   : > { %334 = vst [vmem:[%s8056_s27 + $0x20] sm:$0xff] %v333_v4  ;;  %336 = vst [vmem:[%s8056_s27 + $0x28] sm:$0xff] %v335_v5  ;;  %v339_v7 = vld [vmem:[%s8051_s7 + $0x38] sm:$0xff]  ;;  %v341_v8 = vld [vmem:[%s8051_s7 + $0x40] sm:$0xff] }
  0x29   : > { %338 = vst [vmem:[%s8056_s27 + $0x30] sm:$0xff] %v337_v6  ;;  %340 = vst [vmem:[%s8056_s27 + $0x38] sm:$0xff] %v339_v7  ;;  %v343_v9 = vld [vmem:[%s8051_s7 + $0x48] sm:$0xff]  ;;  %v345_v10 = vld [vmem:[%s8051_s7 + $0x50] sm:$0xff] }
  0x2a   : > { %342 = vst [vmem:[%s8056_s27 + $0x40] sm:$0xff] %v341_v8  ;;  %v347_v11 = vld [vmem:[%s8051_s7 + $0x58] sm:$0xff]  ;;  %344 = vst [vmem:[%s8056_s27 + $0x48] sm:$0xff] %v343_v9  ;;  %v349_v12 = vld [vmem:[%s8051_s7 + $0x60] sm:$0xff] }
  0x2b   : > { %346 = vst [vmem:[%s8056_s27 + $0x50] sm:$0xff] %v345_v10  ;;  %348 = vst [vmem:[%s8056_s27 + $0x58] sm:$0xff] %v347_v11  ;;  %v351_v13 = vld [vmem:[%s8051_s7 + $0x68] sm:$0xff]  ;;  %v353_v14 = vld [vmem:[%s8051_s7 + $0x70] sm:$0xff] }
  0x2c   : > { %350 = vst [vmem:[%s8056_s27 + $0x60] sm:$0xff] %v349_v12  ;;  %352 = vst [vmem:[%s8056_s27 + $0x68] sm:$0xff] %v351_v13  ;;  %v355_v15 = vld [vmem:[%s8051_s7 + $0x78] sm:$0xff]  ;;  %v357_v16 = vld [vmem:[%s8051_s7 + $0x100] sm:$0xff] }
  0x2d   : > { %354 = vst [vmem:[%s8056_s27 + $0x70] sm:$0xff] %v353_v14  ;;  %v359_v17 = vld [vmem:[%s8051_s7 + $0x108] sm:$0xff]  ;;  %356 = vst [vmem:[%s8056_s27 + $0x78] sm:$0xff] %v355_v15  ;;  %v361_v18 = vld [vmem:[%s8051_s7 + $0x110] sm:$0xff] }
  0x2e   : > { %358 = vst [vmem:[%s8056_s27 + $0x80] sm:$0xff] %v357_v16  ;;  %360 = vst [vmem:[%s8056_s27 + $0x88] sm:$0xff] %v359_v17  ;;  %v363_v19 = vld [vmem:[%s8051_s7 + $0x118] sm:$0xff]  ;;  %v365_v20 = vld [vmem:[%s8051_s7 + $0x120] sm:$0xff] }
  0x2f   : > { %362 = vst [vmem:[%s8056_s27 + $0x90] sm:$0xff] %v361_v18  ;;  %364 = vst [vmem:[%s8056_s27 + $0x98] sm:$0xff] %v363_v19  ;;  %v367_v21 = vld [vmem:[%s8051_s7 + $0x128] sm:$0xff]  ;;  %v369_v22 = vld [vmem:[%s8051_s7 + $0x130] sm:$0xff] }
  0x30   : > { %366 = vst [vmem:[%s8056_s27 + $0xa0] sm:$0xff] %v365_v20  ;;  %v371_v23 = vld [vmem:[%s8051_s7 + $0x138] sm:$0xff]  ;;  %368 = vst [vmem:[%s8056_s27 + $0xa8] sm:$0xff] %v367_v21  ;;  %v373_v24 = vld [vmem:[%s8051_s7 + $0x140] sm:$0xff] }
  0x31   : > { %370 = vst [vmem:[%s8056_s27 + $0xb0] sm:$0xff] %v369_v22  ;;  %372 = vst [vmem:[%s8056_s27 + $0xb8] sm:$0xff] %v371_v23  ;;  %v375_v25 = vld [vmem:[%s8051_s7 + $0x148] sm:$0xff]  ;;  %v377_v26 = vld [vmem:[%s8051_s7 + $0x150] sm:$0xff] }
  0x32   : > { %374 = vst [vmem:[%s8056_s27 + $0xc0] sm:$0xff] %v373_v24  ;;  %376 = vst [vmem:[%s8056_s27 + $0xc8] sm:$0xff] %v375_v25  ;;  %v379_v27 = vld [vmem:[%s8051_s7 + $0x158] sm:$0xff]  ;;  %v381_v28 = vld [vmem:[%s8051_s7 + $0x160] sm:$0xff] }
  0x33   : > { %378 = vst [vmem:[%s8056_s27 + $0xd0] sm:$0xff] %v377_v26  ;;  %v383_v29 = vld [vmem:[%s8051_s7 + $0x168] sm:$0xff]  ;;  %380 = vst [vmem:[%s8056_s27 + $0xd8] sm:$0xff] %v379_v27  ;;  %v385_v30 = vld [vmem:[%s8051_s7 + $0x170] sm:$0xff] }
  0x34   : > { %382 = vst [vmem:[%s8056_s27 + $0xe0] sm:$0xff] %v381_v28  ;;  %384 = vst [vmem:[%s8056_s27 + $0xe8] sm:$0xff] %v383_v29  ;;  %v387_v31 = vld [vmem:[%s8051_s7 + $0x178] sm:$0xff]  ;;  %v389_v32 = vld [vmem:[%s8051_s7 + $0x200] sm:$0xff] }
  0x35   : > { %386 = vst [vmem:[%s8056_s27 + $0xf0] sm:$0xff] %v385_v30  ;;  %388 = vst [vmem:[%s8056_s27 + $0xf8] sm:$0xff] %v387_v31  ;;  %v391_v33 = vld [vmem:[%s8051_s7 + $0x208] sm:$0xff]  ;;  %v393_v34 = vld [vmem:[%s8051_s7 + $0x210] sm:$0xff] }
  0x36   : > { %390 = vst [vmem:[%s8056_s27 + $0x100] sm:$0xff] %v389_v32  ;;  %v395_v35 = vld [vmem:[%s8051_s7 + $0x218] sm:$0xff]  ;;  %392 = vst [vmem:[%s8056_s27 + $0x108] sm:$0xff] %v391_v33  ;;  %v397_v36 = vld [vmem:[%s8051_s7 + $0x220] sm:$0xff] }
  0x37   : > { %394 = vst [vmem:[%s8056_s27 + $0x110] sm:$0xff] %v393_v34  ;;  %396 = vst [vmem:[%s8056_s27 + $0x118] sm:$0xff] %v395_v35  ;;  %v399_v37 = vld [vmem:[%s8051_s7 + $0x228] sm:$0xff]  ;;  %v401_v38 = vld [vmem:[%s8051_s7 + $0x230] sm:$0xff] }
  0x38   : > { %398 = vst [vmem:[%s8056_s27 + $0x120] sm:$0xff] %v397_v36  ;;  %400 = vst [vmem:[%s8056_s27 + $0x128] sm:$0xff] %v399_v37  ;;  %v403_v39 = vld [vmem:[%s8051_s7 + $0x238] sm:$0xff]  ;;  %v405_v40 = vld [vmem:[%s8051_s7 + $0x240] sm:$0xff] }
  0x39   : > { %402 = vst [vmem:[%s8056_s27 + $0x130] sm:$0xff] %v401_v38  ;;  %v407_v41 = vld [vmem:[%s8051_s7 + $0x248] sm:$0xff]  ;;  %404 = vst [vmem:[%s8056_s27 + $0x138] sm:$0xff] %v403_v39  ;;  %v409_v42 = vld [vmem:[%s8051_s7 + $0x250] sm:$0xff] }
  0x3a   : > { %406 = vst [vmem:[%s8056_s27 + $0x140] sm:$0xff] %v405_v40  ;;  %408 = vst [vmem:[%s8056_s27 + $0x148] sm:$0xff] %v407_v41  ;;  %v411_v43 = vld [vmem:[%s8051_s7 + $0x258] sm:$0xff]  ;;  %v413_v44 = vld [vmem:[%s8051_s7 + $0x260] sm:$0xff] }
  0x3b   : > { %410 = vst [vmem:[%s8056_s27 + $0x150] sm:$0xff] %v409_v42  ;;  %412 = vst [vmem:[%s8056_s27 + $0x158] sm:$0xff] %v411_v43  ;;  %v415_v45 = vld [vmem:[%s8051_s7 + $0x268] sm:$0xff]  ;;  %v417_v46 = vld [vmem:[%s8051_s7 + $0x270] sm:$0xff] }
  0x3c   : > { %414 = vst [vmem:[%s8056_s27 + $0x160] sm:$0xff] %v413_v44  ;;  %v419_v47 = vld [vmem:[%s8051_s7 + $0x278] sm:$0xff]  ;;  %416 = vst [vmem:[%s8056_s27 + $0x168] sm:$0xff] %v415_v45  ;;  %v421_v48 = vld [vmem:[%s8051_s7 + $0x300] sm:$0xff] }
  0x3d   : > { %418 = vst [vmem:[%s8056_s27 + $0x170] sm:$0xff] %v417_v46  ;;  %420 = vst [vmem:[%s8056_s27 + $0x178] sm:$0xff] %v419_v47  ;;  %v423_v49 = vld [vmem:[%s8051_s7 + $0x308] sm:$0xff]  ;;  %v425_v50 = vld [vmem:[%s8051_s7 + $0x310] sm:$0xff] }
  0x3e   : > { %422 = vst [vmem:[%s8056_s27 + $0x180] sm:$0xff] %v421_v48  ;;  %424 = vst [vmem:[%s8056_s27 + $0x188] sm:$0xff] %v423_v49  ;;  %v427_v51 = vld [vmem:[%s8051_s7 + $0x318] sm:$0xff]  ;;  %v429_v52 = vld [vmem:[%s8051_s7 + $0x320] sm:$0xff] }
  0x3f   : > { %426 = vst [vmem:[%s8056_s27 + $0x190] sm:$0xff] %v425_v50  ;;  %v431_v53 = vld [vmem:[%s8051_s7 + $0x328] sm:$0xff]  ;;  %428 = vst [vmem:[%s8056_s27 + $0x198] sm:$0xff] %v427_v51  ;;  %v433_v54 = vld [vmem:[%s8051_s7 + $0x330] sm:$0xff] }
  0x40   : > { %430 = vst [vmem:[%s8056_s27 + $0x1a0] sm:$0xff] %v429_v52  ;;  %432 = vst [vmem:[%s8056_s27 + $0x1a8] sm:$0xff] %v431_v53  ;;  %v435_v55 = vld [vmem:[%s8051_s7 + $0x338] sm:$0xff]  ;;  %v437_v56 = vld [vmem:[%s8051_s7 + $0x340] sm:$0xff] }
  0x41   : > { %434 = vst [vmem:[%s8056_s27 + $0x1b0] sm:$0xff] %v433_v54  ;;  %436 = vst [vmem:[%s8056_s27 + $0x1b8] sm:$0xff] %v435_v55  ;;  %v439_v57 = vld [vmem:[%s8051_s7 + $0x348] sm:$0xff]  ;;  %v441_v58 = vld [vmem:[%s8051_s7 + $0x350] sm:$0xff] }
  0x42   : > { %438 = vst [vmem:[%s8056_s27 + $0x1c0] sm:$0xff] %v437_v56  ;;  %v443_v59 = vld [vmem:[%s8051_s7 + $0x358] sm:$0xff]  ;;  %440 = vst [vmem:[%s8056_s27 + $0x1c8] sm:$0xff] %v439_v57  ;;  %v445_v60 = vld [vmem:[%s8051_s7 + $0x360] sm:$0xff] }
  0x43   : > { %442 = vst [vmem:[%s8056_s27 + $0x1d0] sm:$0xff] %v441_v58  ;;  %444 = vst [vmem:[%s8056_s27 + $0x1d8] sm:$0xff] %v443_v59  ;;  %v447_v61 = vld [vmem:[%s8051_s7 + $0x368] sm:$0xff]  ;;  %v449_v62 = vld [vmem:[%s8051_s7 + $0x370] sm:$0xff] }
  0x44   : > { %446 = vst [vmem:[%s8056_s27 + $0x1e0] sm:$0xff] %v445_v60  ;;  %448 = vst [vmem:[%s8056_s27 + $0x1e8] sm:$0xff] %v447_v61  ;;  %v451_v63 = vld [vmem:[%s8051_s7 + $0x378] sm:$0xff] }
  0x45   : > { %450 = vst [vmem:[%s8056_s27 + $0x1f0] sm:$0xff] %v449_v62  ;;  %452 = vst [vmem:[%s8056_s27 + $0x1f8] sm:$0xff] %v451_v63 }
  0x46 PF: > { %458 = sbr.rel (!%p8019_p8) target bundleno = 109 (0x6d), region = 58  ;;  %s460_s24 = sand.u32 (%p8019_p8), 1, %s7876_s13  }
  0x47   : > { %s6168_s25 = sshll.u32 (%p8019_p8), %s7900_s19, 4  ;;  %s6166_s9 = sshll.u32 (%p8019_p8), %s460_s24, 9 }
  0x48   : > { %s6319_s26 = sshll.u32 (%p8019_p8), %s7908_s21, 7  ;;  %s8196_s7 = scalar_lea.vmem (%p8019_p8), [#allocation6], %s6166_s9 }
  0x49   : > { %s466_s29 = sadd.s32 (%p8019_p8), %s6319_s26, %s6168_s25 }
  0x4a   : > { %s6170_s28 = sshll.u32 (%p8019_p8), %s466_s29, 3 }
  0x4b   : > { %s8191_s4 = scalar_lea.vmem (%p8019_p8), %s11349_s1, %s6170_s28 }
  0x4c   : > { %v622_v0 = vld [vmem:[%s8191_s4] sm:$0xff] (%p8019_p8)  ;;  %v624_v1 = vld [vmem:[%s8191_s4 + $0x8] sm:$0xff] (%p8019_p8)  ;;  %v626_v2 = vld [vmem:[%s8191_s4 + $0x10] sm:$0xff] (%p8019_p8) }
  0x4d   : > { %623 = vst [vmem:[%s8196_s7] sm:$0xff] %v622_v0  ;;  %625 = vst [vmem:[%s8196_s7 + $0x8] sm:$0xff] %v624_v1  ;;  %v628_v3 = vld [vmem:[%s8191_s4 + $0x18] sm:$0xff]  ;;  %v630_v4 = vld [vmem:[%s8191_s4 + $0x20] sm:$0xff] }
  0x4e   : > { %627 = vst [vmem:[%s8196_s7 + $0x10] sm:$0xff] %v626_v2  ;;  %v632_v5 = vld [vmem:[%s8191_s4 + $0x28] sm:$0xff]  ;;  %629 = vst [vmem:[%s8196_s7 + $0x18] sm:$0xff] %v628_v3  ;;  %v634_v6 = vld [vmem:[%s8191_s4 + $0x30] sm:$0xff] }
  0x4f   : > { %631 = vst [vmem:[%s8196_s7 + $0x20] sm:$0xff] %v630_v4  ;;  %633 = vst [vmem:[%s8196_s7 + $0x28] sm:$0xff] %v632_v5  ;;  %v636_v7 = vld [vmem:[%s8191_s4 + $0x38] sm:$0xff]  ;;  %v638_v8 = vld [vmem:[%s8191_s4 + $0x40] sm:$0xff] }
  0x50   : > { %635 = vst [vmem:[%s8196_s7 + $0x30] sm:$0xff] %v634_v6  ;;  %637 = vst [vmem:[%s8196_s7 + $0x38] sm:$0xff] %v636_v7  ;;  %v640_v9 = vld [vmem:[%s8191_s4 + $0x48] sm:$0xff]  ;;  %v642_v10 = vld [vmem:[%s8191_s4 + $0x50] sm:$0xff] }
  0x51   : > { %639 = vst [vmem:[%s8196_s7 + $0x40] sm:$0xff] %v638_v8  ;;  %v644_v11 = vld [vmem:[%s8191_s4 + $0x58] sm:$0xff]  ;;  %641 = vst [vmem:[%s8196_s7 + $0x48] sm:$0xff] %v640_v9  ;;  %v646_v12 = vld [vmem:[%s8191_s4 + $0x60] sm:$0xff] }
  0x52   : > { %643 = vst [vmem:[%s8196_s7 + $0x50] sm:$0xff] %v642_v10  ;;  %645 = vst [vmem:[%s8196_s7 + $0x58] sm:$0xff] %v644_v11  ;;  %v648_v13 = vld [vmem:[%s8191_s4 + $0x68] sm:$0xff]  ;;  %v650_v14 = vld [vmem:[%s8191_s4 + $0x70] sm:$0xff] }
  0x53   : > { %647 = vst [vmem:[%s8196_s7 + $0x60] sm:$0xff] %v646_v12  ;;  %649 = vst [vmem:[%s8196_s7 + $0x68] sm:$0xff] %v648_v13  ;;  %v652_v15 = vld [vmem:[%s8191_s4 + $0x78] sm:$0xff]  ;;  %v654_v16 = vld [vmem:[%s8191_s4 + $0x100] sm:$0xff] }
  0x54   : > { %651 = vst [vmem:[%s8196_s7 + $0x70] sm:$0xff] %v650_v14  ;;  %v656_v17 = vld [vmem:[%s8191_s4 + $0x108] sm:$0xff]  ;;  %653 = vst [vmem:[%s8196_s7 + $0x78] sm:$0xff] %v652_v15  ;;  %v658_v18 = vld [vmem:[%s8191_s4 + $0x110] sm:$0xff] }
  0x55   : > { %655 = vst [vmem:[%s8196_s7 + $0x80] sm:$0xff] %v654_v16  ;;  %657 = vst [vmem:[%s8196_s7 + $0x88] sm:$0xff] %v656_v17  ;;  %v660_v19 = vld [vmem:[%s8191_s4 + $0x118] sm:$0xff]  ;;  %v662_v20 = vld [vmem:[%s8191_s4 + $0x120] sm:$0xff] }
  0x56   : > { %659 = vst [vmem:[%s8196_s7 + $0x90] sm:$0xff] %v658_v18  ;;  %661 = vst [vmem:[%s8196_s7 + $0x98] sm:$0xff] %v660_v19  ;;  %v664_v21 = vld [vmem:[%s8191_s4 + $0x128] sm:$0xff]  ;;  %v666_v22 = vld [vmem:[%s8191_s4 + $0x130] sm:$0xff] }
  0x57   : > { %663 = vst [vmem:[%s8196_s7 + $0xa0] sm:$0xff] %v662_v20  ;;  %v668_v23 = vld [vmem:[%s8191_s4 + $0x138] sm:$0xff]  ;;  %665 = vst [vmem:[%s8196_s7 + $0xa8] sm:$0xff] %v664_v21  ;;  %v670_v24 = vld [vmem:[%s8191_s4 + $0x140] sm:$0xff] }
  0x58   : > { %667 = vst [vmem:[%s8196_s7 + $0xb0] sm:$0xff] %v666_v22  ;;  %669 = vst [vmem:[%s8196_s7 + $0xb8] sm:$0xff] %v668_v23  ;;  %v672_v25 = vld [vmem:[%s8191_s4 + $0x148] sm:$0xff]  ;;  %v674_v26 = vld [vmem:[%s8191_s4 + $0x150] sm:$0xff] }
  0x59   : > { %671 = vst [vmem:[%s8196_s7 + $0xc0] sm:$0xff] %v670_v24  ;;  %673 = vst [vmem:[%s8196_s7 + $0xc8] sm:$0xff] %v672_v25  ;;  %v676_v27 = vld [vmem:[%s8191_s4 + $0x158] sm:$0xff]  ;;  %v678_v28 = vld [vmem:[%s8191_s4 + $0x160] sm:$0xff] }
  0x5a   : > { %675 = vst [vmem:[%s8196_s7 + $0xd0] sm:$0xff] %v674_v26  ;;  %v680_v29 = vld [vmem:[%s8191_s4 + $0x168] sm:$0xff]  ;;  %677 = vst [vmem:[%s8196_s7 + $0xd8] sm:$0xff] %v676_v27  ;;  %v682_v30 = vld [vmem:[%s8191_s4 + $0x170] sm:$0xff] }
  0x5b   : > { %679 = vst [vmem:[%s8196_s7 + $0xe0] sm:$0xff] %v678_v28  ;;  %681 = vst [vmem:[%s8196_s7 + $0xe8] sm:$0xff] %v680_v29  ;;  %v684_v31 = vld [vmem:[%s8191_s4 + $0x178] sm:$0xff]  ;;  %v686_v32 = vld [vmem:[%s8191_s4 + $0x200] sm:$0xff] }
  0x5c   : > { %683 = vst [vmem:[%s8196_s7 + $0xf0] sm:$0xff] %v682_v30  ;;  %685 = vst [vmem:[%s8196_s7 + $0xf8] sm:$0xff] %v684_v31  ;;  %v688_v33 = vld [vmem:[%s8191_s4 + $0x208] sm:$0xff]  ;;  %v690_v34 = vld [vmem:[%s8191_s4 + $0x210] sm:$0xff] }
  0x5d   : > { %687 = vst [vmem:[%s8196_s7 + $0x100] sm:$0xff] %v686_v32  ;;  %v692_v35 = vld [vmem:[%s8191_s4 + $0x218] sm:$0xff]  ;;  %689 = vst [vmem:[%s8196_s7 + $0x108] sm:$0xff] %v688_v33  ;;  %v694_v36 = vld [vmem:[%s8191_s4 + $0x220] sm:$0xff] }
  0x5e   : > { %691 = vst [vmem:[%s8196_s7 + $0x110] sm:$0xff] %v690_v34  ;;  %693 = vst [vmem:[%s8196_s7 + $0x118] sm:$0xff] %v692_v35  ;;  %v696_v37 = vld [vmem:[%s8191_s4 + $0x228] sm:$0xff]  ;;  %v698_v38 = vld [vmem:[%s8191_s4 + $0x230] sm:$0xff] }
  0x5f   : > { %695 = vst [vmem:[%s8196_s7 + $0x120] sm:$0xff] %v694_v36  ;;  %697 = vst [vmem:[%s8196_s7 + $0x128] sm:$0xff] %v696_v37  ;;  %v700_v39 = vld [vmem:[%s8191_s4 + $0x238] sm:$0xff]  ;;  %v702_v40 = vld [vmem:[%s8191_s4 + $0x240] sm:$0xff] }
  0x60   : > { %699 = vst [vmem:[%s8196_s7 + $0x130] sm:$0xff] %v698_v38  ;;  %v704_v41 = vld [vmem:[%s8191_s4 + $0x248] sm:$0xff]  ;;  %701 = vst [vmem:[%s8196_s7 + $0x138] sm:$0xff] %v700_v39  ;;  %v706_v42 = vld [vmem:[%s8191_s4 + $0x250] sm:$0xff] }
  0x61   : > { %703 = vst [vmem:[%s8196_s7 + $0x140] sm:$0xff] %v702_v40  ;;  %705 = vst [vmem:[%s8196_s7 + $0x148] sm:$0xff] %v704_v41  ;;  %v708_v43 = vld [vmem:[%s8191_s4 + $0x258] sm:$0xff]  ;;  %v710_v44 = vld [vmem:[%s8191_s4 + $0x260] sm:$0xff] }
  0x62   : > { %707 = vst [vmem:[%s8196_s7 + $0x150] sm:$0xff] %v706_v42  ;;  %709 = vst [vmem:[%s8196_s7 + $0x158] sm:$0xff] %v708_v43  ;;  %v712_v45 = vld [vmem:[%s8191_s4 + $0x268] sm:$0xff]  ;;  %v714_v46 = vld [vmem:[%s8191_s4 + $0x270] sm:$0xff] }
  0x63   : > { %711 = vst [vmem:[%s8196_s7 + $0x160] sm:$0xff] %v710_v44  ;;  %v716_v47 = vld [vmem:[%s8191_s4 + $0x278] sm:$0xff]  ;;  %713 = vst [vmem:[%s8196_s7 + $0x168] sm:$0xff] %v712_v45  ;;  %v718_v48 = vld [vmem:[%s8191_s4 + $0x300] sm:$0xff] }
  0x64   : > { %715 = vst [vmem:[%s8196_s7 + $0x170] sm:$0xff] %v714_v46  ;;  %717 = vst [vmem:[%s8196_s7 + $0x178] sm:$0xff] %v716_v47  ;;  %v720_v49 = vld [vmem:[%s8191_s4 + $0x308] sm:$0xff]  ;;  %v722_v50 = vld [vmem:[%s8191_s4 + $0x310] sm:$0xff] }
  0x65   : > { %719 = vst [vmem:[%s8196_s7 + $0x180] sm:$0xff] %v718_v48  ;;  %721 = vst [vmem:[%s8196_s7 + $0x188] sm:$0xff] %v720_v49  ;;  %v724_v51 = vld [vmem:[%s8191_s4 + $0x318] sm:$0xff]  ;;  %v726_v52 = vld [vmem:[%s8191_s4 + $0x320] sm:$0xff] }
  0x66   : > { %723 = vst [vmem:[%s8196_s7 + $0x190] sm:$0xff] %v722_v50  ;;  %v728_v53 = vld [vmem:[%s8191_s4 + $0x328] sm:$0xff]  ;;  %725 = vst [vmem:[%s8196_s7 + $0x198] sm:$0xff] %v724_v51  ;;  %v730_v54 = vld [vmem:[%s8191_s4 + $0x330] sm:$0xff] }
  0x67   : > { %727 = vst [vmem:[%s8196_s7 + $0x1a0] sm:$0xff] %v726_v52  ;;  %729 = vst [vmem:[%s8196_s7 + $0x1a8] sm:$0xff] %v728_v53  ;;  %v732_v55 = vld [vmem:[%s8191_s4 + $0x338] sm:$0xff]  ;;  %v734_v56 = vld [vmem:[%s8191_s4 + $0x340] sm:$0xff] }
  0x68   : > { %731 = vst [vmem:[%s8196_s7 + $0x1b0] sm:$0xff] %v730_v54  ;;  %733 = vst [vmem:[%s8196_s7 + $0x1b8] sm:$0xff] %v732_v55  ;;  %v736_v57 = vld [vmem:[%s8191_s4 + $0x348] sm:$0xff]  ;;  %v738_v58 = vld [vmem:[%s8191_s4 + $0x350] sm:$0xff] }
  0x69   : > { %735 = vst [vmem:[%s8196_s7 + $0x1c0] sm:$0xff] %v734_v56  ;;  %v740_v59 = vld [vmem:[%s8191_s4 + $0x358] sm:$0xff]  ;;  %737 = vst [vmem:[%s8196_s7 + $0x1c8] sm:$0xff] %v736_v57  ;;  %v742_v60 = vld [vmem:[%s8191_s4 + $0x360] sm:$0xff] }
  0x6a   : > { %739 = vst [vmem:[%s8196_s7 + $0x1d0] sm:$0xff] %v738_v58  ;;  %741 = vst [vmem:[%s8196_s7 + $0x1d8] sm:$0xff] %v740_v59  ;;  %v744_v61 = vld [vmem:[%s8191_s4 + $0x368] sm:$0xff]  ;;  %v746_v62 = vld [vmem:[%s8191_s4 + $0x370] sm:$0xff] }
  0x6b   : > { %743 = vst [vmem:[%s8196_s7 + $0x1e0] sm:$0xff] %v742_v60  ;;  %745 = vst [vmem:[%s8196_s7 + $0x1e8] sm:$0xff] %v744_v61  ;;  %v748_v63 = vld [vmem:[%s8191_s4 + $0x378] sm:$0xff] }
  0x6c   : > { %747 = vst [vmem:[%s8196_s7 + $0x1f0] sm:$0xff] %v746_v62  ;;  %749 = vst [vmem:[%s8196_s7 + $0x1f8] sm:$0xff] %v748_v63 }
  0x6d PF: > { %755 = sbr.rel (!%p8019_p8) target bundleno = 148 (0x94), region = 96  ;;  %s757_s27 = sand.u32 (%p8019_p8), 1, %s7876_s13  }
  0x6e   : > { %s6173_s24 = sshll.u32 (%p8019_p8), %s7900_s19, 4  ;;  %s6171_s25 = sshll.u32 (%p8019_p8), %s757_s27, 9 }
  0x6f   : > { %s6320_s9 = sshll.u32 (%p8019_p8), %s7908_s21, 7  ;;  %s8336_s30 = scalar_lea.vmem (%p8019_p8), [#allocation7], %s6171_s25 }
  0x70   : > { %s763_s26 = sadd.s32 (%p8019_p8), %s6320_s9, %s6173_s24 }
  0x71   : > { %s6175_s29 = sshll.u32 (%p8019_p8), %s763_s26, 3 }
  0x72   : > { %s8331_s8 = scalar_lea.vmem (%p8019_p8), %s11350_s2, %s6175_s29 }
  0x73   : > { %v919_v0 = vld [vmem:[%s8331_s8] sm:$0xff] (%p8019_p8)  ;;  %v921_v1 = vld [vmem:[%s8331_s8 + $0x8] sm:$0xff] (%p8019_p8)  ;;  %v923_v2 = vld [vmem:[%s8331_s8 + $0x10] sm:$0xff] (%p8019_p8) }
  0x74   : > { %920 = vst [vmem:[%s8336_s30] sm:$0xff] %v919_v0  ;;  %922 = vst [vmem:[%s8336_s30 + $0x8] sm:$0xff] %v921_v1  ;;  %v925_v3 = vld [vmem:[%s8331_s8 + $0x18] sm:$0xff]  ;;  %v927_v4 = vld [vmem:[%s8331_s8 + $0x20] sm:$0xff] }
  0x75   : > { %924 = vst [vmem:[%s8336_s30 + $0x10] sm:$0xff] %v923_v2  ;;  %v929_v5 = vld [vmem:[%s8331_s8 + $0x28] sm:$0xff]  ;;  %926 = vst [vmem:[%s8336_s30 + $0x18] sm:$0xff] %v925_v3  ;;  %v931_v6 = vld [vmem:[%s8331_s8 + $0x30] sm:$0xff] }
  0x76   : > { %928 = vst [vmem:[%s8336_s30 + $0x20] sm:$0xff] %v927_v4  ;;  %930 = vst [vmem:[%s8336_s30 + $0x28] sm:$0xff] %v929_v5  ;;  %v933_v7 = vld [vmem:[%s8331_s8 + $0x38] sm:$0xff]  ;;  %v935_v8 = vld [vmem:[%s8331_s8 + $0x40] sm:$0xff] }
  0x77   : > { %932 = vst [vmem:[%s8336_s30 + $0x30] sm:$0xff] %v931_v6  ;;  %934 = vst [vmem:[%s8336_s30 + $0x38] sm:$0xff] %v933_v7  ;;  %v937_v9 = vld [vmem:[%s8331_s8 + $0x48] sm:$0xff]  ;;  %v939_v10 = vld [vmem:[%s8331_s8 + $0x50] sm:$0xff] }
  0x78   : > { %936 = vst [vmem:[%s8336_s30 + $0x40] sm:$0xff] %v935_v8  ;;  %v941_v11 = vld [vmem:[%s8331_s8 + $0x58] sm:$0xff]  ;;  %938 = vst [vmem:[%s8336_s30 + $0x48] sm:$0xff] %v937_v9  ;;  %v943_v12 = vld [vmem:[%s8331_s8 + $0x60] sm:$0xff] }
  0x79   : > { %940 = vst [vmem:[%s8336_s30 + $0x50] sm:$0xff] %v939_v10  ;;  %942 = vst [vmem:[%s8336_s30 + $0x58] sm:$0xff] %v941_v11  ;;  %v945_v13 = vld [vmem:[%s8331_s8 + $0x68] sm:$0xff]  ;;  %v947_v14 = vld [vmem:[%s8331_s8 + $0x70] sm:$0xff] }
  0x7a   : > { %944 = vst [vmem:[%s8336_s30 + $0x60] sm:$0xff] %v943_v12  ;;  %946 = vst [vmem:[%s8336_s30 + $0x68] sm:$0xff] %v945_v13  ;;  %v949_v15 = vld [vmem:[%s8331_s8 + $0x78] sm:$0xff]  ;;  %v951_v16 = vld [vmem:[%s8331_s8 + $0x100] sm:$0xff] }
  0x7b   : > { %948 = vst [vmem:[%s8336_s30 + $0x70] sm:$0xff] %v947_v14  ;;  %v953_v17 = vld [vmem:[%s8331_s8 + $0x108] sm:$0xff]  ;;  %950 = vst [vmem:[%s8336_s30 + $0x78] sm:$0xff] %v949_v15  ;;  %v955_v18 = vld [vmem:[%s8331_s8 + $0x110] sm:$0xff] }
  0x7c   : > { %952 = vst [vmem:[%s8336_s30 + $0x80] sm:$0xff] %v951_v16  ;;  %954 = vst [vmem:[%s8336_s30 + $0x88] sm:$0xff] %v953_v17  ;;  %v957_v19 = vld [vmem:[%s8331_s8 + $0x118] sm:$0xff]  ;;  %v959_v20 = vld [vmem:[%s8331_s8 + $0x120] sm:$0xff] }
  0x7d   : > { %956 = vst [vmem:[%s8336_s30 + $0x90] sm:$0xff] %v955_v18  ;;  %958 = vst [vmem:[%s8336_s30 + $0x98] sm:$0xff] %v957_v19  ;;  %v961_v21 = vld [vmem:[%s8331_s8 + $0x128] sm:$0xff]  ;;  %v963_v22 = vld [vmem:[%s8331_s8 + $0x130] sm:$0xff] }
  0x7e   : > { %960 = vst [vmem:[%s8336_s30 + $0xa0] sm:$0xff] %v959_v20  ;;  %v965_v23 = vld [vmem:[%s8331_s8 + $0x138] sm:$0xff]  ;;  %962 = vst [vmem:[%s8336_s30 + $0xa8] sm:$0xff] %v961_v21  ;;  %v967_v24 = vld [vmem:[%s8331_s8 + $0x140] sm:$0xff] }
  0x7f   : > { %964 = vst [vmem:[%s8336_s30 + $0xb0] sm:$0xff] %v963_v22  ;;  %966 = vst [vmem:[%s8336_s30 + $0xb8] sm:$0xff] %v965_v23  ;;  %v969_v25 = vld [vmem:[%s8331_s8 + $0x148] sm:$0xff]  ;;  %v971_v26 = vld [vmem:[%s8331_s8 + $0x150] sm:$0xff] }
  0x80   : > { %968 = vst [vmem:[%s8336_s30 + $0xc0] sm:$0xff] %v967_v24  ;;  %970 = vst [vmem:[%s8336_s30 + $0xc8] sm:$0xff] %v969_v25  ;;  %v973_v27 = vld [vmem:[%s8331_s8 + $0x158] sm:$0xff]  ;;  %v975_v28 = vld [vmem:[%s8331_s8 + $0x160] sm:$0xff] }
  0x81   : > { %972 = vst [vmem:[%s8336_s30 + $0xd0] sm:$0xff] %v971_v26  ;;  %v977_v29 = vld [vmem:[%s8331_s8 + $0x168] sm:$0xff]  ;;  %974 = vst [vmem:[%s8336_s30 + $0xd8] sm:$0xff] %v973_v27  ;;  %v979_v30 = vld [vmem:[%s8331_s8 + $0x170] sm:$0xff] }
  0x82   : > { %976 = vst [vmem:[%s8336_s30 + $0xe0] sm:$0xff] %v975_v28  ;;  %978 = vst [vmem:[%s8336_s30 + $0xe8] sm:$0xff] %v977_v29  ;;  %v981_v31 = vld [vmem:[%s8331_s8 + $0x178] sm:$0xff]  ;;  %v983_v32 = vld [vmem:[%s8331_s8 + $0x200] sm:$0xff] }
  0x83   : > { %980 = vst [vmem:[%s8336_s30 + $0xf0] sm:$0xff] %v979_v30  ;;  %982 = vst [vmem:[%s8336_s30 + $0xf8] sm:$0xff] %v981_v31  ;;  %v985_v33 = vld [vmem:[%s8331_s8 + $0x208] sm:$0xff]  ;;  %v987_v34 = vld [vmem:[%s8331_s8 + $0x210] sm:$0xff] }
  0x84   : > { %984 = vst [vmem:[%s8336_s30 + $0x100] sm:$0xff] %v983_v32  ;;  %v989_v35 = vld [vmem:[%s8331_s8 + $0x218] sm:$0xff]  ;;  %986 = vst [vmem:[%s8336_s30 + $0x108] sm:$0xff] %v985_v33  ;;  %v991_v36 = vld [vmem:[%s8331_s8 + $0x220] sm:$0xff] }
  0x85   : > { %988 = vst [vmem:[%s8336_s30 + $0x110] sm:$0xff] %v987_v34  ;;  %990 = vst [vmem:[%s8336_s30 + $0x118] sm:$0xff] %v989_v35  ;;  %v993_v37 = vld [vmem:[%s8331_s8 + $0x228] sm:$0xff]  ;;  %v995_v38 = vld [vmem:[%s8331_s8 + $0x230] sm:$0xff] }
  0x86   : > { %992 = vst [vmem:[%s8336_s30 + $0x120] sm:$0xff] %v991_v36  ;;  %994 = vst [vmem:[%s8336_s30 + $0x128] sm:$0xff] %v993_v37  ;;  %v997_v39 = vld [vmem:[%s8331_s8 + $0x238] sm:$0xff]  ;;  %v999_v40 = vld [vmem:[%s8331_s8 + $0x240] sm:$0xff] }
  0x87   : > { %996 = vst [vmem:[%s8336_s30 + $0x130] sm:$0xff] %v995_v38  ;;  %v1001_v41 = vld [vmem:[%s8331_s8 + $0x248] sm:$0xff]  ;;  %998 = vst [vmem:[%s8336_s30 + $0x138] sm:$0xff] %v997_v39  ;;  %v1003_v42 = vld [vmem:[%s8331_s8 + $0x250] sm:$0xff] }
  0x88   : > { %1000 = vst [vmem:[%s8336_s30 + $0x140] sm:$0xff] %v999_v40  ;;  %1002 = vst [vmem:[%s8336_s30 + $0x148] sm:$0xff] %v1001_v41  ;;  %v1005_v43 = vld [vmem:[%s8331_s8 + $0x258] sm:$0xff]  ;;  %v1007_v44 = vld [vmem:[%s8331_s8 + $0x260] sm:$0xff] }
  0x89   : > { %1004 = vst [vmem:[%s8336_s30 + $0x150] sm:$0xff] %v1003_v42  ;;  %1006 = vst [vmem:[%s8336_s30 + $0x158] sm:$0xff] %v1005_v43  ;;  %v1009_v45 = vld [vmem:[%s8331_s8 + $0x268] sm:$0xff]  ;;  %v1011_v46 = vld [vmem:[%s8331_s8 + $0x270] sm:$0xff] }
  0x8a   : > { %1008 = vst [vmem:[%s8336_s30 + $0x160] sm:$0xff] %v1007_v44  ;;  %v1013_v47 = vld [vmem:[%s8331_s8 + $0x278] sm:$0xff]  ;;  %1010 = vst [vmem:[%s8336_s30 + $0x168] sm:$0xff] %v1009_v45  ;;  %v1015_v48 = vld [vmem:[%s8331_s8 + $0x300] sm:$0xff] }
  0x8b   : > { %1012 = vst [vmem:[%s8336_s30 + $0x170] sm:$0xff] %v1011_v46  ;;  %1014 = vst [vmem:[%s8336_s30 + $0x178] sm:$0xff] %v1013_v47  ;;  %v1017_v49 = vld [vmem:[%s8331_s8 + $0x308] sm:$0xff]  ;;  %v1019_v50 = vld [vmem:[%s8331_s8 + $0x310] sm:$0xff] }
  0x8c   : > { %1016 = vst [vmem:[%s8336_s30 + $0x180] sm:$0xff] %v1015_v48  ;;  %1018 = vst [vmem:[%s8336_s30 + $0x188] sm:$0xff] %v1017_v49  ;;  %v1021_v51 = vld [vmem:[%s8331_s8 + $0x318] sm:$0xff]  ;;  %v1023_v52 = vld [vmem:[%s8331_s8 + $0x320] sm:$0xff] }
  0x8d   : > { %1020 = vst [vmem:[%s8336_s30 + $0x190] sm:$0xff] %v1019_v50  ;;  %v1025_v53 = vld [vmem:[%s8331_s8 + $0x328] sm:$0xff]  ;;  %1022 = vst [vmem:[%s8336_s30 + $0x198] sm:$0xff] %v1021_v51  ;;  %v1027_v54 = vld [vmem:[%s8331_s8 + $0x330] sm:$0xff] }
  0x8e   : > { %1024 = vst [vmem:[%s8336_s30 + $0x1a0] sm:$0xff] %v1023_v52  ;;  %1026 = vst [vmem:[%s8336_s30 + $0x1a8] sm:$0xff] %v1025_v53  ;;  %v1029_v55 = vld [vmem:[%s8331_s8 + $0x338] sm:$0xff]  ;;  %v1031_v56 = vld [vmem:[%s8331_s8 + $0x340] sm:$0xff] }
  0x8f   : > { %1028 = vst [vmem:[%s8336_s30 + $0x1b0] sm:$0xff] %v1027_v54  ;;  %1030 = vst [vmem:[%s8336_s30 + $0x1b8] sm:$0xff] %v1029_v55  ;;  %v1033_v57 = vld [vmem:[%s8331_s8 + $0x348] sm:$0xff]  ;;  %v1035_v58 = vld [vmem:[%s8331_s8 + $0x350] sm:$0xff] }
  0x90   : > { %1032 = vst [vmem:[%s8336_s30 + $0x1c0] sm:$0xff] %v1031_v56  ;;  %v1037_v59 = vld [vmem:[%s8331_s8 + $0x358] sm:$0xff]  ;;  %1034 = vst [vmem:[%s8336_s30 + $0x1c8] sm:$0xff] %v1033_v57  ;;  %v1039_v60 = vld [vmem:[%s8331_s8 + $0x360] sm:$0xff] }
  0x91   : > { %1036 = vst [vmem:[%s8336_s30 + $0x1d0] sm:$0xff] %v1035_v58  ;;  %1038 = vst [vmem:[%s8336_s30 + $0x1d8] sm:$0xff] %v1037_v59  ;;  %v1041_v61 = vld [vmem:[%s8331_s8 + $0x368] sm:$0xff]  ;;  %v1043_v62 = vld [vmem:[%s8331_s8 + $0x370] sm:$0xff] }
  0x92   : > { %1040 = vst [vmem:[%s8336_s30 + $0x1e0] sm:$0xff] %v1039_v60  ;;  %1042 = vst [vmem:[%s8336_s30 + $0x1e8] sm:$0xff] %v1041_v61  ;;  %v1045_v63 = vld [vmem:[%s8331_s8 + $0x378] sm:$0xff] }
  0x93   : > { %1044 = vst [vmem:[%s8336_s30 + $0x1f0] sm:$0xff] %v1043_v62  ;;  %1046 = vst [vmem:[%s8336_s30 + $0x1f8] sm:$0xff] %v1045_v63 }
  0x94 PF: > { %p6176_p13 = scmp.ge.s32.totalorder %s7912_s22, 1  ;;  %p1051_p0 = scmp.lt.s32.totalorder %s7912_s22, 9 }
  0x96   : > { %p1052_p1 = pnand %p6176_p13, %p1051_p0 }
  0x98   : > { %1055 = sbr.rel (%p1052_p1) target bundleno = 1539 (0x603), region = 134 }
  0x9f   : > { %s1058_s4 = sand.u32 1, %s7880_s14   ;;  %s1065_s7 = sand.u32 1, %s7872_s12  }
  0xa0   : > { %s6177_s27 = sshll.u32 %s1058_s4, 9  ;;  %s6178_s24 = sshll.u32 %s1065_s7, 9 }
  0xa1   : > { %s8467_s25 = scalar_lea.vmem [#allocation5], %s6177_s27  ;;  %s8469_s9 = scalar_lea.vmem [#allocation6], %s6178_s24 }
  0xa2   : > { %s8471_s26 = scalar_lea.vmem [#allocation7], %s6178_s24  ;;  %s8473_s29 = scalar_lea.vmem [#allocation8], %s6177_s27 }
  0xa3   : > { %p6181_p2 = scmp.ne.s32.totalorder %s7888_s16, 0 }
  0xa4   : > { %vm1114_vm0 = vcmask (!%p6181_p2), 7168   ;;  %vm1243_vm1 = vcmask (!%p6181_p2), 130048   ;;  %v7914_v0 = vmov (!%p6181_p2), -inf   ;;  %v7915_v1 = vmov (!%p6181_p2), 0.0  }
  0xa5   : > { %1113 = sbr.rel (%p6181_p2) target bundleno = 261 (0x105), region = 150  ;;  %1115 = vst.msk [vmem:[#allocation2] sm:$0xff] (!%p6181_p2), %vm1114_vm0, %v7914_v0  ;;  %1116 = vst.msk [vmem:[#allocation2 + $0x8] sm:$0xff] (!%p6181_p2), %vm1114_vm0, %v7914_v0 }
  0xa6   : > { %1117 = vst.msk [vmem:[#allocation2 + $0x10] sm:$0xff] (!%p6181_p2), %vm1114_vm0, %v7914_v0  ;;  %1118 = vst.msk [vmem:[#allocation2 + $0x18] sm:$0xff] (!%p6181_p2), %vm1114_vm0, %v7914_v0 }
  0xa7   : > { %1119 = vst.msk [vmem:[#allocation2 + $0x20] sm:$0xff] (!%p6181_p2), %vm1114_vm0, %v7914_v0  ;;  %1120 = vst.msk [vmem:[#allocation2 + $0x28] sm:$0xff] (!%p6181_p2), %vm1114_vm0, %v7914_v0 }
  0xa8   : > { %1121 = vst.msk [vmem:[#allocation2 + $0x30] sm:$0xff] (!%p6181_p2), %vm1114_vm0, %v7914_v0  ;;  %1122 = vst.msk [vmem:[#allocation2 + $0x38] sm:$0xff] (!%p6181_p2), %vm1114_vm0, %v7914_v0 }
  0xa9   : > { %1123 = vst.msk [vmem:[#allocation2 + $0x40] sm:$0xff] (!%p6181_p2), %vm1114_vm0, %v7914_v0  ;;  %1124 = vst.msk [vmem:[#allocation2 + $0x48] sm:$0xff] (!%p6181_p2), %vm1114_vm0, %v7914_v0 }
  0xaa   : > { %1125 = vst.msk [vmem:[#allocation2 + $0x50] sm:$0xff] (!%p6181_p2), %vm1114_vm0, %v7914_v0  ;;  %1126 = vst.msk [vmem:[#allocation2 + $0x58] sm:$0xff] (!%p6181_p2), %vm1114_vm0, %v7914_v0 }
  0xab   : > { %1127 = vst.msk [vmem:[#allocation2 + $0x60] sm:$0xff] (!%p6181_p2), %vm1114_vm0, %v7914_v0  ;;  %1128 = vst.msk [vmem:[#allocation2 + $0x68] sm:$0xff] (!%p6181_p2), %vm1114_vm0, %v7914_v0 }
  0xac   : > { %1129 = vst.msk [vmem:[#allocation2 + $0x70] sm:$0xff] %vm1114_vm0, %v7914_v0  ;;  %1130 = vst.msk [vmem:[#allocation2 + $0x78] sm:$0xff] %vm1114_vm0, %v7914_v0 }
  0xad   : > { %1131 = vst.msk [vmem:[#allocation2 + $0x80] sm:$0xff] %vm1114_vm0, %v7914_v0  ;;  %1132 = vst.msk [vmem:[#allocation2 + $0x88] sm:$0xff] %vm1114_vm0, %v7914_v0 }
  0xae   : > { %1133 = vst.msk [vmem:[#allocation2 + $0x90] sm:$0xff] %vm1114_vm0, %v7914_v0  ;;  %1134 = vst.msk [vmem:[#allocation2 + $0x98] sm:$0xff] %vm1114_vm0, %v7914_v0 }
  0xaf   : > { %1135 = vst.msk [vmem:[#allocation2 + $0xa0] sm:$0xff] %vm1114_vm0, %v7914_v0  ;;  %1136 = vst.msk [vmem:[#allocation2 + $0xa8] sm:$0xff] %vm1114_vm0, %v7914_v0 }
  0xb0   : > { %1137 = vst.msk [vmem:[#allocation2 + $0xb0] sm:$0xff] %vm1114_vm0, %v7914_v0  ;;  %1138 = vst.msk [vmem:[#allocation2 + $0xb8] sm:$0xff] %vm1114_vm0, %v7914_v0 }
  0xb1   : > { %1139 = vst.msk [vmem:[#allocation2 + $0xc0] sm:$0xff] %vm1114_vm0, %v7914_v0  ;;  %1140 = vst.msk [vmem:[#allocation2 + $0xc8] sm:$0xff] %vm1114_vm0, %v7914_v0 }
  0xb2   : > { %1141 = vst.msk [vmem:[#allocation2 + $0xd0] sm:$0xff] %vm1114_vm0, %v7914_v0  ;;  %1142 = vst.msk [vmem:[#allocation2 + $0xd8] sm:$0xff] %vm1114_vm0, %v7914_v0 }
  0xb3   : > { %1143 = vst.msk [vmem:[#allocation2 + $0xe0] sm:$0xff] %vm1114_vm0, %v7914_v0  ;;  %1144 = vst.msk [vmem:[#allocation2 + $0xe8] sm:$0xff] %vm1114_vm0, %v7914_v0 }
  0xb4   : > { %1145 = vst.msk [vmem:[#allocation2 + $0xf0] sm:$0xff] %vm1114_vm0, %v7914_v0  ;;  %1146 = vst.msk [vmem:[#allocation2 + $0xf8] sm:$0xff] %vm1114_vm0, %v7914_v0 }
  0xb5   : > { %1147 = vst.msk [vmem:[#allocation2 + $0x100] sm:$0xff] %vm1114_vm0, %v7914_v0  ;;  %1148 = vst.msk [vmem:[#allocation2 + $0x108] sm:$0xff] %vm1114_vm0, %v7914_v0 }
  0xb6   : > { %1149 = vst.msk [vmem:[#allocation2 + $0x110] sm:$0xff] %vm1114_vm0, %v7914_v0  ;;  %1150 = vst.msk [vmem:[#allocation2 + $0x118] sm:$0xff] %vm1114_vm0, %v7914_v0 }
  0xb7   : > { %1151 = vst.msk [vmem:[#allocation2 + $0x120] sm:$0xff] %vm1114_vm0, %v7914_v0  ;;  %1152 = vst.msk [vmem:[#allocation2 + $0x128] sm:$0xff] %vm1114_vm0, %v7914_v0 }
  0xb8   : > { %1153 = vst.msk [vmem:[#allocation2 + $0x130] sm:$0xff] %vm1114_vm0, %v7914_v0  ;;  %1154 = vst.msk [vmem:[#allocation2 + $0x138] sm:$0xff] %vm1114_vm0, %v7914_v0 }
  0xb9   : > { %1155 = vst.msk [vmem:[#allocation2 + $0x140] sm:$0xff] %vm1114_vm0, %v7914_v0  ;;  %1156 = vst.msk [vmem:[#allocation2 + $0x148] sm:$0xff] %vm1114_vm0, %v7914_v0 }
  0xba   : > { %1157 = vst.msk [vmem:[#allocation2 + $0x150] sm:$0xff] %vm1114_vm0, %v7914_v0  ;;  %1158 = vst.msk [vmem:[#allocation2 + $0x158] sm:$0xff] %vm1114_vm0, %v7914_v0 }
  0xbb   : > { %1159 = vst.msk [vmem:[#allocation2 + $0x160] sm:$0xff] %vm1114_vm0, %v7914_v0  ;;  %1160 = vst.msk [vmem:[#allocation2 + $0x168] sm:$0xff] %vm1114_vm0, %v7914_v0 }
  0xbc   : > { %1161 = vst.msk [vmem:[#allocation2 + $0x170] sm:$0xff] %vm1114_vm0, %v7914_v0  ;;  %1162 = vst.msk [vmem:[#allocation2 + $0x178] sm:$0xff] %vm1114_vm0, %v7914_v0 }
  0xbd   : > { %1163 = vst.msk [vmem:[#allocation2 + $0x180] sm:$0xff] %vm1114_vm0, %v7914_v0  ;;  %1164 = vst.msk [vmem:[#allocation2 + $0x188] sm:$0xff] %vm1114_vm0, %v7914_v0 }
  0xbe   : > { %1165 = vst.msk [vmem:[#allocation2 + $0x190] sm:$0xff] %vm1114_vm0, %v7914_v0  ;;  %1166 = vst.msk [vmem:[#allocation2 + $0x198] sm:$0xff] %vm1114_vm0, %v7914_v0 }
  0xbf   : > { %1167 = vst.msk [vmem:[#allocation2 + $0x1a0] sm:$0xff] %vm1114_vm0, %v7914_v0  ;;  %1168 = vst.msk [vmem:[#allocation2 + $0x1a8] sm:$0xff] %vm1114_vm0, %v7914_v0 }
  0xc0   : > { %1169 = vst.msk [vmem:[#allocation2 + $0x1b0] sm:$0xff] %vm1114_vm0, %v7914_v0  ;;  %1170 = vst.msk [vmem:[#allocation2 + $0x1b8] sm:$0xff] %vm1114_vm0, %v7914_v0 }
  0xc1   : > { %1171 = vst.msk [vmem:[#allocation2 + $0x1c0] sm:$0xff] %vm1114_vm0, %v7914_v0  ;;  %1172 = vst.msk [vmem:[#allocation2 + $0x1c8] sm:$0xff] %vm1114_vm0, %v7914_v0 }
  0xc2   : > { %1173 = vst.msk [vmem:[#allocation2 + $0x1d0] sm:$0xff] %vm1114_vm0, %v7914_v0  ;;  %1174 = vst.msk [vmem:[#allocation2 + $0x1d8] sm:$0xff] %vm1114_vm0, %v7914_v0 }
  0xc3   : > { %1175 = vst.msk [vmem:[#allocation2 + $0x1e0] sm:$0xff] %vm1114_vm0, %v7914_v0  ;;  %1176 = vst.msk [vmem:[#allocation2 + $0x1e8] sm:$0xff] %vm1114_vm0, %v7914_v0 }
  0xc4   : > { %1177 = vst.msk [vmem:[#allocation2 + $0x1f0] sm:$0xff] %vm1114_vm0, %v7914_v0  ;;  %1178 = vst.msk [vmem:[#allocation2 + $0x1f8] sm:$0xff] %vm1114_vm0, %v7914_v0 }
  0xc5   : > { %1179 = vst.msk [vmem:[#allocation3] sm:$0xff] %vm1114_vm0, %v7915_v1  ;;  %1180 = vst.msk [vmem:[#allocation3 + $0x8] sm:$0xff] %vm1114_vm0, %v7915_v1 }
  0xc6   : > { %1181 = vst.msk [vmem:[#allocation3 + $0x10] sm:$0xff] %vm1114_vm0, %v7915_v1  ;;  %1182 = vst.msk [vmem:[#allocation3 + $0x18] sm:$0xff] %vm1114_vm0, %v7915_v1 }
  0xc7   : > { %1183 = vst.msk [vmem:[#allocation3 + $0x20] sm:$0xff] %vm1114_vm0, %v7915_v1  ;;  %1184 = vst.msk [vmem:[#allocation3 + $0x28] sm:$0xff] %vm1114_vm0, %v7915_v1 }
  0xc8   : > { %1185 = vst.msk [vmem:[#allocation3 + $0x30] sm:$0xff] %vm1114_vm0, %v7915_v1  ;;  %1186 = vst.msk [vmem:[#allocation3 + $0x38] sm:$0xff] %vm1114_vm0, %v7915_v1 }
  0xc9   : > { %1187 = vst.msk [vmem:[#allocation3 + $0x40] sm:$0xff] %vm1114_vm0, %v7915_v1  ;;  %1188 = vst.msk [vmem:[#allocation3 + $0x48] sm:$0xff] %vm1114_vm0, %v7915_v1 }
  0xca   : > { %1189 = vst.msk [vmem:[#allocation3 + $0x50] sm:$0xff] %vm1114_vm0, %v7915_v1  ;;  %1190 = vst.msk [vmem:[#allocation3 + $0x58] sm:$0xff] %vm1114_vm0, %v7915_v1 }
  0xcb   : > { %1191 = vst.msk [vmem:[#allocation3 + $0x60] sm:$0xff] %vm1114_vm0, %v7915_v1  ;;  %1192 = vst.msk [vmem:[#allocation3 + $0x68] sm:$0xff] %vm1114_vm0, %v7915_v1 }
  0xcc   : > { %1193 = vst.msk [vmem:[#allocation3 + $0x70] sm:$0xff] %vm1114_vm0, %v7915_v1  ;;  %1194 = vst.msk [vmem:[#allocation3 + $0x78] sm:$0xff] %vm1114_vm0, %v7915_v1 }
  0xcd   : > { %1195 = vst.msk [vmem:[#allocation3 + $0x80] sm:$0xff] %vm1114_vm0, %v7915_v1  ;;  %1196 = vst.msk [vmem:[#allocation3 + $0x88] sm:$0xff] %vm1114_vm0, %v7915_v1 }
  0xce   : > { %1197 = vst.msk [vmem:[#allocation3 + $0x90] sm:$0xff] %vm1114_vm0, %v7915_v1  ;;  %1198 = vst.msk [vmem:[#allocation3 + $0x98] sm:$0xff] %vm1114_vm0, %v7915_v1 }
  0xcf   : > { %1199 = vst.msk [vmem:[#allocation3 + $0xa0] sm:$0xff] %vm1114_vm0, %v7915_v1  ;;  %1200 = vst.msk [vmem:[#allocation3 + $0xa8] sm:$0xff] %vm1114_vm0, %v7915_v1 }
  0xd0   : > { %1201 = vst.msk [vmem:[#allocation3 + $0xb0] sm:$0xff] %vm1114_vm0, %v7915_v1  ;;  %1202 = vst.msk [vmem:[#allocation3 + $0xb8] sm:$0xff] %vm1114_vm0, %v7915_v1 }
  0xd1   : > { %1203 = vst.msk [vmem:[#allocation3 + $0xc0] sm:$0xff] %vm1114_vm0, %v7915_v1  ;;  %1204 = vst.msk [vmem:[#allocation3 + $0xc8] sm:$0xff] %vm1114_vm0, %v7915_v1 }
  0xd2   : > { %1205 = vst.msk [vmem:[#allocation3 + $0xd0] sm:$0xff] %vm1114_vm0, %v7915_v1  ;;  %1206 = vst.msk [vmem:[#allocation3 + $0xd8] sm:$0xff] %vm1114_vm0, %v7915_v1 }
  0xd3   : > { %1207 = vst.msk [vmem:[#allocation3 + $0xe0] sm:$0xff] %vm1114_vm0, %v7915_v1  ;;  %1208 = vst.msk [vmem:[#allocation3 + $0xe8] sm:$0xff] %vm1114_vm0, %v7915_v1 }
  0xd4   : > { %1209 = vst.msk [vmem:[#allocation3 + $0xf0] sm:$0xff] %vm1114_vm0, %v7915_v1  ;;  %1210 = vst.msk [vmem:[#allocation3 + $0xf8] sm:$0xff] %vm1114_vm0, %v7915_v1 }
  0xd5   : > { %1211 = vst.msk [vmem:[#allocation3 + $0x100] sm:$0xff] %vm1114_vm0, %v7915_v1  ;;  %1212 = vst.msk [vmem:[#allocation3 + $0x108] sm:$0xff] %vm1114_vm0, %v7915_v1 }
  0xd6   : > { %1213 = vst.msk [vmem:[#allocation3 + $0x110] sm:$0xff] %vm1114_vm0, %v7915_v1  ;;  %1214 = vst.msk [vmem:[#allocation3 + $0x118] sm:$0xff] %vm1114_vm0, %v7915_v1 }
  0xd7   : > { %1215 = vst.msk [vmem:[#allocation3 + $0x120] sm:$0xff] %vm1114_vm0, %v7915_v1  ;;  %1216 = vst.msk [vmem:[#allocation3 + $0x128] sm:$0xff] %vm1114_vm0, %v7915_v1 }
  0xd8   : > { %1217 = vst.msk [vmem:[#allocation3 + $0x130] sm:$0xff] %vm1114_vm0, %v7915_v1  ;;  %1218 = vst.msk [vmem:[#allocation3 + $0x138] sm:$0xff] %vm1114_vm0, %v7915_v1 }
  0xd9   : > { %1219 = vst.msk [vmem:[#allocation3 + $0x140] sm:$0xff] %vm1114_vm0, %v7915_v1  ;;  %1220 = vst.msk [vmem:[#allocation3 + $0x148] sm:$0xff] %vm1114_vm0, %v7915_v1 }
  0xda   : > { %1221 = vst.msk [vmem:[#allocation3 + $0x150] sm:$0xff] %vm1114_vm0, %v7915_v1  ;;  %1222 = vst.msk [vmem:[#allocation3 + $0x158] sm:$0xff] %vm1114_vm0, %v7915_v1 }
  0xdb   : > { %1223 = vst.msk [vmem:[#allocation3 + $0x160] sm:$0xff] %vm1114_vm0, %v7915_v1  ;;  %1224 = vst.msk [vmem:[#allocation3 + $0x168] sm:$0xff] %vm1114_vm0, %v7915_v1 }
  0xdc   : > { %1225 = vst.msk [vmem:[#allocation3 + $0x170] sm:$0xff] %vm1114_vm0, %v7915_v1  ;;  %1226 = vst.msk [vmem:[#allocation3 + $0x178] sm:$0xff] %vm1114_vm0, %v7915_v1 }
  0xdd   : > { %1227 = vst.msk [vmem:[#allocation3 + $0x180] sm:$0xff] %vm1114_vm0, %v7915_v1  ;;  %1228 = vst.msk [vmem:[#allocation3 + $0x188] sm:$0xff] %vm1114_vm0, %v7915_v1 }
  0xde   : > { %1229 = vst.msk [vmem:[#allocation3 + $0x190] sm:$0xff] %vm1114_vm0, %v7915_v1  ;;  %1230 = vst.msk [vmem:[#allocation3 + $0x198] sm:$0xff] %vm1114_vm0, %v7915_v1 }
  0xdf   : > { %1231 = vst.msk [vmem:[#allocation3 + $0x1a0] sm:$0xff] %vm1114_vm0, %v7915_v1  ;;  %1232 = vst.msk [vmem:[#allocation3 + $0x1a8] sm:$0xff] %vm1114_vm0, %v7915_v1 }
  0xe0   : > { %1233 = vst.msk [vmem:[#allocation3 + $0x1b0] sm:$0xff] %vm1114_vm0, %v7915_v1  ;;  %1234 = vst.msk [vmem:[#allocation3 + $0x1b8] sm:$0xff] %vm1114_vm0, %v7915_v1 }
  0xe1   : > { %1235 = vst.msk [vmem:[#allocation3 + $0x1c0] sm:$0xff] %vm1114_vm0, %v7915_v1  ;;  %1236 = vst.msk [vmem:[#allocation3 + $0x1c8] sm:$0xff] %vm1114_vm0, %v7915_v1 }
  0xe2   : > { %1237 = vst.msk [vmem:[#allocation3 + $0x1d0] sm:$0xff] %vm1114_vm0, %v7915_v1  ;;  %1238 = vst.msk [vmem:[#allocation3 + $0x1d8] sm:$0xff] %vm1114_vm0, %v7915_v1 }
  0xe3   : > { %1239 = vst.msk [vmem:[#allocation3 + $0x1e0] sm:$0xff] %vm1114_vm0, %v7915_v1  ;;  %1240 = vst.msk [vmem:[#allocation3 + $0x1e8] sm:$0xff] %vm1114_vm0, %v7915_v1 }
  0xe4   : > { %1241 = vst.msk [vmem:[#allocation3 + $0x1f0] sm:$0xff] %vm1114_vm0, %v7915_v1  ;;  %1242 = vst.msk [vmem:[#allocation3 + $0x1f8] sm:$0xff] %vm1114_vm0, %v7915_v1 }
  0xe5   : > { %1244 = vst.msk [vmem:[#allocation4] sm:$0xff] %vm1243_vm1, %v7915_v1  ;;  %1245 = vst.msk [vmem:[#allocation4 + $0x8] sm:$0xff] %vm1243_vm1, %v7915_v1 }
  0xe6   : > { %1246 = vst.msk [vmem:[#allocation4 + $0x10] sm:$0xff] %vm1243_vm1, %v7915_v1  ;;  %1247 = vst.msk [vmem:[#allocation4 + $0x18] sm:$0xff] %vm1243_vm1, %v7915_v1 }
  0xe7   : > { %1248 = vst.msk [vmem:[#allocation4 + $0x20] sm:$0xff] %vm1243_vm1, %v7915_v1  ;;  %1249 = vst.msk [vmem:[#allocation4 + $0x28] sm:$0xff] %vm1243_vm1, %v7915_v1 }
  0xe8   : > { %1250 = vst.msk [vmem:[#allocation4 + $0x30] sm:$0xff] %vm1243_vm1, %v7915_v1  ;;  %1251 = vst.msk [vmem:[#allocation4 + $0x38] sm:$0xff] %vm1243_vm1, %v7915_v1 }
  0xe9   : > { %1252 = vst.msk [vmem:[#allocation4 + $0x40] sm:$0xff] %vm1243_vm1, %v7915_v1  ;;  %1253 = vst.msk [vmem:[#allocation4 + $0x48] sm:$0xff] %vm1243_vm1, %v7915_v1 }
  0xea   : > { %1254 = vst.msk [vmem:[#allocation4 + $0x50] sm:$0xff] %vm1243_vm1, %v7915_v1  ;;  %1255 = vst.msk [vmem:[#allocation4 + $0x58] sm:$0xff] %vm1243_vm1, %v7915_v1 }
  0xeb   : > { %1256 = vst.msk [vmem:[#allocation4 + $0x60] sm:$0xff] %vm1243_vm1, %v7915_v1  ;;  %1257 = vst.msk [vmem:[#allocation4 + $0x68] sm:$0xff] %vm1243_vm1, %v7915_v1 }
  0xec   : > { %1258 = vst.msk [vmem:[#allocation4 + $0x70] sm:$0xff] %vm1243_vm1, %v7915_v1  ;;  %1259 = vst.msk [vmem:[#allocation4 + $0x78] sm:$0xff] %vm1243_vm1, %v7915_v1 }
  0xed   : > { %1260 = vst.msk [vmem:[#allocation4 + $0x80] sm:$0xff] %vm1243_vm1, %v7915_v1  ;;  %1261 = vst.msk [vmem:[#allocation4 + $0x88] sm:$0xff] %vm1243_vm1, %v7915_v1 }
  0xee   : > { %1262 = vst.msk [vmem:[#allocation4 + $0x90] sm:$0xff] %vm1243_vm1, %v7915_v1  ;;  %1263 = vst.msk [vmem:[#allocation4 + $0x98] sm:$0xff] %vm1243_vm1, %v7915_v1 }
  0xef   : > { %1264 = vst.msk [vmem:[#allocation4 + $0xa0] sm:$0xff] %vm1243_vm1, %v7915_v1  ;;  %1265 = vst.msk [vmem:[#allocation4 + $0xa8] sm:$0xff] %vm1243_vm1, %v7915_v1 }
  0xf0   : > { %1266 = vst.msk [vmem:[#allocation4 + $0xb0] sm:$0xff] %vm1243_vm1, %v7915_v1  ;;  %1267 = vst.msk [vmem:[#allocation4 + $0xb8] sm:$0xff] %vm1243_vm1, %v7915_v1 }
  0xf1   : > { %1268 = vst.msk [vmem:[#allocation4 + $0xc0] sm:$0xff] %vm1243_vm1, %v7915_v1  ;;  %1269 = vst.msk [vmem:[#allocation4 + $0xc8] sm:$0xff] %vm1243_vm1, %v7915_v1 }
  0xf2   : > { %1270 = vst.msk [vmem:[#allocation4 + $0xd0] sm:$0xff] %vm1243_vm1, %v7915_v1  ;;  %1271 = vst.msk [vmem:[#allocation4 + $0xd8] sm:$0xff] %vm1243_vm1, %v7915_v1 }
  0xf3   : > { %1272 = vst.msk [vmem:[#allocation4 + $0xe0] sm:$0xff] %vm1243_vm1, %v7915_v1  ;;  %1273 = vst.msk [vmem:[#allocation4 + $0xe8] sm:$0xff] %vm1243_vm1, %v7915_v1 }
  0xf4   : > { %1274 = vst.msk [vmem:[#allocation4 + $0xf0] sm:$0xff] %vm1243_vm1, %v7915_v1  ;;  %1275 = vst.msk [vmem:[#allocation4 + $0xf8] sm:$0xff] %vm1243_vm1, %v7915_v1 }
  0xf5   : > { %1276 = vst.msk [vmem:[#allocation4 + $0x100] sm:$0xff] %vm1243_vm1, %v7915_v1  ;;  %1277 = vst.msk [vmem:[#allocation4 + $0x108] sm:$0xff] %vm1243_vm1, %v7915_v1 }
  0xf6   : > { %1278 = vst.msk [vmem:[#allocation4 + $0x110] sm:$0xff] %vm1243_vm1, %v7915_v1  ;;  %1279 = vst.msk [vmem:[#allocation4 + $0x118] sm:$0xff] %vm1243_vm1, %v7915_v1 }
  0xf7   : > { %1280 = vst.msk [vmem:[#allocation4 + $0x120] sm:$0xff] %vm1243_vm1, %v7915_v1  ;;  %1281 = vst.msk [vmem:[#allocation4 + $0x128] sm:$0xff] %vm1243_vm1, %v7915_v1 }
  0xf8   : > { %1282 = vst.msk [vmem:[#allocation4 + $0x130] sm:$0xff] %vm1243_vm1, %v7915_v1  ;;  %1283 = vst.msk [vmem:[#allocation4 + $0x138] sm:$0xff] %vm1243_vm1, %v7915_v1 }
  0xf9   : > { %1284 = vst.msk [vmem:[#allocation4 + $0x140] sm:$0xff] %vm1243_vm1, %v7915_v1  ;;  %1285 = vst.msk [vmem:[#allocation4 + $0x148] sm:$0xff] %vm1243_vm1, %v7915_v1 }
  0xfa   : > { %1286 = vst.msk [vmem:[#allocation4 + $0x150] sm:$0xff] %vm1243_vm1, %v7915_v1  ;;  %1287 = vst.msk [vmem:[#allocation4 + $0x158] sm:$0xff] %vm1243_vm1, %v7915_v1 }
  0xfb   : > { %1288 = vst.msk [vmem:[#allocation4 + $0x160] sm:$0xff] %vm1243_vm1, %v7915_v1  ;;  %1289 = vst.msk [vmem:[#allocation4 + $0x168] sm:$0xff] %vm1243_vm1, %v7915_v1 }
  0xfc   : > { %1290 = vst.msk [vmem:[#allocation4 + $0x170] sm:$0xff] %vm1243_vm1, %v7915_v1  ;;  %1291 = vst.msk [vmem:[#allocation4 + $0x178] sm:$0xff] %vm1243_vm1, %v7915_v1 }
  0xfd   : > { %1292 = vst.msk [vmem:[#allocation4 + $0x180] sm:$0xff] %vm1243_vm1, %v7915_v1  ;;  %1293 = vst.msk [vmem:[#allocation4 + $0x188] sm:$0xff] %vm1243_vm1, %v7915_v1 }
  0xfe   : > { %1294 = vst.msk [vmem:[#allocation4 + $0x190] sm:$0xff] %vm1243_vm1, %v7915_v1  ;;  %1295 = vst.msk [vmem:[#allocation4 + $0x198] sm:$0xff] %vm1243_vm1, %v7915_v1 }
  0xff   : > { %1296 = vst.msk [vmem:[#allocation4 + $0x1a0] sm:$0xff] %vm1243_vm1, %v7915_v1  ;;  %1297 = vst.msk [vmem:[#allocation4 + $0x1a8] sm:$0xff] %vm1243_vm1, %v7915_v1 }
 0x100   : > { %1298 = vst.msk [vmem:[#allocation4 + $0x1b0] sm:$0xff] %vm1243_vm1, %v7915_v1  ;;  %1299 = vst.msk [vmem:[#allocation4 + $0x1b8] sm:$0xff] %vm1243_vm1, %v7915_v1 }
 0x101   : > { %1300 = vst.msk [vmem:[#allocation4 + $0x1c0] sm:$0xff] %vm1243_vm1, %v7915_v1  ;;  %1301 = vst.msk [vmem:[#allocation4 + $0x1c8] sm:$0xff] %vm1243_vm1, %v7915_v1 }
 0x102   : > { %1302 = vst.msk [vmem:[#allocation4 + $0x1d0] sm:$0xff] %vm1243_vm1, %v7915_v1  ;;  %1303 = vst.msk [vmem:[#allocation4 + $0x1d8] sm:$0xff] %vm1243_vm1, %v7915_v1 }
 0x103   : > { %1304 = vst.msk [vmem:[#allocation4 + $0x1e0] sm:$0xff] %vm1243_vm1, %v7915_v1  ;;  %1305 = vst.msk [vmem:[#allocation4 + $0x1e8] sm:$0xff] %vm1243_vm1, %v7915_v1 }
 0x104   : > { %1306 = vst.msk [vmem:[#allocation4 + $0x1f0] sm:$0xff] %vm1243_vm1, %v7915_v1  ;;  %1307 = vst.msk [vmem:[#allocation4 + $0x1f8] sm:$0xff] %vm1243_vm1, %v7915_v1 }
 0x105 PF: > { %v1436_v2 = vld [vmem:[%s8469_s9] sm:$0xff]  ;;  %v1437_v3 = vld [vmem:[%s8469_s9 + $0x8] sm:$0xff]  ;;  %vm1564_vm2 = vcmask 130048   ;;  %v1438_v8 = vld [vmem:[%s8469_s9 + $0x10] sm:$0xff]  ;;  %vm3809_vm4 = vcmask 7168   ;;  %p6310_p3 = scmp.ne.s32.totalorder %s7888_s16, 1 }
 0x106   : > { %v1452_v4 = vld [vmem:[%s8469_s9 + $0x80] sm:$0xff]  ;;  %v7026_v5 = vpack.c.bf16 %v1437_v3, %v1436_v2  ;;  %vm8865_vm3 = vmpackc.low %vm1564_vm2, %vm1564_vm2  ;;  %v1453_v7 = vld [vmem:[%s8469_s9 + $0x88] sm:$0xff] }
 0x107   : > { %v7074_v9 = vpack.c.bf16 %v1453_v7, %v1452_v4  ;;  %v1439_v10 = vld [vmem:[%s8469_s9 + $0x18] sm:$0xff]  ;;  %v1454_v11 = vld [vmem:[%s8469_s9 + $0x90] sm:$0xff]  ;;  %v1440_v15 = vld [vmem:[%s8469_s9 + $0x20] sm:$0xff] }
 0x108   : > { %v1455_v12 = vld [vmem:[%s8469_s9 + $0x98] sm:$0xff]  ;;  %7028 = vmatprep.subr.msk.bf16.mxu0 %vm8865_vm3, %v7026_v5  ;;  %v7032_v13 = vpack.c.bf16 %v1439_v10, %v1438_v8  ;;  %v1441_v16 = vld [vmem:[%s8469_s9 + $0x28] sm:$0xff]  ;;  %v1456_v17 = vld [vmem:[%s8469_s9 + $0xa0] sm:$0xff] }
 0x109   : > { %v7080_v14 = vpack.c.bf16 %v1455_v12, %v1454_v11  ;;  %7076 = vmatprep.subr.msk.bf16.mxu1 %vm8865_vm3, %v7074_v9  ;;  %7031 = vmatpush3.bf16.xpose.msk.msra.mxu0 %vm8865_vm3, %v7026_v5  ;;  %v1457_v18 = vld [vmem:[%s8469_s9 + $0xa8] sm:$0xff]  ;;  %v7038_v19 = vpack.c.bf16 %v1441_v16, %v1440_v15  ;;  %v1308_v21 = vld [vmem:[%s8467_s25] sm:$0xff]  ;;  %v1442_v25 = vld [vmem:[%s8469_s9 + $0x30] sm:$0xff] }
 0x10a   : > { %7079 = vmatpush3.bf16.xpose.msk.msra.mxu1 %vm8865_vm3, %v7074_v9  ;;  %7034 = vmatprep.subr.msk.bf16.mxu0 %vm8865_vm3, %v7032_v13  ;;  %v7086_v20 = vpack.c.bf16 %v1457_v18, %v1456_v17  ;;  %v1324_v22 = vld [vmem:[%s8467_s25 + $0x80] sm:$0xff]  ;;  %v1372_v23 = vmul.f32 0.25, %v1308_v21  ;;  %v1443_v26 = vld [vmem:[%s8469_s9 + $0x38] sm:$0xff]  ;;  %v1458_v27 = vld [vmem:[%s8469_s9 + $0xb0] sm:$0xff] }
 0x10b   : > { %7082 = vmatprep.subr.msk.bf16.mxu1 %vm8865_vm3, %v7080_v14  ;;  %v1388_v24 = vmul.f32 0.25, %v1324_v22  ;;  %v1459_v28 = vld [vmem:[%s8469_s9 + $0xb8] sm:$0xff]  ;;  %v7044_v29 = vpack.c.bf16 %v1443_v26, %v1442_v25  ;;  %v1444_v31 = vld [vmem:[%s8469_s9 + $0x40] sm:$0xff]  ;;  %v1445_v32 = vld [vmem:[%s8469_s9 + $0x48] sm:$0xff] }
 0x10c   : > { %6610 = vmatprep.mubr.msk.f32.mxu0 %vm1564_vm2, %v1372_v23  ;;  %v7092_v30 = vpack.c.bf16 %v1459_v28, %v1458_v27  ;;  %v1460_v33 = vld [vmem:[%s8469_s9 + $0xc0] sm:$0xff]  ;;  %v1461_v34 = vld [vmem:[%s8469_s9 + $0xc8] sm:$0xff]  ;;  %v7050_v35 = vpack.c.bf16 %v1445_v32, %v1444_v31  ;;  %v1446_v37 = vld [vmem:[%s8469_s9 + $0x50] sm:$0xff] }
 0x10d   : > { %6666 = vmatprep.mubr.msk.f32.mxu1 %vm1564_vm2, %v1388_v24  ;;  %v7098_v36 = vpack.c.bf16 %v1461_v34, %v1460_v33  ;;  %v1447_v38 = vld [vmem:[%s8469_s9 + $0x58] sm:$0xff]  ;;  %v1462_v39 = vld [vmem:[%s8469_s9 + $0xd0] sm:$0xff]  ;;  %v1448_v43 = vld [vmem:[%s8469_s9 + $0x60] sm:$0xff] }
 0x10e   : > { %v1463_v40 = vld [vmem:[%s8469_s9 + $0xd8] sm:$0xff]  ;;  %v7056_v41 = vpack.c.bf16 %v1447_v38, %v1446_v37  ;;  %v1449_v44 = vld [vmem:[%s8469_s9 + $0x68] sm:$0xff]  ;;  %v1464_v45 = vld [vmem:[%s8469_s9 + $0xe0] sm:$0xff] }
 0x10f   : > { %v7104_v42 = vpack.c.bf16 %v1463_v40, %v1462_v39  ;;  %v1465_v46 = vld [vmem:[%s8469_s9 + $0xe8] sm:$0xff]  ;;  %v7062_v47 = vpack.c.bf16 %v1449_v44, %v1448_v43  ;;  %v1450_v49 = vld [vmem:[%s8469_s9 + $0x70] sm:$0xff]  ;;  %v1451_v50 = vld [vmem:[%s8469_s9 + $0x78] sm:$0xff] }
 0x110   : > { %v7110_v48 = vpack.c.bf16 %v1465_v46, %v1464_v45  ;;  %v1466_v51 = vld [vmem:[%s8469_s9 + $0xf0] sm:$0xff]  ;;  %v1467_v52 = vld [vmem:[%s8469_s9 + $0xf8] sm:$0xff]  ;;  %v7068_v53 = vpack.c.bf16 %v1451_v50, %v1450_v49  ;;  %v1468_v55 = vld [vmem:[%s8469_s9 + $0x100] sm:$0xff] }
 0x111   : > { %7037 = vmatpush3.bf16.xpose.msk.msra.mxu0 %vm8865_vm3, %v7032_v13  ;;  %v7116_v54 = vpack.c.bf16 %v1467_v52, %v1466_v51  ;;  %v1469_v56 = vld [vmem:[%s8469_s9 + $0x108] sm:$0xff]  ;;  %v1484_v57 = vld [vmem:[%s8469_s9 + $0x180] sm:$0xff]  ;;  %v1310_v63 = vld [vmem:[%s8467_s25 + $0x10] sm:$0xff] }
 0x112   : > { %7085 = vmatpush3.bf16.xpose.msk.msra.mxu1 %vm8865_vm3, %v7080_v14  ;;  %7040 = vmatprep.subr.msk.bf16.mxu0 %vm8865_vm3, %v7038_v19  ;;  %v1485_v58 = vld [vmem:[%s8469_s9 + $0x188] sm:$0xff]  ;;  %v7122_v59 = vpack.c.bf16 %v1469_v56, %v1468_v55  ;;  %v1326_v1 = vld [vmem:[%s8467_s25 + $0x90] sm:$0xff]  ;;  %v1471_v3 = vld [vmem:[%s8469_s9 + $0x118] sm:$0xff]  ;;  %v1374_v9 = vmul.f32 0.25, %v1310_v63 }
 0x113   : > { %7088 = vmatprep.subr.msk.bf16.mxu1 %vm8865_vm3, %v7086_v20  ;;  %v7170_v60 = vpack.c.bf16 %v1485_v58, %v1484_v57  ;;  %v1309_v61 = vld [vmem:[%s8467_s25 + $0x8] sm:$0xff]  ;;  %v1470_v2 = vld [vmem:[%s8469_s9 + $0x110] sm:$0xff]  ;;  %v1311_v5 = vld [vmem:[%s8467_s25 + $0x18] sm:$0xff]  ;;  %v1390_v12 = vmul.f32 0.25, %v1326_v1 }
 0x114   : > { %v1325_v62 = vld [vmem:[%s8467_s25 + $0x88] sm:$0xff]  ;;  %v1373_v0 = vmul.f32 0.25, %v1309_v61  ;;  %v1486_v7 = vld [vmem:[%s8469_s9 + $0x190] sm:$0xff]  ;;  %v1487_v8 = vld [vmem:[%s8469_s9 + $0x198] sm:$0xff]  ;;  %v7128_v13 = vpack.c.bf16 %v1471_v3, %v1470_v2  ;;  %v1375_v15 = vmul.f32 0.25, %v1311_v5 }
 0x115   : > { %v1389_v4 = vmul.f32 0.25, %v1325_v62  ;;  %v1327_v10 = vld [vmem:[%s8467_s25 + $0x98] sm:$0xff]  ;;  %v1312_v11 = vld [vmem:[%s8467_s25 + $0x20] sm:$0xff]  ;;  %v7176_v16 = vpack.c.bf16 %v1487_v8, %v1486_v7  ;;  %v1329_v21 = vld [vmem:[%s8467_s25 + $0xa8] sm:$0xff] }
 0x116   : > { %v1328_v14 = vld [vmem:[%s8467_s25 + $0xa0] sm:$0xff]  ;;  %v1391_v17 = vmul.f32 0.25, %v1327_v10  ;;  %v1376_v18 = vmul.f32 0.25, %v1312_v11  ;;  %v1473_v23 = vld [vmem:[%s8469_s9 + $0x128] sm:$0xff]  ;;  %v1314_v27 = vld [vmem:[%s8467_s25 + $0x30] sm:$0xff]  ;;  %v1393_v28 = vmul.f32 0.25, %v1329_v21 }
 0x117   : > { %v1472_v22 = vld [vmem:[%s8469_s9 + $0x120] sm:$0xff]  ;;  %v1489_v26 = vld [vmem:[%s8469_s9 + $0x1a8] sm:$0xff]  ;;  %v1331_v32 = vld [vmem:[%s8467_s25 + $0xb8] sm:$0xff] }
 0x118   : > { %v1488_v25 = vld [vmem:[%s8469_s9 + $0x1a0] sm:$0xff]  ;;  %v7134_v31 = vpack.c.bf16 %v1473_v23, %v1472_v22  ;;  %v1395_v39 = vmul.f32 0.25, %v1331_v32  ;;  %v1333_v43 = vld [vmem:[%s8467_s25 + $0xc8] sm:$0xff]  ;;  %v1474_v44 = vld [vmem:[%s8469_s9 + $0x130] sm:$0xff] }
 0x119   : > { %7043 = vmatpush3.bf16.xpose.msk.msra.mxu0 %vm8865_vm3, %v7038_v19  ;;  %v1313_v19 = vld [vmem:[%s8467_s25 + $0x28] sm:$0xff]  ;;  %v1316_v33 = vld [vmem:[%s8467_s25 + $0x40] sm:$0xff]  ;;  %v7182_v34 = vpack.c.bf16 %v1489_v26, %v1488_v25  ;;  %v1475_v45 = vld [vmem:[%s8469_s9 + $0x138] sm:$0xff]  ;;  %v1397_v50 = vmul.f32 0.25, %v1333_v43 }
 0x11a   : > { %7091 = vmatpush3.bf16.xpose.msk.msra.mxu1 %vm8865_vm3, %v7086_v20  ;;  %7046 = vmatprep.subr.msk.bf16.mxu0 %vm8865_vm3, %v7044_v29  ;;  %v1392_v20 = vmul.f32 0.25, %v1328_v14  ;;  %v1377_v24 = vmul.f32 0.25, %v1313_v19  ;;  %v1380_v40 = vmul.f32 0.25, %v1316_v33  ;;  %v1490_v46 = vld [vmem:[%s8469_s9 + $0x1b0] sm:$0xff]  ;;  %v1319_v51 = vld [vmem:[%s8467_s25 + $0x58] sm:$0xff]  ;;  %v1320_v55 = vld [vmem:[%s8467_s25 + $0x60] sm:$0xff] }
 0x11b   : > { %7094 = vmatprep.subr.msk.bf16.mxu1 %vm8865_vm3, %v7092_v30  ;;  %v1318_v49 = vld [vmem:[%s8467_s25 + $0x50] sm:$0xff]  ;;  %v1336_v58 = vld [vmem:[%s8467_s25 + $0xe0] sm:$0xff]  ;;  %v1384_v62 = vmul.f32 0.25, %v1320_v55  ;;  %v1321_v63 = vld [vmem:[%s8467_s25 + $0x68] sm:$0xff] }
 0x11c   : > { %v1334_v52 = vld [vmem:[%s8467_s25 + $0xd0] sm:$0xff]  ;;  %v1382_v57 = vmul.f32 0.25, %v1318_v49  ;;  %v1337_v1 = vld [vmem:[%s8467_s25 + $0xe8] sm:$0xff]  ;;  %v1476_v2 = vld [vmem:[%s8469_s9 + $0x140] sm:$0xff]  ;;  %v1385_v7 = vmul.f32 0.25, %v1321_v63 }
 0x11d   : > { %v1477_v3 = vld [vmem:[%s8469_s9 + $0x148] sm:$0xff]  ;;  %v1322_v8 = vld [vmem:[%s8467_s25 + $0x70] sm:$0xff]  ;;  %v1323_v10 = vld [vmem:[%s8467_s25 + $0x78] sm:$0xff] }
 0x11e   : > { %v1493_v5 = vld [vmem:[%s8469_s9 + $0x1c8] sm:$0xff]  ;;  %v1338_v11 = vld [vmem:[%s8467_s25 + $0xf0] sm:$0xff]  ;;  %v1340_v14 = vld [vmem:[%s8467_s25 + $0x100] sm:$0xff] }
 0x11f   : > { %v1402_v19 = vmul.f32 0.25, %v1338_v11  ;;  %v1404_v21 = vmul.f32 0.25, %v1340_v14  ;;  %v1478_v23 = vld [vmem:[%s8469_s9 + $0x150] sm:$0xff]  ;;  %v1495_v26 = vld [vmem:[%s8469_s9 + $0x1d8] sm:$0xff]  ;;  %v1497_v32 = vld [vmem:[%s8469_s9 + $0x1e8] sm:$0xff] }
 0x120   : > { %v1494_v25 = vld [vmem:[%s8469_s9 + $0x1d0] sm:$0xff]  ;;  %v1345_v55 = vld [vmem:[%s8467_s25 + $0x128] sm:$0xff]  ;;  %v1347_v63 = vld [vmem:[%s8467_s25 + $0x138] sm:$0xff] }
 0x121   : > { %7049 = vmatpush3.bf16.xpose.msk.msra.mxu0 %vm8865_vm3, %v7044_v29  ;;  %v1315_v29 = vld [vmem:[%s8467_s25 + $0x38] sm:$0xff]  ;;  %v1342_v43 = vld [vmem:[%s8467_s25 + $0x110] sm:$0xff] }
 0x122   : > { %7097 = vmatpush3.bf16.xpose.msk.msra.mxu1 %vm8865_vm3, %v7092_v30  ;;  %7052 = vmatprep.subr.msk.bf16.mxu0 %vm8865_vm3, %v7050_v35  ;;  %v1330_v30 = vld [vmem:[%s8467_s25 + $0xb0] sm:$0xff]  ;;  %v1379_v37 = vmul.f32 0.25, %v1315_v29  ;;  %v1480_v29 = vld [vmem:[%s8469_s9 + $0x160] sm:$0xff] }
 0x123   : > { %7100 = vmatprep.subr.msk.bf16.mxu1 %vm8865_vm3, %v7098_v36  ;;  %v1394_v38 = vmul.f32 0.25, %v1330_v30  ;;  %v1481_v30 = vld [vmem:[%s8469_s9 + $0x168] sm:$0xff]  ;;  %v1350_v11 = vld [vmem:[%s8467_s25 + $0x150] sm:$0xff] }
 0x124   : > { %v7158_v33 = vpack.c.bf16 %v1481_v30, %v1480_v29 }
 0x129   : > { %7055 = vmatpush3.bf16.xpose.msk.msra.mxu0 %vm8865_vm3, %v7050_v35  ;;  %v1378_v35 = vmul.f32 0.25, %v1314_v27 }
 0x12a   : > { %7103 = vmatpush3.bf16.xpose.msk.msra.mxu1 %vm8865_vm3, %v7098_v36  ;;  %7058 = vmatprep.subr.msk.bf16.mxu0 %vm8865_vm3, %v7056_v41  ;;  %v1332_v36 = vld [vmem:[%s8467_s25 + $0xc0] sm:$0xff] }
 0x12b   : > { %7106 = vmatprep.subr.msk.bf16.mxu1 %vm8865_vm3, %v7104_v42 }
 0x131   : > { %7061 = vmatpush3.bf16.xpose.msk.msra.mxu0 %vm8865_vm3, %v7056_v41  ;;  %v1317_v41 = vld [vmem:[%s8467_s25 + $0x48] sm:$0xff] }
 0x132   : > { %7109 = vmatpush3.bf16.xpose.msk.msra.mxu1 %vm8865_vm3, %v7104_v42  ;;  %7064 = vmatprep.subr.msk.bf16.mxu0 %vm8865_vm3, %v7062_v47  ;;  %v1396_v42 = vmul.f32 0.25, %v1332_v36  ;;  %v1483_v36 = vld [vmem:[%s8469_s9 + $0x178] sm:$0xff] }
 0x133   : > { %7112 = vmatprep.subr.msk.bf16.mxu1 %vm8865_vm3, %v7110_v48 }
 0x139   : > { %7067 = vmatpush3.bf16.xpose.msk.msra.mxu0 %vm8865_vm3, %v7062_v47  ;;  %v1491_v47 = vld [vmem:[%s8469_s9 + $0x1b8] sm:$0xff] }
 0x13a   : > { %7115 = vmatpush3.bf16.xpose.msk.msra.mxu1 %vm8865_vm3, %v7110_v48  ;;  %7070 = vmatprep.subr.msk.bf16.mxu0 %vm8865_vm3, %v7068_v53  ;;  %v1381_v48 = vmul.f32 0.25, %v1317_v41  ;;  %v7188_v56 = vpack.c.bf16 %v1491_v47, %v1490_v46  ;;  %v1341_v41 = vld [vmem:[%s8467_s25 + $0x108] sm:$0xff]  ;;  %v1406_v47 = vmul.f32 0.25, %v1342_v43 }
 0x13b   : > { %7118 = vmatprep.subr.msk.bf16.mxu1 %vm8865_vm3, %v7116_v54 }
 0x141   : > { %7073 = vmatpush3.bf16.xpose.msk.msra.mxu0 %vm8865_vm3, %v7068_v53  ;;  %v7140_v53 = vpack.c.bf16 %v1475_v45, %v1474_v44  ;;  %v1358_v44 = vld [vmem:[%s8467_s25 + $0x190] sm:$0xff]  ;;  %v1405_v45 = vmul.f32 0.25, %v1341_v41 }
 0x142   : > { %7121 = vmatpush3.bf16.xpose.msk.msra.mxu1 %vm8865_vm3, %v7116_v54  ;;  %7124 = vmatprep.subr.msk.bf16.mxu0 %vm8865_vm3, %v7122_v59  ;;  %v1335_v54 = vld [vmem:[%s8467_s25 + $0xd8] sm:$0xff]  ;;  %v1422_v49 = vmul.f32 0.25, %v1358_v44 }
 0x143   : > { %7172 = vmatprep.subr.msk.bf16.mxu1 %vm8865_vm3, %v7170_v60  ;;  %v1399_v61 = vmul.f32 0.25, %v1335_v54 }
 0x148   : > { %6611 = vmatmul.mubr.msk.f32.vlgmr.msra.gmra.mrb[0].mxu0 %vm1564_vm2, %v1373_v0  ;;  %v1400_v0 = vmul.f32 0.25, %v1336_v58  ;;  %v1346_v58 = vld [vmem:[%s8467_s25 + $0x130] sm:$0xff] }
 0x149   : > { %6667 = vmatmul.mubr.msk.f32.vlgmr.msra.gmra.mrb[0].mxu1 %vm1564_vm2, %v1389_v4  ;;  %7127 = vmatpush3.bf16.xpose.msk.msra.mxu0 %vm8865_vm3, %v7122_v59  ;;  %v1383_v59 = vmul.f32 0.25, %v1319_v51  ;;  %v1492_v4 = vld [vmem:[%s8469_s9 + $0x1c0] sm:$0xff] }
 0x14a   : > { %6613 = vmatprep.mubr.msk.f32.mxu0 %vm1564_vm2, %v1374_v9  ;;  %7175 = vmatpush3.bf16.xpose.msk.msra.mxu1 %vm8865_vm3, %v7170_v60  ;;  %v1398_v60 = vmul.f32 0.25, %v1334_v52  ;;  %v1401_v9 = vmul.f32 0.25, %v1337_v1  ;;  %v1344_v51 = vld [vmem:[%s8467_s25 + $0x120] sm:$0xff]  ;;  %v1363_v1 = vld [vmem:[%s8467_s25 + $0x1b8] sm:$0xff] }
 0x14b   : > { %6669 = vmatprep.mubr.msk.f32.mxu1 %vm1564_vm2, %v1390_v12  ;;  %7130 = vmatprep.subr.msk.bf16.mxu0 %vm8865_vm3, %v7128_v13  ;;  %v7146_v12 = vpack.c.bf16 %v1477_v3, %v1476_v2  ;;  %v1360_v52 = vld [vmem:[%s8467_s25 + $0x1a0] sm:$0xff]  ;;  %v1408_v54 = vmul.f32 0.25, %v1344_v51 }
 0x14c   : > { %6614 = vmatmul.mubr.msk.f32.gmra.mrb[2].mxu0 %vm1564_vm2, %v1375_v15  ;;  %7178 = vmatprep.subr.msk.bf16.mxu1 %vm8865_vm3, %v7176_v16  ;;  %v7194_v15 = vpack.c.bf16 %v1493_v5, %v1492_v4  ;;  %v1348_v2 = vld [vmem:[%s8467_s25 + $0x140] sm:$0xff]  ;;  %v1411_v4 = vmul.f32 0.25, %v1347_v63  ;;  %v1427_v5 = vmul.f32 0.25, %v1363_v1 }
 0x14d   : > { %6670 = vmatmul.mubr.msk.f32.gmra.mrb[2].mxu1 %vm1564_vm2, %v1391_v17  ;;  %6616 = vmatprep.mubr.msk.f32.mxu0 %vm1564_vm2, %v1376_v18  ;;  %v1356_v17 = vld [vmem:[%s8467_s25 + $0x180] sm:$0xff]  ;;  %v1387_v18 = vmul.f32 0.25, %v1323_v10  ;;  %v1365_v10 = vld [vmem:[%s8467_s25 + $0x1c8] sm:$0xff] }
 0x14e   : > { %6672 = vmatprep.mubr.msk.f32.mxu1 %vm1564_vm2, %v1392_v20  ;;  %v1420_v22 = vmul.f32 0.25, %v1356_v17  ;;  %v1364_v3 = vld [vmem:[%s8467_s25 + $0x1c0] sm:$0xff]  ;;  %v1429_v14 = vmul.f32 0.25, %v1365_v10 }
 0x150   : > { %6617 = vmatmul.mubr.msk.f32.gmra.mrb[4].mxu0 %vm1564_vm2, %v1377_v24  ;;  %v1479_v24 = vld [vmem:[%s8469_s9 + $0x158] sm:$0xff] }
 0x151   : > { %7133 = vmatpush3.bf16.xpose.msk.msra.mxu0 %vm8865_vm3, %v7128_v13  ;;  %6673 = vmatmul.mubr.msk.f32.gmra.mrb[4].mxu1 %vm1564_vm2, %v1393_v28  ;;  %v1339_v13 = vld [vmem:[%s8467_s25 + $0xf8] sm:$0xff]  ;;  %v7152_v27 = vpack.c.bf16 %v1479_v24, %v1478_v23  ;;  %v7200_v28 = vpack.c.bf16 %v1495_v26, %v1494_v25  ;;  %v1353_v24 = vld [vmem:[%s8467_s25 + $0x168] sm:$0xff] }
 0x152   : > { %7181 = vmatpush3.bf16.xpose.msk.msra.mxu1 %vm8865_vm3, %v7176_v16  ;;  %7136 = vmatprep.subr.msk.bf16.mxu0 %vm8865_vm3, %v7134_v31  ;;  %v1386_v16 = vmul.f32 0.25, %v1322_v8  ;;  %v1403_v20 = vmul.f32 0.25, %v1339_v13  ;;  %v1349_v8 = vld [vmem:[%s8467_s25 + $0x148] sm:$0xff]  ;;  %v1417_v29 = vmul.f32 0.25, %v1353_v24 }
 0x153   : > { %7184 = vmatprep.subr.msk.bf16.mxu1 %vm8865_vm3, %v7182_v34  ;;  %6619 = vmatprep.mubr.msk.f32.mxu0 %vm1564_vm2, %v1378_v35  ;;  %v1482_v35 = vld [vmem:[%s8469_s9 + $0x170] sm:$0xff]  ;;  %v1413_v13 = vmul.f32 0.25, %v1349_v8  ;;  %v1369_v26 = vld [vmem:[%s8467_s25 + $0x1e8] sm:$0xff] }
 0x154   : > { %6620 = vmatmul.mubr.msk.f32.gmra.mrb[6].mxu0 %vm1564_vm2, %v1379_v37  ;;  %6675 = vmatprep.mubr.msk.f32.mxu1 %vm1564_vm2, %v1394_v38  ;;  %v1498_v37 = vld [vmem:[%s8469_s9 + $0x1f0] sm:$0xff]  ;;  %v1499_v38 = vld [vmem:[%s8469_s9 + $0x1f8] sm:$0xff]  ;;  %v1433_v30 = vmul.f32 0.25, %v1369_v26 }
 0x155   : > { %6676 = vmatmul.mubr.msk.f32.gmra.mrb[6].mxu1 %vm1564_vm2, %v1395_v39  ;;  %6622 = vmatprep.mubr.msk.f32.mxu0 %vm1564_vm2, %v1380_v40  ;;  %v7164_v39 = vpack.c.bf16 %v1483_v36, %v1482_v35  ;;  %v7212_v40 = vpack.c.bf16 %v1499_v38, %v1498_v37 }
 0x156   : > { %6678 = vmatprep.mubr.msk.f32.mxu1 %vm1564_vm2, %v1396_v42  ;;  %v1357_v42 = vld [vmem:[%s8467_s25 + $0x188] sm:$0xff] }
 0x157   : > { %v1421_v46 = vmul.f32 0.25, %v1357_v42 }
 0x158   : > { %6623 = vmatmul.mubr.msk.f32.gmra.mrb[8].mxu0 %vm1564_vm2, %v1381_v48  ;;  %v1343_v48 = vld [vmem:[%s8467_s25 + $0x118] sm:$0xff] }
 0x159   : > { %7139 = vmatpush3.bf16.xpose.msk.msra.mxu0 %vm8865_vm3, %v7134_v31  ;;  %6679 = vmatmul.mubr.msk.f32.gmra.mrb[8].mxu1 %vm1564_vm2, %v1397_v50  ;;  %v1496_v31 = vld [vmem:[%s8469_s9 + $0x1e0] sm:$0xff]  ;;  %v1359_v50 = vld [vmem:[%s8467_s25 + $0x198] sm:$0xff] }
 0x15a   : > { %7187 = vmatpush3.bf16.xpose.msk.msra.mxu1 %vm8865_vm3, %v7182_v34  ;;  %7142 = vmatprep.subr.msk.bf16.mxu0 %vm8865_vm3, %v7140_v53  ;;  %v7206_v34 = vpack.c.bf16 %v1497_v32, %v1496_v31  ;;  %v1423_v6 = vmul.f32 0.25, %v1359_v50  ;;  %v1355_v32 = vld [vmem:[%s8467_s25 + $0x178] sm:$0xff] }
 0x15b   : > { %7190 = vmatprep.subr.msk.bf16.mxu1 %vm8865_vm3, %v7188_v56  ;;  %6625 = vmatprep.mubr.msk.f32.mxu0 %vm1564_vm2, %v1382_v57  ;;  %v1361_v57 = vld [vmem:[%s8467_s25 + $0x1a8] sm:$0xff]  ;;  %v1419_v35 = vmul.f32 0.25, %v1355_v32 }
 0x15c   : > { %6626 = vmatmul.mubr.msk.f32.gmra.mrb[10].mxu0 %vm1564_vm2, %v1383_v59  ;;  %6681 = vmatprep.mubr.msk.f32.mxu1 %vm1564_vm2, %v1398_v60  ;;  %v1362_v59 = vld [vmem:[%s8467_s25 + $0x1b0] sm:$0xff]  ;;  %v1409_v60 = vmul.f32 0.25, %v1345_v55  ;;  %v7916_v55 = vmov 0  }
 0x15d   : > { %6682 = vmatmul.mubr.msk.f32.gmra.mrb[10].mxu1 %vm1564_vm2, %v1399_v61  ;;  %6628 = vmatprep.mubr.msk.f32.mxu0 %vm1564_vm2, %v1384_v62  ;;  %v1425_v61 = vmul.f32 0.25, %v1361_v57  ;;  %v1410_v62 = vmul.f32 0.25, %v1346_v58 }
 0x15e   : > { %6684 = vmatprep.mubr.msk.f32.mxu1 %vm1564_vm2, %v1400_v0  ;;  %v1426_v0 = vmul.f32 0.25, %v1362_v59  ;;  %7438 = vset.pattern.permute.xlu1 %v7916_v55 }
 0x15f   : > { %7439 = vset.pattern.permute.xlu0 %v7916_v55 }
 0x160   : > { %6629 = vmatmul.mubr.msk.f32.gmra.mrb[12].mxu0 %vm1564_vm2, %v1385_v7  ;;  %v1412_v7 = vmul.f32 0.25, %v1348_v2 }
 0x161   : > { %7145 = vmatpush3.bf16.xpose.msk.msra.mxu0 %vm8865_vm3, %v7140_v53  ;;  %6685 = vmatmul.mubr.msk.f32.gmra.mrb[12].mxu1 %vm1564_vm2, %v1401_v9  ;;  %v1407_v53 = vmul.f32 0.25, %v1343_v48  ;;  %v1428_v9 = vmul.f32 0.25, %v1364_v3 }
 0x162   : > { %7193 = vmatpush3.bf16.xpose.msk.msra.mxu1 %vm8865_vm3, %v7188_v56  ;;  %7148 = vmatprep.subr.msk.bf16.mxu0 %vm8865_vm3, %v7146_v12  ;;  %v1424_v56 = vmul.f32 0.25, %v1360_v52 }
 0x163   : > { %7196 = vmatprep.subr.msk.bf16.mxu1 %vm8865_vm3, %v7194_v15  ;;  %6631 = vmatprep.mubr.msk.f32.mxu0 %vm1564_vm2, %v1386_v16  ;;  %v1351_v16 = vld [vmem:[%s8467_s25 + $0x158] sm:$0xff] }
 0x164   : > { %6632 = vmatmul.mubr.msk.f32.gmra.mrb[14].mxu0 %vm1564_vm2, %v1387_v18  ;;  %6687 = vmatprep.mubr.msk.f32.mxu1 %vm1564_vm2, %v1402_v19  ;;  %v1367_v18 = vld [vmem:[%s8467_s25 + $0x1d8] sm:$0xff]  ;;  %v1352_v19 = vld [vmem:[%s8467_s25 + $0x160] sm:$0xff] }
 0x165   : > { %6688 = vmatmul.mubr.msk.f32.gmra.mrb[14].mxu1 %vm1564_vm2, %v1403_v20  ;;  %6722 = vmatprep.mubr.msk.f32.mxu0 %vm1564_vm2, %v1404_v21  ;;  %v1368_v20 = vld [vmem:[%s8467_s25 + $0x1e0] sm:$0xff]  ;;  %v1415_v21 = vmul.f32 0.25, %v1351_v16  ;;  %v1416_v23 = vmul.f32 0.25, %v1352_v19 }
 0x166   : > { %6778 = vmatprep.mubr.msk.f32.mxu1 %vm1564_vm2, %v1420_v22  ;;  %v1431_v22 = vmul.f32 0.25, %v1367_v18  ;;  %v1432_v25 = vmul.f32 0.25, %v1368_v20 }
 0x169   : > { %7151 = vmatpush3.bf16.xpose.msk.msra.mxu0 %vm8865_vm3, %v7146_v12  ;;  %v1366_v12 = vld [vmem:[%s8467_s25 + $0x1d0] sm:$0xff] }
 0x16a   : > { %7199 = vmatpush3.bf16.xpose.msk.msra.mxu1 %vm8865_vm3, %v7194_v15  ;;  %7154 = vmatprep.subr.msk.bf16.mxu0 %vm8865_vm3, %v7152_v27  ;;  %v1414_v15 = vmul.f32 0.25, %v1350_v11  ;;  %v1430_v17 = vmul.f32 0.25, %v1366_v12 }
 0x16b   : > { %7202 = vmatprep.subr.msk.bf16.mxu1 %vm8865_vm3, %v7200_v28 }
 0x171   : > { %7157 = vmatpush3.bf16.xpose.msk.msra.mxu0 %vm8865_vm3, %v7152_v27  ;;  %v1354_v27 = vld [vmem:[%s8467_s25 + $0x170] sm:$0xff] }
 0x172   : > { %7205 = vmatpush3.bf16.xpose.msk.msra.mxu1 %vm8865_vm3, %v7200_v28  ;;  %7160 = vmatprep.subr.msk.bf16.mxu0 %vm8865_vm3, %v7158_v33  ;;  %v1370_v28 = vld [vmem:[%s8467_s25 + $0x1f0] sm:$0xff]  ;;  %v1418_v31 = vmul.f32 0.25, %v1354_v27 }
 0x173   : > { %7208 = vmatprep.subr.msk.bf16.mxu1 %vm8865_vm3, %v7206_v34 }
 0x179   : > { %7163 = vmatpush3.bf16.xpose.msk.msra.mxu0 %vm8865_vm3, %v7158_v33  ;;  %v1434_v33 = vmul.f32 0.25, %v1370_v28 }
 0x17a   : > { %7211 = vmatpush3.bf16.xpose.msk.msra.mxu1 %vm8865_vm3, %v7206_v34  ;;  %7166 = vmatprep.subr.msk.bf16.mxu0 %vm8865_vm3, %v7164_v39  ;;  %v1371_v34 = vld [vmem:[%s8467_s25 + $0x1f8] sm:$0xff] }
 0x17b   : > { %7214 = vmatprep.subr.msk.bf16.mxu1 %vm8865_vm3, %v7212_v40  ;;  %v1435_v36 = vmul.f32 0.25, %v1371_v34 }
 0x181   : > { %7169 = vmatpush3.bf16.xpose.msk.msra.mxu0 %vm8865_vm3, %v7164_v39 }
 0x182   : > { %7217 = vmatpush3.bf16.xpose.msk.msra.mxu1 %vm8865_vm3, %v7212_v40 }
 0x188   : > { %6723 = vmatmul.mubr.msk.f32.vlgmr.msra.gmra.mrb[16].mxu0 %vm1564_vm2, %v1405_v45 }
 0x189   : > { %6779 = vmatmul.mubr.msk.f32.vlgmr.msra.gmra.mrb[16].mxu1 %vm1564_vm2, %v1421_v46  ;;  %6725 = vmatprep.mubr.msk.f32.mxu0 %vm1564_vm2, %v1406_v47 }
 0x18a   : > { %6781 = vmatprep.mubr.msk.f32.mxu1 %vm1564_vm2, %v1422_v49 }
 0x18c   : > { %6726 = vmatmul.mubr.msk.f32.gmra.mrb[18].mxu0 %vm1564_vm2, %v1407_v53 }
 0x18d   : > { %6782 = vmatmul.mubr.msk.f32.gmra.mrb[18].mxu1 %vm1564_vm2, %v1423_v6  ;;  %6728 = vmatprep.mubr.msk.f32.mxu0 %vm1564_vm2, %v1408_v54 }
 0x18e   : > { %6784 = vmatprep.mubr.msk.f32.mxu1 %vm1564_vm2, %v1424_v56 }
 0x190   : > { %6729 = vmatmul.mubr.msk.f32.gmra.mrb[20].mxu0 %vm1564_vm2, %v1409_v60 }
 0x191   : > { %6785 = vmatmul.mubr.msk.f32.gmra.mrb[20].mxu1 %vm1564_vm2, %v1425_v61  ;;  %6731 = vmatprep.mubr.msk.f32.mxu0 %vm1564_vm2, %v1410_v62 }
 0x192   : > { %6787 = vmatprep.mubr.msk.f32.mxu1 %vm1564_vm2, %v1426_v0 }
 0x194   : > { %6732 = vmatmul.mubr.msk.f32.gmra.mrb[22].mxu0 %vm1564_vm2, %v1411_v4 }
 0x195   : > { %6788 = vmatmul.mubr.msk.f32.gmra.mrb[22].mxu1 %vm1564_vm2, %v1427_v5  ;;  %6734 = vmatprep.mubr.msk.f32.mxu0 %vm1564_vm2, %v1412_v7 }
 0x196   : > { %6790 = vmatprep.mubr.msk.f32.mxu1 %vm1564_vm2, %v1428_v9 }
 0x198   : > { %6735 = vmatmul.mubr.msk.f32.gmra.mrb[24].mxu0 %vm1564_vm2, %v1413_v13 }
 0x199   : > { %6791 = vmatmul.mubr.msk.f32.gmra.mrb[24].mxu1 %vm1564_vm2, %v1429_v14  ;;  %6737 = vmatprep.mubr.msk.f32.mxu0 %vm1564_vm2, %v1414_v15 }
 0x19a   : > { %6793 = vmatprep.mubr.msk.f32.mxu1 %vm1564_vm2, %v1430_v17 }
 0x19c   : > { %6738 = vmatmul.mubr.msk.f32.gmra.mrb[26].mxu0 %vm1564_vm2, %v1415_v21 }
 0x19d   : > { %6794 = vmatmul.mubr.msk.f32.gmra.mrb[26].mxu1 %vm1564_vm2, %v1431_v22  ;;  %6740 = vmatprep.mubr.msk.f32.mxu0 %vm1564_vm2, %v1416_v23 }
 0x19e   : > { %6796 = vmatprep.mubr.msk.f32.mxu1 %vm1564_vm2, %v1432_v25 }
 0x1a0   : > { %6741 = vmatmul.mubr.msk.f32.gmra.mrb[28].mxu0 %vm1564_vm2, %v1417_v29 }
 0x1a1   : > { %6797 = vmatmul.mubr.msk.f32.gmra.mrb[28].mxu1 %vm1564_vm2, %v1433_v30  ;;  %6743 = vmatprep.mubr.msk.f32.mxu0 %vm1564_vm2, %v1418_v31 }
 0x1a2   : > { %6799 = vmatprep.mubr.msk.f32.mxu1 %vm1564_vm2, %v1434_v33 }
 0x1a4   : > { %6744 = vmatmul.mubr.msk.f32.gmra.mrb[30].mxu0 %vm1564_vm2, %v1419_v35 }
 0x1a5   : > { %6800 = vmatmul.mubr.msk.f32.gmra.mrb[30].mxu1 %vm1564_vm2, %v1435_v36 }
 0x21b   : > { %v9186_v37 = vpop.f32.mrb[0].mxu0 }
 0x21c   : > { %v9188_v38 = vpop.f32.mrb[0].mxu1  ;;  %2595 = vmax.xlane.f32.xlu0 %v9186_v37  ;;  %v9191_v39 = vpop.f32.mrb[1].mxu0 }
 0x21d   : > { %2627 = vmax.xlane.f32.xlu1 %v9188_v38  ;;  %v9194_v40 = vpop.f32.mrb[1].mxu1 }
 0x21f   : > { %v9196_v41 = vpop.f32.mrb[2].mxu0 }
 0x220   : > { %2593 = vmax.xlane.f32.xlu0 %v9191_v39  ;;  %v9199_v42 = vpop.f32.mrb[3].mxu0  ;;  %v9201_v43 = vpop.f32.mrb[2].mxu1 }
 0x221   : > { %2599 = vmax.xlane.f32.xlu1 %v9196_v41  ;;  %v9204_v44 = vpop.f32.mrb[3].mxu1 }
 0x223   : > { %v9206_v45 = vpop.f32.mrb[4].mxu0 }
 0x224   : > { %2625 = vmax.xlane.f32.xlu0 %v9194_v40  ;;  %v9209_v46 = vpop.f32.mrb[5].mxu0  ;;  %v9211_v47 = vpop.f32.mrb[4].mxu1 }
 0x225   : > { %11510 = vst [vmem:[#allocation11_spill] sm:$0xff] %v9209_v46  ;;  %11511 = vst [vmem:[#allocation12_spill] sm:$0xff] %v9211_v47  ;;  %2631 = vmax.xlane.f32.xlu1 %v9201_v43  ;;  %v9214_v48 = vpop.f32.mrb[5].mxu1 }
 0x226   : > { %11512 = vst [vmem:[#allocation13_spill] sm:$0xff] %v9214_v48 }
 0x227   : > { %v9216_v49 = vpop.f32.mrb[6].mxu0 }
 0x228   : > { %11513 = vst [vmem:[#allocation14_spill] sm:$0xff] %v9216_v49  ;;  %2629 = vmax.xlane.f32.xlu0 %v9204_v44  ;;  %v9219_v50 = vpop.f32.mrb[7].mxu0  ;;  %v9221_v51 = vpop.f32.mrb[6].mxu1 }
 0x229   : > { %11514 = vst [vmem:[#allocation15_spill] sm:$0xff] %v9219_v50  ;;  %11515 = vst [vmem:[#allocation16_spill] sm:$0xff] %v9221_v51  ;;  %2597 = vmax.xlane.f32.xlu1 %v9199_v42  ;;  %v9224_v52 = vpop.f32.mrb[7].mxu1 }
 0x22a   : > { %11516 = vst [vmem:[#allocation17_spill] sm:$0xff] %v9224_v52 }
 0x22b   : > { %v9226_v53 = vpop.f32.mrb[8].mxu0 }
 0x22c   : > { %11517 = vst [vmem:[#allocation18_spill] sm:$0xff] %v9226_v53  ;;  %2601 = vmax.xlane.f32.xlu0 %v9209_v46  ;;  %v9229_v6 = vpop.f32.mrb[9].mxu0  ;;  %v9231_v54 = vpop.f32.mrb[8].mxu1 }
 0x22d   : > { %11518 = vst [vmem:[#allocation19_spill] sm:$0xff] %v9229_v6  ;;  %11519 = vst [vmem:[#allocation20_spill] sm:$0xff] %v9231_v54  ;;  %2603 = vmax.xlane.f32.xlu1 %v9206_v45  ;;  %v9234_v56 = vpop.f32.mrb[9].mxu1 }
 0x22e   : > { %11520 = vst [vmem:[#allocation21_spill] sm:$0xff] %v9234_v56 }
 0x22f   : > { %v9236_v57 = vpop.f32.mrb[10].mxu0 }
 0x230   : > { %11521 = vst [vmem:[#allocation22_spill] sm:$0xff] %v9236_v57  ;;  %2633 = vmax.xlane.f32.xlu0 %v9214_v48  ;;  %v9239_v58 = vpop.f32.mrb[11].mxu0  ;;  %v9241_v59 = vpop.f32.mrb[10].mxu1 }
 0x231   : > { %11522 = vst [vmem:[#allocation23_spill] sm:$0xff] %v9239_v58  ;;  %11523 = vst [vmem:[#allocation24_spill] sm:$0xff] %v9241_v59  ;;  %2635 = vmax.xlane.f32.xlu1 %v9211_v47  ;;  %v9244_v60 = vpop.f32.mrb[11].mxu1 }
 0x232   : > { %11524 = vst [vmem:[#allocation25_spill] sm:$0xff] %v9244_v60 }
 0x233   : > { %v9246_v61 = vpop.f32.mrb[12].mxu0 }
 0x234   : > { %11525 = vst [vmem:[#allocation26_spill] sm:$0xff] %v9246_v61  ;;  %2605 = vmax.xlane.f32.xlu0 %v9219_v50  ;;  %v9249_v62 = vpop.f32.mrb[13].mxu0  ;;  %v9251_v63 = vpop.f32.mrb[12].mxu1 }
 0x235   : > { %11526 = vst [vmem:[#allocation27_spill] sm:$0xff] %v9249_v62  ;;  %11527 = vst [vmem:[#allocation28_spill] sm:$0xff] %v9251_v63  ;;  %2607 = vmax.xlane.f32.xlu1 %v9216_v49  ;;  %v9254_v0 = vpop.f32.mrb[13].mxu1 }
 0x236   : > { %11528 = vst [vmem:[#allocation29_spill] sm:$0xff] %v9254_v0 }
 0x237   : > { %v9256_v1 = vpop.f32.mrb[14].mxu0 }
 0x238   : > { %11529 = vst [vmem:[#allocation30_spill] sm:$0xff] %v9256_v1  ;;  %2637 = vmax.xlane.f32.xlu0 %v9224_v52  ;;  %v9259_v2 = vpop.f32.mrb[15].mxu0  ;;  %v9261_v3 = vpop.f32.mrb[14].mxu1 }
 0x239   : > { %11530 = vst [vmem:[#allocation31_spill] sm:$0xff] %v9259_v2  ;;  %11531 = vst [vmem:[#allocation32_spill] sm:$0xff] %v9261_v3  ;;  %2639 = vmax.xlane.f32.xlu1 %v9221_v51  ;;  %v9264_v4 = vpop.f32.mrb[15].mxu1 }
 0x23a   : > { %11532 = vst [vmem:[#allocation33_spill] sm:$0xff] %v9264_v4 }
 0x23c   : > { %2609 = vmax.xlane.f32.xlu0 %v9229_v6  ;;  %v9638_v6 = vld [vmem:[#allocation2 + $0xe0] sm:$0xff] }
 0x23d   : > { %2611 = vmax.xlane.f32.xlu1 %v9226_v53 }
 0x240   : > { %2641 = vmax.xlane.f32.xlu0 %v9234_v56 }
 0x241   : > { %2643 = vmax.xlane.f32.xlu1 %v9231_v54 }
 0x244   : > { %2613 = vmax.xlane.f32.xlu0 %v9239_v58 }
 0x245   : > { %2615 = vmax.xlane.f32.xlu1 %v9236_v57 }
 0x248   : > { %2645 = vmax.xlane.f32.xlu0 %v9244_v60 }
 0x249   : > { %2647 = vmax.xlane.f32.xlu1 %v9241_v59  ;;  %v9576_v59 = vld [vmem:[#allocation2 + $0x50] sm:$0xff] }
 0x24c   : > { %2617 = vmax.xlane.f32.xlu0 %v9249_v62  ;;  %v9552_v62 = vld [vmem:[#allocation2 + $0xc0] sm:$0xff] }
 0x24d   : > { %2619 = vmax.xlane.f32.xlu1 %v9246_v61 }
 0x250   : > { %2649 = vmax.xlane.f32.xlu0 %v9254_v0 }
 0x251   : > { %2651 = vmax.xlane.f32.xlu1 %v9251_v63 }
 0x254   : > { %2621 = vmax.xlane.f32.xlu0 %v9259_v2 }
 0x255   : > { %2623 = vmax.xlane.f32.xlu1 %v9256_v1 }
 0x258   : > { %2653 = vmax.xlane.f32.xlu0 %v9264_v4 }
 0x259   : > { %2655 = vmax.xlane.f32.xlu1 %v9261_v3  ;;  %v9499_v3 = vld [vmem:[#allocation2 + $0x30] sm:$0xff] }
 0x25b   : > { %v9282_v5 = vpop.f32.mrb[16].mxu0 }
 0x25c   : > { %11533 = vst [vmem:[#allocation34_spill] sm:$0xff] %v9282_v5  ;;  %v9284_v7 = vpop.f32.mrb[17].mxu0  ;;  %v9286_v8 = vpop.f32.mrb[16].mxu1 }
 0x25d   : > { %11534 = vst [vmem:[#allocation35_spill] sm:$0xff] %v9284_v7  ;;  %11535 = vst [vmem:[#allocation36_spill] sm:$0xff] %v9286_v8  ;;  %2657 = vmax.xlane.f32.xlu0 %v9284_v7  ;;  %2659 = vmax.xlane.f32.xlu1 %v9282_v5  ;;  %v9290_v9 = vpop.f32.mrb[17].mxu1  ;;  %v1531_v5 = vld [vmem:[%s8471_s26 + $0xf8] sm:$0xff] }
 0x25e   : > { %11536 = vst [vmem:[#allocation37_spill] sm:$0xff] %v9290_v9 }
 0x25f   : > { %v9292_v10 = vpop.f32.mrb[18].mxu0 }
 0x260   : > { %11537 = vst [vmem:[#allocation38_spill] sm:$0xff] %v9292_v10  ;;  %v9294_v11 = vpop.f32.mrb[19].mxu0  ;;  %v9296_v12 = vpop.f32.mrb[18].mxu1 }
 0x261   : > { %11538 = vst [vmem:[#allocation39_spill] sm:$0xff] %v9294_v11  ;;  %11539 = vst [vmem:[#allocation40_spill] sm:$0xff] %v9296_v12  ;;  %2689 = vmax.xlane.f32.xlu0 %v9290_v9  ;;  %2691 = vmax.xlane.f32.xlu1 %v9286_v8  ;;  %v9300_v13 = vpop.f32.mrb[19].mxu1  ;;  %v1529_v9 = vld [vmem:[%s8471_s26 + $0xe8] sm:$0xff] }
 0x262   : > { %11540 = vst [vmem:[#allocation41_spill] sm:$0xff] %v9300_v13 }
 0x263   : > { %v9302_v14 = vpop.f32.mrb[20].mxu0 }
 0x264   : > { %11541 = vst [vmem:[#allocation42_spill] sm:$0xff] %v9302_v14  ;;  %v9304_v15 = vpop.f32.mrb[21].mxu0  ;;  %v9306_v16 = vpop.f32.mrb[20].mxu1 }
 0x265   : > { %11542 = vst [vmem:[#allocation43_spill] sm:$0xff] %v9304_v15  ;;  %11543 = vst [vmem:[#allocation44_spill] sm:$0xff] %v9306_v16  ;;  %2661 = vmax.xlane.f32.xlu0 %v9294_v11  ;;  %2663 = vmax.xlane.f32.xlu1 %v9292_v10  ;;  %v9310_v17 = vpop.f32.mrb[21].mxu1  ;;  %v1528_v10 = vld [vmem:[%s8471_s26 + $0xe0] sm:$0xff] }
 0x266   : > { %11544 = vst [vmem:[#allocation45_spill] sm:$0xff] %v9310_v17  ;;  %v7274_v7 = vpack.c.bf16 %v1529_v9, %v1528_v10 }
 0x267   : > { %v9312_v18 = vpop.f32.mrb[22].mxu0 }
 0x268   : > { %11545 = vst [vmem:[#allocation46_spill] sm:$0xff] %v9312_v18  ;;  %v9314_v19 = vpop.f32.mrb[23].mxu0  ;;  %v9316_v20 = vpop.f32.mrb[22].mxu1 }
 0x269   : > { %11546 = vst [vmem:[#allocation47_spill] sm:$0xff] %v9314_v19  ;;  %11547 = vst [vmem:[#allocation48_spill] sm:$0xff] %v9316_v20  ;;  %2693 = vmax.xlane.f32.xlu0 %v9300_v13  ;;  %2695 = vmax.xlane.f32.xlu1 %v9296_v12  ;;  %v9320_v21 = vpop.f32.mrb[23].mxu1  ;;  %v9459_v12 = vld [vmem:[#allocation2 + $0x20] sm:$0xff] }
 0x26a   : > { %11548 = vst [vmem:[#allocation49_spill] sm:$0xff] %v9320_v21 }
 0x26b   : > { %v9322_v22 = vpop.f32.mrb[24].mxu0 }
 0x26c   : > { %11549 = vst [vmem:[#allocation50_spill] sm:$0xff] %v9322_v22  ;;  %v9324_v23 = vpop.f32.mrb[25].mxu0  ;;  %v9326_v24 = vpop.f32.mrb[24].mxu1 }
 0x26d   : > { %11550 = vst [vmem:[#allocation51_spill] sm:$0xff] %v9324_v23  ;;  %11551 = vst [vmem:[#allocation52_spill] sm:$0xff] %v9326_v24  ;;  %2665 = vmax.xlane.f32.xlu0 %v9304_v15  ;;  %2667 = vmax.xlane.f32.xlu1 %v9302_v14  ;;  %v9330_v25 = vpop.f32.mrb[25].mxu1  ;;  %v1526_v15 = vld [vmem:[%s8471_s26 + $0xd0] sm:$0xff]  ;;  %v1527_v14 = vld [vmem:[%s8471_s26 + $0xd8] sm:$0xff] }
 0x26e   : > { %11552 = vst [vmem:[#allocation53_spill] sm:$0xff] %v9330_v25 }
 0x26f   : > { %v9332_v26 = vpop.f32.mrb[26].mxu0 }
 0x270   : > { %11553 = vst [vmem:[#allocation54_spill] sm:$0xff] %v9332_v26  ;;  %v9334_v27 = vpop.f32.mrb[27].mxu0  ;;  %v9336_v28 = vpop.f32.mrb[26].mxu1 }
 0x271   : > { %11554 = vst [vmem:[#allocation55_spill] sm:$0xff] %v9334_v27  ;;  %11555 = vst [vmem:[#allocation56_spill] sm:$0xff] %v9336_v28  ;;  %2697 = vmax.xlane.f32.xlu0 %v9310_v17  ;;  %2699 = vmax.xlane.f32.xlu1 %v9306_v16  ;;  %v9340_v29 = vpop.f32.mrb[27].mxu1  ;;  %v9439_v16 = vld [vmem:[#allocation2 + $0x90] sm:$0xff] }
 0x272   : > { %11556 = vst [vmem:[#allocation57_spill] sm:$0xff] %v9340_v29 }
 0x273   : > { %v9342_v30 = vpop.f32.mrb[28].mxu0 }
 0x274   : > { %11557 = vst [vmem:[#allocation58_spill] sm:$0xff] %v9342_v30  ;;  %v9344_v31 = vpop.f32.mrb[29].mxu0  ;;  %v9346_v32 = vpop.f32.mrb[28].mxu1 }
 0x275   : > { %11558 = vst [vmem:[#allocation59_spill] sm:$0xff] %v9344_v31  ;;  %11559 = vst [vmem:[#allocation60_spill] sm:$0xff] %v9346_v32  ;;  %2669 = vmax.xlane.f32.xlu0 %v9314_v19  ;;  %2671 = vmax.xlane.f32.xlu1 %v9312_v18  ;;  %v9350_v33 = vpop.f32.mrb[29].mxu1  ;;  %v1525_v18 = vld [vmem:[%s8471_s26 + $0xc8] sm:$0xff] }
 0x276   : > { %11560 = vst [vmem:[#allocation61_spill] sm:$0xff] %v9350_v33 }
 0x277   : > { %v9352_v34 = vpop.f32.mrb[30].mxu0 }
 0x278   : > { %11561 = vst [vmem:[#allocation62_spill] sm:$0xff] %v9352_v34  ;;  %v9354_v35 = vpop.f32.mrb[31].mxu0  ;;  %v9356_v36 = vpop.f32.mrb[30].mxu1 }
 0x279   : > { %11562 = vst [vmem:[#allocation63_spill] sm:$0xff] %v9354_v35  ;;  %11563 = vst [vmem:[#allocation64_spill] sm:$0xff] %v9356_v36  ;;  %2701 = vmax.xlane.f32.xlu0 %v9320_v21  ;;  %2703 = vmax.xlane.f32.xlu1 %v9316_v20  ;;  %v9360_v55 = vpop.f32.mrb[31].mxu1 }
 0x27a   : > { %11564 = vst [vmem:[#allocation65_spill] sm:$0xff] %v9360_v55 }
 0x27d   : > { %2673 = vmax.xlane.f32.xlu0 %v9324_v23  ;;  %2675 = vmax.xlane.f32.xlu1 %v9322_v22  ;;  %v1522_v23 = vld [vmem:[%s8471_s26 + $0xb0] sm:$0xff]  ;;  %v1523_v22 = vld [vmem:[%s8471_s26 + $0xb8] sm:$0xff] }
 0x27e   : > { %v7262_v20 = vpack.c.bf16 %v1523_v22, %v1522_v23  ;;  %v1524_v23 = vld [vmem:[%s8471_s26 + $0xc0] sm:$0xff] }
 0x281   : > { %2705 = vmax.xlane.f32.xlu0 %v9330_v25  ;;  %2707 = vmax.xlane.f32.xlu1 %v9326_v24  ;;  %v1521_v24 = vld [vmem:[%s8471_s26 + $0xa8] sm:$0xff] }
 0x285   : > { %2677 = vmax.xlane.f32.xlu0 %v9334_v27  ;;  %2679 = vmax.xlane.f32.xlu1 %v9332_v26  ;;  %v1517_v27 = vld [vmem:[%s8471_s26 + $0x88] sm:$0xff] }
 0x289   : > { %2709 = vmax.xlane.f32.xlu0 %v9340_v29  ;;  %2711 = vmax.xlane.f32.xlu1 %v9336_v28  ;;  %v1500_v29 = vld [vmem:[%s8471_s26] sm:$0xff] }
 0x28d   : > { %2681 = vmax.xlane.f32.xlu0 %v9344_v31  ;;  %2683 = vmax.xlane.f32.xlu1 %v9342_v30  ;;  %v1501_v31 = vld [vmem:[%s8471_s26 + $0x8] sm:$0xff]  ;;  %v1516_v30 = vld [vmem:[%s8471_s26 + $0x80] sm:$0xff] }
 0x28e   : > { %v7218_v28 = vpack.c.bf16 %v1501_v31, %v1500_v29  ;;  %v7250_v26 = vpack.c.bf16 %v1517_v27, %v1516_v30  ;;  %v9388_v29 = vld [vmem:[#allocation2 + $0x88] sm:$0xff] }
 0x28f   : > { %v1505_v30 = vld [vmem:[%s8471_s26 + $0x28] sm:$0xff] }
 0x290   : > { %7219 = vmatprep.subr.bf16.mxu0 %v7218_v28  ;;  %7251 = vmatprep.subr.bf16.mxu1 %v7250_v26 }
 0x291   : > { %2713 = vmax.xlane.f32.xlu0 %v9350_v33  ;;  %2715 = vmax.xlane.f32.xlu1 %v9346_v32  ;;  %v1503_v33 = vld [vmem:[%s8471_s26 + $0x18] sm:$0xff]  ;;  %v1518_v32 = vld [vmem:[%s8471_s26 + $0x90] sm:$0xff] }
 0x292   : > { %7221 = vmatpush3.bf16.msra.mxu0 %v7218_v28  ;;  %7253 = vmatpush3.bf16.msra.mxu1 %v7250_v26  ;;  %v1504_v28 = vld [vmem:[%s8471_s26 + $0x20] sm:$0xff] }
 0x295   : > { %2685 = vmax.xlane.f32.xlu0 %v9354_v35  ;;  %2687 = vmax.xlane.f32.xlu1 %v9352_v34  ;;  %v1502_v35 = vld [vmem:[%s8471_s26 + $0x10] sm:$0xff] }
 0x296   : > { %v7222_v34 = vpack.c.bf16 %v1503_v33, %v1502_v35  ;;  %v7226_v33 = vpack.c.bf16 %v1505_v30, %v1504_v28  ;;  %v1520_v35 = vld [vmem:[%s8471_s26 + $0xa0] sm:$0xff]  ;;  %v1506_v28 = vld [vmem:[%s8471_s26 + $0x30] sm:$0xff]  ;;  %v1507_v30 = vld [vmem:[%s8471_s26 + $0x38] sm:$0xff] }
 0x298   : > { %7223 = vmatprep.subr.bf16.mxu0 %v7222_v34 }
 0x299   : > { %2717 = vmax.xlane.f32.xlu0 %v9360_v55  ;;  %2719 = vmax.xlane.f32.xlu1 %v9356_v36  ;;  %v1519_v55 = vld [vmem:[%s8471_s26 + $0x98] sm:$0xff]  ;;  %v9386_v36 = vld [vmem:[#allocation2 + $0x8] sm:$0xff] }
 0x29a   : > { %v7254_v25 = vpack.c.bf16 %v1519_v55, %v1518_v32  ;;  %7225 = vmatpush3.bf16.msra.mxu0 %v7222_v34  ;;  %v9400_v55 = vld [vmem:[#allocation2] sm:$0xff]  ;;  %v7258_v34 = vpack.c.bf16 %v1521_v24, %v1520_v35  ;;  %v7230_v35 = vpack.c.bf16 %v1507_v30, %v1506_v28  ;;  %v1509_v30 = vld [vmem:[%s8471_s26 + $0x48] sm:$0xff] }
 0x29b   : > { %7227 = vmatprep.subr.bf16.mxu0 %v7226_v33  ;;  %v1508_v28 = vld [vmem:[%s8471_s26 + $0x40] sm:$0xff] }
 0x29c   : > { %7255 = vmatprep.subr.bf16.mxu1 %v7254_v25  ;;  %v7234_v22 = vpack.c.bf16 %v1509_v30, %v1508_v28  ;;  %v1511_v28 = vld [vmem:[%s8471_s26 + $0x58] sm:$0xff] }
 0x29d   : > { %7257 = vmatpush3.bf16.msra.mxu1 %v7254_v25 }
 0x29e   : > { %7229 = vmatpush3.bf16.msra.mxu0 %v7226_v33  ;;  %7259 = vmatprep.subr.bf16.mxu1 %v7258_v34  ;;  %v9420_v33 = vld [vmem:[#allocation2 + $0x80] sm:$0xff] }
 0x29f   : > { %7231 = vmatprep.subr.bf16.mxu0 %v7230_v35 }
 0x2a1   : > { %7261 = vmatpush3.bf16.msra.mxu1 %v7258_v34 }
 0x2a2   : > { %7233 = vmatpush3.bf16.msra.mxu0 %v7230_v35  ;;  %7263 = vmatprep.subr.bf16.mxu1 %v7262_v20  ;;  %v7266_v35 = vpack.c.bf16 %v1525_v18, %v1524_v23 }
 0x2a3   : > { %7235 = vmatprep.subr.bf16.mxu0 %v7234_v22 }
 0x2a5   : > { %7265 = vmatpush3.bf16.msra.mxu1 %v7262_v20  ;;  %v9444_v20 = vld [vmem:[#allocation2 + $0x10] sm:$0xff] }
 0x2a6   : > { %7237 = vmatpush3.bf16.msra.mxu0 %v7234_v22  ;;  %7267 = vmatprep.subr.bf16.mxu1 %v7266_v35  ;;  %v7270_v22 = vpack.c.bf16 %v1527_v14, %v1526_v15 }
 0x2a9   : > { %v2596_v27 = vpop.xlane.xlu0 %2595  ;;  %7269 = vmatpush3.bf16.msra.mxu1 %v7266_v35  ;;  %v9464_v35 = vld [vmem:[#allocation2 + $0x28] sm:$0xff] }
 0x2aa   : > { %v2628_v31 = vpop.xlane.xlu1 %2627  ;;  %v9393_v26 = vmax.f32 %v9386_v36, %v2596_v27  ;;  %v9405_v27 = vld [vmem:[#allocation2 + $0x18] sm:$0xff]  ;;  %7271 = vmatprep.subr.bf16.mxu1 %v7270_v22 }
 0x2ab   : > { %v9398_v32 = vmax.f32 %v9388_v29, %v2628_v31 }
 0x2ac   : > { %5031 = vst.msk [vmem:[#allocation2 + $0x8] sm:$0xff] %vm3809_vm4, %v9393_v26  ;;  %2984 = vperm.xlu1 %7438, %v9393_v26   ;;  %v2786_v1 = vsub.f32 %v9386_v36, %v9393_v26 }
 0x2ad   : > { %5047 = vst.msk [vmem:[#allocation2 + $0x88] sm:$0xff] %vm3809_vm4, %v9398_v32  ;;  %v2594_v25 = vpop.xlane.xlu0 %2593  ;;  %v2802_v14 = vsub.f32 %v9388_v29, %v9398_v32  ;;  %7273 = vmatpush3.bf16.msra.mxu1 %v7270_v22  ;;  %v9483_v29 = vld [vmem:[#allocation2 + $0xa8] sm:$0xff]  ;;  %v1514_v22 = vld [vmem:[%s8471_s26 + $0x70] sm:$0xff] }
 0x2ae   : > { %v9412_v31 = vmax.f32 %v9400_v55, %v2594_v25  ;;  %v2600_v24 = vpop.xlane.xlu1 %2599  ;;  %v9424_v25 = vld [vmem:[#allocation2 + $0x98] sm:$0xff]  ;;  %7275 = vmatprep.subr.bf16.mxu1 %v7274_v7 }
 0x2af   : > { %v9417_v21 = vmax.f32 %v9405_v27, %v2600_v24  ;;  %3064 = vperm.xlu0 %7439, %v9398_v32  }
 0x2b0   : > { %5030 = vst.msk [vmem:[#allocation2] sm:$0xff] %vm3809_vm4, %v9412_v31 }
 0x2b1   : > { %5033 = vst.msk [vmem:[#allocation2 + $0x18] sm:$0xff] %vm3809_vm4, %v9417_v21  ;;  %v2626_v34 = vpop.xlane.xlu0 %2625  ;;  %7277 = vmatpush3.bf16.msra.mxu1 %v7274_v7 }
 0x2b2   : > { %v9431_v24 = vmax.f32 %v9420_v33, %v2626_v34  ;;  %v2632_v19 = vpop.xlane.xlu1 %2631  ;;  %v1510_v34 = vld [vmem:[%s8471_s26 + $0x50] sm:$0xff] }
 0x2b3   : > { %v9436_v17 = vmax.f32 %v9424_v25, %v2632_v19  ;;  %2979 = vperm.xlu0 %7439, %v9412_v31   ;;  %v7238_v23 = vpack.c.bf16 %v1511_v28, %v1510_v34  ;;  %v1512_v34 = vld [vmem:[%s8471_s26 + $0x60] sm:$0xff]  ;;  %v1513_v28 = vld [vmem:[%s8471_s26 + $0x68] sm:$0xff] }
 0x2b4   : > { %5046 = vst.msk [vmem:[#allocation2 + $0x80] sm:$0xff] %vm3809_vm4, %v9431_v24  ;;  %3059 = vperm.xlu1 %7438, %v9431_v24   ;;  %v7242_v11 = vpack.c.bf16 %v1513_v28, %v1512_v34  ;;  %v2883_v34 = vmul.f32 1.442695, %v2802_v14 }
 0x2b5   : > { %5049 = vst.msk [vmem:[#allocation2 + $0x98] sm:$0xff] %vm3809_vm4, %v9436_v17  ;;  %v2630_v19 = vpop.xlane.xlu0 %2629  ;;  %7239 = vmatprep.subr.bf16.mxu0 %v7238_v23  ;;  %v2804_v26 = vsub.f32 %v9424_v25, %v9436_v17 }
 0x2b6   : > { %v9451_v30 = vmax.f32 %v9439_v16, %v2630_v19  ;;  %v2598_v18 = vpop.xlane.xlu1 %2597  ;;  %7241 = vmatpush3.bf16.msra.mxu0 %v7238_v23  ;;  %v9480_v23 = vld [vmem:[#allocation2 + $0xa0] sm:$0xff]  ;;  %7440 = vpow2.f32 %v2883_v34 }
 0x2b7   : > { %v9456_v13 = vmax.f32 %v9444_v20, %v2598_v18  ;;  %3074 = vperm.xlu0 %7439, %v9436_v17   ;;  %7243 = vmatprep.subr.bf16.mxu0 %v7242_v11  ;;  %v2887_v25 = vmul.f32 1.442695, %v2804_v26 }
 0x2b8   : > { %5048 = vst.msk [vmem:[#allocation2 + $0x90] sm:$0xff] %vm3809_vm4, %v9451_v30  ;;  %2994 = vperm.xlu1 %7438, %v9417_v21  }
 0x2b9   : > { %5032 = vst.msk [vmem:[#allocation2 + $0x10] sm:$0xff] %vm3809_vm4, %v9456_v13  ;;  %v2602_v19 = vpop.xlane.xlu0 %2601 }
 0x2ba   : > { %v2604_v15 = vpop.xlane.xlu1 %2603  ;;  %v9473_v18 = vmax.f32 %v9459_v12, %v2602_v19  ;;  %7245 = vmatpush3.bf16.msra.mxu0 %v7242_v11  ;;  %v1515_v19 = vld [vmem:[%s8471_s26 + $0x78] sm:$0xff] }
 0x2bb   : > { %v9478_v8 = vmax.f32 %v9464_v35, %v2604_v15  ;;  %v7246_v28 = vpack.c.bf16 %v1515_v19, %v1514_v22  ;;  %v1530_v15 = vld [vmem:[%s8471_s26 + $0xf0] sm:$0xff]  ;;  %v9502_v11 = vld [vmem:[#allocation2 + $0x38] sm:$0xff] }
 0x2bc   : > { %2989 = vperm.xlu1 %7438, %v9456_v13   ;;  %5034 = vst.msk [vmem:[#allocation2 + $0x20] sm:$0xff] %vm3809_vm4, %v9473_v18  ;;  %v7278_v2 = vpack.c.bf16 %v1531_v5, %v1530_v15  ;;  %v9515_v22 = vld [vmem:[#allocation2 + $0xb0] sm:$0xff]  ;;  %v9518_v19 = vld [vmem:[#allocation2 + $0xb8] sm:$0xff] }
 0x2bd   : > { %5035 = vst.msk [vmem:[#allocation2 + $0x28] sm:$0xff] %vm3809_vm4, %v9478_v8  ;;  %v2634_v32 = vpop.xlane.xlu0 %2633  ;;  %7247 = vmatprep.subr.bf16.mxu0 %v7246_v28  ;;  %v2790_v58 = vsub.f32 %v9464_v35, %v9478_v8  ;;  %v2803_v35 = vsub.f32 %v9439_v16, %v9451_v30  ;;  %v9664_v16 = vld [vmem:[#allocation2 + $0x70] sm:$0xff] }
 0x2be   : > { %v2636_v9 = vpop.xlane.xlu1 %2635  ;;  %v9492_v10 = vmax.f32 %v9480_v23, %v2634_v32  ;;  %7249 = vmatpush3.bf16.msra.mxu0 %v7246_v28  ;;  %7279 = vmatprep.subr.bf16.mxu1 %v7278_v2 }
 0x2bf   : > { %v9497_v4 = vmax.f32 %v9483_v29, %v2636_v9  ;;  %7281 = vmatpush3.bf16.msra.mxu1 %v7278_v2  ;;  %v2785_v9 = vsub.f32 %v9400_v55, %v9412_v31 }
 0x2c0   : > { %3069 = vperm.xlu1 %7438, %v9451_v30   ;;  %5050 = vst.msk [vmem:[#allocation2 + $0xa0] sm:$0xff] %vm3809_vm4, %v9492_v10  ;;  %v9554_v36 = vpop.eup %7440 }
 0x2c1   : > { %5051 = vst.msk [vmem:[#allocation2 + $0xa8] sm:$0xff] %vm3809_vm4, %v9497_v4  ;;  %3084 = vperm.xlu0 %7439, %v9497_v4   ;;  %v2606_v7 = vpop.xlane.xlu0 %2605  ;;  %v2849_v31 = vmul.f32 1.442695, %v2785_v9  ;;  %11565 = vst [vmem:[#allocation66_spill] sm:$0xff] %v9554_v36  ;;  %v2801_v9 = vsub.f32 %v9420_v33, %v9431_v24  ;;  %v9583_v24 = vld [vmem:[#allocation2 + $0x58] sm:$0xff]  ;;  %v9594_v33 = vld [vmem:[#allocation2 + $0xd0] sm:$0xff] }
 0x2c2   : > { %v2608_v14 = vpop.xlane.xlu1 %2607  ;;  %v9510_v32 = vmax.f32 %v9499_v3, %v2606_v7  ;;  %v9532_v7 = vld [vmem:[#allocation2 + $0x40] sm:$0xff] }
 0x2c3   : > { %v9513_v5 = vmax.f32 %v9502_v11, %v2608_v14  ;;  %v9537_v14 = vld [vmem:[#allocation2 + $0x48] sm:$0xff]  ;;  %7442 = vpow2.f32 %v2849_v31  ;;  %v2881_v17 = vmul.f32 1.442695, %v2801_v9  ;;  %v9601_v9 = vld [vmem:[#allocation2 + $0xd8] sm:$0xff] }
 0x2c4   : > { %3004 = vperm.xlu1 %7438, %v9478_v8   ;;  %5036 = vst.msk [vmem:[#allocation2 + $0x30] sm:$0xff] %vm3809_vm4, %v9510_v32  ;;  %v9647_v8 = vld [vmem:[#allocation2 + $0xe8] sm:$0xff] }
 0x2c5   : > { %5037 = vst.msk [vmem:[#allocation2 + $0x38] sm:$0xff] %vm3809_vm4, %v9513_v5  ;;  %v2638_v34 = vpop.xlane.xlu0 %2637 }
 0x2c6   : > { %v2640_v28 = vpop.xlane.xlu1 %2639  ;;  %v9527_v15 = vmax.f32 %v9515_v22, %v2638_v34  ;;  %v2788_v34 = vsub.f32 %v9405_v27, %v9417_v21  ;;  %v9561_v21 = vld [vmem:[#allocation2 + $0xc8] sm:$0xff]  ;;  %v2851_v27 = vmul.f32 1.442695, %v2786_v1 }
 0x2c7   : > { %v9530_v2 = vmax.f32 %v9518_v19, %v2640_v28 }
 0x2c8   : > { %2999 = vperm.xlu1 %7438, %v9473_v18   ;;  %5052 = vst.msk [vmem:[#allocation2 + $0xb0] sm:$0xff] %vm3809_vm4, %v9527_v15  ;;  %7444 = vpow2.f32 %v2851_v27  ;;  %v9612_v27 = vld [vmem:[#allocation2 + $0x60] sm:$0xff] }
 0x2c9   : > { %5053 = vst.msk [vmem:[#allocation2 + $0xb8] sm:$0xff] %vm3809_vm4, %v9530_v2  ;;  %3094 = vperm.xlu0 %7439, %v9530_v2   ;;  %v2610_v55 = vpop.xlane.xlu0 %2609 }
 0x2ca   : > { %v2612_v28 = vpop.xlane.xlu1 %2611  ;;  %v9547_v0 = vmax.f32 %v9532_v7, %v2610_v55 }
 0x2cb   : > { %v9550_v63 = vmax.f32 %v9537_v14, %v2612_v28  ;;  %v2855_v28 = vmul.f32 1.442695, %v2788_v34 }
 0x2cc   : > { %3079 = vperm.xlu1 %7438, %v9492_v10   ;;  %5038 = vst.msk [vmem:[#allocation2 + $0x40] sm:$0xff] %vm3809_vm4, %v9547_v0 }
 0x2cd   : > { %5039 = vst.msk [vmem:[#allocation2 + $0x48] sm:$0xff] %vm3809_vm4, %v9550_v63  ;;  %4605 = vperm.xlu0 %7439, %v9554_v36   ;;  %v2642_v55 = vpop.xlane.xlu0 %2641  ;;  %7446 = vpow2.f32 %v2855_v28  ;;  %v9614_v36 = vpop.eup %7442 }
 0x2ce   : > { %v2644_v61 = vpop.xlane.xlu1 %2643  ;;  %v9571_v60 = vmax.f32 %v9552_v62, %v2642_v55  ;;  %7448 = vpow2.f32 %v2881_v17  ;;  %11566 = vst [vmem:[#allocation67_spill] sm:$0xff] %v9614_v36 }
 0x2cf   : > { %v9574_v1 = vmax.f32 %v9561_v21, %v2644_v61  ;;  %7450 = vpow2.f32 %v2887_v25  ;;  %v9621_v25 = vld [vmem:[#allocation2 + $0x68] sm:$0xff] }
 0x2d0   : > { %3014 = vperm.xlu1 %7438, %v9513_v5   ;;  %5054 = vst.msk [vmem:[#allocation2 + $0xc0] sm:$0xff] %vm3809_vm4, %v9571_v60 }
 0x2d1   : > { %5055 = vst.msk [vmem:[#allocation2 + $0xc8] sm:$0xff] %vm3809_vm4, %v9574_v1  ;;  %3024 = vperm.xlu0 %7439, %v9550_v63   ;;  %v2614_v61 = vpop.xlane.xlu0 %2613 }
 0x2d2   : > { %v2616_v31 = vpop.xlane.xlu1 %2615  ;;  %v9589_v34 = vmax.f32 %v9576_v59, %v2614_v61  ;;  %v9633_v56 = vpop.eup %7444 }
 0x2d3   : > { %v9592_v55 = vmax.f32 %v9583_v24, %v2616_v31  ;;  %11567 = vst [vmem:[#allocation68_spill] sm:$0xff] %v9633_v56 }
 0x2d4   : > { %3009 = vperm.xlu1 %7438, %v9510_v32   ;;  %5040 = vst.msk [vmem:[#allocation2 + $0x50] sm:$0xff] %vm3809_vm4, %v9589_v34 }
 0x2d5   : > { %5041 = vst.msk [vmem:[#allocation2 + $0x58] sm:$0xff] %vm3809_vm4, %v9592_v55  ;;  %3104 = vperm.xlu0 %7439, %v9574_v1   ;;  %v2646_v26 = vpop.xlane.xlu0 %2645 }
 0x2d6   : > { %v2648_v28 = vpop.xlane.xlu1 %2647  ;;  %v9607_v61 = vmax.f32 %v9594_v33, %v2646_v26  ;;  %v2787_v26 = vsub.f32 %v9444_v20, %v9456_v13 }
 0x2d7   : > { %v9610_v31 = vmax.f32 %v9601_v9, %v2648_v28  ;;  %v9640_v13 = vpop.eup %7446 }
 0x2d8   : > { %3089 = vperm.xlu1 %7438, %v9527_v15   ;;  %5056 = vst.msk [vmem:[#allocation2 + $0xd0] sm:$0xff] %vm3809_vm4, %v9607_v61  ;;  %11568 = vst [vmem:[#allocation69_spill] sm:$0xff] %v9640_v13  ;;  %v9659_v52 = vpop.eup %7448 }
 0x2d9   : > { %5057 = vst.msk [vmem:[#allocation2 + $0xd8] sm:$0xff] %vm3809_vm4, %v9610_v31  ;;  %4520 = vperm.xlu0 %7439, %v9614_v36   ;;  %v2618_v28 = vpop.xlane.xlu0 %2617  ;;  %v2859_v36 = vmul.f32 1.442695, %v2790_v58  ;;  %11569 = vst [vmem:[#allocation70_spill] sm:$0xff] %v9659_v52  ;;  %v9666_v30 = vpop.eup %7450 }
 0x2da   : > { %v2620_v57 = vpop.xlane.xlu1 %2619  ;;  %v9631_v17 = vmax.f32 %v9612_v27, %v2618_v28  ;;  %v2853_v28 = vmul.f32 1.442695, %v2787_v26  ;;  %11570 = vst [vmem:[#allocation71_spill] sm:$0xff] %v9666_v30 }
 0x2db   : > { %v9636_v54 = vmax.f32 %v9621_v25, %v2620_v57 }
 0x2dc   : > { %4525 = vperm.xlu1 %7438, %v9633_v56   ;;  %5042 = vst.msk [vmem:[#allocation2 + $0x60] sm:$0xff] %vm3809_vm4, %v9631_v17  ;;  %v2806_v56 = vsub.f32 %v9483_v29, %v9497_v4  ;;  %v9673_v4 = vld [vmem:[#allocation2 + $0x78] sm:$0xff]  ;;  %v2885_v29 = vmul.f32 1.442695, %v2803_v35  ;;  %7452 = vpow2.f32 %v2853_v28 }
 0x2dd   : > { %5043 = vst.msk [vmem:[#allocation2 + $0x68] sm:$0xff] %vm3809_vm4, %v9636_v54  ;;  %4535 = vperm.xlu0 %7439, %v9640_v13   ;;  %v2650_v57 = vpop.xlane.xlu0 %2649  ;;  %7454 = vpow2.f32 %v2859_v36  ;;  %v9691_v28 = vld [vmem:[#allocation2 + $0xf8] sm:$0xff] }
 0x2de   : > { %v2652_v20 = vpop.xlane.xlu1 %2651  ;;  %v9657_v53 = vmax.f32 %v9638_v6, %v2650_v57  ;;  %7456 = vpow2.f32 %v2885_v29  ;;  %v9707_v29 = vld [vmem:[#allocation2 + $0x108] sm:$0xff] }
 0x2df   : > { %v9662_v51 = vmax.f32 %v9647_v8, %v2652_v20  ;;  %v2891_v20 = vmul.f32 1.442695, %v2806_v56 }
 0x2e0   : > { %4600 = vperm.xlu1 %7438, %v9659_v52   ;;  %5058 = vst.msk [vmem:[#allocation2 + $0xe0] sm:$0xff] %vm3809_vm4, %v9657_v53  ;;  %v9684_v52 = vld [vmem:[#allocation2 + $0xf0] sm:$0xff] }
 0x2e1   : > { %5059 = vst.msk [vmem:[#allocation2 + $0xe8] sm:$0xff] %vm3809_vm4, %v9662_v51  ;;  %4615 = vperm.xlu0 %7439, %v9666_v30   ;;  %v2622_v26 = vpop.xlane.xlu0 %2621  ;;  %7458 = vpow2.f32 %v2891_v20  ;;  %v9709_v30 = vld [vmem:[#allocation2 + $0x100] sm:$0xff]  ;;  %v2789_v20 = vsub.f32 %v9459_v12, %v9473_v18  ;;  %v9729_v12 = vld [vmem:[#allocation2 + $0x188] sm:$0xff] }
 0x2e2   : > { %v2624_v57 = vpop.xlane.xlu1 %2623  ;;  %v9679_v13 = vmax.f32 %v9664_v16, %v2622_v26  ;;  %11571 = vst [vmem:[#allocation72_spill] sm:$0xff] %v9709_v30  ;;  %11574 = vst [vmem:[#allocation75_spill] sm:$0xff] %v9729_v12  ;;  %v9731_v18 = vld [vmem:[#allocation2 + $0x180] sm:$0xff] }
 0x2e3   : > { %v9682_v58 = vmax.f32 %v9673_v4, %v2624_v57  ;;  %11575 = vst [vmem:[#allocation76_spill] sm:$0xff] %v9731_v18  ;;  %v2857_v46 = vmul.f32 1.442695, %v2789_v20 }
 0x2e4   : > { %3019 = vperm.xlu1 %7438, %v9547_v0   ;;  %5044 = vst.msk [vmem:[#allocation2 + $0x70] sm:$0xff] %vm3809_vm4, %v9679_v13 }
 0x2e5   : > { %5045 = vst.msk [vmem:[#allocation2 + $0x78] sm:$0xff] %vm3809_vm4, %v9682_v58  ;;  %3034 = vperm.xlu0 %7439, %v9592_v55   ;;  %v2654_v56 = vpop.xlane.xlu0 %2653  ;;  %7460 = vpow2.f32 %v2857_v46 }
 0x2e6   : > { %v2656_v36 = vpop.xlane.xlu1 %2655  ;;  %v9697_v26 = vmax.f32 %v9684_v52, %v2654_v56  ;;  %v2792_v56 = vsub.f32 %v9502_v11, %v9513_v5  ;;  %v9718_v50 = vpop.eup %7452  ;;  %v2805_v11 = vsub.f32 %v9480_v23, %v9492_v10 }
 0x2e7   : > { %v9700_v57 = vmax.f32 %v9691_v28, %v2656_v36  ;;  %11572 = vst [vmem:[#allocation73_spill] sm:$0xff] %v9718_v50  ;;  %v9726_v47 = vpop.eup %7454 }
 0x2e8   : > { %3099 = vperm.xlu1 %7438, %v9571_v60   ;;  %5060 = vst.msk [vmem:[#allocation2 + $0xf0] sm:$0xff] %vm3809_vm4, %v9697_v26  ;;  %11573 = vst [vmem:[#allocation74_spill] sm:$0xff] %v9726_v47 }
 0x2e9   : > { %5061 = vst.msk [vmem:[#allocation2 + $0xf8] sm:$0xff] %vm3809_vm4, %v9700_v57  ;;  %3114 = vperm.xlu0 %7439, %v9610_v31  }
 0x2ea   : > { %v2660_v36 = vpop.xlane.xlu1 %2659  ;;  %v2658_v35 = vpop.xlane.xlu0 %2657 }
 0x2eb   : > { %v9721_v49 = vmax.f32 %v9707_v29, %v2660_v36  ;;  %v9724_v48 = vmax.f32 %v9709_v30, %v2658_v35  ;;  %v2863_v35 = vmul.f32 1.442695, %v2792_v56  ;;  %v2808_v36 = vsub.f32 %v9518_v19, %v9530_v2  ;;  %v9744_v30 = vpop.eup %7456  ;;  %v9757_v56 = vld [vmem:[#allocation2 + $0x110] sm:$0xff] }
 0x2ec   : > { %4530 = vperm.xlu1 %7438, %v9718_v50   ;;  %11576 = vst [vmem:[#allocation77_spill] sm:$0xff] %v9744_v30  ;;  %v9752_v5 = vpop.eup %7458  ;;  %11579 = vst [vmem:[#allocation80_spill] sm:$0xff] %v9757_v56  ;;  %v2889_v19 = vmul.f32 1.442695, %v2805_v11  ;;  %v9773_v11 = vld [vmem:[#allocation2 + $0x198] sm:$0xff]  ;;  %v9775_v2 = vld [vmem:[#allocation2 + $0x190] sm:$0xff] }
 0x2ed   : > { %5063 = vst.msk [vmem:[#allocation2 + $0x108] sm:$0xff] %vm3809_vm4, %v9721_v49  ;;  %4545 = vperm.xlu0 %7439, %v9726_v47   ;;  %5062 = vst.msk [vmem:[#allocation2 + $0x100] sm:$0xff] %vm3809_vm4, %v9724_v48  ;;  %v9755_v47 = vld [vmem:[#allocation2 + $0x118] sm:$0xff]  ;;  %7462 = vpow2.f32 %v2863_v35 }
 0x2ee   : > { %v2692_v50 = vpop.xlane.xlu1 %2691  ;;  %v2690_v20 = vpop.xlane.xlu0 %2689  ;;  %11577 = vst [vmem:[#allocation78_spill] sm:$0xff] %v9752_v5  ;;  %11578 = vst [vmem:[#allocation79_spill] sm:$0xff] %v9755_v47  ;;  %7464 = vpow2.f32 %v2889_v19  ;;  %v9791_v19 = vld [vmem:[#allocation2 + $0x128] sm:$0xff] }
 0x2ef   : > { %v9747_v23 = vmax.f32 %v9729_v12, %v2692_v50  ;;  %v9750_v10 = vmax.f32 %v9731_v18, %v2690_v20  ;;  %v2895_v50 = vmul.f32 1.442695, %v2808_v36  ;;  %11580 = vst [vmem:[#allocation81_spill] sm:$0xff] %v9773_v11  ;;  %11581 = vst [vmem:[#allocation82_spill] sm:$0xff] %v9775_v2  ;;  %v2791_v12 = vsub.f32 %v9499_v3, %v9510_v32 }
 0x2f0   : > { %4610 = vperm.xlu1 %7438, %v9744_v30  }
 0x2f1   : > { %5079 = vst.msk [vmem:[#allocation2 + $0x188] sm:$0xff] %vm3809_vm4, %v9747_v23  ;;  %4625 = vperm.xlu0 %7439, %v9752_v5   ;;  %5078 = vst.msk [vmem:[#allocation2 + $0x180] sm:$0xff] %vm3809_vm4, %v9750_v10  ;;  %7466 = vpow2.f32 %v2895_v50  ;;  %v9793_v5 = vld [vmem:[#allocation2 + $0x120] sm:$0xff] }
 0x2f2   : > { %v2664_v20 = vpop.xlane.xlu1 %2663  ;;  %v2662_v30 = vpop.xlane.xlu0 %2661  ;;  %11583 = vst [vmem:[#allocation84_spill] sm:$0xff] %v9793_v5 }
 0x2f3   : > { %v9767_v18 = vmax.f32 %v9755_v47, %v2664_v20  ;;  %v9770_v46 = vmax.f32 %v9757_v56, %v2662_v30  ;;  %v9806_v56 = vpop.eup %7460  ;;  %v9819_v47 = vld [vmem:[#allocation2 + $0x1a0] sm:$0xff] }
 0x2f4   : > { %3029 = vperm.xlu1 %7438, %v9589_v34   ;;  %11584 = vst [vmem:[#allocation85_spill] sm:$0xff] %v9806_v56  ;;  %11587 = vst [vmem:[#allocation88_spill] sm:$0xff] %v9819_v47 }
 0x2f5   : > { %5065 = vst.msk [vmem:[#allocation2 + $0x118] sm:$0xff] %vm3809_vm4, %v9767_v18  ;;  %3044 = vperm.xlu0 %7439, %v9636_v54   ;;  %5064 = vst.msk [vmem:[#allocation2 + $0x110] sm:$0xff] %vm3809_vm4, %v9770_v46 }
 0x2f6   : > { %v2696_v30 = vpop.xlane.xlu1 %2695  ;;  %v2694_v35 = vpop.xlane.xlu0 %2693 }
 0x2f7   : > { %v9785_v36 = vmax.f32 %v9773_v11, %v2696_v30  ;;  %v9788_v20 = vmax.f32 %v9775_v2, %v2694_v35  ;;  %v2794_v30 = vsub.f32 %v9537_v14, %v9550_v63  ;;  %v9814_v50 = vpop.eup %7462  ;;  %v9817_v11 = vld [vmem:[#allocation2 + $0x1a8] sm:$0xff]  ;;  %v2807_v63 = vsub.f32 %v9515_v22, %v9527_v15 }
 0x2f8   : > { %3109 = vperm.xlu1 %7438, %v9607_v61   ;;  %11585 = vst [vmem:[#allocation86_spill] sm:$0xff] %v9814_v50  ;;  %11586 = vst [vmem:[#allocation87_spill] sm:$0xff] %v9817_v11 }
 0x2f9   : > { %11582 = vst [vmem:[#allocation83_spill] sm:$0xff] %v9788_v20  ;;  %5081 = vst.msk [vmem:[#allocation2 + $0x198] sm:$0xff] %vm3809_vm4, %v9785_v36  ;;  %3124 = vperm.xlu0 %7439, %v9662_v51  }
 0x2fa   : > { %5080 = vst.msk [vmem:[#allocation2 + $0x190] sm:$0xff] %vm3809_vm4, %v9788_v20  ;;  %v2668_v35 = vpop.xlane.xlu1 %2667  ;;  %v2666_v2 = vpop.xlane.xlu0 %2665  ;;  %v2861_v20 = vmul.f32 1.442695, %v2791_v12 }
 0x2fb   : > { %v9809_v3 = vmax.f32 %v9791_v19, %v2668_v35  ;;  %v9812_v32 = vmax.f32 %v9793_v5, %v2666_v2  ;;  %v2867_v2 = vmul.f32 1.442695, %v2794_v30  ;;  %v2810_v35 = vsub.f32 %v9561_v21, %v9574_v1  ;;  %v9832_v5 = vpop.eup %7464  ;;  %v9845_v30 = vld [vmem:[#allocation2 + $0x130] sm:$0xff]  ;;  %v9863_v1 = vld [vmem:[#allocation2 + $0x1b8] sm:$0xff] }
 0x2fc   : > { %4540 = vperm.xlu1 %7438, %v9806_v56   ;;  %11588 = vst [vmem:[#allocation89_spill] sm:$0xff] %v9832_v5  ;;  %v9840_v14 = vpop.eup %7466  ;;  %11590 = vst [vmem:[#allocation91_spill] sm:$0xff] %v9845_v30  ;;  %7468 = vpow2.f32 %v2861_v20  ;;  %v2893_v21 = vmul.f32 1.442695, %v2807_v63 }
 0x2fd   : > { %5067 = vst.msk [vmem:[#allocation2 + $0x128] sm:$0xff] %vm3809_vm4, %v9809_v3  ;;  %4555 = vperm.xlu0 %7439, %v9814_v50   ;;  %5066 = vst.msk [vmem:[#allocation2 + $0x120] sm:$0xff] %vm3809_vm4, %v9812_v32  ;;  %v9843_v50 = vld [vmem:[#allocation2 + $0x138] sm:$0xff]  ;;  %7470 = vpow2.f32 %v2867_v2  ;;  %v9883_v2 = vld [vmem:[#allocation2 + $0x148] sm:$0xff] }
 0x2fe   : > { %v2700_v56 = vpop.xlane.xlu1 %2699  ;;  %v2698_v12 = vpop.xlane.xlu0 %2697  ;;  %11589 = vst [vmem:[#allocation90_spill] sm:$0xff] %v9840_v14  ;;  %11591 = vst [vmem:[#allocation92_spill] sm:$0xff] %v9863_v1  ;;  %7472 = vpow2.f32 %v2893_v21 }
 0x2ff   : > { %v9835_v22 = vmax.f32 %v9817_v11, %v2700_v56  ;;  %v9838_v15 = vmax.f32 %v9819_v47, %v2698_v12  ;;  %v2899_v56 = vmul.f32 1.442695, %v2810_v35  ;;  %v2796_v12 = vsub.f32 %v9583_v24, %v9592_v55  ;;  %v9885_v11 = vld [vmem:[#allocation2 + $0x140] sm:$0xff] }
 0x300   : > { %4620 = vperm.xlu1 %7438, %v9832_v5   ;;  %v2812_v24 = vsub.f32 %v9601_v9, %v9610_v31  ;;  %11593 = vst [vmem:[#allocation94_spill] sm:$0xff] %v9885_v11  ;;  %v2798_v31 = vsub.f32 %v9621_v25, %v9636_v54  ;;  %v11596_v54 = vsub.f32 %v9532_v7, %v9547_v0 }
 0x301   : > { %5083 = vst.msk [vmem:[#allocation2 + $0x1a8] sm:$0xff] %vm3809_vm4, %v9835_v22  ;;  %4635 = vperm.xlu0 %7439, %v9840_v14   ;;  %5082 = vst.msk [vmem:[#allocation2 + $0x1a0] sm:$0xff] %vm3809_vm4, %v9838_v15  ;;  %v9865_v14 = vld [vmem:[#allocation2 + $0x1b0] sm:$0xff]  ;;  %7474 = vpow2.f32 %v2899_v56 }
 0x302   : > { %v2672_v5 = vpop.xlane.xlu1 %2671  ;;  %v2670_v47 = vpop.xlane.xlu0 %2669  ;;  %11592 = vst [vmem:[#allocation93_spill] sm:$0xff] %v9865_v14  ;;  %v2903_v9 = vmul.f32 1.442695, %v2812_v24  ;;  %v2865_v25 = vmul.f32 1.442695, %v11596_v54 }
 0x303   : > { %v9857_v20 = vmax.f32 %v9843_v50, %v2672_v5  ;;  %v9860_v63 = vmax.f32 %v9845_v30, %v2670_v47  ;;  %v2871_v47 = vmul.f32 1.442695, %v2796_v12  ;;  %v9907_v30 = vld [vmem:[#allocation2 + $0x1c8] sm:$0xff]  ;;  %v2875_v24 = vmul.f32 1.442695, %v2798_v31 }
 0x304   : > { %3039 = vperm.xlu1 %7438, %v9631_v17  }
 0x305   : > { %5069 = vst.msk [vmem:[#allocation2 + $0x138] sm:$0xff] %vm3809_vm4, %v9857_v20  ;;  %3054 = vperm.xlu0 %7439, %v9682_v58   ;;  %5068 = vst.msk [vmem:[#allocation2 + $0x130] sm:$0xff] %vm3809_vm4, %v9860_v63  ;;  %7476 = vpow2.f32 %v2871_v47  ;;  %v9909_v47 = vld [vmem:[#allocation2 + $0x1c0] sm:$0xff] }
 0x306   : > { %v2704_v55 = vpop.xlane.xlu1 %2703  ;;  %v2702_v5 = vpop.xlane.xlu0 %2701  ;;  %7478 = vpow2.f32 %v2903_v9  ;;  %v9934_v9 = vld [vmem:[#allocation2 + $0x150] sm:$0xff] }
 0x307   : > { %v9877_v35 = vmax.f32 %v9863_v1, %v2704_v55  ;;  %v9880_v21 = vmax.f32 %v9865_v14, %v2702_v5  ;;  %v9896_v5 = vpop.eup %7468  ;;  %11599 = vst [vmem:[#allocation99_spill] sm:$0xff] %v9934_v9  ;;  %7480 = vpow2.f32 %v2865_v25 }
 0x308   : > { %3119 = vperm.xlu1 %7438, %v9657_v53   ;;  %11594 = vst [vmem:[#allocation95_spill] sm:$0xff] %v9896_v5  ;;  %v9904_v1 = vpop.eup %7470  ;;  %7482 = vpow2.f32 %v2875_v24  ;;  %v2816_v24 = vsub.f32 %v9691_v28, %v9700_v57  ;;  %v11606_v28 = vsub.f32 %v9594_v33, %v9607_v61 }
 0x309   : > { %5085 = vst.msk [vmem:[#allocation2 + $0x1b8] sm:$0xff] %vm3809_vm4, %v9877_v35  ;;  %3134 = vperm.xlu0 %7439, %v9700_v57   ;;  %5084 = vst.msk [vmem:[#allocation2 + $0x1b0] sm:$0xff] %vm3809_vm4, %v9880_v21 }
 0x30a   : > { %v2676_v12 = vpop.xlane.xlu1 %2675  ;;  %v2674_v55 = vpop.xlane.xlu0 %2673  ;;  %11595 = vst [vmem:[#allocation96_spill] sm:$0xff] %v9904_v1  ;;  %v2901_v57 = vmul.f32 1.442695, %v11606_v28  ;;  %v10001_v28 = vld [vmem:[#allocation2 + $0x1e8] sm:$0xff] }
 0x30b   : > { %v9899_v14 = vmax.f32 %v9883_v2, %v2676_v12  ;;  %v9902_v56 = vmax.f32 %v9885_v11, %v2674_v55  ;;  %v2814_v12 = vsub.f32 %v9647_v8, %v9662_v51  ;;  %v9921_v11 = vpop.eup %7472  ;;  %v11600_v51 = vsub.f32 %v9552_v62, %v9571_v60 }
 0x30c   : > { %4550 = vperm.xlu1 %7438, %v9896_v5   ;;  %11597 = vst [vmem:[#allocation97_spill] sm:$0xff] %v9921_v11  ;;  %v9929_v54 = vpop.eup %7474 }
 0x30d   : > { %5071 = vst.msk [vmem:[#allocation2 + $0x148] sm:$0xff] %vm3809_vm4, %v9899_v14  ;;  %4565 = vperm.xlu0 %7439, %v9904_v1   ;;  %5070 = vst.msk [vmem:[#allocation2 + $0x140] sm:$0xff] %vm3809_vm4, %v9902_v56  ;;  %v9932_v1 = vld [vmem:[#allocation2 + $0x158] sm:$0xff]  ;;  %v2897_v8 = vmul.f32 1.442695, %v11600_v51 }
 0x30e   : > { %v2708_v55 = vpop.xlane.xlu1 %2707  ;;  %v2706_v5 = vpop.xlane.xlu0 %2705  ;;  %11598 = vst [vmem:[#allocation98_spill] sm:$0xff] %v9929_v54  ;;  %v2907_v31 = vmul.f32 1.442695, %v2814_v12  ;;  %v9955_v51 = vld [vmem:[#allocation2 + $0x1d8] sm:$0xff] }
 0x30f   : > { %v9924_v0 = vmax.f32 %v9907_v30, %v2708_v55  ;;  %v9927_v7 = vmax.f32 %v9909_v47, %v2706_v5  ;;  %v2800_v5 = vsub.f32 %v9673_v4, %v9682_v58  ;;  %v9952_v62 = vpop.eup %7476  ;;  %7484 = vpow2.f32 %v2897_v8 }
 0x310   : > { %4630 = vperm.xlu1 %7438, %v9921_v11   ;;  %11601 = vst [vmem:[#allocation100_spill] sm:$0xff] %v9952_v62  ;;  %v11603_v58 = vsub.f32 %v9576_v59, %v9589_v34  ;;  %7486 = vpow2.f32 %v2907_v31  ;;  %v9975_v34 = vpop.eup %7478  ;;  %v2911_v31 = vmul.f32 1.442695, %v2816_v24 }
 0x311   : > { %5087 = vst.msk [vmem:[#allocation2 + $0x1c8] sm:$0xff] %vm3809_vm4, %v9924_v0  ;;  %4645 = vperm.xlu0 %7439, %v9929_v54   ;;  %5086 = vst.msk [vmem:[#allocation2 + $0x1c0] sm:$0xff] %vm3809_vm4, %v9927_v7  ;;  %v9957_v54 = vld [vmem:[#allocation2 + $0x1d0] sm:$0xff] }
 0x312   : > { %v2680_v55 = vpop.xlane.xlu1 %2679  ;;  %v2678_v11 = vpop.xlane.xlu0 %2677  ;;  %11602 = vst [vmem:[#allocation101_spill] sm:$0xff] %v9957_v54  ;;  %v2869_v4 = vmul.f32 1.442695, %v11603_v58  ;;  %11604 = vst [vmem:[#allocation102_spill] sm:$0xff] %v9975_v34  ;;  %v9978_v58 = vld [vmem:[#allocation2 + $0x168] sm:$0xff] }
 0x313   : > { %v9947_v25 = vmax.f32 %v9932_v1, %v2680_v55  ;;  %v9950_v60 = vmax.f32 %v9934_v9, %v2678_v11  ;;  %v2879_v11 = vmul.f32 1.442695, %v2800_v5 }
 0x314   : > { %3049 = vperm.xlu1 %7438, %v9679_v13   ;;  %7488 = vpow2.f32 %v2869_v4 }
 0x315   : > { %5073 = vst.msk [vmem:[#allocation2 + $0x158] sm:$0xff] %vm3809_vm4, %v9947_v25  ;;  %4575 = vperm.xlu0 %7439, %v9952_v62   ;;  %5072 = vst.msk [vmem:[#allocation2 + $0x150] sm:$0xff] %vm3809_vm4, %v9950_v60  ;;  %v9980_v62 = vld [vmem:[#allocation2 + $0x160] sm:$0xff]  ;;  %7490 = vpow2.f32 %v2879_v11  ;;  %v11610_v11 = vsub.f32 %v9612_v27, %v9631_v17  ;;  %v10024_v17 = vld [vmem:[#allocation2 + $0x178] sm:$0xff] }
 0x316   : > { %v2712_v12 = vpop.xlane.xlu1 %2711  ;;  %v2710_v55 = vpop.xlane.xlu0 %2709  ;;  %11605 = vst [vmem:[#allocation103_spill] sm:$0xff] %v9980_v62  ;;  %7492 = vpow2.f32 %v2901_v57  ;;  %11613 = vst [vmem:[#allocation109_spill] sm:$0xff] %v10024_v17 }
 0x317   : > { %v9970_v8 = vmax.f32 %v9955_v51, %v2712_v12  ;;  %v9973_v59 = vmax.f32 %v9957_v54, %v2710_v55  ;;  %v9990_v55 = vpop.eup %7480  ;;  %v2873_v24 = vmul.f32 1.442695, %v11610_v11  ;;  %7494 = vpow2.f32 %v2911_v31  ;;  %v10026_v11 = vld [vmem:[#allocation2 + $0x170] sm:$0xff] }
 0x318   : > { %3129 = vperm.xlu1 %7438, %v9697_v26   ;;  %11607 = vst [vmem:[#allocation104_spill] sm:$0xff] %v9990_v55  ;;  %v9998_v61 = vpop.eup %7482  ;;  %11614 = vst [vmem:[#allocation110_spill] sm:$0xff] %v10026_v11  ;;  %v11615_v31 = vsub.f32 %v9638_v6, %v9657_v53  ;;  %v10047_v6 = vld [vmem:[#allocation2 + $0x1f8] sm:$0xff] }
 0x319   : > { %5089 = vst.msk [vmem:[#allocation2 + $0x1d8] sm:$0xff] %vm3809_vm4, %v9970_v8  ;;  %4655 = vperm.xlu0 %7439, %v9975_v34   ;;  %5088 = vst.msk [vmem:[#allocation2 + $0x1d0] sm:$0xff] %vm3809_vm4, %v9973_v59  ;;  %v10003_v34 = vld [vmem:[#allocation2 + $0x1e0] sm:$0xff]  ;;  %7496 = vpow2.f32 %v2873_v24 }
 0x31a   : > { %v2684_v5 = vpop.xlane.xlu1 %2683  ;;  %v2682_v12 = vpop.xlane.xlu0 %2681  ;;  %11608 = vst [vmem:[#allocation105_spill] sm:$0xff] %v9998_v61  ;;  %11609 = vst [vmem:[#allocation106_spill] sm:$0xff] %v10003_v34 }
 0x31b   : > { %v9993_v4 = vmax.f32 %v9978_v58, %v2684_v5  ;;  %v9996_v33 = vmax.f32 %v9980_v62, %v2682_v12  ;;  %11618 = vst [vmem:[#allocation113_spill] sm:$0xff] %v10047_v6 }
 0x31c   : > { %4560 = vperm.xlu1 %7438, %v9990_v55   ;;  %v10013_v55 = vpop.eup %7484 }
 0x31d   : > { %5075 = vst.msk [vmem:[#allocation2 + $0x168] sm:$0xff] %vm3809_vm4, %v9993_v4  ;;  %4585 = vperm.xlu0 %7439, %v9998_v61   ;;  %5074 = vst.msk [vmem:[#allocation2 + $0x160] sm:$0xff] %vm3809_vm4, %v9996_v33  ;;  %v10021_v27 = vpop.eup %7486  ;;  %v2905_v61 = vmul.f32 1.442695, %v11615_v31  ;;  %v10049_v31 = vld [vmem:[#allocation2 + $0x1f0] sm:$0xff] }
 0x31e   : > { %v2716_v5 = vpop.xlane.xlu1 %2715  ;;  %v2714_v12 = vpop.xlane.xlu0 %2713  ;;  %11611 = vst [vmem:[#allocation107_spill] sm:$0xff] %v10013_v55  ;;  %11612 = vst [vmem:[#allocation108_spill] sm:$0xff] %v10021_v27 }
 0x31f   : > { %v10016_v62 = vmax.f32 %v10001_v28, %v2716_v5  ;;  %v10019_v57 = vmax.f32 %v10003_v34, %v2714_v12  ;;  %11619 = vst [vmem:[#allocation114_spill] sm:$0xff] %v10049_v31  ;;  %7498 = vpow2.f32 %v2905_v61 }
 0x320   : > { %4640 = vperm.xlu1 %7438, %v10013_v55   ;;  %v10036_v55 = vpop.eup %7488 }
 0x321   : > { %5091 = vst.msk [vmem:[#allocation2 + $0x1e8] sm:$0xff] %vm3809_vm4, %v10016_v62  ;;  %4665 = vperm.xlu0 %7439, %v10021_v27   ;;  %5090 = vst.msk [vmem:[#allocation2 + $0x1e0] sm:$0xff] %vm3809_vm4, %v10019_v57  ;;  %v10044_v53 = vpop.eup %7490  ;;  %v11620_v27 = vsub.f32 %v9664_v16, %v9679_v13 }
 0x322   : > { %v2688_v5 = vpop.xlane.xlu1 %2687  ;;  %v2686_v12 = vpop.xlane.xlu0 %2685  ;;  %11616 = vst [vmem:[#allocation111_spill] sm:$0xff] %v10036_v55  ;;  %11617 = vst [vmem:[#allocation112_spill] sm:$0xff] %v10044_v53 }
 0x323   : > { %v10039_v34 = vmax.f32 %v10024_v17, %v2688_v5  ;;  %v10042_v24 = vmax.f32 %v10026_v11, %v2686_v12  ;;  %v2877_v54 = vmul.f32 1.442695, %v11620_v27  ;;  %v11625_v27 = vsub.f32 %v9684_v52, %v9697_v26 }
 0x324   : > { %4570 = vperm.xlu1 %7438, %v10036_v55   ;;  %v10059_v55 = vpop.eup %7492 }
 0x325   : > { %5077 = vst.msk [vmem:[#allocation2 + $0x178] sm:$0xff] %vm3809_vm4, %v10039_v34  ;;  %4595 = vperm.xlu0 %7439, %v10044_v53   ;;  %5076 = vst.msk [vmem:[#allocation2 + $0x170] sm:$0xff] %vm3809_vm4, %v10042_v24  ;;  %v10067_v16 = vpop.eup %7494  ;;  %7500 = vpow2.f32 %v2877_v54  ;;  %v2909_v53 = vmul.f32 1.442695, %v11625_v27  ;;  %v1548_v27 = vld [vmem:[%s8471_s26 + $0x180] sm:$0xff] }
 0x326   : > { %v2720_v5 = vpop.xlane.xlu1 %2719  ;;  %v2718_v12 = vpop.xlane.xlu0 %2717  ;;  %11621 = vst [vmem:[#allocation115_spill] sm:$0xff] %v10059_v55  ;;  %11624 = vst [vmem:[#allocation118_spill] sm:$0xff] %v10067_v16 }
 0x327   : > { %v10062_v61 = vmax.f32 %v10047_v6, %v2720_v5  ;;  %v10065_v13 = vmax.f32 %v10049_v31, %v2718_v12  ;;  %v1532_v5 = vld [vmem:[%s8471_s26 + $0x100] sm:$0xff]  ;;  %v1533_v12 = vld [vmem:[%s8471_s26 + $0x108] sm:$0xff]  ;;  %v10080_v31 = vpop.eup %7496  ;;  %7502 = vpow2.f32 %v2909_v53 }
 0x328   : > { %4650 = vperm.xlu1 %7438, %v10059_v55   ;;  %11626 = vst [vmem:[#allocation119_spill] sm:$0xff] %v10080_v31  ;;  %v10082_v54 = vpack.c.bf16 %v1533_v12, %v1532_v5 }
 0x329   : > { %11622 = vst [vmem:[#allocation116_spill] sm:$0xff] %v10062_v61  ;;  %11623 = vst [vmem:[#allocation117_spill] sm:$0xff] %v10065_v13  ;;  %4675 = vperm.xlu0 %7439, %v10067_v16   ;;  %v1549_v16 = vld [vmem:[%s8471_s26 + $0x188] sm:$0xff]  ;;  %v10090_v6 = vpop.eup %7498 }
 0x32a   : > { %5093 = vst.msk [vmem:[#allocation2 + $0x1f8] sm:$0xff] %vm3809_vm4, %v10062_v61  ;;  %5092 = vst.msk [vmem:[#allocation2 + $0x1f0] sm:$0xff] %vm3809_vm4, %v10065_v13  ;;  %7283 = vmatprep.subr.bf16.mxu0 %v10082_v54  ;;  %v10092_v11 = vpack.c.bf16 %v1549_v16, %v1548_v27 }
 0x32b   : > { %v2985_v55 = vpop.permute.xlu1 %2984  ;;  %11627 = vst [vmem:[#allocation120_spill] sm:$0xff] %v10090_v6 }
 0x32c   : > { %4580 = vperm.xlu1 %7438, %v10080_v31   ;;  %v3298_v52 = vsub.f32 %v9186_v37, %v2985_v55  ;;  %7315 = vmatprep.subr.bf16.mxu1 %v10092_v11 }
 0x32d   : > { %3144 = vperm.xlu0 %7439, %v9721_v49  }
 0x32e   : > { %v3065_v26 = vpop.permute.xlu0 %3064  ;;  %v3363_v53 = vmul.f32 1.442695, %v3298_v52 }
 0x32f   : > { %v3314_v5 = vsub.f32 %v9188_v38, %v3065_v26  ;;  %v10098_v31 = vpop.eup %7500 }
 0x330   : > { %4660 = vperm.xlu1 %7438, %v10090_v6   ;;  %11628 = vst [vmem:[#allocation121_spill] sm:$0xff] %v10098_v31  ;;  %7504 = vpow2.f32 %v3363_v53  ;;  %v11636_v6 = vld [vmem:[#allocation11_spill] sm:$0xff] }
 0x331   : > { %3224 = vperm.xlu0 %7439, %v9747_v23   ;;  %v3395_v16 = vmul.f32 1.442695, %v3314_v5  ;;  %v10104_v26 = vpop.eup %7502 }
 0x332   : > { %v2980_v12 = vpop.permute.xlu0 %2979  ;;  %11629 = vst [vmem:[#allocation122_spill] sm:$0xff] %v10104_v26 }
 0x333   : > { %v3297_v37 = vsub.f32 %v9191_v39, %v2980_v12  ;;  %v3060_v55 = vpop.permute.xlu1 %3059 }
 0x334   : > { %v3313_v17 = vsub.f32 %v9194_v40, %v3060_v55  ;;  %4590 = vperm.xlu1 %7438, %v10098_v31   ;;  %v1539_v31 = vld [vmem:[%s8471_s26 + $0x138] sm:$0xff] }
 0x335   : > { %v3361_v27 = vmul.f32 1.442695, %v3297_v37  ;;  %3154 = vperm.xlu0 %7439, %v9767_v18   ;;  %v11630_v37 = vsub.f32 %v9707_v29, %v9721_v49 }
 0x336   : > { %v3393_v38 = vmul.f32 1.442695, %v3313_v17  ;;  %v3075_v40 = vpop.permute.xlu0 %3074 }
 0x337   : > { %7506 = vpow2.f32 %v3361_v27  ;;  %v2995_v52 = vpop.permute.xlu1 %2994  ;;  %v3316_v53 = vsub.f32 %v9201_v43, %v3075_v40  ;;  %v2915_v55 = vmul.f32 1.442695, %v11630_v37  ;;  %v1534_v27 = vld [vmem:[%s8471_s26 + $0x110] sm:$0xff] }
 0x338   : > { %7508 = vpow2.f32 %v3393_v38  ;;  %4670 = vperm.xlu1 %7438, %v10104_v26   ;;  %v3300_v39 = vsub.f32 %v9196_v41, %v2995_v52  ;;  %v1535_v38 = vld [vmem:[%s8471_s26 + $0x118] sm:$0xff]  ;;  %v1550_v43 = vld [vmem:[%s8471_s26 + $0x190] sm:$0xff] }
 0x339   : > { %7510 = vpow2.f32 %v3395_v16  ;;  %3234 = vperm.xlu0 %7439, %v9785_v36   ;;  %v1538_v26 = vld [vmem:[%s8471_s26 + $0x130] sm:$0xff] }
 0x33a   : > { %v3367_v12 = vmul.f32 1.442695, %v3300_v39  ;;  %v10118_v52 = vpop.eup %7504  ;;  %v1551_v39 = vld [vmem:[%s8471_s26 + $0x198] sm:$0xff] }
 0x33b   : > { %v2990_v5 = vpop.permute.xlu1 %2989  ;;  %11631 = vst [vmem:[#allocation123_spill] sm:$0xff] %v10118_v52 }
 0x33c   : > { %v3299_v17 = vsub.f32 %v9199_v42, %v2990_v5  ;;  %3139 = vperm.xlu1 %7438, %v9724_v48   ;;  %v3399_v5 = vmul.f32 1.442695, %v3316_v53  ;;  %v1536_v53 = vld [vmem:[%s8471_s26 + $0x120] sm:$0xff] }
 0x33d   : > { %3164 = vperm.xlu0 %7439, %v9809_v3  }
 0x33e   : > { %v3365_v41 = vmul.f32 1.442695, %v3299_v17 }
 0x33f   : > { %v3070_v16 = vpop.permute.xlu1 %3069 }
 0x340   : > { %7512 = vpow2.f32 %v3365_v41  ;;  %v3315_v42 = vsub.f32 %v9204_v44, %v3070_v16  ;;  %3219 = vperm.xlu1 %7438, %v9750_v10   ;;  %v7286_v44 = vpack.c.bf16 %v1535_v38, %v1534_v27  ;;  %v7318_v41 = vpack.c.bf16 %v1551_v39, %v1550_v43  ;;  %v3085_v16 = vpop.permute.xlu0 %3084  ;;  %v1553_v27 = vld [vmem:[%s8471_s26 + $0x1a8] sm:$0xff] }
 0x341   : > { %v10124_v40 = vpop.eup %7506  ;;  %7514 = vpow2.f32 %v3367_v12  ;;  %3244 = vperm.xlu0 %7439, %v9835_v22   ;;  %v1537_v12 = vld [vmem:[%s8471_s26 + $0x128] sm:$0xff] }
 0x342   : > { %11632 = vst [vmem:[#allocation124_spill] sm:$0xff] %v10124_v40  ;;  %v10127_v49 = vpop.eup %7508  ;;  %7516 = vpow2.f32 %v2915_v55  ;;  %v3397_v29 = vmul.f32 1.442695, %v3315_v42  ;;  %6834 = vmatprep.mubr.f32.mxu0 %v10124_v40  ;;  %v1552_v55 = vld [vmem:[%s8471_s26 + $0x1a0] sm:$0xff]  ;;  %v7290_v42 = vpack.c.bf16 %v1537_v12, %v1536_v53  ;;  %v11635_v43 = vld [vmem:[#allocation72_spill] sm:$0xff] }
 0x343   : > { %11633 = vst [vmem:[#allocation125_spill] sm:$0xff] %v10127_v49  ;;  %v10130_v17 = vpop.eup %7510  ;;  %6890 = vmatprep.mubr.f32.mxu1 %v10127_v49  ;;  %v3005_v37 = vpop.permute.xlu1 %3004  ;;  %6835 = vmatmul.mubr.f32.vlgmr.msra.gmra.mrb[32].mxu0 %v10118_v52  ;;  %v2817_v39 = vsub.f32 %v11635_v43, %v9724_v48  ;;  %v11638_v49 = vld [vmem:[#allocation12_spill] sm:$0xff]  ;;  %v11639_v12 = vld [vmem:[#allocation79_spill] sm:$0xff]  ;;  %v7294_v43 = vpack.c.bf16 %v1539_v31, %v1538_v26 }
 0x344   : > { %11634 = vst [vmem:[#allocation126_spill] sm:$0xff] %v10130_v17  ;;  %7518 = vpow2.f32 %v3397_v29  ;;  %3149 = vperm.xlu1 %7438, %v9770_v46   ;;  %6891 = vmatmul.mubr.f32.vlgmr.msra.gmra.mrb[32].mxu1 %v10130_v17  ;;  %v3302_v38 = vsub.f32 %v9206_v45, %v3005_v37  ;;  %v11637_v37 = vld [vmem:[#allocation83_spill] sm:$0xff]  ;;  %v1554_v17 = vld [vmem:[%s8471_s26 + $0x1b0] sm:$0xff]  ;;  %v1557_v26 = vld [vmem:[%s8471_s26 + $0x1c8] sm:$0xff] }
 0x345   : > { %7520 = vpow2.f32 %v3399_v5  ;;  %3174 = vperm.xlu0 %7439, %v9857_v20   ;;  %7285 = vmatpush3.bf16.msra.mxu0 %v10082_v54  ;;  %v7322_v5 = vpack.c.bf16 %v1553_v27, %v1552_v55  ;;  %v1555_v54 = vld [vmem:[%s8471_s26 + $0x1b8] sm:$0xff]  ;;  %v11640_v55 = vsub.f32 %v11639_v12, %v9767_v18  ;;  %v11643_v18 = vld [vmem:[#allocation13_spill] sm:$0xff]  ;;  %v1556_v31 = vld [vmem:[%s8471_s26 + $0x1c0] sm:$0xff] }
 0x346   : > { %7287 = vmatprep.subr.bf16.mxu0 %v7286_v44  ;;  %7317 = vmatpush3.bf16.msra.mxu1 %v10092_v11  ;;  %v3318_v11 = vsub.f32 %v11638_v49, %v3085_v16  ;;  %v3371_v53 = vmul.f32 1.442695, %v3302_v38  ;;  %v2913_v49 = vmul.f32 1.442695, %v2817_v39  ;;  %v1541_v38 = vld [vmem:[%s8471_s26 + $0x148] sm:$0xff]  ;;  %v7326_v52 = vpack.c.bf16 %v1555_v54, %v1554_v17 }
 0x347   : > { %v3000_v29 = vpop.permute.xlu1 %2999  ;;  %7319 = vmatprep.subr.bf16.mxu1 %v7318_v41 }
 0x348   : > { %v3301_v40 = vsub.f32 %v11636_v6, %v3000_v29  ;;  %v10149_v45 = vpop.permute.xlu0 %3094  ;;  %3229 = vperm.xlu1 %7438, %v11637_v37   ;;  %v2919_v6 = vmul.f32 1.442695, %v11640_v55 }
 0x349   : > { %3254 = vperm.xlu0 %7439, %v9877_v35   ;;  %7289 = vmatpush3.bf16.msra.mxu0 %v7286_v44  ;;  %v1540_v44 = vld [vmem:[%s8471_s26 + $0x140] sm:$0xff] }
 0x34a   : > { %v10156_v48 = vpop.eup %7512  ;;  %v3369_v27 = vmul.f32 1.442695, %v3301_v40  ;;  %7291 = vmatprep.subr.bf16.mxu0 %v7290_v42  ;;  %7321 = vmatpush3.bf16.msra.mxu1 %v7318_v41  ;;  %v3403_v41 = vmul.f32 1.442695, %v3318_v11  ;;  %v7298_v54 = vpack.c.bf16 %v1541_v38, %v1540_v44  ;;  %v1542_v11 = vld [vmem:[%s8471_s26 + $0x150] sm:$0xff] }
 0x34b   : > { %v10161_v29 = vpop.eup %7514  ;;  %v3080_v16 = vpop.permute.xlu1 %3079  ;;  %6837 = vmatprep.mubr.f32.mxu0 %v10156_v48  ;;  %7323 = vmatprep.subr.bf16.mxu1 %v7322_v5 }
 0x34c   : > { %11641 = vst [vmem:[#allocation72_spill] sm:$0xff] %v10161_v29  ;;  %v10166_v9 = vpop.eup %7516  ;;  %7522 = vpow2.f32 %v3369_v27  ;;  %v3317_v40 = vsub.f32 %v11643_v18, %v3080_v16  ;;  %v10169_v12 = vpop.permute.xlu0 %4605  ;;  %3159 = vperm.xlu1 %7438, %v9812_v32   ;;  %6838 = vmatmul.mubr.f32.gmra.mrb[34].mxu0 %v10161_v29  ;;  %v7330_v16 = vpack.c.bf16 %v1557_v26, %v1556_v31  ;;  %v11647_v18 = vld [vmem:[#allocation80_spill] sm:$0xff]  ;;  %v1544_v26 = vld [vmem:[%s8471_s26 + $0x160] sm:$0xff] }
 0x34d   : > { %11642 = vst [vmem:[#allocation11_spill] sm:$0xff] %v10166_v9  ;;  %11644 = vst [vmem:[#allocation83_spill] sm:$0xff] %v10169_v12  ;;  %7524 = vpow2.f32 %v3371_v53  ;;  %4685 = vperm.xlu0 %7439, %v10166_v9   ;;  %7293 = vmatpush3.bf16.msra.mxu0 %v7290_v42  ;;  %v1543_v53 = vld [vmem:[%s8471_s26 + $0x158] sm:$0xff]  ;;  %v11648_v12 = vld [vmem:[#allocation15_spill] sm:$0xff] }
 0x34e   : > { %v10176_v17 = vpop.eup %7518  ;;  %7526 = vpow2.f32 %v2919_v6  ;;  %v3401_v39 = vmul.f32 1.442695, %v3317_v40  ;;  %7295 = vmatprep.subr.bf16.mxu0 %v7294_v43  ;;  %7325 = vmatpush3.bf16.msra.mxu1 %v7322_v5  ;;  %v1558_v5 = vld [vmem:[%s8471_s26 + $0x1d0] sm:$0xff]  ;;  %v1559_v6 = vld [vmem:[%s8471_s26 + $0x1d8] sm:$0xff]  ;;  %v7302_v38 = vpack.c.bf16 %v1543_v53, %v1542_v11  ;;  %v2819_v40 = vsub.f32 %v11647_v18, %v9770_v46 }
 0x34f   : > { %v10178_v55 = vpop.eup %7520  ;;  %7528 = vpow2.f32 %v2913_v49  ;;  %v3015_v27 = vpop.permute.xlu1 %3014  ;;  %6893 = vmatprep.mubr.f32.mxu1 %v10176_v17  ;;  %7327 = vmatprep.subr.bf16.mxu1 %v7326_v52  ;;  %v11646_v49 = vld [vmem:[#allocation14_spill] sm:$0xff]  ;;  %v7334_v9 = vpack.c.bf16 %v1559_v6, %v1558_v5 }
 0x350   : > { %11645 = vst [vmem:[#allocation12_spill] sm:$0xff] %v10178_v55  ;;  %7530 = vpow2.f32 %v3401_v39  ;;  %v10183_v42 = vpop.permute.xlu0 %3024  ;;  %3239 = vperm.xlu1 %7438, %v9838_v15   ;;  %6894 = vmatmul.mubr.f32.gmra.mrb[34].mxu1 %v10178_v55  ;;  %v3304_v44 = vsub.f32 %v11646_v49, %v3015_v27  ;;  %v1545_v39 = vld [vmem:[%s8471_s26 + $0x168] sm:$0xff]  ;;  %v1560_v27 = vld [vmem:[%s8471_s26 + $0x1e0] sm:$0xff]  ;;  %v2917_v49 = vmul.f32 1.442695, %v2819_v40  ;;  %v1563_v40 = vld [vmem:[%s8471_s26 + $0x1f8] sm:$0xff] }
 0x351   : > { %7532 = vpow2.f32 %v3403_v41  ;;  %3184 = vperm.xlu0 %7439, %v9899_v14   ;;  %7297 = vmatpush3.bf16.msra.mxu0 %v7294_v43  ;;  %v1561_v43 = vld [vmem:[%s8471_s26 + $0x1e8] sm:$0xff] }
 0x352   : > { %7299 = vmatprep.subr.bf16.mxu0 %v7298_v54  ;;  %7329 = vmatpush3.bf16.msra.mxu1 %v7326_v52  ;;  %v11649_v52 = vld [vmem:[#allocation16_spill] sm:$0xff]  ;;  %v3375_v53 = vmul.f32 1.442695, %v3304_v44  ;;  %v1547_v44 = vld [vmem:[%s8471_s26 + $0x178] sm:$0xff] }
 0x353   : > { %v3010_v31 = vpop.permute.xlu1 %3009  ;;  %7331 = vmatprep.subr.bf16.mxu1 %v7330_v16  ;;  %v3320_v11 = vsub.f32 %v11649_v52, %v10149_v45  ;;  %v1546_v45 = vld [vmem:[%s8471_s26 + $0x170] sm:$0xff] }
 0x354   : > { %v3303_v41 = vsub.f32 %v11648_v12, %v3010_v31  ;;  %v10196_v55 = vpop.permute.xlu0 %3104  ;;  %3169 = vperm.xlu1 %7438, %v9860_v63   ;;  %v7306_v12 = vpack.c.bf16 %v1545_v39, %v1544_v26  ;;  %v7338_v31 = vpack.c.bf16 %v1561_v43, %v1560_v27 }
 0x355   : > { %3264 = vperm.xlu0 %7439, %v9924_v0   ;;  %7301 = vmatpush3.bf16.msra.mxu0 %v7298_v54  ;;  %v11651_v54 = vld [vmem:[#allocation17_spill] sm:$0xff]  ;;  %v3407_v39 = vmul.f32 1.442695, %v3320_v11 }
 0x356   : > { %v10204_v46 = vpop.eup %7522  ;;  %v3373_v5 = vmul.f32 1.442695, %v3303_v41  ;;  %7303 = vmatprep.subr.bf16.mxu0 %v7302_v38  ;;  %7333 = vmatpush3.bf16.msra.mxu1 %v7330_v16  ;;  %v1562_v16 = vld [vmem:[%s8471_s26 + $0x1f0] sm:$0xff] }
 0x357   : > { %v10206_v6 = vpop.eup %7524  ;;  %v3090_v18 = vpop.permute.xlu1 %3089  ;;  %6840 = vmatprep.mubr.f32.mxu0 %v10204_v46  ;;  %7335 = vmatprep.subr.bf16.mxu1 %v7334_v9 }
 0x358   : > { %v10211_v52 = vpop.eup %7526  ;;  %7534 = vpow2.f32 %v3373_v5  ;;  %v3319_v41 = vsub.f32 %v11651_v54, %v3090_v18  ;;  %v10214_v29 = vpop.permute.xlu0 %4520  ;;  %3249 = vperm.xlu1 %7438, %v9880_v21   ;;  %6841 = vmatmul.mubr.f32.gmra.mrb[36].mxu0 %v10206_v6  ;;  %v7310_v5 = vpack.c.bf16 %v1547_v44, %v1546_v45 }
 0x359   : > { %11650 = vst [vmem:[#allocation79_spill] sm:$0xff] %v10211_v52  ;;  %11652 = vst [vmem:[#allocation13_spill] sm:$0xff] %v10214_v29  ;;  %v10220_v26 = vpop.eup %7528  ;;  %7536 = vpow2.f32 %v3375_v53  ;;  %4695 = vperm.xlu0 %7439, %v10211_v52   ;;  %7305 = vmatpush3.bf16.msra.mxu0 %v7302_v38  ;;  %v7342_v29 = vpack.c.bf16 %v1563_v40, %v1562_v16  ;;  %v11655_v53 = vld [vmem:[#allocation18_spill] sm:$0xff] }
 0x35a   : > { %11653 = vst [vmem:[#allocation14_spill] sm:$0xff] %v10220_v26  ;;  %v10223_v27 = vpop.eup %7530  ;;  %v3405_v43 = vmul.f32 1.442695, %v3319_v41  ;;  %7307 = vmatprep.subr.bf16.mxu0 %v7306_v12  ;;  %7337 = vmatpush3.bf16.msra.mxu1 %v7334_v9  ;;  %7538 = vpow2.f32 %v2917_v49  ;;  %v3306_v49 = vsub.f32 %v11655_v53, %v10183_v42 }
 0x35b   : > { %v10225_v18 = vpop.eup %7532  ;;  %v10227_v54 = vpop.permute.xlu1 %4525  ;;  %6896 = vmatprep.mubr.f32.mxu1 %v10223_v27  ;;  %7339 = vmatprep.subr.bf16.mxu1 %v7338_v31 }
 0x35c   : > { %7540 = vpow2.f32 %v3405_v43  ;;  %v10230_v11 = vpop.permute.xlu0 %4535  ;;  %4680 = vperm.xlu1 %7438, %v10220_v26   ;;  %6897 = vmatmul.mubr.f32.gmra.mrb[36].mxu1 %v10225_v18  ;;  %v3379_v42 = vmul.f32 1.442695, %v3306_v49  ;;  %v11660_v26 = vld [vmem:[#allocation21_spill] sm:$0xff] }
 0x35d   : > { %7542 = vpow2.f32 %v3407_v39  ;;  %3194 = vperm.xlu0 %7439, %v9947_v25   ;;  %7309 = vmatpush3.bf16.msra.mxu0 %v7306_v12  ;;  %v11658_v39 = vld [vmem:[#allocation20_spill] sm:$0xff] }
 0x35e   : > { %7311 = vmatprep.subr.bf16.mxu0 %v7310_v5  ;;  %7341 = vmatpush3.bf16.msra.mxu1 %v7338_v31  ;;  %v11656_v31 = vld [vmem:[#allocation19_spill] sm:$0xff]  ;;  %v3322_v43 = vsub.f32 %v11658_v39, %v10196_v55 }
 0x35f   : > { %v10235_v9 = vpop.permute.xlu1 %4600  ;;  %7343 = vmatprep.subr.bf16.mxu1 %v7342_v29 }
 0x360   : > { %v10237_v38 = vpop.permute.xlu0 %4615  ;;  %3179 = vperm.xlu1 %7438, %v9902_v56   ;;  %v3411_v55 = vmul.f32 1.442695, %v3322_v43  ;;  %v11665_v43 = vld [vmem:[#allocation84_spill] sm:$0xff] }
 0x361   : > { %11654 = vst [vmem:[#allocation80_spill] sm:$0xff] %v10237_v38  ;;  %3274 = vperm.xlu0 %7439, %v9970_v8   ;;  %7313 = vmatpush3.bf16.msra.mxu0 %v7310_v5  ;;  %v11659_v5 = vsub.f32 %v9791_v19, %v9809_v3  ;;  %v11661_v19 = vsub.f32 %v9843_v50, %v9857_v20 }
 0x362   : > { %v10243_v45 = vpop.eup %7534  ;;  %7345 = vmatpush3.bf16.msra.mxu1 %v7342_v29  ;;  %v2821_v50 = vsub.f32 %v11665_v43, %v9812_v32 }
 0x363   : > { %v10245_v44 = vpop.eup %7536  ;;  %v3020_v12 = vpop.permute.xlu1 %3019  ;;  %6843 = vmatprep.mubr.f32.mxu0 %v10243_v45  ;;  %v2923_v53 = vmul.f32 1.442695, %v11659_v5  ;;  %v2927_v3 = vmul.f32 1.442695, %v11661_v19  ;;  %v11668_v19 = vld [vmem:[#allocation81_spill] sm:$0xff] }
 0x364   : > { %v3305_v41 = vsub.f32 %v11656_v31, %v3020_v12  ;;  %v3035_v16 = vpop.permute.xlu0 %3034  ;;  %3259 = vperm.xlu1 %7438, %v9927_v7   ;;  %6844 = vmatmul.mubr.f32.gmra.mrb[38].mxu0 %v10245_v44  ;;  %v10251_v40 = vpop.eup %7538  ;;  %v2921_v32 = vmul.f32 1.442695, %v2821_v50 }
 0x365   : > { %11657 = vst [vmem:[#allocation15_spill] sm:$0xff] %v10251_v40  ;;  %3204 = vperm.xlu0 %7439, %v9993_v4  }
 0x366   : > { %v10256_v29 = vpop.eup %7540  ;;  %v3377_v12 = vmul.f32 1.442695, %v3305_v41 }
 0x367   : > { %v10261_v31 = vpop.eup %7542  ;;  %v3100_v52 = vpop.permute.xlu1 %3099  ;;  %6899 = vmatprep.mubr.f32.mxu1 %v10256_v29 }
 0x368   : > { %7544 = vpow2.f32 %v3377_v12  ;;  %v3321_v49 = vsub.f32 %v11660_v26, %v3100_v52  ;;  %v3115_v38 = vpop.permute.xlu0 %3114  ;;  %4690 = vperm.xlu1 %7438, %v10251_v40   ;;  %6900 = vmatmul.mubr.f32.gmra.mrb[38].mxu1 %v10261_v31  ;;  %v11663_v52 = vld [vmem:[#allocation75_spill] sm:$0xff]  ;;  %v11667_v12 = vld [vmem:[#allocation22_spill] sm:$0xff] }
 0x369   : > { %7546 = vpow2.f32 %v3379_v42  ;;  %3284 = vperm.xlu0 %7439, %v10016_v62   ;;  %v11664_v26 = vsub.f32 %v11663_v52, %v9747_v23  ;;  %v11669_v23 = vsub.f32 %v11668_v19, %v9785_v36  ;;  %v11670_v52 = vld [vmem:[#allocation91_spill] sm:$0xff] }
 0x36a   : > { %7548 = vpow2.f32 %v2923_v53  ;;  %v3409_v41 = vmul.f32 1.442695, %v3321_v49  ;;  %v3308_v49 = vsub.f32 %v11667_v12, %v3035_v16  ;;  %v11672_v16 = vld [vmem:[#allocation23_spill] sm:$0xff] }
 0x36b   : > { %v10271_v39 = vpop.permute.xlu1 %4530  ;;  %v2947_v42 = vmul.f32 1.442695, %v11664_v26  ;;  %v2823_v26 = vsub.f32 %v11670_v52, %v9860_v63  ;;  %v11674_v63 = vld [vmem:[#allocation87_spill] sm:$0xff] }
 0x36c   : > { %7550 = vpow2.f32 %v3409_v41  ;;  %v10273_v5 = vpop.permute.xlu0 %4545  ;;  %3189 = vperm.xlu1 %7438, %v9950_v60   ;;  %v3383_v36 = vmul.f32 1.442695, %v3308_v49 }
 0x36d   : > { %11662 = vst [vmem:[#allocation16_spill] sm:$0xff] %v10273_v5  ;;  %7552 = vpow2.f32 %v3411_v55  ;;  %3214 = vperm.xlu0 %7439, %v10039_v34  }
 0x36e   : > { %7554 = vpow2.f32 %v2927_v3  ;;  %v2951_v3 = vmul.f32 1.442695, %v11669_v23  ;;  %v11675_v23 = vsub.f32 %v11674_v63, %v9835_v22  ;;  %v11678_v22 = vld [vmem:[#allocation76_spill] sm:$0xff] }
 0x36f   : > { %v10282_v20 = vpop.permute.xlu1 %4610  ;;  %7556 = vpow2.f32 %v2947_v42  ;;  %v11673_v42 = vld [vmem:[#allocation24_spill] sm:$0xff] }
 0x370   : > { %v10284_v53 = vpop.permute.xlu0 %4625  ;;  %3269 = vperm.xlu1 %7438, %v9973_v59   ;;  %v3324_v19 = vsub.f32 %v11673_v42, %v3115_v38  ;;  %7558 = vpow2.f32 %v2951_v3  ;;  %v2955_v52 = vmul.f32 1.442695, %v11675_v23  ;;  %v11677_v38 = vld [vmem:[#allocation25_spill] sm:$0xff]  ;;  %v2833_v3 = vsub.f32 %v11678_v22, %v9750_v10 }
 0x371   : > { %11666 = vst [vmem:[#allocation17_spill] sm:$0xff] %v10284_v53  ;;  %3294 = vperm.xlu0 %7439, %v10062_v61   ;;  %7560 = vpow2.f32 %v2921_v32 }
 0x372   : > { %v10289_v55 = vpop.eup %7544  ;;  %v3415_v32 = vmul.f32 1.442695, %v3324_v19  ;;  %v11682_v19 = vld [vmem:[#allocation82_spill] sm:$0xff] }
 0x373   : > { %v10294_v41 = vpop.eup %7546  ;;  %v3030_v43 = vpop.permute.xlu1 %3029  ;;  %6846 = vmatprep.mubr.f32.mxu0 %v10289_v55 }
 0x374   : > { %v10299_v40 = vpop.eup %7548  ;;  %v3307_v12 = vsub.f32 %v11672_v16, %v3030_v43  ;;  %v10302_v61 = vpop.permute.xlu0 %3044  ;;  %3199 = vperm.xlu1 %7438, %v9996_v33   ;;  %6847 = vmatmul.mubr.f32.gmra.mrb[40].mxu0 %v10294_v41  ;;  %v2925_v16 = vmul.f32 1.442695, %v2823_v26  ;;  %v11679_v26 = vld [vmem:[#allocation92_spill] sm:$0xff] }
 0x375   : > { %11671 = vst [vmem:[#allocation18_spill] sm:$0xff] %v10299_v40  ;;  %4705 = vperm.xlu0 %7439, %v10299_v40  }
 0x376   : > { %v10308_v50 = vpop.eup %7550  ;;  %v3381_v53 = vmul.f32 1.442695, %v3307_v12  ;;  %v11680_v12 = vsub.f32 %v11679_v26, %v9877_v35  ;;  %v11683_v35 = vld [vmem:[#allocation88_spill] sm:$0xff] }
 0x377   : > { %v10313_v43 = vpop.eup %7552  ;;  %v3110_v5 = vpop.permute.xlu1 %3109  ;;  %6902 = vmatprep.mubr.f32.mxu1 %v10308_v50 }
 0x378   : > { %v10316_v49 = vpop.eup %7554  ;;  %7562 = vpow2.f32 %v3381_v53  ;;  %v3323_v42 = vsub.f32 %v11677_v38, %v3110_v5  ;;  %v10319_v40 = vpop.permute.xlu0 %3124  ;;  %3279 = vperm.xlu1 %7438, %v10019_v57   ;;  %6903 = vmatmul.mubr.f32.gmra.mrb[40].mxu1 %v10313_v43  ;;  %v2959_v53 = vmul.f32 1.442695, %v11680_v12  ;;  %v2826_v5 = vsub.f32 %v9883_v2, %v9899_v14 }
 0x379   : > { %11676 = vst [vmem:[#allocation19_spill] sm:$0xff] %v10316_v49  ;;  %7564 = vpow2.f32 %v3383_v36  ;;  %4715 = vperm.xlu0 %7439, %v10316_v49   ;;  %v10333_v38 = vpop.eup %7556  ;;  %v2945_v36 = vmul.f32 1.442695, %v2833_v3  ;;  %v2842_v2 = vsub.f32 %v9907_v30, %v9924_v0  ;;  %v2828_v0 = vsub.f32 %v9932_v1, %v9947_v25 }
 0x37a   : > { %7566 = vpow2.f32 %v2955_v52  ;;  %v3413_v63 = vmul.f32 1.442695, %v3323_v42  ;;  %11681 = vst [vmem:[#allocation20_spill] sm:$0xff] %v10333_v38  ;;  %v2835_v52 = vsub.f32 %v11682_v19, %v11637_v37  ;;  %v2931_v14 = vmul.f32 1.442695, %v2826_v5  ;;  %v10347_v22 = vpop.eup %7558 }
 0x37b   : > { %7568 = vpow2.f32 %v2925_v16  ;;  %v10331_v23 = vpop.permute.xlu1 %4540  ;;  %v2837_v16 = vsub.f32 %v11683_v35, %v9838_v15  ;;  %11684 = vst [vmem:[#allocation21_spill] sm:$0xff] %v10347_v22  ;;  %v10352_v37 = vpop.eup %7560  ;;  %v2963_v15 = vmul.f32 1.442695, %v2842_v2 }
 0x37c   : > { %7570 = vpow2.f32 %v3413_v63  ;;  %v10335_v10 = vpop.permute.xlu0 %4555  ;;  %3209 = vperm.xlu1 %7438, %v10042_v24   ;;  %11685 = vst [vmem:[#allocation75_spill] sm:$0xff] %v10352_v37  ;;  %v2949_v3 = vmul.f32 1.442695, %v2835_v52  ;;  %v11687_v63 = vld [vmem:[#allocation93_spill] sm:$0xff] }
 0x37d   : > { %7572 = vpow2.f32 %v3415_v32  ;;  %4765 = vperm.xlu0 %7439, %v10333_v38   ;;  %v11686_v32 = vld [vmem:[#allocation26_spill] sm:$0xff]  ;;  %v2953_v5 = vmul.f32 1.442695, %v2837_v16  ;;  %v2839_v19 = vsub.f32 %v11687_v63, %v9880_v21  ;;  %v2935_v16 = vmul.f32 1.442695, %v2828_v0 }
 0x37e   : > { %7574 = vpow2.f32 %v2959_v53  ;;  %v3310_v12 = vsub.f32 %v11686_v32, %v10302_v61  ;;  %v11689_v61 = vld [vmem:[#allocation27_spill] sm:$0xff]  ;;  %v2844_v63 = vsub.f32 %v9955_v51, %v9970_v8  ;;  %v11694_v51 = vld [vmem:[#allocation94_spill] sm:$0xff] }
 0x37f   : > { %v10345_v42 = vpop.permute.xlu1 %4620  ;;  %7576 = vpow2.f32 %v2945_v36  ;;  %v2957_v49 = vmul.f32 1.442695, %v2839_v19  ;;  %v2825_v8 = vsub.f32 %v11694_v51, %v9902_v56 }
 0x380   : > { %v10349_v26 = vpop.permute.xlu0 %4635  ;;  %3289 = vperm.xlu1 %7438, %v10065_v13   ;;  %7578 = vpow2.f32 %v2931_v14  ;;  %v3387_v25 = vmul.f32 1.442695, %v3310_v12  ;;  %v11691_v14 = vld [vmem:[#allocation28_spill] sm:$0xff]  ;;  %v2967_v0 = vmul.f32 1.442695, %v2844_v63 }
 0x381   : > { %4775 = vperm.xlu0 %7439, %v10347_v22   ;;  %7580 = vpow2.f32 %v2949_v3  ;;  %v3326_v21 = vsub.f32 %v11691_v14, %v10319_v40  ;;  %v11693_v40 = vld [vmem:[#allocation29_spill] sm:$0xff]  ;;  %v2929_v56 = vmul.f32 1.442695, %v2825_v8  ;;  %v11701_v8 = vld [vmem:[#allocation30_spill] sm:$0xff] }
 0x382   : > { %v10357_v30 = vpop.eup %7562  ;;  %7582 = vpow2.f32 %v2963_v15 }
 0x383   : > { %v10361_v53 = vpop.eup %7564  ;;  %v3040_v36 = vpop.permute.xlu1 %3039  ;;  %6849 = vmatprep.mubr.f32.mxu0 %v10357_v30  ;;  %7584 = vpow2.f32 %v2953_v5  ;;  %v3419_v15 = vmul.f32 1.442695, %v3326_v21  ;;  %v2830_v5 = vsub.f32 %v9978_v58, %v9993_v4  ;;  %v2846_v4 = vsub.f32 %v10001_v28, %v10016_v62  ;;  %v11698_v21 = vld [vmem:[#allocation99_spill] sm:$0xff] }
 0x384   : > { %v10366_v52 = vpop.eup %7566  ;;  %v3309_v35 = vsub.f32 %v11689_v61, %v3040_v36  ;;  %v10369_v32 = vpop.permute.xlu0 %3054  ;;  %4700 = vperm.xlu1 %7438, %v10352_v37   ;;  %6850 = vmatmul.mubr.f32.gmra.mrb[42].mxu0 %v10361_v53  ;;  %v11735_v37 = vld [vmem:[#allocation34_spill] sm:$0xff] }
 0x385   : > { %11688 = vst [vmem:[#allocation84_spill] sm:$0xff] %v10366_v52  ;;  %v10373_v1 = vpop.eup %7568  ;;  %4785 = vperm.xlu0 %7439, %v10366_v52   ;;  %v2939_v58 = vmul.f32 1.442695, %v2830_v5  ;;  %v3312_v62 = vsub.f32 %v11701_v8, %v10369_v32  ;;  %v11705_v32 = vld [vmem:[#allocation31_spill] sm:$0xff] }
 0x386   : > { %11690 = vst [vmem:[#allocation22_spill] sm:$0xff] %v10373_v1  ;;  %v10378_v2 = vpop.eup %7570  ;;  %v3385_v36 = vmul.f32 1.442695, %v3309_v35 }
 0x387   : > { %v10382_v61 = vpop.eup %7572  ;;  %v3120_v22 = vpop.permute.xlu1 %3119  ;;  %6905 = vmatprep.mubr.f32.mxu1 %v10378_v2 }
 0x388   : > { %v10385_v3 = vpop.eup %7574  ;;  %7586 = vpow2.f32 %v3385_v36  ;;  %v3325_v12 = vsub.f32 %v11693_v40, %v3120_v22  ;;  %v10388_v14 = vpop.permute.xlu0 %3134  ;;  %4710 = vperm.xlu1 %7438, %v10373_v1   ;;  %6906 = vmatmul.mubr.f32.gmra.mrb[42].mxu1 %v10382_v61 }
 0x389   : > { %11692 = vst [vmem:[#allocation81_spill] sm:$0xff] %v10385_v3  ;;  %7588 = vpow2.f32 %v3387_v25  ;;  %4795 = vperm.xlu0 %7439, %v10385_v3   ;;  %v10397_v22 = vpop.eup %7576  ;;  %v2841_v25 = vsub.f32 %v9909_v47, %v9927_v7 }
 0x38a   : > { %7590 = vpow2.f32 %v2935_v16  ;;  %v3417_v19 = vmul.f32 1.442695, %v3325_v12  ;;  %11695 = vst [vmem:[#allocation91_spill] sm:$0xff] %v10397_v22  ;;  %v10401_v36 = vpop.eup %7578  ;;  %v2827_v16 = vsub.f32 %v11698_v21, %v9950_v60  ;;  %v2971_v60 = vmul.f32 1.442695, %v2846_v4  ;;  %v11703_v21 = vld [vmem:[#allocation101_spill] sm:$0xff] }
 0x38b   : > { %7592 = vpow2.f32 %v2957_v49  ;;  %v10399_v35 = vpop.permute.xlu1 %4550  ;;  %11696 = vst [vmem:[#allocation23_spill] sm:$0xff] %v10401_v36  ;;  %v10411_v49 = vpop.eup %7580  ;;  %v2961_v7 = vmul.f32 1.442695, %v2841_v25  ;;  %v11708_v4 = vld [vmem:[#allocation32_spill] sm:$0xff] }
 0x38c   : > { %7594 = vpow2.f32 %v3417_v19  ;;  %v10403_v40 = vpop.permute.xlu0 %4565  ;;  %4760 = vperm.xlu1 %7438, %v10397_v22   ;;  %11697 = vst [vmem:[#allocation24_spill] sm:$0xff] %v10411_v49  ;;  %v10417_v12 = vpop.eup %7582  ;;  %v2933_v19 = vmul.f32 1.442695, %v2827_v16  ;;  %v11736_v22 = vld [vmem:[#allocation35_spill] sm:$0xff] }
 0x38d   : > { %7596 = vpow2.f32 %v3419_v15  ;;  %4725 = vperm.xlu0 %7439, %v10401_v36   ;;  %11699 = vst [vmem:[#allocation87_spill] sm:$0xff] %v10417_v12  ;;  %v10422_v47 = vpop.eup %7584  ;;  %v11702_v15 = vld [vmem:[#allocation109_spill] sm:$0xff]  ;;  %v2843_v36 = vsub.f32 %v11703_v21, %v9973_v59  ;;  %v3328_v59 = vsub.f32 %v11708_v4, %v10388_v14 }
 0x38e   : > { %7598 = vpow2.f32 %v2967_v0  ;;  %11700 = vst [vmem:[#allocation25_spill] sm:$0xff] %v10422_v47  ;;  %v2832_v0 = vsub.f32 %v11702_v15, %v10039_v34 }
 0x38f   : > { %v10415_v63 = vpop.permute.xlu1 %4630  ;;  %7600 = vpow2.f32 %v2929_v56 }
 0x390   : > { %v10419_v51 = vpop.permute.xlu0 %4645  ;;  %4770 = vperm.xlu1 %7438, %v10411_v49   ;;  %7602 = vpow2.f32 %v2939_v58  ;;  %v3391_v58 = vmul.f32 1.442695, %v3312_v62  ;;  %v2943_v15 = vmul.f32 1.442695, %v2832_v0 }
 0x391   : > { %4805 = vperm.xlu0 %7439, %v10417_v12   ;;  %7604 = vpow2.f32 %v2961_v7  ;;  %v11710_v7 = vld [vmem:[#allocation33_spill] sm:$0xff] }
 0x392   : > { %v10427_v28 = vpop.eup %7586  ;;  %7606 = vpow2.f32 %v2971_v60  ;;  %v11712_v60 = vld [vmem:[#allocation103_spill] sm:$0xff] }
 0x393   : > { %v10431_v5 = vpop.eup %7588  ;;  %v3050_v56 = vpop.permute.xlu1 %3049  ;;  %6852 = vmatprep.mubr.f32.mxu0 %v10427_v28  ;;  %7608 = vpow2.f32 %v2933_v19  ;;  %v2829_v0 = vsub.f32 %v11712_v60, %v9996_v33  ;;  %v3423_v19 = vmul.f32 1.442695, %v3328_v59  ;;  %v11716_v33 = vld [vmem:[#allocation106_spill] sm:$0xff] }
 0x394   : > { %v10436_v25 = vpop.eup %7590  ;;  %v3311_v8 = vsub.f32 %v11705_v32, %v3050_v56  ;;  %v10439_v12 = vpop.permute.xlu0 %4575  ;;  %4780 = vperm.xlu1 %7438, %v10422_v47   ;;  %6853 = vmatmul.mubr.f32.gmra.mrb[44].mxu0 %v10431_v5  ;;  %v2965_v32 = vmul.f32 1.442695, %v2843_v36 }
 0x395   : > { %11704 = vst [vmem:[#allocation76_spill] sm:$0xff] %v10436_v25  ;;  %11706 = vst [vmem:[#allocation92_spill] sm:$0xff] %v10439_v12  ;;  %v10443_v34 = vpop.eup %7592  ;;  %4735 = vperm.xlu0 %7439, %v10436_v25  }
 0x396   : > { %11707 = vst [vmem:[#allocation82_spill] sm:$0xff] %v10443_v34  ;;  %v10448_v16 = vpop.eup %7594  ;;  %v3389_v21 = vmul.f32 1.442695, %v3311_v8 }
 0x397   : > { %v10450_v56 = vpop.eup %7596  ;;  %v3130_v3 = vpop.permute.xlu1 %3129  ;;  %6908 = vmatprep.mubr.f32.mxu1 %v10448_v16 }
 0x398   : > { %v10453_v52 = vpop.eup %7598  ;;  %7610 = vpow2.f32 %v3389_v21  ;;  %v3327_v62 = vsub.f32 %v11710_v7, %v3130_v3  ;;  %v10456_v14 = vpop.permute.xlu0 %4655  ;;  %4790 = vperm.xlu1 %7438, %v10443_v34   ;;  %6909 = vmatmul.mubr.f32.gmra.mrb[44].mxu1 %v10450_v56  ;;  %v2937_v7 = vmul.f32 1.442695, %v2829_v0 }
 0x399   : > { %11709 = vst [vmem:[#allocation88_spill] sm:$0xff] %v10453_v52  ;;  %11711 = vst [vmem:[#allocation26_spill] sm:$0xff] %v10456_v14  ;;  %7612 = vpow2.f32 %v3391_v58  ;;  %4815 = vperm.xlu0 %7439, %v10453_v52   ;;  %v10463_v8 = vpop.eup %7600  ;;  %v2845_v58 = vsub.f32 %v11716_v33, %v10019_v57 }
 0x39a   : > { %7614 = vpow2.f32 %v2943_v15  ;;  %v3421_v36 = vmul.f32 1.442695, %v3327_v62  ;;  %11713 = vst [vmem:[#allocation93_spill] sm:$0xff] %v10463_v8  ;;  %v10467_v3 = vpop.eup %7602 }
 0x39b   : > { %7616 = vpow2.f32 %v2965_v32  ;;  %v10465_v4 = vpop.permute.xlu1 %4560  ;;  %11714 = vst [vmem:[#allocation27_spill] sm:$0xff] %v10467_v3  ;;  %v10475_v59 = vpop.eup %7604  ;;  %v2969_v0 = vmul.f32 1.442695, %v2845_v58 }
 0x39c   : > { %7618 = vpow2.f32 %v3421_v36  ;;  %v10469_v21 = vpop.permute.xlu0 %4585  ;;  %4720 = vperm.xlu1 %7438, %v10463_v8   ;;  %11717 = vst [vmem:[#allocation29_spill] sm:$0xff] %v10475_v59  ;;  %v10479_v32 = vpop.eup %7606  ;;  %v11721_v36 = vld [vmem:[#allocation110_spill] sm:$0xff] }
 0x39d   : > { %11715 = vst [vmem:[#allocation28_spill] sm:$0xff] %v10469_v21  ;;  %7620 = vpow2.f32 %v3423_v19  ;;  %4745 = vperm.xlu0 %7439, %v10467_v3   ;;  %11718 = vst [vmem:[#allocation94_spill] sm:$0xff] %v10479_v32  ;;  %v10484_v60 = vpop.eup %7608  ;;  %v2831_v57 = vsub.f32 %v11721_v36, %v10042_v24 }
 0x39e   : > { %11720 = vst [vmem:[#allocation30_spill] sm:$0xff] %v10484_v60  ;;  %7622 = vpow2.f32 %v2937_v7 }
 0x39f   : > { %v10477_v15 = vpop.permute.xlu1 %4640  ;;  %7624 = vpow2.f32 %v2969_v0  ;;  %v2941_v24 = vmul.f32 1.442695, %v2831_v57 }
 0x3a0   : > { %v10481_v62 = vpop.permute.xlu0 %4665  ;;  %4800 = vperm.xlu1 %7438, %v10475_v59  }
 0x3a1   : > { %11719 = vst [vmem:[#allocation99_spill] sm:$0xff] %v10481_v62  ;;  %4825 = vperm.xlu0 %7439, %v10479_v32   ;;  %7626 = vpow2.f32 %v2941_v24  ;;  %v11737_v62 = vld [vmem:[#allocation36_spill] sm:$0xff] }
 0x3a2   : > { %v10489_v19 = vpop.eup %7610 }
 0x3a3   : > { %v10491_v33 = vpop.eup %7612  ;;  %v10493_v3 = vpop.permute.xlu1 %4570  ;;  %6855 = vmatprep.mubr.f32.mxu0 %v10489_v19 }
 0x3a4   : > { %11722 = vst [vmem:[#allocation109_spill] sm:$0xff] %v10493_v3  ;;  %v10496_v52 = vpop.eup %7614  ;;  %v10498_v25 = vpop.permute.xlu0 %4595  ;;  %4730 = vperm.xlu1 %7438, %v10484_v60   ;;  %6856 = vmatmul.mubr.f32.gmra.mrb[46].mxu0 %v10491_v33  ;;  %v11739_v3 = vld [vmem:[#allocation38_spill] sm:$0xff] }
 0x3a5   : > { %11723 = vst [vmem:[#allocation101_spill] sm:$0xff] %v10496_v52  ;;  %11724 = vst [vmem:[#allocation31_spill] sm:$0xff] %v10498_v25  ;;  %v10502_v7 = vpop.eup %7616  ;;  %4755 = vperm.xlu0 %7439, %v10496_v52  }
 0x3a6   : > { %11725 = vst [vmem:[#allocation32_spill] sm:$0xff] %v10502_v7  ;;  %v10505_v58 = vpop.eup %7618 }
 0x3a7   : > { %v10507_v36 = vpop.eup %7620  ;;  %v10509_v32 = vpop.permute.xlu1 %4650  ;;  %6911 = vmatprep.mubr.f32.mxu1 %v10505_v58 }
 0x3a8   : > { %11726 = vst [vmem:[#allocation33_spill] sm:$0xff] %v10509_v32  ;;  %v10512_v59 = vpop.permute.xlu0 %4675  ;;  %4810 = vperm.xlu1 %7438, %v10502_v7   ;;  %6912 = vmatmul.mubr.f32.gmra.mrb[46].mxu1 %v10507_v36  ;;  %v10516_v60 = vpop.eup %7622  ;;  %v11738_v32 = vld [vmem:[#allocation37_spill] sm:$0xff] }
 0x3a9   : > { %11727 = vst [vmem:[#allocation103_spill] sm:$0xff] %v10512_v59  ;;  %11728 = vst [vmem:[#allocation106_spill] sm:$0xff] %v10516_v60  ;;  %v10521_v52 = vpop.eup %7624 }
 0x3aa   : > { %11730 = vst [vmem:[#allocation127_spill] sm:$0xff] %v10521_v52 }
 0x3ab   : > { %v10518_v0 = vpop.permute.xlu1 %4580  ;;  %v10526_v38 = vpop.eup %7626 }
 0x3ac   : > { %11729 = vst [vmem:[#allocation110_spill] sm:$0xff] %v10518_v0  ;;  %v3145_v57 = vpop.permute.xlu0 %3144  ;;  %4740 = vperm.xlu1 %7438, %v10516_v60   ;;  %11732 = vst [vmem:[#allocation129_spill] sm:$0xff] %v10526_v38 }
 0x3ad   : > { %v3330_v49 = vsub.f32 %v11735_v37, %v3145_v57  ;;  %v11740_v37 = vld [vmem:[#allocation39_spill] sm:$0xff] }
 0x3af   : > { %v10523_v8 = vpop.permute.xlu1 %4660 }
 0x3b0   : > { %11731 = vst [vmem:[#allocation128_spill] sm:$0xff] %v10523_v8  ;;  %v3225_v34 = vpop.permute.xlu0 %3224  ;;  %4820 = vperm.xlu1 %7438, %v10521_v52   ;;  %v3427_v8 = vmul.f32 1.442695, %v3330_v49 }
 0x3b1   : > { %v3346_v0 = vsub.f32 %v11737_v62, %v3225_v34 }
 0x3b3   : > { %v10528_v7 = vpop.permute.xlu1 %4590 }
 0x3b4   : > { %11733 = vst [vmem:[#allocation130_spill] sm:$0xff] %v10528_v7  ;;  %v3155_v1 = vpop.permute.xlu0 %3154  ;;  %4750 = vperm.xlu1 %7438, %v10526_v38   ;;  %v3459_v38 = vmul.f32 1.442695, %v3346_v0 }
 0x3b7   : > { %v10531_v24 = vpop.permute.xlu1 %4670 }
 0x3b8   : > { %11734 = vst [vmem:[#allocation131_spill] sm:$0xff] %v10531_v24  ;;  %v3235_v47 = vpop.permute.xlu0 %3234  ;;  %v3332_v24 = vsub.f32 %v11739_v3, %v3155_v1 }
 0x3ba   : > { %v3431_v34 = vmul.f32 1.442695, %v3332_v24 }
 0x3bb   : > { %v3140_v60 = vpop.permute.xlu1 %3139 }
 0x3bc   : > { %v3329_v59 = vsub.f32 %v11736_v22, %v3140_v60  ;;  %v3165_v25 = vpop.permute.xlu0 %3164  ;;  %v11741_v22 = vld [vmem:[#allocation123_spill] sm:$0xff] }
 0x3be   : > { %v3425_v52 = vmul.f32 1.442695, %v3329_v59  ;;  %v11742_v59 = vld [vmem:[#allocation40_spill] sm:$0xff] }
 0x3bf   : > { %v3220_v21 = vpop.permute.xlu1 %3219  ;;  %v3348_v62 = vsub.f32 %v11742_v59, %v3235_v47  ;;  %v11746_v47 = vld [vmem:[#allocation43_spill] sm:$0xff] }
 0x3c0   : > { %7628 = vpow2.f32 %v3425_v52  ;;  %v3345_v7 = vsub.f32 %v11738_v32, %v3220_v21  ;;  %v3245_v14 = vpop.permute.xlu0 %3244  ;;  %v11743_v21 = vld [vmem:[#allocation41_spill] sm:$0xff] }
 0x3c1   : > { %7630 = vpow2.f32 %v3427_v8  ;;  %v11744_v32 = vld [vmem:[#allocation125_spill] sm:$0xff] }
 0x3c2   : > { %v3457_v12 = vmul.f32 1.442695, %v3345_v7 }
 0x3c3   : > { %v3150_v13 = vpop.permute.xlu1 %3149 }
 0x3c4   : > { %7632 = vpow2.f32 %v3457_v12  ;;  %v3331_v57 = vsub.f32 %v11740_v37, %v3150_v13  ;;  %3619 = vadd.xlane.f32.xlu0 %v11741_v22  ;;  %v3175_v49 = vpop.permute.xlu0 %3174  ;;  %v3463_v12 = vmul.f32 1.442695, %v3348_v62  ;;  %v11745_v13 = vld [vmem:[#allocation42_spill] sm:$0xff] }
 0x3c5   : > { %7634 = vpow2.f32 %v3459_v38  ;;  %v3334_v7 = vsub.f32 %v11745_v13, %v3165_v25  ;;  %v11748_v25 = vld [vmem:[#allocation44_spill] sm:$0xff]  ;;  %v11750_v13 = vld [vmem:[#allocation46_spill] sm:$0xff] }
 0x3c6   : > { %v3429_v52 = vmul.f32 1.442695, %v3331_v57  ;;  %v3350_v59 = vsub.f32 %v11748_v25, %v3245_v14  ;;  %v3336_v14 = vsub.f32 %v11750_v13, %v3175_v49 }
 0x3c7   : > { %v3230_v60 = vpop.permute.xlu1 %3229 }
 0x3c8   : > { %7636 = vpow2.f32 %v3429_v52  ;;  %v3347_v8 = vsub.f32 %v11743_v21, %v3230_v60  ;;  %3649 = vadd.xlane.f32.xlu0 %v11744_v32  ;;  %v3255_v1 = vpop.permute.xlu0 %3254  ;;  %v11749_v21 = vld [vmem:[#allocation45_spill] sm:$0xff] }
 0x3c9   : > { %7638 = vpow2.f32 %v3431_v34  ;;  %v3435_v34 = vmul.f32 1.442695, %v3334_v7 }
 0x3ca   : > { %v10543_v3 = vpop.eup %7628  ;;  %v3461_v0 = vmul.f32 1.442695, %v3347_v8 }
 0x3cb   : > { %v10546_v37 = vpop.eup %7630  ;;  %v3160_v38 = vpop.permute.xlu1 %3159  ;;  %6946 = vmatprep.mubr.f32.mxu0 %v10543_v3 }
 0x3cc   : > { %7640 = vpow2.f32 %v3461_v0  ;;  %v3333_v24 = vsub.f32 %v11746_v47, %v3160_v38  ;;  %3621 = vadd.xlane.f32.xlu0 %v10156_v48  ;;  %v10551_v57 = vpop.permute.xlu0 %4685  ;;  %6947 = vmatmul.mubr.f32.vlgmr.msra.gmra.mrb[48].mxu0 %v10546_v37  ;;  %v11751_v47 = vld [vmem:[#allocation47_spill] sm:$0xff] }
 0x3cd   : > { %11747 = vst [vmem:[#allocation34_spill] sm:$0xff] %v10551_v57  ;;  %7642 = vpow2.f32 %v3463_v12  ;;  %v3467_v12 = vmul.f32 1.442695, %v3350_v59  ;;  %v11752_v59 = vld [vmem:[#allocation48_spill] sm:$0xff] }
 0x3ce   : > { %v10554_v22 = vpop.eup %7632  ;;  %v3433_v62 = vmul.f32 1.442695, %v3333_v24  ;;  %v3352_v49 = vsub.f32 %v11752_v59, %v3255_v1 }
 0x3cf   : > { %v10557_v52 = vpop.eup %7634  ;;  %v3240_v60 = vpop.permute.xlu1 %3239  ;;  %7002 = vmatprep.mubr.f32.mxu1 %v10554_v22 }
 0x3d0   : > { %7644 = vpow2.f32 %v3433_v62  ;;  %v3349_v8 = vsub.f32 %v11749_v21, %v3240_v60  ;;  %3653 = vadd.xlane.f32.xlu0 %v10176_v17  ;;  %v3185_v48 = vpop.permute.xlu0 %3184  ;;  %7003 = vmatmul.mubr.f32.vlgmr.msra.gmra.mrb[48].mxu1 %v10557_v52  ;;  %v3471_v1 = vmul.f32 1.442695, %v3352_v49 }
 0x3d1   : > { %7646 = vpow2.f32 %v3435_v34  ;;  %v3439_v34 = vmul.f32 1.442695, %v3336_v14 }
 0x3d2   : > { %v10563_v32 = vpop.eup %7636  ;;  %v3465_v7 = vmul.f32 1.442695, %v3349_v8  ;;  %v11753_v8 = vld [vmem:[#allocation49_spill] sm:$0xff] }
 0x3d3   : > { %v10566_v0 = vpop.eup %7638  ;;  %v3170_v38 = vpop.permute.xlu1 %3169  ;;  %6949 = vmatprep.mubr.f32.mxu0 %v10563_v32 }
 0x3d4   : > { %7648 = vpow2.f32 %v3465_v7  ;;  %v3335_v24 = vsub.f32 %v11751_v47, %v3170_v38  ;;  %3625 = vadd.xlane.f32.xlu0 %v10204_v46  ;;  %v3265_v17 = vpop.permute.xlu0 %3264  ;;  %6950 = vmatmul.mubr.f32.gmra.mrb[50].mxu0 %v10566_v0  ;;  %v11755_v7 = vld [vmem:[#allocation126_spill] sm:$0xff] }
 0x3d5   : > { %7650 = vpow2.f32 %v3467_v12 }
 0x3d6   : > { %v10572_v25 = vpop.eup %7640  ;;  %v3437_v62 = vmul.f32 1.442695, %v3335_v24 }
 0x3d7   : > { %v3250_v60 = vpop.permute.xlu1 %3249  ;;  %7005 = vmatprep.mubr.f32.mxu1 %v10572_v25  ;;  %v10576_v21 = vpop.eup %7642 }
 0x3d8   : > { %7652 = vpow2.f32 %v3437_v62  ;;  %v3351_v13 = vsub.f32 %v11753_v8, %v3250_v60  ;;  %3657 = vadd.xlane.f32.xlu0 %v10223_v27  ;;  %v10580_v46 = vpop.permute.xlu0 %4695  ;;  %3651 = vadd.xlane.f32.xlu1 %v11755_v7  ;;  %v11757_v27 = vld [vmem:[#allocation124_spill] sm:$0xff]  ;;  %v11759_v8 = vld [vmem:[#allocation51_spill] sm:$0xff] }
 0x3d9   : > { %11754 = vst [vmem:[#allocation35_spill] sm:$0xff] %v10580_v46  ;;  %7006 = vmatmul.mubr.f32.gmra.mrb[50].mxu1 %v10576_v21  ;;  %7654 = vpow2.f32 %v3439_v34  ;;  %v11758_v34 = vld [vmem:[#allocation50_spill] sm:$0xff] }
 0x3da   : > { %v10584_v12 = vpop.eup %7644  ;;  %v3469_v14 = vmul.f32 1.442695, %v3351_v13  ;;  %v3338_v49 = vsub.f32 %v11758_v34, %v3185_v48 }
 0x3db   : > { %v10586_v38 = vpop.permute.xlu1 %4680  ;;  %6952 = vmatprep.mubr.f32.mxu0 %v10584_v12  ;;  %v10589_v47 = vpop.eup %7646 }
 0x3dc   : > { %11756 = vst [vmem:[#allocation36_spill] sm:$0xff] %v10586_v38  ;;  %7656 = vpow2.f32 %v3469_v14  ;;  %3629 = vadd.xlane.f32.xlu0 %v10243_v45  ;;  %3617 = vadd.xlane.f32.xlu1 %v11757_v27  ;;  %v3195_v24 = vpop.permute.xlu0 %3194  ;;  %v11760_v45 = vld [vmem:[#allocation72_spill] sm:$0xff]  ;;  %v3443_v14 = vmul.f32 1.442695, %v3338_v49 }
 0x3dd   : > { %6953 = vmatmul.mubr.f32.gmra.mrb[52].mxu0 %v10589_v47  ;;  %7658 = vpow2.f32 %v3471_v1  ;;  %v11761_v27 = vld [vmem:[#allocation52_spill] sm:$0xff] }
 0x3de   : > { %v10594_v59 = vpop.eup %7648  ;;  %v3354_v1 = vsub.f32 %v11761_v27, %v3265_v17 }
 0x3df   : > { %v3180_v62 = vpop.permute.xlu1 %3179  ;;  %7008 = vmatprep.mubr.f32.mxu1 %v10594_v59  ;;  %v10598_v60 = vpop.eup %7650 }
 0x3e0   : > { %v3337_v13 = vsub.f32 %v11759_v8, %v3180_v62  ;;  %3661 = vadd.xlane.f32.xlu0 %v10256_v29  ;;  %3623 = vadd.xlane.f32.xlu1 %v11760_v45  ;;  %v3275_v48 = vpop.permute.xlu0 %3274  ;;  %v11762_v62 = vld [vmem:[#allocation53_spill] sm:$0xff]  ;;  %v11763_v29 = vld [vmem:[#allocation12_spill] sm:$0xff]  ;;  %v3475_v17 = vmul.f32 1.442695, %v3354_v1  ;;  %v11766_v1 = vld [vmem:[#allocation55_spill] sm:$0xff] }
 0x3e1   : > { %7009 = vmatmul.mubr.f32.gmra.mrb[52].mxu1 %v10598_v60 }
 0x3e2   : > { %v10604_v7 = vpop.eup %7652  ;;  %v3441_v46 = vmul.f32 1.442695, %v3337_v13 }
 0x3e3   : > { %v3260_v34 = vpop.permute.xlu1 %3259  ;;  %6955 = vmatprep.mubr.f32.mxu0 %v10604_v7  ;;  %v10608_v38 = vpop.eup %7654 }
 0x3e4   : > { %7660 = vpow2.f32 %v3441_v46  ;;  %v3353_v8 = vsub.f32 %v11762_v62, %v3260_v34  ;;  %3633 = vadd.xlane.f32.xlu0 %v10289_v55  ;;  %3655 = vadd.xlane.f32.xlu1 %v11763_v29  ;;  %v3205_v55 = vpop.permute.xlu0 %3204  ;;  %v11765_v46 = vld [vmem:[#allocation54_spill] sm:$0xff] }
 0x3e5   : > { %6956 = vmatmul.mubr.f32.gmra.mrb[54].mxu0 %v10608_v38  ;;  %7662 = vpow2.f32 %v3443_v14  ;;  %v3340_v34 = vsub.f32 %v11765_v46, %v3195_v24  ;;  %v11768_v24 = vld [vmem:[#allocation57_spill] sm:$0xff] }
 0x3e6   : > { %v10614_v45 = vpop.eup %7656  ;;  %v3473_v49 = vmul.f32 1.442695, %v3353_v8 }
 0x3e7   : > { %v10616_v13 = vpop.permute.xlu1 %4690  ;;  %7011 = vmatprep.mubr.f32.mxu1 %v10614_v45  ;;  %v10619_v27 = vpop.eup %7658  ;;  %v3447_v29 = vmul.f32 1.442695, %v3340_v34 }
 0x3e8   : > { %11764 = vst [vmem:[#allocation37_spill] sm:$0xff] %v10616_v13  ;;  %7664 = vpow2.f32 %v3473_v49  ;;  %3665 = vadd.xlane.f32.xlu0 %v10308_v50  ;;  %3627 = vadd.xlane.f32.xlu1 %v10206_v6  ;;  %v11767_v49 = vld [vmem:[#allocation56_spill] sm:$0xff]  ;;  %v3285_v6 = vpop.permute.xlu0 %3284 }
 0x3e9   : > { %7012 = vmatmul.mubr.f32.gmra.mrb[54].mxu1 %v10619_v27  ;;  %7666 = vpow2.f32 %v3475_v17  ;;  %v3356_v50 = vsub.f32 %v11767_v49, %v3275_v48  ;;  %v11769_v48 = vld [vmem:[#allocation58_spill] sm:$0xff] }
 0x3ea   : > { %v3342_v34 = vsub.f32 %v11769_v48, %v3205_v55 }
 0x3eb   : > { %v3190_v14 = vpop.permute.xlu1 %3189 }
 0x3ec   : > { %v3339_v62 = vsub.f32 %v11766_v1, %v3190_v14  ;;  %3637 = vadd.xlane.f32.xlu0 %v10357_v30  ;;  %3659 = vadd.xlane.f32.xlu1 %v10225_v18  ;;  %v3479_v30 = vmul.f32 1.442695, %v3356_v50 }
 0x3ee   : > { %v10628_v8 = vpop.eup %7660  ;;  %v3445_v13 = vmul.f32 1.442695, %v3339_v62 }
 0x3ef   : > { %v3270_v57 = vpop.permute.xlu1 %3269  ;;  %6958 = vmatprep.mubr.f32.mxu0 %v10628_v8  ;;  %v10632_v17 = vpop.eup %7662 }
 0x3f0   : > { %7668 = vpow2.f32 %v3445_v13  ;;  %v3355_v46 = vsub.f32 %v11768_v24, %v3270_v57  ;;  %3669 = vadd.xlane.f32.xlu0 %v10378_v2  ;;  %3631 = vadd.xlane.f32.xlu1 %v10245_v44  ;;  %v11770_v57 = vld [vmem:[#allocation59_spill] sm:$0xff]  ;;  %v3215_v44 = vpop.permute.xlu0 %3214  ;;  %v3451_v2 = vmul.f32 1.442695, %v3342_v34  ;;  %v11772_v24 = vld [vmem:[#allocation61_spill] sm:$0xff] }
 0x3f1   : > { %6959 = vmatmul.mubr.f32.gmra.mrb[56].mxu0 %v10632_v17  ;;  %7670 = vpow2.f32 %v3447_v29  ;;  %v11771_v29 = vld [vmem:[#allocation60_spill] sm:$0xff] }
 0x3f2   : > { %v10638_v18 = vpop.eup %7664  ;;  %v3477_v14 = vmul.f32 1.442695, %v3355_v46  ;;  %v3358_v55 = vsub.f32 %v11771_v29, %v3285_v6 }
 0x3f3   : > { %v3200_v1 = vpop.permute.xlu1 %3199  ;;  %7014 = vmatprep.mubr.f32.mxu1 %v10638_v18  ;;  %v10642_v62 = vpop.eup %7666 }
 0x3f4   : > { %7672 = vpow2.f32 %v3477_v14  ;;  %v3341_v13 = vsub.f32 %v11770_v57, %v3200_v1  ;;  %3641 = vadd.xlane.f32.xlu0 %v10427_v28  ;;  %3663 = vadd.xlane.f32.xlu1 %v10261_v31  ;;  %v3483_v31 = vmul.f32 1.442695, %v3358_v55  ;;  %v11773_v28 = vld [vmem:[#allocation62_spill] sm:$0xff]  ;;  %v11774_v57 = vld [vmem:[#allocation63_spill] sm:$0xff] }
 0x3f5   : > { %7015 = vmatmul.mubr.f32.gmra.mrb[56].mxu1 %v10642_v62  ;;  %7674 = vpow2.f32 %v3479_v30  ;;  %v3344_v14 = vsub.f32 %v11773_v28, %v3215_v44  ;;  %v3295_v30 = vpop.permute.xlu0 %3294  ;;  %v11775_v44 = vld [vmem:[#allocation64_spill] sm:$0xff] }
 0x3f6   : > { %v3449_v49 = vmul.f32 1.442695, %v3341_v13 }
 0x3f7   : > { %v3280_v50 = vpop.permute.xlu1 %3279 }
 0x3f8   : > { %7676 = vpow2.f32 %v3449_v49  ;;  %v3357_v46 = vsub.f32 %v11772_v24, %v3280_v50  ;;  %3673 = vadd.xlane.f32.xlu0 %v10448_v16  ;;  %3635 = vadd.xlane.f32.xlu1 %v10294_v41  ;;  %v3455_v16 = vmul.f32 1.442695, %v3344_v14  ;;  %v11776_v50 = vld [vmem:[#allocation65_spill] sm:$0xff] }
 0x3f9   : > { %7678 = vpow2.f32 %v3451_v2  ;;  %v3360_v2 = vsub.f32 %v11775_v44, %v3295_v30  ;;  %v10679_v28 = vpop.permute.xlu0 %4705  ;;  %v4455_v30 = vld [vmem:[#allocation4 + $0x8] sm:$0xff] }
 0x3fa   : > { %v10652_v48 = vpop.eup %7668  ;;  %v3481_v1 = vmul.f32 1.442695, %v3357_v46 }
 0x3fb   : > { %v3210_v34 = vpop.permute.xlu1 %3209  ;;  %6961 = vmatprep.mubr.f32.mxu0 %v10652_v48  ;;  %v10656_v6 = vpop.eup %7670 }
 0x3fc   : > { %7680 = vpow2.f32 %v3481_v1  ;;  %v3343_v13 = vsub.f32 %v11774_v57, %v3210_v34  ;;  %3645 = vadd.xlane.f32.xlu0 %v10489_v19  ;;  %3667 = vadd.xlane.f32.xlu1 %v10313_v43  ;;  %v3487_v19 = vmul.f32 1.442695, %v3360_v2  ;;  %v4471_v34 = vld [vmem:[#allocation4 + $0x88] sm:$0xff]  ;;  %v4470_v57 = vld [vmem:[#allocation4 + $0x80] sm:$0xff] }
 0x3fd   : > { %6962 = vmatmul.mubr.f32.gmra.mrb[58].mxu0 %v10656_v6  ;;  %7682 = vpow2.f32 %v3483_v31 }
 0x3fe   : > { %v10662_v41 = vpop.eup %7672  ;;  %v3453_v29 = vmul.f32 1.442695, %v3343_v13  ;;  %v11777_v13 = vld [vmem:[#allocation13_spill] sm:$0xff] }
 0x3ff   : > { %v3290_v55 = vpop.permute.xlu1 %3289  ;;  %7017 = vmatprep.mubr.f32.mxu1 %v10662_v41  ;;  %v10666_v49 = vpop.eup %7674 }
 0x400   : > { %7684 = vpow2.f32 %v3453_v29  ;;  %v3359_v24 = vsub.f32 %v11776_v50, %v3290_v55  ;;  %3677 = vadd.xlane.f32.xlu0 %v10505_v58  ;;  %3639 = vadd.xlane.f32.xlu1 %v10361_v53  ;;  %v4854_v50 = vmul.f32 %v10235_v9, %v4470_v57 }
 0x401   : > { %7018 = vmatmul.mubr.f32.gmra.mrb[58].mxu1 %v10666_v49  ;;  %7686 = vpow2.f32 %v3455_v16 }
 0x402   : > { %v10672_v43 = vpop.eup %7676  ;;  %v3485_v46 = vmul.f32 1.442695, %v3359_v24 }
 0x403   : > { %6964 = vmatprep.mubr.f32.mxu0 %v10672_v43  ;;  %v10675_v31 = vpop.eup %7678 }
 0x404   : > { %7688 = vpow2.f32 %v3485_v46  ;;  %3681 = vadd.xlane.f32.xlu0 %v10543_v3  ;;  %3671 = vadd.xlane.f32.xlu1 %v10382_v61  ;;  %v10692_v61 = vpop.permute.xlu0 %4715 }
 0x405   : > { %6965 = vmatmul.mubr.f32.gmra.mrb[60].mxu0 %v10675_v31  ;;  %7690 = vpow2.f32 %v3487_v19 }
 0x406   : > { %v10682_v53 = vpop.eup %7680 }
 0x407   : > { %7020 = vmatprep.mubr.f32.mxu1 %v10682_v53  ;;  %v10685_v58 = vpop.eup %7682 }
 0x408   : > { %3713 = vadd.xlane.f32.xlu0 %v10554_v22  ;;  %3643 = vadd.xlane.f32.xlu1 %v10431_v5  ;;  %v10707_v22 = vpop.permute.xlu0 %4765 }
 0x409   : > { %7021 = vmatmul.mubr.f32.gmra.mrb[60].mxu1 %v10685_v58 }
 0x40a   : > { %v10690_v3 = vpop.eup %7684 }
 0x40b   : > { %6967 = vmatprep.mubr.f32.mxu0 %v10690_v3  ;;  %v10695_v14 = vpop.eup %7686 }
 0x40c   : > { %3685 = vadd.xlane.f32.xlu0 %v10563_v32  ;;  %3675 = vadd.xlane.f32.xlu1 %v10450_v56  ;;  %v4454_v32 = vld [vmem:[#allocation4] sm:$0xff]  ;;  %v4839_v56 = vmul.f32 %v10227_v54, %v4455_v30  ;;  %v4457_v30 = vld [vmem:[#allocation4 + $0x18] sm:$0xff] }
 0x40d   : > { %6968 = vmatmul.mubr.f32.gmra.mrb[62].mxu0 %v10695_v14  ;;  %v4838_v16 = vmul.f32 %v11777_v13, %v4454_v32  ;;  %v4456_v32 = vld [vmem:[#allocation4 + $0x10] sm:$0xff] }
 0x40e   : > { %v10700_v1 = vpop.eup %7688  ;;  %v4472_v13 = vld [vmem:[#allocation4 + $0x90] sm:$0xff] }
 0x40f   : > { %7023 = vmatprep.mubr.f32.mxu1 %v10700_v1  ;;  %v10703_v5 = vpop.eup %7690 }
 0x410   : > { %3717 = vadd.xlane.f32.xlu0 %v10572_v25  ;;  %3647 = vadd.xlane.f32.xlu1 %v10491_v33  ;;  %v11778_v25 = vld [vmem:[#allocation83_spill] sm:$0xff]  ;;  %v10715_v33 = vpop.permute.xlu0 %4775 }
 0x411   : > { %7024 = vmatmul.mubr.f32.gmra.mrb[62].mxu1 %v10703_v5  ;;  %v4855_v2 = vmul.f32 %v11778_v25, %v4471_v34  ;;  %v4840_v34 = vmul.f32 %v10271_v39, %v4456_v32  ;;  %v11779_v25 = vld [vmem:[#allocation80_spill] sm:$0xff] }
 0x414   : > { %3689 = vadd.xlane.f32.xlu0 %v10584_v12  ;;  %3679 = vadd.xlane.f32.xlu1 %v10507_v36  ;;  %v10720_v36 = vpop.permute.xlu1 %4700  ;;  %v10728_v9 = vpop.permute.xlu0 %4785 }
 0x416   : > { %v6836_v44 = vpop.f32.mrb[32].mxu0 }
 0x417   : > { %v4903_v29 = vadd.f32 %v6836_v44, %v4839_v56  ;;  %v3940_v55 = vpop.f32.mrb[33].mxu0  ;;  %v6892_v19 = vpop.f32.mrb[32].mxu1 }
 0x418   : > { %v4902_v24 = vadd.f32 %v4838_v16, %v3940_v55  ;;  %3721 = vadd.xlane.f32.xlu0 %v10594_v59  ;;  %3683 = vadd.xlane.f32.xlu1 %v10546_v37  ;;  %v4919_v54 = vadd.f32 %v6892_v19, %v4855_v2  ;;  %v4085_v12 = vpop.f32.mrb[33].mxu1  ;;  %v4841_v37 = vmul.f32 %v10230_v11, %v4457_v30  ;;  %v4473_v59 = vld [vmem:[#allocation4 + $0x98] sm:$0xff]  ;;  %v10732_v56 = vpop.permute.xlu1 %4710  ;;  %v11780_v19 = vld [vmem:[#allocation16_spill] sm:$0xff]  ;;  %v4474_v30 = vld [vmem:[#allocation4 + $0xa0] sm:$0xff] }
 0x419   : > { %4967 = vst.msk [vmem:[#allocation4 + $0x8] sm:$0xff] %vm1564_vm2, %v4903_v29  ;;  %v4918_v46 = vadd.f32 %v4854_v50, %v4085_v12  ;;  %v4856_v11 = vmul.f32 %v10282_v20, %v4472_v13  ;;  %v10739_v2 = vpop.permute.xlu0 %4795  ;;  %v4459_v50 = vld [vmem:[#allocation4 + $0x28] sm:$0xff]  ;;  %v4458_v20 = vld [vmem:[#allocation4 + $0x20] sm:$0xff] }
 0x41a   : > { %4966 = vst.msk [vmem:[#allocation4] sm:$0xff] %vm1564_vm2, %v4902_v24  ;;  %4983 = vst.msk [vmem:[#allocation4 + $0x88] sm:$0xff] %vm1564_vm2, %v4919_v54  ;;  %v4475_v54 = vld [vmem:[#allocation4 + $0xa8] sm:$0xff] }
 0x41b   : > { %4982 = vst.msk [vmem:[#allocation4 + $0x80] sm:$0xff] %vm1564_vm2, %v4918_v46 }
 0x41c   : > { %3693 = vadd.xlane.f32.xlu0 %v10604_v7  ;;  %3715 = vadd.xlane.f32.xlu1 %v10557_v52  ;;  %v4857_v52 = vmul.f32 %v11779_v25, %v4473_v59  ;;  %v11781_v59 = vld [vmem:[#allocation17_spill] sm:$0xff]  ;;  %v4477_v25 = vld [vmem:[#allocation4 + $0xb8] sm:$0xff] }
 0x41d   : > { %v10750_v24 = vpop.permute.xlu0 %4725 }
 0x41f   : > { %v6839_v57 = vpop.f32.mrb[34].mxu0 }
 0x420   : > { %v4905_v16 = vadd.f32 %v6839_v57, %v4841_v37  ;;  %3725 = vadd.xlane.f32.xlu0 %v10614_v45  ;;  %v3950_v44 = vpop.f32.mrb[35].mxu0  ;;  %3687 = vadd.xlane.f32.xlu1 %v10566_v0  ;;  %v10744_v45 = vpop.permute.xlu1 %4760 }
 0x421   : > { %v4904_v7 = vadd.f32 %v4840_v34, %v3950_v44  ;;  %v4858_v34 = vmul.f32 %v10345_v42, %v4474_v30  ;;  %v10761_v57 = vpop.permute.xlu0 %4805  ;;  %v4461_v44 = vld [vmem:[#allocation4 + $0x38] sm:$0xff]  ;;  %v4460_v42 = vld [vmem:[#allocation4 + $0x30] sm:$0xff]  ;;  %v4479_v30 = vld [vmem:[#allocation4 + $0xc8] sm:$0xff] }
 0x422   : > { %4969 = vst.msk [vmem:[#allocation4 + $0x18] sm:$0xff] %vm1564_vm2, %v4905_v16 }
 0x423   : > { %4968 = vst.msk [vmem:[#allocation4 + $0x10] sm:$0xff] %vm1564_vm2, %v4904_v7  ;;  %v6895_v39 = vpop.f32.mrb[34].mxu1 }
 0x424   : > { %v4921_v29 = vadd.f32 %v6895_v39, %v4857_v52  ;;  %3697 = vadd.xlane.f32.xlu0 %v10628_v8  ;;  %v4095_v55 = vpop.f32.mrb[35].mxu1  ;;  %3719 = vadd.xlane.f32.xlu1 %v10576_v21  ;;  %v4843_v8 = vmul.f32 %v11780_v19, %v4459_v50  ;;  %v4842_v21 = vmul.f32 %v10331_v23, %v4458_v20  ;;  %v10754_v12 = vpop.permute.xlu1 %4770  ;;  %v4476_v39 = vld [vmem:[#allocation4 + $0xb0] sm:$0xff] }
 0x425   : > { %v4920_v0 = vadd.f32 %v4856_v11, %v4095_v55  ;;  %v10772_v7 = vpop.permute.xlu0 %4735  ;;  %v11783_v19 = vld [vmem:[#allocation113_spill] sm:$0xff] }
 0x426   : > { %4985 = vst.msk [vmem:[#allocation4 + $0x98] sm:$0xff] %vm1564_vm2, %v4921_v29 }
 0x427   : > { %4984 = vst.msk [vmem:[#allocation4 + $0x90] sm:$0xff] %vm1564_vm2, %v4920_v0 }
 0x428   : > { %3729 = vadd.xlane.f32.xlu0 %v10638_v18  ;;  %3691 = vadd.xlane.f32.xlu1 %v10589_v47  ;;  %v4859_v47 = vmul.f32 %v11781_v59, %v4475_v54 }
 0x429   : > { %v10783_v0 = vpop.permute.xlu0 %4815 }
 0x42b   : > { %v6842_v46 = vpop.f32.mrb[36].mxu0 }
 0x42c   : > { %v4907_v32 = vadd.f32 %v6842_v46, %v4843_v8  ;;  %3701 = vadd.xlane.f32.xlu0 %v10652_v48  ;;  %v3960_v37 = vpop.f32.mrb[37].mxu0  ;;  %3723 = vadd.xlane.f32.xlu1 %v10598_v60  ;;  %v10766_v48 = vpop.permute.xlu1 %4780 }
 0x42d   : > { %v4906_v18 = vadd.f32 %v4842_v21, %v3960_v37  ;;  %v4478_v37 = vld [vmem:[#allocation4 + $0xc0] sm:$0xff] }
 0x42e   : > { %4971 = vst.msk [vmem:[#allocation4 + $0x28] sm:$0xff] %vm1564_vm2, %v4907_v32 }
 0x42f   : > { %4970 = vst.msk [vmem:[#allocation4 + $0x20] sm:$0xff] %vm1564_vm2, %v4906_v18  ;;  %v6898_v23 = vpop.f32.mrb[36].mxu1 }
 0x430   : > { %v4923_v13 = vadd.f32 %v6898_v23, %v4859_v47  ;;  %3733 = vadd.xlane.f32.xlu0 %v10662_v41  ;;  %v4105_v16 = vpop.f32.mrb[37].mxu1  ;;  %3695 = vadd.xlane.f32.xlu1 %v10608_v38  ;;  %v4845_v41 = vmul.f32 %v10335_v10, %v4461_v44  ;;  %v4844_v38 = vmul.f32 %v10399_v35, %v4460_v42  ;;  %v10776_v52 = vpop.permute.xlu1 %4790 }
 0x431   : > { %v4922_v60 = vadd.f32 %v4858_v34, %v4105_v16  ;;  %v4860_v10 = vmul.f32 %v10415_v63, %v4476_v39  ;;  %v11782_v63 = vld [vmem:[#allocation116_spill] sm:$0xff]  ;;  %v4863_v23 = vmul.f32 %v10419_v51, %v4479_v30  ;;  %v4465_v39 = vld [vmem:[#allocation4 + $0x58] sm:$0xff]  ;;  %v11790_v30 = vld [vmem:[#allocation73_spill] sm:$0xff] }
 0x432   : > { %4987 = vst.msk [vmem:[#allocation4 + $0xa8] sm:$0xff] %vm1564_vm2, %v4923_v13  ;;  %v2848_v8 = vsub.f32 %v11783_v19, %v11782_v63  ;;  %v11784_v51 = vld [vmem:[#allocation68_spill] sm:$0xff]  ;;  %v4481_v19 = vld [vmem:[#allocation4 + $0xd8] sm:$0xff] }
 0x433   : > { %4986 = vst.msk [vmem:[#allocation4 + $0xa0] sm:$0xff] %vm1564_vm2, %v4922_v60  ;;  %v3490_v60 = vld [vmem:[#allocation3 + $0x8] sm:$0xff] }
 0x434   : > { %3705 = vadd.xlane.f32.xlu0 %v10672_v43  ;;  %3727 = vadd.xlane.f32.xlu1 %v10619_v27  ;;  %v4861_v27 = vmul.f32 %v10349_v26, %v4477_v25  ;;  %v10794_v26 = vpop.permute.xlu0 %4745  ;;  %v2975_v46 = vmul.f32 1.442695, %v2848_v8  ;;  %v11785_v25 = vld [vmem:[#allocation117_spill] sm:$0xff] }
 0x435   : > { %v11789_v8 = vld [vmem:[#allocation109_spill] sm:$0xff] }
 0x436   : > { %7692 = vpow2.f32 %v2975_v46 }
 0x437   : > { %v6845_v11 = vpop.f32.mrb[38].mxu0 }
 0x438   : > { %v4909_v29 = vadd.f32 %v6845_v11, %v4845_v41  ;;  %3737 = vadd.xlane.f32.xlu0 %v10682_v53  ;;  %v3970_v55 = vpop.f32.mrb[39].mxu0  ;;  %3699 = vadd.xlane.f32.xlu1 %v10632_v17  ;;  %v10788_v53 = vpop.permute.xlu1 %4720  ;;  %v3505_v41 = vld [vmem:[#allocation3 + $0x80] sm:$0xff] }
 0x439   : > { %v4908_v43 = vadd.f32 %v4844_v38, %v3970_v55  ;;  %v11786_v38 = vld [vmem:[#allocation114_spill] sm:$0xff] }
 0x43a   : > { %4973 = vst.msk [vmem:[#allocation4 + $0x38] sm:$0xff] %vm1564_vm2, %v4909_v29  ;;  %v2847_v11 = vsub.f32 %v11786_v38, %v11785_v25  ;;  %v4464_v29 = vld [vmem:[#allocation4 + $0x50] sm:$0xff]  ;;  %v11787_v55 = vld [vmem:[#allocation70_spill] sm:$0xff]  ;;  %v3493_v25 = vld [vmem:[#allocation3 + $0x20] sm:$0xff] }
 0x43b   : > { %4972 = vst.msk [vmem:[#allocation4 + $0x30] sm:$0xff] %vm1564_vm2, %v4908_v43  ;;  %v6901_v35 = vpop.f32.mrb[38].mxu1  ;;  %v3569_v43 = vmul.f32 %v11787_v55, %v3505_v41  ;;  %v3509_v55 = vld [vmem:[#allocation3 + $0xa0] sm:$0xff] }
 0x43c   : > { %v4925_v50 = vadd.f32 %v6901_v35, %v4861_v27  ;;  %3709 = vadd.xlane.f32.xlu0 %v10690_v3  ;;  %v4115_v20 = vpop.f32.mrb[39].mxu1  ;;  %3731 = vadd.xlane.f32.xlu1 %v10642_v62  ;;  %v4463_v3 = vld [vmem:[#allocation4 + $0x48] sm:$0xff]  ;;  %v10798_v54 = vpop.permute.xlu1 %4800  ;;  %v4462_v62 = vld [vmem:[#allocation4 + $0x40] sm:$0xff]  ;;  %v3491_v35 = vld [vmem:[#allocation3 + $0x10] sm:$0xff] }
 0x43d   : > { %v4924_v17 = vadd.f32 %v4860_v10, %v4115_v20  ;;  %v4847_v21 = vmul.f32 %v10403_v40, %v4463_v3  ;;  %v4846_v32 = vmul.f32 %v10465_v4, %v4462_v62  ;;  %v4862_v40 = vmul.f32 %v10477_v15, %v4478_v37  ;;  %v11788_v20 = vld [vmem:[#allocation92_spill] sm:$0xff] }
 0x43e   : > { %4989 = vst.msk [vmem:[#allocation4 + $0xb8] sm:$0xff] %vm1564_vm2, %v4925_v50  ;;  %v3554_v15 = vmul.f32 %v11784_v51, %v3490_v60  ;;  %v2973_v50 = vmul.f32 1.442695, %v2847_v11  ;;  %v4848_v3 = vmul.f32 %v11789_v8, %v4464_v29  ;;  %v11793_v51 = vld [vmem:[#allocation77_spill] sm:$0xff] }
 0x43f   : > { %4988 = vst.msk [vmem:[#allocation4 + $0xb0] sm:$0xff] %vm1564_vm2, %v4924_v17  ;;  %v4849_v17 = vmul.f32 %v11788_v20, %v4465_v39  ;;  %v11794_v11 = vld [vmem:[#allocation85_spill] sm:$0xff]  ;;  %v4466_v20 = vld [vmem:[#allocation4 + $0x60] sm:$0xff] }
 0x440   : > { %3741 = vadd.xlane.f32.xlu0 %v10700_v1  ;;  %3703 = vadd.xlane.f32.xlu1 %v10656_v6  ;;  %v10803_v1 = vpop.permute.xlu0 %4825  ;;  %v10806_v47 = vpop.permute.xlu1 %4730  ;;  %7694 = vpow2.f32 %v2973_v50 }
 0x441   : > { %v10826_v27 = vpop.eup %7692 }
 0x444   : > { %3735 = vadd.xlane.f32.xlu1 %v10666_v49  ;;  %v10813_v16 = vpop.permute.xlu0 %4755  ;;  %v10816_v44 = vpop.permute.xlu1 %4810 }
 0x447   : > { %v6848_v6 = vpop.f32.mrb[40].mxu0 }
 0x448   : > { %v4911_v18 = vadd.f32 %v6848_v6, %v4847_v21  ;;  %v3980_v59 = vpop.f32.mrb[41].mxu0  ;;  %3707 = vadd.xlane.f32.xlu1 %v10675_v31  ;;  %v10828_v10 = vpop.permute.xlu1 %4740  ;;  %v4480_v21 = vld [vmem:[#allocation4 + $0xd0] sm:$0xff] }
 0x449   : > { %v4910_v34 = vadd.f32 %v4846_v32, %v3980_v59  ;;  %v3555_v32 = vmul.f32 %v11790_v30, %v3491_v35  ;;  %v11791_v59 = vld [vmem:[#allocation26_spill] sm:$0xff]  ;;  %v4467_v35 = vld [vmem:[#allocation4 + $0x68] sm:$0xff] }
 0x44a   : > { %4975 = vst.msk [vmem:[#allocation4 + $0x48] sm:$0xff] %vm1564_vm2, %v4911_v18  ;;  %v3507_v18 = vld [vmem:[#allocation3 + $0x90] sm:$0xff]  ;;  %v10849_v50 = vpop.eup %7694 }
 0x44b   : > { %4974 = vst.msk [vmem:[#allocation4 + $0x40] sm:$0xff] %vm1564_vm2, %v4910_v34  ;;  %v6904_v4 = vpop.f32.mrb[40].mxu1  ;;  %v4865_v34 = vmul.f32 %v11791_v59, %v4481_v19  ;;  %v11796_v19 = vld [vmem:[#allocation66_spill] sm:$0xff] }
 0x44c   : > { %v4927_v49 = vadd.f32 %v6904_v4, %v4863_v23  ;;  %v4125_v13 = vpop.f32.mrb[41].mxu1  ;;  %3739 = vadd.xlane.f32.xlu1 %v10685_v58 }
 0x44d   : > { %v4926_v31 = vadd.f32 %v4862_v40, %v4125_v13  ;;  %v11792_v40 = vld [vmem:[#allocation33_spill] sm:$0xff] }
 0x44e   : > { %4991 = vst.msk [vmem:[#allocation4 + $0xc8] sm:$0xff] %vm1564_vm2, %v4927_v49  ;;  %v4864_v4 = vmul.f32 %v11792_v40, %v4480_v21  ;;  %v10838_v49 = vpop.permute.xlu1 %4820  ;;  %v3495_v21 = vld [vmem:[#allocation3 + $0x30] sm:$0xff] }
 0x44f   : > { %4990 = vst.msk [vmem:[#allocation4 + $0xc0] sm:$0xff] %vm1564_vm2, %v4926_v31 }
 0x450   : > { %3711 = vadd.xlane.f32.xlu1 %v10695_v14 }
 0x451   : > { %v3620_v42 = vpop.xlane.xlu0 %3619 }
 0x452   : > { %v3746_v58 = vadd.f32 %v3620_v42, %v3554_v15  ;;  %v3571_v15 = vmul.f32 %v11793_v51, %v3507_v18  ;;  %v10847_v39 = vpop.permute.xlu1 %4750  ;;  %v11798_v18 = vld [vmem:[#allocation110_spill] sm:$0xff] }
 0x453   : > { %v4850_v59 = vmul.f32 %v11798_v18, %v4466_v20 }
 0x454   : > { %3811 = vst.msk [vmem:[#allocation3 + $0x8] sm:$0xff] %vm3809_vm4, %v3746_v58  ;;  %3743 = vadd.xlane.f32.xlu1 %v10703_v5  ;;  %v3557_v58 = vmul.f32 %v11794_v11, %v3493_v25  ;;  %v3511_v25 = vld [vmem:[#allocation3 + $0xb0] sm:$0xff]  ;;  %v11801_v11 = vld [vmem:[#allocation99_spill] sm:$0xff] }
 0x455   : > { %v3650_v14 = vpop.xlane.xlu0 %3649 }
 0x456   : > { %v3761_v63 = vadd.f32 %v3650_v14, %v3569_v43  ;;  %4835 = vperm.xlu0 %7439, %v10826_v27   ;;  %v3506_v43 = vld [vmem:[#allocation3 + $0x88] sm:$0xff] }
 0x457   : > { %v6851_v62 = vpop.f32.mrb[42].mxu0  ;;  %v3570_v8 = vmul.f32 %v11796_v19, %v3506_v43  ;;  %v11802_v43 = vld [vmem:[#allocation128_spill] sm:$0xff] }
 0x458   : > { %3826 = vst.msk [vmem:[#allocation3 + $0x80] sm:$0xff] %vm3809_vm4, %v3761_v63  ;;  %v4913_v5 = vadd.f32 %v6851_v62, %v4849_v17  ;;  %v3990_v46 = vpop.f32.mrb[43].mxu0  ;;  %v11795_v17 = vld [vmem:[#allocation89_spill] sm:$0xff] }
 0x459   : > { %v4912_v6 = vadd.f32 %v4848_v3, %v3990_v46  ;;  %v3622_v37 = vpop.xlane.xlu0 %3621  ;;  %v3573_v63 = vmul.f32 %v11795_v17, %v3509_v55  ;;  %v11797_v46 = vld [vmem:[#allocation28_spill] sm:$0xff] }
 0x45a   : > { %4977 = vst.msk [vmem:[#allocation4 + $0x58] sm:$0xff] %vm1564_vm2, %v4913_v5  ;;  %v3747_v23 = vadd.f32 %v3622_v37, %v3555_v32  ;;  %v3489_v5 = vld [vmem:[#allocation3] sm:$0xff]  ;;  %v4851_v30 = vmul.f32 %v11797_v46, %v4467_v35  ;;  %v4483_v37 = vld [vmem:[#allocation4 + $0xe8] sm:$0xff] }
 0x45b   : > { %4976 = vst.msk [vmem:[#allocation4 + $0x50] sm:$0xff] %vm1564_vm2, %v4912_v6  ;;  %v6907_v13 = vpop.f32.mrb[42].mxu1  ;;  %v3497_v46 = vld [vmem:[#allocation3 + $0x40] sm:$0xff] }
 0x45c   : > { %3812 = vst.msk [vmem:[#allocation3 + $0x10] sm:$0xff] %vm3809_vm4, %v3747_v23  ;;  %v4929_v31 = vadd.f32 %v6907_v13, %v4865_v34  ;;  %v4135_v60 = vpop.f32.mrb[43].mxu1  ;;  %v4482_v23 = vld [vmem:[#allocation4 + $0xe0] sm:$0xff] }
 0x45d   : > { %v4928_v42 = vadd.f32 %v4864_v4, %v4135_v60  ;;  %v3654_v41 = vpop.xlane.xlu0 %3653  ;;  %v11799_v13 = vld [vmem:[#allocation95_spill] sm:$0xff] }
 0x45e   : > { %4993 = vst.msk [vmem:[#allocation4 + $0xd8] sm:$0xff] %vm1564_vm2, %v4929_v31  ;;  %v3763_v38 = vadd.f32 %v3654_v41, %v3571_v15  ;;  %v3559_v31 = vmul.f32 %v11799_v13, %v3495_v21  ;;  %v11800_v60 = vld [vmem:[#allocation67_spill] sm:$0xff]  ;;  %v3494_v13 = vld [vmem:[#allocation3 + $0x28] sm:$0xff] }
 0x45f   : > { %4992 = vst.msk [vmem:[#allocation4 + $0xd0] sm:$0xff] %vm1564_vm2, %v4928_v42  ;;  %v3553_v51 = vmul.f32 %v11800_v60, %v3489_v5 }
 0x460   : > { %3828 = vst.msk [vmem:[#allocation3 + $0x90] sm:$0xff] %vm3809_vm4, %v3763_v38  ;;  %v3492_v38 = vld [vmem:[#allocation3 + $0x18] sm:$0xff] }
 0x461   : > { %v3626_v29 = vpop.xlane.xlu0 %3625 }
 0x462   : > { %v3749_v14 = vadd.f32 %v3626_v29, %v3557_v58  ;;  %v4867_v58 = vmul.f32 %v11801_v11, %v4483_v37  ;;  %v11805_v37 = vld [vmem:[#allocation104_spill] sm:$0xff] }
 0x463   : > { %v3561_v18 = vmul.f32 %v11805_v37, %v3497_v46 }
 0x464   : > { %3814 = vst.msk [vmem:[#allocation3 + $0x20] sm:$0xff] %vm3809_vm4, %v3749_v14  ;;  %v4866_v14 = vmul.f32 %v11802_v43, %v4482_v23  ;;  %v11809_v43 = vld [vmem:[#allocation31_spill] sm:$0xff] }
 0x465   : > { %v3658_v3 = vpop.xlane.xlu0 %3657  ;;  %v3652_v62 = vpop.xlane.xlu1 %3651  ;;  %4830 = vperm.xlu1 %7438, %v10849_v50  }
 0x466   : > { %v3765_v32 = vadd.f32 %v3658_v3, %v3573_v63  ;;  %v3762_v6 = vadd.f32 %v3652_v62, %v3570_v8  ;;  %v11803_v63 = vld [vmem:[#allocation97_spill] sm:$0xff] }
 0x467   : > { %v6854_v34 = vpop.f32.mrb[44].mxu0  ;;  %v3575_v19 = vmul.f32 %v11803_v63, %v3511_v25  ;;  %v11804_v8 = vld [vmem:[#allocation69_spill] sm:$0xff]  ;;  %v11808_v25 = vld [vmem:[#allocation74_spill] sm:$0xff] }
 0x468   : > { %3830 = vst.msk [vmem:[#allocation3 + $0xa0] sm:$0xff] %vm3809_vm4, %v3765_v32  ;;  %3827 = vst.msk [vmem:[#allocation3 + $0x88] sm:$0xff] %vm3809_vm4, %v3762_v6  ;;  %v4915_v40 = vadd.f32 %v6854_v34, %v4851_v30  ;;  %v4000_v4 = vpop.f32.mrb[45].mxu0  ;;  %v3556_v3 = vmul.f32 %v11804_v8, %v3492_v38  ;;  %v3508_v30 = vld [vmem:[#allocation3 + $0x98] sm:$0xff]  ;;  %v3558_v38 = vmul.f32 %v11808_v25, %v3494_v13 }
 0x469   : > { %v4914_v15 = vadd.f32 %v4850_v59, %v4000_v4  ;;  %v3630_v42 = vpop.xlane.xlu0 %3629  ;;  %v3618_v41 = vpop.xlane.xlu1 %3617  ;;  %v11806_v59 = vld [vmem:[#allocation71_spill] sm:$0xff]  ;;  %v11810_v63 = vld [vmem:[#allocation130_spill] sm:$0xff] }
 0x46a   : > { %4979 = vst.msk [vmem:[#allocation4 + $0x68] sm:$0xff] %vm1564_vm2, %v4915_v40  ;;  %v3751_v29 = vadd.f32 %v3630_v42, %v3559_v31  ;;  %v3745_v55 = vadd.f32 %v3618_v41, %v3553_v51  ;;  %v3572_v34 = vmul.f32 %v11806_v59, %v3508_v30  ;;  %v3513_v4 = vld [vmem:[#allocation3 + $0xc0] sm:$0xff]  ;;  %v4469_v51 = vld [vmem:[#allocation4 + $0x78] sm:$0xff]  ;;  %v3515_v59 = vld [vmem:[#allocation3 + $0xd0] sm:$0xff] }
 0x46b   : > { %4978 = vst.msk [vmem:[#allocation4 + $0x60] sm:$0xff] %vm1564_vm2, %v4914_v15  ;;  %v6910_v35 = vpop.f32.mrb[44].mxu1  ;;  %v4468_v15 = vld [vmem:[#allocation4 + $0x70] sm:$0xff]  ;;  %v11807_v42 = vld [vmem:[#allocation107_spill] sm:$0xff]  ;;  %v11812_v30 = vld [vmem:[#allocation78_spill] sm:$0xff] }
 0x46c   : > { %3816 = vst.msk [vmem:[#allocation3 + $0x30] sm:$0xff] %vm3809_vm4, %v3751_v29  ;;  %3810 = vst.msk [vmem:[#allocation3] sm:$0xff] %vm3809_vm4, %v3745_v55  ;;  %v4931_v20 = vadd.f32 %v6910_v35, %v4867_v58  ;;  %v4145_v17 = vpop.f32.mrb[45].mxu1  ;;  %v3577_v41 = vmul.f32 %v11807_v42, %v3513_v4  ;;  %v3499_v29 = vld [vmem:[#allocation3 + $0x50] sm:$0xff]  ;;  %v3510_v55 = vld [vmem:[#allocation3 + $0xa8] sm:$0xff] }
 0x46d   : > { %v4930_v62 = vadd.f32 %v4866_v14, %v4145_v17  ;;  %v3662_v21 = vpop.xlane.xlu0 %3661  ;;  %v3624_v5 = vpop.xlane.xlu1 %3623  ;;  %v4853_v14 = vmul.f32 %v11809_v43, %v4469_v51  ;;  %v4485_v17 = vld [vmem:[#allocation4 + $0xf8] sm:$0xff]  ;;  %v3501_v43 = vld [vmem:[#allocation3 + $0x60] sm:$0xff] }
 0x46e   : > { %4995 = vst.msk [vmem:[#allocation4 + $0xe8] sm:$0xff] %vm1564_vm2, %v4931_v20  ;;  %v3767_v32 = vadd.f32 %v3662_v21, %v3575_v19  ;;  %v3748_v6 = vadd.f32 %v3624_v5, %v3556_v3  ;;  %v4852_v19 = vmul.f32 %v11810_v63, %v4468_v15  ;;  %v4484_v3 = vld [vmem:[#allocation4 + $0xf0] sm:$0xff]  ;;  %v11811_v5 = vld [vmem:[#allocation111_spill] sm:$0xff] }
 0x46f   : > { %4994 = vst.msk [vmem:[#allocation4 + $0xe0] sm:$0xff] %vm1564_vm2, %v4930_v62  ;;  %v3563_v46 = vmul.f32 %v11811_v5, %v3499_v29  ;;  %v3498_v5 = vld [vmem:[#allocation3 + $0x48] sm:$0xff] }
 0x470   : > { %3832 = vst.msk [vmem:[#allocation3 + $0xb0] sm:$0xff] %vm3809_vm4, %v3767_v32  ;;  %3813 = vst.msk [vmem:[#allocation3 + $0x18] sm:$0xff] %vm3809_vm4, %v3748_v6  ;;  %v3574_v32 = vmul.f32 %v11812_v30, %v3510_v55 }
 0x471   : > { %v3634_v23 = vpop.xlane.xlu0 %3633  ;;  %v3656_v40 = vpop.xlane.xlu1 %3655 }
 0x472   : > { %v3753_v31 = vadd.f32 %v3634_v23, %v3561_v18  ;;  %v3764_v60 = vadd.f32 %v3656_v40, %v3572_v34  ;;  %v3496_v34 = vld [vmem:[#allocation3 + $0x38] sm:$0xff]  ;;  %v11813_v23 = vld [vmem:[#allocation103_spill] sm:$0xff] }
 0x473   : > { %v4869_v40 = vmul.f32 %v11813_v23, %v4485_v17  ;;  %v11817_v17 = vld [vmem:[#allocation119_spill] sm:$0xff]  ;;  %v3503_v23 = vld [vmem:[#allocation3 + $0x70] sm:$0xff] }
 0x474   : > { %3818 = vst.msk [vmem:[#allocation3 + $0x40] sm:$0xff] %vm3809_vm4, %v3753_v31  ;;  %3829 = vst.msk [vmem:[#allocation3 + $0x98] sm:$0xff] %vm3809_vm4, %v3764_v60  ;;  %v11814_v31 = vld [vmem:[#allocation131_spill] sm:$0xff]  ;;  %v3565_v63 = vmul.f32 %v11817_v17, %v3501_v43  ;;  %v11824_v43 = vld [vmem:[#allocation100_spill] sm:$0xff] }
 0x475   : > { %v3666_v11 = vpop.xlane.xlu0 %3665  ;;  %v3628_v58 = vpop.xlane.xlu1 %3627  ;;  %v4868_v60 = vmul.f32 %v11814_v31, %v4484_v3  ;;  %v11821_v31 = vld [vmem:[#allocation121_spill] sm:$0xff]  ;;  %v3521_v17 = vld [vmem:[#allocation3 + $0x100] sm:$0xff] }
 0x476   : > { %v3769_v35 = vadd.f32 %v3666_v11, %v3577_v41  ;;  %v3750_v20 = vadd.f32 %v3628_v58, %v3558_v38  ;;  %v11815_v41 = vld [vmem:[#allocation115_spill] sm:$0xff]  ;;  %v11816_v38 = vld [vmem:[#allocation86_spill] sm:$0xff] }
 0x477   : > { %v6857_v8 = vpop.f32.mrb[46].mxu0  ;;  %v3579_v25 = vmul.f32 %v11815_v41, %v3515_v59  ;;  %v3560_v11 = vmul.f32 %v11816_v38, %v3496_v34  ;;  %v3500_v38 = vld [vmem:[#allocation3 + $0x58] sm:$0xff] }
 0x478   : > { %3834 = vst.msk [vmem:[#allocation3 + $0xc0] sm:$0xff] %vm3809_vm4, %v3769_v35  ;;  %3815 = vst.msk [vmem:[#allocation3 + $0x28] sm:$0xff] %vm3809_vm4, %v3750_v20  ;;  %v4917_v62 = vadd.f32 %v6857_v8, %v4853_v14  ;;  %v4010_v21 = vpop.f32.mrb[47].mxu0  ;;  %v3512_v14 = vld [vmem:[#allocation3 + $0xb8] sm:$0xff] }
 0x479   : > { %v4916_v6 = vadd.f32 %v4852_v19, %v4010_v21  ;;  %v3638_v37 = vpop.xlane.xlu0 %3637  ;;  %v3660_v18 = vpop.xlane.xlu1 %3659  ;;  %v11818_v19 = vld [vmem:[#allocation90_spill] sm:$0xff]  ;;  %v3517_v21 = vld [vmem:[#allocation3 + $0xe0] sm:$0xff] }
 0x47a   : > { %4981 = vst.msk [vmem:[#allocation4 + $0x78] sm:$0xff] %vm1564_vm2, %v4917_v62  ;;  %v3755_v4 = vadd.f32 %v3638_v37, %v3563_v46  ;;  %v3766_v13 = vadd.f32 %v3660_v18, %v3574_v32  ;;  %v3576_v8 = vmul.f32 %v11818_v19, %v3512_v14  ;;  %v11819_v32 = vld [vmem:[#allocation120_spill] sm:$0xff]  ;;  %v3564_v14 = vmul.f32 %v11824_v43, %v3500_v38 }
 0x47b   : > { %4980 = vst.msk [vmem:[#allocation4 + $0x70] sm:$0xff] %vm1564_vm2, %v4916_v6  ;;  %v6913_v51 = vpop.f32.mrb[46].mxu1  ;;  %v3581_v6 = vmul.f32 %v11819_v32, %v3517_v21  ;;  %v11820_v37 = vld [vmem:[#allocation96_spill] sm:$0xff]  ;;  %v11826_v21 = vld [vmem:[#allocation102_spill] sm:$0xff]  ;;  %v3537_v32 = vld [vmem:[#allocation3 + $0x180] sm:$0xff] }
 0x47c   : > { %3820 = vst.msk [vmem:[#allocation3 + $0x50] sm:$0xff] %vm3809_vm4, %v3755_v4  ;;  %3831 = vst.msk [vmem:[#allocation3 + $0xa8] sm:$0xff] %vm3809_vm4, %v3766_v13  ;;  %v4933_v15 = vadd.f32 %v6913_v51, %v4869_v40  ;;  %v4155_v42 = vpop.f32.mrb[47].mxu1  ;;  %v3562_v18 = vmul.f32 %v11820_v37, %v3498_v5  ;;  %v3514_v40 = vld [vmem:[#allocation3 + $0xc8] sm:$0xff]  ;;  %v11822_v51 = vld [vmem:[#allocation98_spill] sm:$0xff] }
 0x47d   : > { %v4932_v58 = vadd.f32 %v4868_v60, %v4155_v42  ;;  %v3670_v29 = vpop.xlane.xlu0 %3669  ;;  %v3632_v55 = vpop.xlane.xlu1 %3631  ;;  %v3567_v60 = vmul.f32 %v11821_v31, %v3503_v23  ;;  %v11828_v23 = vld [vmem:[#allocation105_spill] sm:$0xff] }
 0x47e   : > { %4997 = vst.msk [vmem:[#allocation4 + $0xf8] sm:$0xff] %vm1564_vm2, %v4933_v15  ;;  %v3771_v35 = vadd.f32 %v3670_v29, %v3579_v25  ;;  %v3752_v20 = vadd.f32 %v3632_v55, %v3560_v11  ;;  %v3578_v15 = vmul.f32 %v11822_v51, %v3514_v40  ;;  %v3519_v25 = vld [vmem:[#allocation3 + $0xf0] sm:$0xff]  ;;  %v11823_v29 = vld [vmem:[#allocation122_spill] sm:$0xff] }
 0x47f   : > { %4996 = vst.msk [vmem:[#allocation4 + $0xf0] sm:$0xff] %vm1564_vm2, %v4932_v58  ;;  %v3583_v55 = vmul.f32 %v11823_v29, %v3519_v25  ;;  %v3523_v31 = vld [vmem:[#allocation3 + $0x110] sm:$0xff]  ;;  %v11830_v25 = vld [vmem:[#allocation108_spill] sm:$0xff] }
 0x480   : > { %3836 = vst.msk [vmem:[#allocation3 + $0xd0] sm:$0xff] %vm3809_vm4, %v3771_v35  ;;  %3817 = vst.msk [vmem:[#allocation3 + $0x38] sm:$0xff] %vm3809_vm4, %v3752_v20  ;;  %v3539_v29 = vld [vmem:[#allocation3 + $0x190] sm:$0xff] }
 0x481   : > { %v3642_v3 = vpop.xlane.xlu0 %3641  ;;  %v3664_v62 = vpop.xlane.xlu1 %3663 }
 0x482   : > { %v3757_v46 = vadd.f32 %v3642_v3, %v3565_v63  ;;  %v3768_v30 = vadd.f32 %v3664_v62, %v3576_v8  ;;  %v3516_v63 = vld [vmem:[#allocation3 + $0xd8] sm:$0xff] }
 0x483   : > { %v11825_v3 = vld [vmem:[#allocation14_spill] sm:$0xff]  ;;  %v3580_v5 = vmul.f32 %v11826_v21, %v3516_v63  ;;  %v3525_v21 = vld [vmem:[#allocation3 + $0x120] sm:$0xff] }
 0x484   : > { %3822 = vst.msk [vmem:[#allocation3 + $0x60] sm:$0xff] %vm3809_vm4, %v3757_v46  ;;  %3833 = vst.msk [vmem:[#allocation3 + $0xb8] sm:$0xff] %vm3809_vm4, %v3768_v30  ;;  %v3585_v62 = vmul.f32 %v11825_v3, %v3521_v17  ;;  %v11831_v17 = vld [vmem:[#allocation24_spill] sm:$0xff] }
 0x485   : > { %v3674_v59 = vpop.xlane.xlu0 %3673  ;;  %v3636_v34 = vpop.xlane.xlu1 %3635  ;;  %v3603_v63 = vmul.f32 %v11831_v17, %v3539_v29 }
 0x486   : > { %v3773_v4 = vadd.f32 %v3674_v59, %v3581_v6  ;;  %v3754_v13 = vadd.f32 %v3636_v34, %v3562_v18  ;;  %v3502_v6 = vld [vmem:[#allocation3 + $0x68] sm:$0xff]  ;;  %v11827_v59 = vld [vmem:[#allocation91_spill] sm:$0xff] }
 0x487   : > { %v3601_v34 = vmul.f32 %v11827_v59, %v3537_v32  ;;  %v3566_v40 = vmul.f32 %v11828_v23, %v3502_v6  ;;  %v4503_v59 = vld [vmem:[#allocation4 + $0x188] sm:$0xff]  ;;  %v4502_v23 = vld [vmem:[#allocation4 + $0x180] sm:$0xff] }
 0x488   : > { %3838 = vst.msk [vmem:[#allocation3 + $0xe0] sm:$0xff] %vm3809_vm4, %v3773_v4  ;;  %3819 = vst.msk [vmem:[#allocation3 + $0x48] sm:$0xff] %vm3809_vm4, %v3754_v13 }
 0x489   : > { %v3646_v42 = vpop.xlane.xlu0 %3645  ;;  %v3668_v41 = vpop.xlane.xlu1 %3667 }
 0x48a   : > { %v3759_v11 = vadd.f32 %v3646_v42, %v3567_v60  ;;  %v3770_v58 = vadd.f32 %v3668_v41, %v3578_v15  ;;  %v3518_v60 = vld [vmem:[#allocation3 + $0xe8] sm:$0xff]  ;;  %v11829_v42 = vld [vmem:[#allocation15_spill] sm:$0xff] }
 0x48b   : > { %v3587_v41 = vmul.f32 %v11829_v42, %v3523_v31  ;;  %v3582_v38 = vmul.f32 %v11830_v25, %v3518_v60  ;;  %v11836_v60 = vld [vmem:[#allocation118_spill] sm:$0xff]  ;;  %v3541_v25 = vld [vmem:[#allocation3 + $0x1a0] sm:$0xff] }
 0x48c   : > { %3824 = vst.msk [vmem:[#allocation3 + $0x70] sm:$0xff] %vm3809_vm4, %v3759_v11  ;;  %3835 = vst.msk [vmem:[#allocation3 + $0xc8] sm:$0xff] %vm3809_vm4, %v3770_v58 }
 0x48d   : > { %v3678_v35 = vpop.xlane.xlu0 %3677  ;;  %v3640_v20 = vpop.xlane.xlu1 %3639 }
 0x48e   : > { %v3775_v19 = vadd.f32 %v3678_v35, %v3583_v55  ;;  %v3756_v8 = vadd.f32 %v3640_v20, %v3564_v14  ;;  %v3504_v55 = vld [vmem:[#allocation3 + $0x78] sm:$0xff]  ;;  %v4487_v35 = vld [vmem:[#allocation4 + $0x108] sm:$0xff]  ;;  %v4486_v20 = vld [vmem:[#allocation4 + $0x100] sm:$0xff] }
 0x490   : > { %3840 = vst.msk [vmem:[#allocation3 + $0xf0] sm:$0xff] %vm3809_vm4, %v3775_v19  ;;  %3821 = vst.msk [vmem:[#allocation3 + $0x58] sm:$0xff] %vm3809_vm4, %v3756_v8  ;;  %v11832_v19 = vld [vmem:[#allocation112_spill] sm:$0xff] }
 0x491   : > { %v3682_v46 = vpop.xlane.xlu0 %3681  ;;  %v3672_v30 = vpop.xlane.xlu1 %3671  ;;  %v3568_v8 = vmul.f32 %v11832_v19, %v3504_v55  ;;  %v4489_v55 = vld [vmem:[#allocation4 + $0x118] sm:$0xff] }
 0x492   : > { %v3777_v37 = vadd.f32 %v3682_v46, %v3585_v62  ;;  %v3772_v18 = vadd.f32 %v3672_v30, %v3580_v5  ;;  %v3520_v5 = vld [vmem:[#allocation3 + $0xf8] sm:$0xff] }
 0x493   : > { %v11833_v46 = vld [vmem:[#allocation34_spill] sm:$0xff] }
 0x494   : > { %3842 = vst.msk [vmem:[#allocation3 + $0x100] sm:$0xff] %vm3809_vm4, %v3777_v37  ;;  %3837 = vst.msk [vmem:[#allocation3 + $0xd8] sm:$0xff] %vm3809_vm4, %v3772_v18  ;;  %v4871_v30 = vmul.f32 %v11833_v46, %v4487_v35  ;;  %v11834_v37 = vld [vmem:[#allocation36_spill] sm:$0xff]  ;;  %v4488_v35 = vld [vmem:[#allocation4 + $0x110] sm:$0xff] }
 0x495   : > { %v3714_v4 = vpop.xlane.xlu0 %3713  ;;  %v3644_v13 = vpop.xlane.xlu1 %3643  ;;  %v4870_v18 = vmul.f32 %v11834_v37, %v4486_v20  ;;  %v3538_v46 = vld [vmem:[#allocation3 + $0x188] sm:$0xff]  ;;  %v11840_v37 = vld [vmem:[#allocation37_spill] sm:$0xff] }
 0x496   : > { %v3793_v51 = vadd.f32 %v3714_v4, %v3601_v34  ;;  %v3758_v15 = vadd.f32 %v3644_v13, %v3566_v40  ;;  %v11835_v13 = vld [vmem:[#allocation75_spill] sm:$0xff] }
 0x497   : > { %v3589_v31 = vmul.f32 %v11835_v13, %v3525_v21 }
 0x498   : > { %3858 = vst.msk [vmem:[#allocation3 + $0x180] sm:$0xff] %vm3809_vm4, %v3793_v51  ;;  %3823 = vst.msk [vmem:[#allocation3 + $0x68] sm:$0xff] %vm3809_vm4, %v3758_v15  ;;  %v3584_v51 = vmul.f32 %v11836_v60, %v3520_v5  ;;  %v3527_v5 = vld [vmem:[#allocation3 + $0x130] sm:$0xff] }
 0x499   : > { %v3686_v11 = vpop.xlane.xlu0 %3685  ;;  %v3676_v58 = vpop.xlane.xlu1 %3675 }
 0x49a   : > { %v3779_v43 = vadd.f32 %v3686_v11, %v3587_v41  ;;  %v3774_v14 = vadd.f32 %v3676_v58, %v3582_v38  ;;  %v3522_v38 = vld [vmem:[#allocation3 + $0x108] sm:$0xff]  ;;  %v4887_v11 = vmul.f32 %v10707_v22, %v4503_v59  ;;  %v11838_v22 = vld [vmem:[#allocation11_spill] sm:$0xff] }
 0x49c   : > { %3844 = vst.msk [vmem:[#allocation3 + $0x110] sm:$0xff] %vm3809_vm4, %v3779_v43  ;;  %3839 = vst.msk [vmem:[#allocation3 + $0xe8] sm:$0xff] %vm3809_vm4, %v3774_v14  ;;  %v4886_v43 = vmul.f32 %v10744_v45, %v4502_v23  ;;  %v11839_v45 = vld [vmem:[#allocation35_spill] sm:$0xff] }
 0x49d   : > { %v3718_v3 = vpop.xlane.xlu0 %3717  ;;  %v3648_v62 = vpop.xlane.xlu1 %3647 }
 0x49e   : > { %v3795_v32 = vadd.f32 %v3718_v3, %v3603_v63  ;;  %v3760_v6 = vadd.f32 %v3648_v62, %v3568_v8  ;;  %v11837_v63 = vld [vmem:[#allocation25_spill] sm:$0xff]  ;;  %v3586_v8 = vmul.f32 %v11838_v22, %v3522_v38 }
 0x49f   : > { %v6948_v34 = vpop.f32.mrb[48].mxu0  ;;  %v3605_v19 = vmul.f32 %v11837_v63, %v3541_v25  ;;  %v3543_v25 = vld [vmem:[#allocation3 + $0x1b0] sm:$0xff] }
 0x4a0   : > { %3860 = vst.msk [vmem:[#allocation3 + $0x190] sm:$0xff] %vm3809_vm4, %v3795_v32  ;;  %3825 = vst.msk [vmem:[#allocation3 + $0x78] sm:$0xff] %vm3809_vm4, %v3760_v6  ;;  %v4935_v40 = vadd.f32 %v6948_v34, %v4871_v30  ;;  %v4230_v4 = vpop.f32.mrb[49].mxu0  ;;  %v4873_v30 = vmul.f32 %v11839_v45, %v4489_v55  ;;  %v4505_v34 = vld [vmem:[#allocation4 + $0x198] sm:$0xff]  ;;  %v4491_v55 = vld [vmem:[#allocation4 + $0x128] sm:$0xff] }
 0x4a1   : > { %v4934_v15 = vadd.f32 %v4870_v18, %v4230_v4  ;;  %v3690_v42 = vpop.xlane.xlu0 %3689  ;;  %v3680_v41 = vpop.xlane.xlu1 %3679  ;;  %v4872_v18 = vmul.f32 %v11840_v37, %v4488_v35  ;;  %v11841_v4 = vld [vmem:[#allocation22_spill] sm:$0xff]  ;;  %v11845_v37 = vld [vmem:[#allocation93_spill] sm:$0xff] }
 0x4a2   : > { %4999 = vst.msk [vmem:[#allocation4 + $0x108] sm:$0xff] %vm1564_vm2, %v4935_v40  ;;  %v3781_v58 = vadd.f32 %v3690_v42, %v3589_v31  ;;  %v3776_v29 = vadd.f32 %v3680_v41, %v3584_v51  ;;  %v3591_v13 = vmul.f32 %v11841_v4, %v3527_v5  ;;  %v11842_v31 = vld [vmem:[#allocation20_spill] sm:$0xff]  ;;  %v4504_v51 = vld [vmem:[#allocation4 + $0x190] sm:$0xff]  ;;  %v11843_v35 = vld [vmem:[#allocation82_spill] sm:$0xff] }
 0x4a3   : > { %4998 = vst.msk [vmem:[#allocation4 + $0x100] sm:$0xff] %vm1564_vm2, %v4934_v15  ;;  %v7004_v14 = vpop.f32.mrb[48].mxu1  ;;  %v3602_v60 = vmul.f32 %v11842_v31, %v3538_v46  ;;  %v3540_v46 = vld [vmem:[#allocation3 + $0x198] sm:$0xff] }
 0x4a4   : > { %3846 = vst.msk [vmem:[#allocation3 + $0x120] sm:$0xff] %vm3809_vm4, %v3781_v58  ;;  %3841 = vst.msk [vmem:[#allocation3 + $0xf8] sm:$0xff] %vm3809_vm4, %v3776_v29  ;;  %v4951_v20 = vadd.f32 %v7004_v14, %v4887_v11  ;;  %v4375_v17 = vpop.f32.mrb[49].mxu1  ;;  %v3524_v58 = vld [vmem:[#allocation3 + $0x118] sm:$0xff]  ;;  %v4889_v29 = vmul.f32 %v10715_v33, %v4505_v34 }
 0x4a5   : > { %v4950_v3 = vadd.f32 %v4886_v43, %v4375_v17  ;;  %v3722_v62 = vpop.xlane.xlu0 %3721  ;;  %v3684_v21 = vpop.xlane.xlu1 %3683  ;;  %v4888_v43 = vmul.f32 %v10754_v12, %v4504_v51  ;;  %v4490_v17 = vld [vmem:[#allocation4 + $0x120] sm:$0xff]  ;;  %v4875_v12 = vmul.f32 %v10679_v28, %v4491_v55  ;;  %v11846_v28 = vld [vmem:[#allocation21_spill] sm:$0xff]  ;;  %v3526_v51 = vld [vmem:[#allocation3 + $0x128] sm:$0xff] }
 0x4a6   : > { %5015 = vst.msk [vmem:[#allocation4 + $0x188] sm:$0xff] %vm1564_vm2, %v4951_v20  ;;  %v3797_v32 = vadd.f32 %v3722_v62, %v3605_v19  ;;  %v3778_v6 = vadd.f32 %v3684_v21, %v3586_v8  ;;  %v3607_v20 = vmul.f32 %v11843_v35, %v3543_v25  ;;  %v11844_v8 = vld [vmem:[#allocation79_spill] sm:$0xff]  ;;  %v3604_v4 = vmul.f32 %v11846_v28, %v3540_v46  ;;  %v4508_v46 = vld [vmem:[#allocation4 + $0x1b0] sm:$0xff] }
 0x4a7   : > { %5014 = vst.msk [vmem:[#allocation4 + $0x180] sm:$0xff] %vm1564_vm2, %v4950_v3  ;;  %v6951_v59 = vpop.f32.mrb[50].mxu0  ;;  %v3588_v3 = vmul.f32 %v11844_v8, %v3524_v58  ;;  %v3529_v62 = vld [vmem:[#allocation3 + $0x140] sm:$0xff] }
 0x4a8   : > { %3862 = vst.msk [vmem:[#allocation3 + $0x1a0] sm:$0xff] %vm3809_vm4, %v3797_v32  ;;  %3843 = vst.msk [vmem:[#allocation3 + $0x108] sm:$0xff] %vm3809_vm4, %v3778_v6  ;;  %v4937_v23 = vadd.f32 %v6951_v59, %v4873_v30  ;;  %v4240_v40 = vpop.f32.mrb[51].mxu0  ;;  %v4874_v30 = vmul.f32 %v10720_v36, %v4490_v17  ;;  %v4507_v32 = vld [vmem:[#allocation4 + $0x1a8] sm:$0xff]  ;;  %v4506_v59 = vld [vmem:[#allocation4 + $0x1a0] sm:$0xff] }
 0x4a9   : > { %v4936_v15 = vadd.f32 %v4872_v18, %v4240_v40  ;;  %v3694_v42 = vpop.xlane.xlu0 %3693  ;;  %v3716_v41 = vpop.xlane.xlu1 %3715  ;;  %v3593_v18 = vmul.f32 %v11845_v37, %v3529_v62  ;;  %v4890_v25 = vmul.f32 %v10766_v48, %v4506_v59  ;;  %v3542_v48 = vld [vmem:[#allocation3 + $0x1a8] sm:$0xff]  ;;  %v4509_v62 = vld [vmem:[#allocation4 + $0x1b8] sm:$0xff] }
 0x4aa   : > { %5001 = vst.msk [vmem:[#allocation4 + $0x118] sm:$0xff] %vm1564_vm2, %v4937_v23  ;;  %v3783_v38 = vadd.f32 %v3694_v42, %v3591_v13  ;;  %v3794_v11 = vadd.f32 %v3716_v41, %v3602_v60  ;;  %v3545_v13 = vld [vmem:[#allocation3 + $0x1c0] sm:$0xff]  ;;  %v4493_v41 = vld [vmem:[#allocation4 + $0x138] sm:$0xff] }
 0x4ab   : > { %5000 = vst.msk [vmem:[#allocation4 + $0x110] sm:$0xff] %vm1564_vm2, %v4936_v15  ;;  %v4891_v15 = vmul.f32 %v10728_v9, %v4507_v32  ;;  %v11848_v9 = vld [vmem:[#allocation18_spill] sm:$0xff] }
 0x4ac   : > { %3848 = vst.msk [vmem:[#allocation3 + $0x130] sm:$0xff] %vm3809_vm4, %v3783_v38  ;;  %3859 = vst.msk [vmem:[#allocation3 + $0x188] sm:$0xff] %vm3809_vm4, %v3794_v11  ;;  %v7007_v14 = vpop.f32.mrb[50].mxu1  ;;  %v11847_v11 = vld [vmem:[#allocation29_spill] sm:$0xff]  ;;  %v3590_v35 = vmul.f32 %v11848_v9, %v3526_v51  ;;  %v3528_v59 = vld [vmem:[#allocation3 + $0x138] sm:$0xff] }
 0x4ad   : > { %v4953_v63 = vadd.f32 %v7007_v14, %v4889_v29  ;;  %v4385_v19 = vpop.f32.mrb[51].mxu1  ;;  %v3726_v22 = vpop.xlane.xlu0 %3725  ;;  %v3609_v58 = vmul.f32 %v11847_v11, %v3545_v13  ;;  %v4492_v29 = vld [vmem:[#allocation4 + $0x130] sm:$0xff]  ;;  %v11852_v51 = vld [vmem:[#allocation19_spill] sm:$0xff]  ;;  %v4495_v11 = vld [vmem:[#allocation4 + $0x148] sm:$0xff] }
 0x4ae   : > { %v4952_v33 = vadd.f32 %v4888_v43, %v4385_v19  ;;  %v3799_v21 = vadd.f32 %v3726_v22, %v3607_v20  ;;  %v3688_v5 = vpop.xlane.xlu1 %3687  ;;  %v3531_v20 = vld [vmem:[#allocation3 + $0x150] sm:$0xff]  ;;  %v4877_v22 = vmul.f32 %v10692_v61, %v4493_v41  ;;  %v11850_v61 = vld [vmem:[#allocation84_spill] sm:$0xff] }
 0x4af   : > { %5017 = vst.msk [vmem:[#allocation4 + $0x198] sm:$0xff] %vm1564_vm2, %v4953_v63  ;;  %v3780_v45 = vadd.f32 %v3688_v5, %v3588_v3  ;;  %v4876_v3 = vmul.f32 %v10732_v56, %v4492_v29  ;;  %v3606_v32 = vmul.f32 %v11850_v61, %v3542_v48  ;;  %v3535_v61 = vld [vmem:[#allocation3 + $0x170] sm:$0xff] }
 0x4b0   : > { %5016 = vst.msk [vmem:[#allocation4 + $0x190] sm:$0xff] %vm1564_vm2, %v4952_v33  ;;  %v6954_v6 = vpop.f32.mrb[52].mxu0 }
 0x4b1   : > { %3864 = vst.msk [vmem:[#allocation3 + $0x1b0] sm:$0xff] %vm3809_vm4, %v3799_v21  ;;  %3845 = vst.msk [vmem:[#allocation3 + $0x118] sm:$0xff] %vm3809_vm4, %v3780_v45  ;;  %v4939_v34 = vadd.f32 %v6954_v6, %v4875_v12  ;;  %v4250_v23 = vpop.f32.mrb[53].mxu0  ;;  %v3698_v40 = vpop.xlane.xlu0 %3697  ;;  %v11849_v21 = vld [vmem:[#allocation30_spill] sm:$0xff]  ;;  %v3547_v6 = vld [vmem:[#allocation3 + $0x1d0] sm:$0xff] }
 0x4b2   : > { %v4938_v31 = vadd.f32 %v4874_v30, %v4250_v23  ;;  %v3785_v60 = vadd.f32 %v3698_v40, %v3593_v18  ;;  %v3720_v36 = vpop.xlane.xlu1 %3719  ;;  %v3595_v5 = vmul.f32 %v11849_v21, %v3531_v20  ;;  %v4892_v40 = vmul.f32 %v10776_v52, %v4508_v46  ;;  %v4510_v21 = vld [vmem:[#allocation4 + $0x1c0] sm:$0xff] }
 0x4b3   : > { %5003 = vst.msk [vmem:[#allocation4 + $0x128] sm:$0xff] %vm1564_vm2, %v4939_v34  ;;  %v3796_v42 = vadd.f32 %v3720_v36, %v3604_v4  ;;  %v4893_v34 = vmul.f32 %v10739_v2, %v4509_v62  ;;  %v11851_v4 = vld [vmem:[#allocation32_spill] sm:$0xff]  ;;  %v3533_v2 = vld [vmem:[#allocation3 + $0x160] sm:$0xff] }
 0x4b4   : > { %5002 = vst.msk [vmem:[#allocation4 + $0x120] sm:$0xff] %vm1564_vm2, %v4938_v31  ;;  %v7010_v38 = vpop.f32.mrb[52].mxu1  ;;  %v3611_v13 = vmul.f32 %v11851_v4, %v3547_v6  ;;  %v11855_v62 = vld [vmem:[#allocation127_spill] sm:$0xff] }
 0x4b5   : > { %3850 = vst.msk [vmem:[#allocation3 + $0x140] sm:$0xff] %vm3809_vm4, %v3785_v60  ;;  %3861 = vst.msk [vmem:[#allocation3 + $0x198] sm:$0xff] %vm3809_vm4, %v3796_v42  ;;  %v4955_v55 = vadd.f32 %v7010_v38, %v4891_v15  ;;  %v4395_v43 = vpop.f32.mrb[53].mxu1  ;;  %v3730_v14 = vpop.xlane.xlu0 %3729  ;;  %v3592_v15 = vmul.f32 %v11852_v51, %v3528_v59  ;;  %v3544_v38 = vld [vmem:[#allocation3 + $0x1b8] sm:$0xff] }
 0x4b6   : > { %v4954_v17 = vadd.f32 %v4890_v25, %v4395_v43  ;;  %v3801_v63 = vadd.f32 %v3730_v14, %v3609_v58  ;;  %v3692_v19 = vpop.xlane.xlu1 %3691  ;;  %v11853_v58 = vld [vmem:[#allocation106_spill] sm:$0xff]  ;;  %v11854_v14 = vld [vmem:[#allocation81_spill] sm:$0xff] }
 0x4b7   : > { %5019 = vst.msk [vmem:[#allocation4 + $0x1a8] sm:$0xff] %vm1564_vm2, %v4955_v55  ;;  %v3782_v8 = vadd.f32 %v3692_v19, %v3590_v35  ;;  %v3597_v29 = vmul.f32 %v11853_v58, %v3533_v2  ;;  %v4494_v55 = vld [vmem:[#allocation4 + $0x140] sm:$0xff]  ;;  %v3608_v9 = vmul.f32 %v11854_v14, %v3544_v38  ;;  %v4879_v19 = vmul.f32 %v10750_v24, %v4495_v11  ;;  %v4497_v2 = vld [vmem:[#allocation4 + $0x158] sm:$0xff]  ;;  %v11859_v38 = vld [vmem:[#allocation76_spill] sm:$0xff] }
 0x4b8   : > { %5018 = vst.msk [vmem:[#allocation4 + $0x1a0] sm:$0xff] %vm1564_vm2, %v4954_v17  ;;  %v6957_v33 = vpop.f32.mrb[54].mxu0  ;;  %v3549_v35 = vld [vmem:[#allocation3 + $0x1e0] sm:$0xff]  ;;  %v4513_v14 = vld [vmem:[#allocation4 + $0x1d8] sm:$0xff] }
 0x4b9   : > { %3866 = vst.msk [vmem:[#allocation3 + $0x1c0] sm:$0xff] %vm3809_vm4, %v3801_v63  ;;  %3847 = vst.msk [vmem:[#allocation3 + $0x128] sm:$0xff] %vm3809_vm4, %v3782_v8  ;;  %v4941_v12 = vadd.f32 %v6957_v33, %v4877_v22  ;;  %v4260_v45 = vpop.f32.mrb[55].mxu0  ;;  %v3702_v30 = vpop.xlane.xlu0 %3701  ;;  %v3530_v63 = vld [vmem:[#allocation3 + $0x148] sm:$0xff]  ;;  %v4878_v8 = vmul.f32 %v10788_v53, %v4494_v55  ;;  %v3613_v33 = vmul.f32 %v11855_v62, %v3549_v35 }
 0x4ba   : > { %v4940_v37 = vadd.f32 %v4876_v3, %v4260_v45  ;;  %v3787_v18 = vadd.f32 %v3702_v30, %v3595_v5  ;;  %v3724_v56 = vpop.xlane.xlu1 %3723  ;;  %v4511_v22 = vld [vmem:[#allocation4 + $0x1c8] sm:$0xff]  ;;  %v11856_v45 = vld [vmem:[#allocation23_spill] sm:$0xff]  ;;  %v4881_v55 = vmul.f32 %v10772_v7, %v4497_v2 }
 0x4bb   : > { %5005 = vst.msk [vmem:[#allocation4 + $0x138] sm:$0xff] %vm1564_vm2, %v4941_v12  ;;  %v3798_v23 = vadd.f32 %v3724_v56, %v3606_v32  ;;  %v3594_v30 = vmul.f32 %v11856_v45, %v3530_v63  ;;  %v4895_v53 = vmul.f32 %v10761_v57, %v4511_v22  ;;  %v4894_v56 = vmul.f32 %v10798_v54, %v4510_v21  ;;  %v3551_v57 = vld [vmem:[#allocation3 + $0x1f0] sm:$0xff]  ;;  %v11860_v63 = vld [vmem:[#allocation88_spill] sm:$0xff]  ;;  %v4498_v21 = vld [vmem:[#allocation4 + $0x160] sm:$0xff] }
 0x4bc   : > { %5004 = vst.msk [vmem:[#allocation4 + $0x130] sm:$0xff] %vm1564_vm2, %v4940_v37  ;;  %v7013_v28 = vpop.f32.mrb[54].mxu1  ;;  %v3546_v37 = vld [vmem:[#allocation3 + $0x1c8] sm:$0xff] }
 0x4bd   : > { %3852 = vst.msk [vmem:[#allocation3 + $0x150] sm:$0xff] %vm3809_vm4, %v3787_v18  ;;  %3863 = vst.msk [vmem:[#allocation3 + $0x1a8] sm:$0xff] %vm3809_vm4, %v3798_v23  ;;  %v4957_v31 = vadd.f32 %v7013_v28, %v4893_v34  ;;  %v4405_v60 = vpop.f32.mrb[55].mxu1  ;;  %v3734_v36 = vpop.xlane.xlu0 %3733  ;;  %v11857_v34 = vld [vmem:[#allocation129_spill] sm:$0xff]  ;;  %v4499_v62 = vld [vmem:[#allocation4 + $0x168] sm:$0xff] }
 0x4be   : > { %v4956_v42 = vadd.f32 %v4892_v40, %v4405_v60  ;;  %v3803_v41 = vadd.f32 %v3734_v36, %v3611_v13  ;;  %v3696_v25 = vpop.xlane.xlu1 %3695  ;;  %v3599_v23 = vmul.f32 %v11857_v34, %v3535_v61  ;;  %v11858_v13 = vld [vmem:[#allocation87_spill] sm:$0xff] }
 0x4bf   : > { %5021 = vst.msk [vmem:[#allocation4 + $0x1b8] sm:$0xff] %vm1564_vm2, %v4957_v31  ;;  %v3784_v52 = vadd.f32 %v3696_v25, %v3592_v15  ;;  %v3610_v31 = vmul.f32 %v11858_v13, %v3546_v37  ;;  %v3532_v15 = vld [vmem:[#allocation3 + $0x158] sm:$0xff] }
 0x4c0   : > { %5020 = vst.msk [vmem:[#allocation4 + $0x1b0] sm:$0xff] %vm1564_vm2, %v4956_v42  ;;  %v3615_v42 = vmul.f32 %v10849_v50, %v3551_v57  ;;  %v4501_v13 = vld [vmem:[#allocation4 + $0x178] sm:$0xff]  ;;  %v4500_v57 = vld [vmem:[#allocation4 + $0x170] sm:$0xff] }
 0x4c1   : > { %3868 = vst.msk [vmem:[#allocation3 + $0x1d0] sm:$0xff] %vm3809_vm4, %v3803_v41  ;;  %3849 = vst.msk [vmem:[#allocation3 + $0x138] sm:$0xff] %vm3809_vm4, %v3784_v52  ;;  %v3706_v43 = vpop.xlane.xlu0 %3705  ;;  %v4496_v41 = vld [vmem:[#allocation4 + $0x150] sm:$0xff]  ;;  %v3596_v52 = vmul.f32 %v11859_v38, %v3532_v15 }
 0x4c2   : > { %v3789_v20 = vadd.f32 %v3706_v43, %v3597_v29  ;;  %v3728_v17 = vpop.xlane.xlu1 %3727  ;;  %v3548_v29 = vld [vmem:[#allocation3 + $0x1d8] sm:$0xff] }
 0x4c3   : > { %v3800_v48 = vadd.f32 %v3728_v17, %v3608_v9  ;;  %v4880_v9 = vmul.f32 %v10806_v47, %v4496_v41 }
 0x4c4   : > { %3854 = vst.msk [vmem:[#allocation3 + $0x160] sm:$0xff] %vm3809_vm4, %v3789_v20  ;;  %v6960_v3 = vpop.f32.mrb[56].mxu0  ;;  %v4512_v20 = vld [vmem:[#allocation4 + $0x1d0] sm:$0xff] }
 0x4c5   : > { %3865 = vst.msk [vmem:[#allocation3 + $0x1b8] sm:$0xff] %vm3809_vm4, %v3800_v48  ;;  %v4943_v5 = vadd.f32 %v6960_v3, %v4879_v19  ;;  %v4270_v46 = vpop.f32.mrb[57].mxu0  ;;  %v3738_v12 = vpop.xlane.xlu0 %3737  ;;  %v3612_v19 = vmul.f32 %v11860_v63, %v3548_v29  ;;  %v4897_v3 = vmul.f32 %v10783_v0, %v4513_v14  ;;  %v4896_v47 = vmul.f32 %v10816_v44, %v4512_v20 }
 0x4c6   : > { %v4942_v32 = vadd.f32 %v4878_v8, %v4270_v46  ;;  %v3805_v24 = vadd.f32 %v3738_v12, %v3613_v33  ;;  %v3700_v6 = vpop.xlane.xlu1 %3699  ;;  %v3534_v8 = vld [vmem:[#allocation3 + $0x168] sm:$0xff]  ;;  %v11861_v12 = vld [vmem:[#allocation27_spill] sm:$0xff]  ;;  %v4883_v0 = vmul.f32 %v10794_v26, %v4499_v62  ;;  %v4882_v44 = vmul.f32 %v10828_v10, %v4498_v21  ;;  %v5105_v62 = vld [vmem:[#allocation3 + $0x38] sm:$0xff] (!%p6310_p3) }
 0x4c7   : > { %5007 = vst.msk [vmem:[#allocation4 + $0x148] sm:$0xff] %vm1564_vm2, %v4943_v5  ;;  %v3786_v18 = vadd.f32 %v3700_v6, %v3594_v30  ;;  %v3598_v45 = vmul.f32 %v11861_v12, %v3534_v8  ;;  %v4515_v6 = vld [vmem:[#allocation4 + $0x1e8] sm:$0xff]  ;;  %v5106_v12 = vld [vmem:[#allocation3 + $0x40] sm:$0xff] (!%p6310_p3) }
 0x4c8   : > { %5006 = vst.msk [vmem:[#allocation4 + $0x140] sm:$0xff] %vm1564_vm2, %v4942_v32  ;;  %v7016_v59 = vpop.f32.mrb[56].mxu1  ;;  %v3550_v32 = vld [vmem:[#allocation3 + $0x1e8] sm:$0xff]  ;;  %v4899_v26 = vmul.f32 %v10803_v1, %v4515_v6  ;;  %v4885_v1 = vmul.f32 %v10813_v16, %v4501_v13  ;;  %v5116_v13 = vld [vmem:[#allocation3 + $0x90] sm:$0xff] (!%p6310_p3) }
 0x4c9   : > { %3870 = vst.msk [vmem:[#allocation3 + $0x1e0] sm:$0xff] %vm3809_vm4, %v3805_v24  ;;  %3851 = vst.msk [vmem:[#allocation3 + $0x148] sm:$0xff] %vm3809_vm4, %v3786_v18  ;;  %v4959_v40 = vadd.f32 %v7016_v59, %v4895_v53  ;;  %v4415_v28 = vpop.f32.mrb[57].mxu1  ;;  %v3710_v4 = vpop.xlane.xlu0 %3709  ;;  %v4514_v53 = vld [vmem:[#allocation4 + $0x1e0] sm:$0xff]  ;;  %v11862_v59 = vld [vmem:[#allocation94_spill] sm:$0xff] }
 0x4ca   : > { %v4958_v60 = vadd.f32 %v4894_v56, %v4415_v28  ;;  %v3791_v36 = vadd.f32 %v3710_v4, %v3599_v23  ;;  %v3732_v51 = vpop.xlane.xlu1 %3731  ;;  %v3614_v34 = vmul.f32 %v11862_v59, %v3550_v32  ;;  %v3536_v28 = vld [vmem:[#allocation3 + $0x178] sm:$0xff]  ;;  %v4898_v10 = vmul.f32 %v10838_v49, %v4514_v53  ;;  %v5099_v8 = vld [vmem:[#allocation3 + $0x8] sm:$0xff] (!%p6310_p3)  ;;  %v5108_v32 = vld [vmem:[#allocation3 + $0x50] sm:$0xff] (!%p6310_p3) }
 0x4cb   : > { %5023 = vst.msk [vmem:[#allocation4 + $0x1c8] sm:$0xff] %vm1564_vm2, %v4959_v40  ;;  %v3802_v54 = vadd.f32 %v3732_v51, %v3610_v31  ;;  %v11863_v51 = vld [vmem:[#allocation101_spill] sm:$0xff]  ;;  %v4884_v49 = vmul.f32 %v10847_v39, %v4500_v57  ;;  %v5113_v53 = vld [vmem:[#allocation3 + $0x78] sm:$0xff] (!%p6310_p3) }
 0x4cc   : > { %5022 = vst.msk [vmem:[#allocation4 + $0x1c0] sm:$0xff] %vm1564_vm2, %v4958_v60  ;;  %v3600_v15 = vmul.f32 %v11863_v51, %v3536_v28  ;;  %v5121_v51 = vld [vmem:[#allocation3 + $0xb8] sm:$0xff] (!%p6310_p3) }
 0x4cd   : > { %3856 = vst.msk [vmem:[#allocation3 + $0x170] sm:$0xff] %vm3809_vm4, %v3791_v36  ;;  %3867 = vst.msk [vmem:[#allocation3 + $0x1c8] sm:$0xff] %vm3809_vm4, %v3802_v54  ;;  %v3742_v25 = vpop.xlane.xlu0 %3741 }
 0x4ce   : > { %v3807_v11 = vadd.f32 %v3742_v25, %v3615_v42  ;;  %v3704_v58 = vpop.xlane.xlu1 %3703  ;;  %v3552_v42 = vld [vmem:[#allocation3 + $0x1f8] sm:$0xff] }
 0x4cf   : > { %v3788_v43 = vadd.f32 %v3704_v58, %v3596_v52  ;;  %v4517_v25 = vld [vmem:[#allocation4 + $0x1f8] sm:$0xff]  ;;  %v3616_v29 = vmul.f32 %v10826_v27, %v3552_v42  ;;  %v5100_v27 = vld [vmem:[#allocation3 + $0x10] sm:$0xff] (!%p6310_p3)  ;;  %v5123_v42 = vld [vmem:[#allocation3 + $0xc8] sm:$0xff] (!%p6310_p3) }
 0x4d0   : > { %3872 = vst.msk [vmem:[#allocation3 + $0x1f0] sm:$0xff] %vm3809_vm4, %v3807_v11  ;;  %v6963_v35 = vpop.f32.mrb[58].mxu0  ;;  %7698 = vrcp.f32 (!%p6310_p3), %v5100_v27 }
 0x4d1   : > { %3853 = vst.msk [vmem:[#allocation3 + $0x158] sm:$0xff] %vm3809_vm4, %v3788_v43  ;;  %v4945_v50 = vadd.f32 %v6963_v35, %v4881_v55  ;;  %v4280_v17 = vpop.f32.mrb[59].mxu0 }
 0x4d2   : > { %v4944_v48 = vadd.f32 %v4880_v9, %v4280_v17  ;;  %v3736_v22 = vpop.xlane.xlu1 %3735  ;;  %v4516_v9 = vld [vmem:[#allocation4 + $0x1f0] sm:$0xff] }
 0x4d3   : > { %5009 = vst.msk [vmem:[#allocation4 + $0x158] sm:$0xff] %vm1564_vm2, %v4945_v50  ;;  %v3804_v7 = vadd.f32 %v3736_v22, %v3612_v19  ;;  %v5098_v19 = vld [vmem:[#allocation3] sm:$0xff] (!%p6310_p3)  ;;  %v7917_v22 = vmov (!%p6310_p3), 0  }
 0x4d4   : > { %5008 = vst.msk [vmem:[#allocation4 + $0x150] sm:$0xff] %vm1564_vm2, %v4944_v48  ;;  %v7019_v33 = vpop.f32.mrb[58].mxu1  ;;  %v5101_v48 = vld [vmem:[#allocation3 + $0x18] sm:$0xff] (!%p6310_p3)  ;;  %7697 = vset.pattern.permute.xlu1 (!%p6310_p3), %v7917_v22  ;;  %7696 = vset.pattern.permute.xlu0 (!%p6310_p3), %v7917_v22  ;;  %7700 = vrcp.f32 (!%p6310_p3), %v5098_v19  ;;  %v5132_v19 = vld [vmem:[#allocation3 + $0x110] sm:$0xff] (!%p6310_p3)  ;;  %v5135_v22 = vld [vmem:[#allocation3 + $0x128] sm:$0xff] (!%p6310_p3) }
 0x4d5   : > { %3869 = vst.msk [vmem:[#allocation3 + $0x1d8] sm:$0xff] %vm3809_vm4, %v3804_v7  ;;  %v4961_v5 = vadd.f32 %v7019_v33, %v4897_v3  ;;  %v4425_v46 = vpop.f32.mrb[59].mxu1  ;;  %v4836_v38 = vpop.permute.xlu0 %4835  ;;  %7702 = vrcp.f32 (!%p6310_p3), %v5101_v48  ;;  %v5103_v3 = vld [vmem:[#allocation3 + $0x28] sm:$0xff] (!%p6310_p3)  ;;  %v5102_v7 = vld [vmem:[#allocation3 + $0x20] sm:$0xff] (!%p6310_p3) }
 0x4d6   : > { %v4960_v30 = vadd.f32 %v4896_v47, %v4425_v46  ;;  %v3708_v61 = vpop.xlane.xlu1 %3707  ;;  %v4901_v14 = vmul.f32 %v4836_v38, %v4517_v25  ;;  %7704 = vrcp.f32 (!%p6310_p3), %v5099_v8  ;;  %v5104_v47 = vld [vmem:[#allocation3 + $0x30] sm:$0xff] (!%p6310_p3)  ;;  %v5125_v25 = vld [vmem:[#allocation3 + $0xd8] sm:$0xff] (!%p6310_p3) }
 0x4d7   : > { %5025 = vst.msk [vmem:[#allocation4 + $0x1d8] sm:$0xff] %vm1564_vm2, %v4961_v5  ;;  %v3790_v24 = vadd.f32 %v3708_v61, %v3598_v45  ;;  %7706 = vrcp.f32 (!%p6310_p3), %v5103_v3  ;;  %v5107_v5 = vld [vmem:[#allocation3 + $0x48] sm:$0xff] (!%p6310_p3)  ;;  %v5134_v3 = vld [vmem:[#allocation3 + $0x120] sm:$0xff] (!%p6310_p3) }
 0x4d8   : > { %5024 = vst.msk [vmem:[#allocation4 + $0x1d0] sm:$0xff] %vm1564_vm2, %v4960_v30  ;;  %v6966_v37 = vpop.f32.mrb[60].mxu0  ;;  %7708 = vrcp.f32 (!%p6310_p3), %v5102_v7  ;;  %v5109_v30 = vld [vmem:[#allocation3 + $0x58] sm:$0xff] (!%p6310_p3) }
 0x4d9   : > { %3855 = vst.msk [vmem:[#allocation3 + $0x168] sm:$0xff] %vm3809_vm4, %v3790_v24  ;;  %v4947_v18 = vadd.f32 %v6966_v37, %v4883_v0  ;;  %v4290_v56 = vpop.f32.mrb[61].mxu0  ;;  %7710 = vrcp.f32 (!%p6310_p3), %v5105_v62  ;;  %v5111_v24 = vld [vmem:[#allocation3 + $0x68] sm:$0xff] (!%p6310_p3)  ;;  %v5137_v62 = vld [vmem:[#allocation3 + $0x138] sm:$0xff] (!%p6310_p3) }
 0x4da   : > { %v4946_v23 = vadd.f32 %v4882_v44, %v4290_v56  ;;  %v3740_v40 = vpop.xlane.xlu1 %3739  ;;  %v7699_v33 = vpop.eup (!%p6310_p3), %7698  ;;  %7712 = vrcp.f32 (!%p6310_p3), %v5104_v47  ;;  %v5110_v44 = vld [vmem:[#allocation3 + $0x60] sm:$0xff] (!%p6310_p3)  ;;  %v5112_v56 = vld [vmem:[#allocation3 + $0x70] sm:$0xff] (!%p6310_p3) }
 0x4db   : > { %5011 = vst.msk [vmem:[#allocation4 + $0x168] sm:$0xff] %vm1564_vm2, %v4947_v18  ;;  %v3806_v4 = vadd.f32 %v3740_v40, %v3614_v34  ;;  %5302 = vperm.xlu1 (!%p6310_p3), %7697, %v7699_v33   ;;  %7714 = vrcp.f32 (!%p6310_p3), %v5107_v5  ;;  %v5115_v34 = vld [vmem:[#allocation3 + $0x88] sm:$0xff] (!%p6310_p3)  ;;  %v5114_v40 = vld [vmem:[#allocation3 + $0x80] sm:$0xff] (!%p6310_p3)  ;;  %v5136_v33 = vld [vmem:[#allocation3 + $0x130] sm:$0xff] (!%p6310_p3) }
 0x4dc   : > { %5010 = vst.msk [vmem:[#allocation4 + $0x160] sm:$0xff] %vm1564_vm2, %v4946_v23  ;;  %v7022_v31 = vpop.f32.mrb[60].mxu1  ;;  %7716 = vrcp.f32 (!%p6310_p3), %v5106_v12  ;;  %v5139_v5 = vld [vmem:[#allocation3 + $0x148] sm:$0xff] (!%p6310_p3)  ;;  %v5138_v12 = vld [vmem:[#allocation3 + $0x140] sm:$0xff] (!%p6310_p3) }
 0x4dd   : > { %3871 = vst.msk [vmem:[#allocation3 + $0x1e8] sm:$0xff] %vm3809_vm4, %v3806_v4  ;;  %v4963_v60 = vadd.f32 %v7022_v31, %v4899_v26  ;;  %v4435_v36 = vpop.f32.mrb[61].mxu1  ;;  %7718 = vrcp.f32 (!%p6310_p3), %v5109_v30  ;;  %v5117_v26 = vld [vmem:[#allocation3 + $0x98] sm:$0xff] (!%p6310_p3)  ;;  %v5119_v31 = vld [vmem:[#allocation3 + $0xa8] sm:$0xff] (!%p6310_p3) }
 0x4de   : > { %v4962_v54 = vadd.f32 %v4898_v10, %v4435_v36  ;;  %v3712_v2 = vpop.xlane.xlu1 %3711  ;;  %v7701_v21 = vpop.eup (!%p6310_p3), %7700  ;;  %7720 = vrcp.f32 (!%p6310_p3), %v5108_v32  ;;  %v5141_v30 = vld [vmem:[#allocation3 + $0x158] sm:$0xff] (!%p6310_p3)  ;;  %v5140_v32 = vld [vmem:[#allocation3 + $0x150] sm:$0xff] (!%p6310_p3) }
 0x4df   : > { %5027 = vst.msk [vmem:[#allocation4 + $0x1e8] sm:$0xff] %vm1564_vm2, %v4963_v60  ;;  %v3792_v41 = vadd.f32 %v3712_v2, %v3600_v15  ;;  %v7703_v46 = vpop.eup (!%p6310_p3), %7702  ;;  %5292 = vperm.xlu0 (!%p6310_p3), %7696, %v7701_v21   ;;  %7722 = vrcp.f32 (!%p6310_p3), %v5111_v24  ;;  %v5118_v60 = vld [vmem:[#allocation3 + $0xa0] sm:$0xff] (!%p6310_p3) }
 0x4e0   : > { %5026 = vst.msk [vmem:[#allocation4 + $0x1e0] sm:$0xff] %vm1564_vm2, %v4962_v54  ;;  %v6969_v52 = vpop.f32.mrb[62].mxu0  ;;  %v7705_v45 = vpop.eup (!%p6310_p3), %7704  ;;  %5307 = vperm.xlu1 (!%p6310_p3), %7697, %v7703_v46   ;;  %7724 = vrcp.f32 (!%p6310_p3), %v5110_v44  ;;  %v5120_v54 = vld [vmem:[#allocation3 + $0xb0] sm:$0xff] (!%p6310_p3)  ;;  %v5143_v24 = vld [vmem:[#allocation3 + $0x168] sm:$0xff] (!%p6310_p3)  ;;  %v5142_v44 = vld [vmem:[#allocation3 + $0x160] sm:$0xff] (!%p6310_p3) }
 0x4e1   : > { %3857 = vst.msk [vmem:[#allocation3 + $0x178] sm:$0xff] %vm3809_vm4, %v3792_v41  ;;  %v4949_v11 = vadd.f32 %v6969_v52, %v4885_v1  ;;  %v4300_v58 = vpop.f32.mrb[63].mxu0  ;;  %v7707_v61 = vpop.eup (!%p6310_p3), %7706  ;;  %7726 = vrcp.f32 (!%p6310_p3), %v5113_v53  ;;  %v5122_v41 = vld [vmem:[#allocation3 + $0xc0] sm:$0xff] (!%p6310_p3)  ;;  %v5124_v52 = vld [vmem:[#allocation3 + $0xd0] sm:$0xff] (!%p6310_p3) }
 0x4e2   : > { %v4948_v55 = vadd.f32 %v4884_v49, %v4300_v58  ;;  %v3744_v43 = vpop.xlane.xlu1 %3743  ;;  %v7709_v0 = vpop.eup (!%p6310_p3), %7708  ;;  %7728 = vrcp.f32 (!%p6310_p3), %v5112_v56  ;;  %v5127_v58 = vld [vmem:[#allocation3 + $0xe8] sm:$0xff] (!%p6310_p3)  ;;  %v5144_v56 = vld [vmem:[#allocation3 + $0x170] sm:$0xff] (!%p6310_p3) }
 0x4e3   : > { %5013 = vst.msk [vmem:[#allocation4 + $0x178] sm:$0xff] %vm1564_vm2, %v4949_v11  ;;  %v3808_v16 = vadd.f32 %v3744_v43, %v3616_v29  ;;  %5297 = vperm.xlu0 (!%p6310_p3), %7696, %v7705_v45   ;;  %v7711_v6 = vpop.eup (!%p6310_p3), %7710  ;;  %7730 = vrcp.f32 (!%p6310_p3), %v5115_v34  ;;  %v5147_v34 = vld [vmem:[#allocation3 + $0x188] sm:$0xff] (!%p6310_p3) }
 0x4e4   : > { %5012 = vst.msk [vmem:[#allocation4 + $0x170] sm:$0xff] %vm1564_vm2, %v4948_v55  ;;  %v7025_v39 = vpop.f32.mrb[62].mxu1  ;;  %5317 = vperm.xlu1 (!%p6310_p3), %7697, %v7707_v61   ;;  %v7713_v37 = vpop.eup (!%p6310_p3), %7712  ;;  %7732 = vrcp.f32 (!%p6310_p3), %v5114_v40  ;;  %v5126_v55 = vld [vmem:[#allocation3 + $0xe0] sm:$0xff] (!%p6310_p3) }
 0x4e5   : > { %3873 = vst.msk [vmem:[#allocation3 + $0x1f8] sm:$0xff] %vm3809_vm4, %v3808_v16  ;;  %v4965_v35 = vadd.f32 %v7025_v39, %v4901_v14  ;;  %v4445_v20 = vpop.f32.mrb[63].mxu1  ;;  %5097 = sbr.rel (%p6310_p3) target bundleno = 1502 (0x5de), region = 154  ;;  %v7715_v18 = vpop.eup (!%p6310_p3), %7714  ;;  %7734 = vrcp.f32 (!%p6310_p3), %v5117_v26  ;;  %v5129_v14 = vld [vmem:[#allocation3 + $0xf8] sm:$0xff] (!%p6310_p3)  ;;  %v5128_v39 = vld [vmem:[#allocation3 + $0xf0] sm:$0xff] (!%p6310_p3)  ;;  %v5146_v40 = vld [vmem:[#allocation3 + $0x180] sm:$0xff] (!%p6310_p3) }
 0x4e6   : > { %v4831_v50 = vpop.permute.xlu1 %4830  ;;  %v7717_v59 = vpop.eup (!%p6310_p3), %7716  ;;  %7736 = vrcp.f32 (!%p6310_p3), %v5116_v13  ;;  %v5149_v26 = vld [vmem:[#allocation3 + $0x198] sm:$0xff] (!%p6310_p3)  ;;  %v5148_v13 = vld [vmem:[#allocation3 + $0x190] sm:$0xff] (!%p6310_p3) }
 0x4e7   : > { %5029 = vst.msk [vmem:[#allocation4 + $0x1f8] sm:$0xff] %vm1564_vm2, %v4965_v35  ;;  %v4900_v17 = vmul.f32 %v4831_v50, %v4516_v9  ;;  %5312 = vperm.xlu0 (!%p6310_p3), %7696, %v7709_v0   ;;  %v7719_v23 = vpop.eup (!%p6310_p3), %7718  ;;  %7738 = vrcp.f32 (!%p6310_p3), %v5119_v31  ;;  %v5131_v35 = vld [vmem:[#allocation3 + $0x108] sm:$0xff] (!%p6310_p3)  ;;  %v5130_v50 = vld [vmem:[#allocation3 + $0x100] sm:$0xff] (!%p6310_p3) }
 0x4e8   : > { %5327 = vperm.xlu1 (!%p6310_p3), %7697, %v7711_v6   ;;  %v7721_v28 = vpop.eup (!%p6310_p3), %7720  ;;  %7740 = vrcp.f32 (!%p6310_p3), %v5118_v60  ;;  %v5145_v53 = vld [vmem:[#allocation3 + $0x178] sm:$0xff] (!%p6310_p3)  ;;  %v5151_v31 = vld [vmem:[#allocation3 + $0x1a8] sm:$0xff] (!%p6310_p3)  ;;  %v5150_v60 = vld [vmem:[#allocation3 + $0x1a0] sm:$0xff] (!%p6310_p3) }
 0x4e9   : > { %v4964_v63 = vadd.f32 %v4900_v17, %v4445_v20  ;;  %v7723_v4 = vpop.eup (!%p6310_p3), %7722  ;;  %7742 = vrcp.f32 (!%p6310_p3), %v5121_v51  ;;  %v5153_v51 = vld [vmem:[#allocation3 + $0x1b8] sm:$0xff] (!%p6310_p3) }
 0x4ea   : > { %v7725_v10 = vpop.eup (!%p6310_p3), %7724  ;;  %7744 = vrcp.f32 (!%p6310_p3), %v5120_v54  ;;  %v5152_v54 = vld [vmem:[#allocation3 + $0x1b0] sm:$0xff] (!%p6310_p3) }
 0x4eb   : > { %5028 = vst.msk [vmem:[#allocation4 + $0x1f0] sm:$0xff] %vm1564_vm2, %v4964_v63  ;;  %5322 = vperm.xlu0 (!%p6310_p3), %7696, %v7713_v37   ;;  %v7727_v57 = vpop.eup (!%p6310_p3), %7726  ;;  %7746 = vrcp.f32 (!%p6310_p3), %v5123_v42  ;;  %v5133_v63 = vld [vmem:[#allocation3 + $0x118] sm:$0xff] (!%p6310_p3)  ;;  %v5155_v42 = vld [vmem:[#allocation3 + $0x1c8] sm:$0xff] (!%p6310_p3) }
 0x4ec   : > { %5337 = vperm.xlu1 %7697, %v7715_v18   ;;  %v7729_v36 = vpop.eup %7728  ;;  %7748 = vrcp.f32 %v5122_v41  ;;  %v5154_v41 = vld [vmem:[#allocation3 + $0x1c0] sm:$0xff] }
 0x4ed   : > { %v7731_v15 = vpop.eup %7730  ;;  %7750 = vrcp.f32 %v5125_v25  ;;  %v5157_v25 = vld [vmem:[#allocation3 + $0x1d8] sm:$0xff] }
 0x4ee   : > { %v7733_v2 = vpop.eup %7732  ;;  %7752 = vrcp.f32 %v5124_v52  ;;  %v5156_v52 = vld [vmem:[#allocation3 + $0x1d0] sm:$0xff] }
 0x4ef   : > { %5332 = vperm.xlu0 %7696, %v7717_v59   ;;  %v7735_v1 = vpop.eup %7734  ;;  %7754 = vrcp.f32 %v5127_v58  ;;  %v5159_v58 = vld [vmem:[#allocation3 + $0x1e8] sm:$0xff] }
 0x4f0   : > { %5347 = vperm.xlu1 %7697, %v7719_v23   ;;  %v7737_v49 = vpop.eup %7736  ;;  %7756 = vrcp.f32 %v5126_v55  ;;  %v5158_v55 = vld [vmem:[#allocation3 + $0x1e0] sm:$0xff] }
 0x4f1   : > { %v7739_v38 = vpop.eup %7738  ;;  %7758 = vrcp.f32 %v5129_v14  ;;  %v5161_v14 = vld [vmem:[#allocation3 + $0x1f8] sm:$0xff] }
 0x4f2   : > { %v7741_v11 = vpop.eup %7740  ;;  %7760 = vrcp.f32 %v5128_v39  ;;  %v5160_v39 = vld [vmem:[#allocation3 + $0x1f0] sm:$0xff] }
 0x4f3   : > { %5342 = vperm.xlu0 %7696, %v7721_v28   ;;  %v7743_v29 = vpop.eup %7742  ;;  %7762 = vrcp.f32 %v5131_v35 }
 0x4f4   : > { %5357 = vperm.xlu1 %7697, %v7723_v4   ;;  %v7745_v43 = vpop.eup %7744  ;;  %7764 = vrcp.f32 %v5130_v50 }
 0x4f5   : > { %v7747_v16 = vpop.eup %7746  ;;  %7766 = vrcp.f32 %v5133_v63 }
 0x4f6   : > { %v7749_v9 = vpop.eup %7748  ;;  %7768 = vrcp.f32 %v5132_v19  ;;  %v5228_v19 = vld [vmem:[#allocation4 + $0x10] sm:$0xff] }
 0x4f7   : > { %5352 = vperm.xlu0 %7696, %v7725_v10   ;;  %v7751_v20 = vpop.eup %7750  ;;  %7770 = vrcp.f32 %v5135_v22 }
 0x4f8   : > { %5367 = vperm.xlu1 %7697, %v7727_v57   ;;  %v7753_v17 = vpop.eup %7752  ;;  %7772 = vrcp.f32 %v5134_v3 }
 0x4f9   : > { %v7755_v27 = vpop.eup %7754  ;;  %7774 = vrcp.f32 %v5137_v62  ;;  %v5229_v62 = vld [vmem:[#allocation4 + $0x18] sm:$0xff] }
 0x4fa   : > { %v7757_v48 = vpop.eup %7756  ;;  %7776 = vrcp.f32 %v5136_v33 }
 0x4fb   : > { %5362 = vperm.xlu0 %7696, %v7729_v36   ;;  %v7759_v8 = vpop.eup %7758  ;;  %7778 = vrcp.f32 %v5139_v5 }
 0x4fc   : > { %5377 = vperm.xlu1 %7697, %v7731_v15   ;;  %v7761_v7 = vpop.eup %7760  ;;  %7780 = vrcp.f32 %v5138_v12  ;;  %v5231_v12 = vld [vmem:[#allocation4 + $0x28] sm:$0xff] }
 0x4fd   : > { %v7763_v47 = vpop.eup %7762  ;;  %7782 = vrcp.f32 %v5141_v30 }
 0x4fe   : > { %v7765_v21 = vpop.eup %7764  ;;  %7784 = vrcp.f32 %v5140_v32 }
 0x4ff   : > { %5372 = vperm.xlu0 %7696, %v7733_v2   ;;  %v7767_v46 = vpop.eup %7766  ;;  %7786 = vrcp.f32 %v5143_v24  ;;  %v5233_v24 = vld [vmem:[#allocation4 + $0x38] sm:$0xff] }
 0x500   : > { %5387 = vperm.xlu1 %7697, %v7735_v1   ;;  %v7769_v45 = vpop.eup %7768  ;;  %7788 = vrcp.f32 %v5142_v44 }
 0x501   : > { %v7771_v61 = vpop.eup %7770  ;;  %7790 = vrcp.f32 %v5145_v53 }
 0x502   : > { %v7773_v0 = vpop.eup %7772  ;;  %7792 = vrcp.f32 %v5144_v56  ;;  %v5235_v56 = vld [vmem:[#allocation4 + $0x48] sm:$0xff] }
 0x503   : > { %5382 = vperm.xlu0 %7696, %v7737_v49   ;;  %v7775_v6 = vpop.eup %7774  ;;  %7794 = vrcp.f32 %v5147_v34 }
 0x504   : > { %5397 = vperm.xlu1 %7697, %v7739_v38   ;;  %v7777_v37 = vpop.eup %7776  ;;  %7796 = vrcp.f32 %v5146_v40 }
 0x505   : > { %v7779_v18 = vpop.eup %7778  ;;  %7798 = vrcp.f32 %v5149_v26  ;;  %v5237_v26 = vld [vmem:[#allocation4 + $0x58] sm:$0xff] }
 0x506   : > { %v7781_v59 = vpop.eup %7780  ;;  %7800 = vrcp.f32 %v5148_v13 }
 0x507   : > { %5392 = vperm.xlu0 %7696, %v7741_v11   ;;  %v7783_v23 = vpop.eup %7782  ;;  %7802 = vrcp.f32 %v5151_v31 }
 0x508   : > { %5407 = vperm.xlu1 %7697, %v7743_v29   ;;  %v7785_v28 = vpop.eup %7784  ;;  %7804 = vrcp.f32 %v5150_v60  ;;  %v5239_v60 = vld [vmem:[#allocation4 + $0x68] sm:$0xff] }
 0x509   : > { %v7787_v4 = vpop.eup %7786  ;;  %7806 = vrcp.f32 %v5153_v51 }
 0x50a   : > { %v7789_v10 = vpop.eup %7788  ;;  %7808 = vrcp.f32 %v5152_v54 }
 0x50b   : > { %5402 = vperm.xlu0 %7696, %v7745_v43   ;;  %v7791_v57 = vpop.eup %7790  ;;  %7810 = vrcp.f32 %v5155_v42  ;;  %v5241_v42 = vld [vmem:[#allocation4 + $0x78] sm:$0xff] }
 0x50c   : > { %5417 = vperm.xlu1 %7697, %v7747_v16   ;;  %v7793_v36 = vpop.eup %7792  ;;  %7812 = vrcp.f32 %v5154_v41 }
 0x50d   : > { %v7795_v15 = vpop.eup %7794  ;;  %7814 = vrcp.f32 %v5157_v25 }
 0x50e   : > { %v7797_v2 = vpop.eup %7796  ;;  %7816 = vrcp.f32 %v5156_v52  ;;  %v5243_v52 = vld [vmem:[#allocation4 + $0x88] sm:$0xff] }
 0x50f   : > { %5412 = vperm.xlu0 %7696, %v7749_v9   ;;  %v7799_v1 = vpop.eup %7798  ;;  %7818 = vrcp.f32 %v5159_v58 }
 0x510   : > { %5427 = vperm.xlu1 %7697, %v7751_v20   ;;  %v7801_v49 = vpop.eup %7800  ;;  %7820 = vrcp.f32 %v5158_v55 }
 0x511   : > { %v7803_v38 = vpop.eup %7802  ;;  %7822 = vrcp.f32 %v5161_v14  ;;  %v5245_v14 = vld [vmem:[#allocation4 + $0x98] sm:$0xff] }
 0x512   : > { %v7805_v11 = vpop.eup %7804  ;;  %7824 = vrcp.f32 %v5160_v39 }
 0x513   : > { %5422 = vperm.xlu0 %7696, %v7753_v17   ;;  %v7807_v29 = vpop.eup %7806 }
 0x514   : > { %5437 = vperm.xlu1 %7697, %v7755_v27   ;;  %v7809_v43 = vpop.eup %7808 }
 0x515   : > { %v7811_v16 = vpop.eup %7810 }
 0x516   : > { %v7813_v9 = vpop.eup %7812 }
 0x517   : > { %5432 = vperm.xlu0 %7696, %v7757_v48   ;;  %v7815_v35 = vpop.eup %7814  ;;  %v5226_v48 = vld [vmem:[#allocation4] sm:$0xff] }
 0x518   : > { %5447 = vperm.xlu1 %7697, %v7759_v8   ;;  %v7817_v20 = vpop.eup %7816 }
 0x519   : > { %v7819_v50 = vpop.eup %7818 }
 0x51a   : > { %v7821_v17 = vpop.eup %7820 }
 0x51b   : > { %5442 = vperm.xlu0 %7696, %v7761_v7   ;;  %v7823_v63 = vpop.eup %7822 }
 0x51c   : > { %5457 = vperm.xlu1 %7697, %v7763_v47   ;;  %v7825_v27 = vpop.eup %7824  ;;  %v5227_v47 = vld [vmem:[#allocation4 + $0x8] sm:$0xff] }
 0x51f   : > { %5452 = vperm.xlu0 %7696, %v7765_v21  }
 0x520   : > { %5467 = vperm.xlu1 %7697, %v7767_v46  }
 0x523   : > { %5462 = vperm.xlu0 %7696, %v7769_v45   ;;  %v5230_v45 = vld [vmem:[#allocation4 + $0x20] sm:$0xff] }
 0x524   : > { %5477 = vperm.xlu1 %7697, %v7771_v61  }
 0x527   : > { %5472 = vperm.xlu0 %7696, %v7773_v0  }
 0x528   : > { %5487 = vperm.xlu1 %7697, %v7775_v6   ;;  %v5232_v6 = vld [vmem:[#allocation4 + $0x30] sm:$0xff] }
 0x52b   : > { %5482 = vperm.xlu0 %7696, %v7777_v37  }
 0x52c   : > { %5497 = vperm.xlu1 %7697, %v7779_v18  }
 0x52f   : > { %5492 = vperm.xlu0 %7696, %v7781_v59   ;;  %v5234_v59 = vld [vmem:[#allocation4 + $0x40] sm:$0xff] }
 0x530   : > { %5507 = vperm.xlu1 %7697, %v7783_v23  }
 0x533   : > { %5502 = vperm.xlu0 %7696, %v7785_v28  }
 0x534   : > { %5517 = vperm.xlu1 %7697, %v7787_v4   ;;  %v5236_v4 = vld [vmem:[#allocation4 + $0x50] sm:$0xff] }
 0x537   : > { %5512 = vperm.xlu0 %7696, %v7789_v10  }
 0x538   : > { %5527 = vperm.xlu1 %7697, %v7791_v57  }
 0x53b   : > { %5522 = vperm.xlu0 %7696, %v7793_v36   ;;  %v5238_v36 = vld [vmem:[#allocation4 + $0x60] sm:$0xff] }
 0x53c   : > { %5537 = vperm.xlu1 %7697, %v7795_v15  }
 0x53f   : > { %5532 = vperm.xlu0 %7696, %v7797_v2  }
 0x540   : > { %5547 = vperm.xlu1 %7697, %v7799_v1   ;;  %v5240_v1 = vld [vmem:[#allocation4 + $0x70] sm:$0xff] }
 0x543   : > { %5542 = vperm.xlu0 %7696, %v7801_v49  }
 0x544   : > { %5557 = vperm.xlu1 %7697, %v7803_v38  }
 0x547   : > { %5552 = vperm.xlu0 %7696, %v7805_v11   ;;  %v5242_v11 = vld [vmem:[#allocation4 + $0x80] sm:$0xff] }
 0x548   : > { %5567 = vperm.xlu1 %7697, %v7807_v29  }
 0x54b   : > { %5562 = vperm.xlu0 %7696, %v7809_v43  }
 0x54c   : > { %5577 = vperm.xlu1 %7697, %v7811_v16   ;;  %v5244_v16 = vld [vmem:[#allocation4 + $0x90] sm:$0xff] }
 0x54f   : > { %5572 = vperm.xlu0 %7696, %v7813_v9  }
 0x550   : > { %5587 = vperm.xlu1 %7697, %v7815_v35  }
 0x553   : > { %5582 = vperm.xlu0 %7696, %v7817_v20  }
 0x554   : > { %5597 = vperm.xlu1 %7697, %v7819_v50   ;;  %v5247_v50 = vld [vmem:[#allocation4 + $0xa8] sm:$0xff] }
 0x557   : > { %5592 = vperm.xlu0 %7696, %v7821_v17   ;;  %v5246_v17 = vld [vmem:[#allocation4 + $0xa0] sm:$0xff] }
 0x558   : > { %5607 = vperm.xlu1 %7697, %v7823_v63  }
 0x55a   : > { %v5303_v22 = vpop.permute.xlu1 %5302 }
 0x55b   : > { %5602 = vperm.xlu0 %7696, %v7825_v27   ;;  %v5612_v8 = vmul.f32 %v5303_v22, %v5228_v19  ;;  %v5249_v22 = vld [vmem:[#allocation4 + $0xb8] sm:$0xff] }
 0x55d   : > { %5676 = vst.msk [vmem:[%s8473_s29 + $0x10] sm:$0xff] %vm1564_vm2, %v5612_v8  ;;  %v5248_v8 = vld [vmem:[#allocation4 + $0xb0] sm:$0xff] }
 0x55e   : > { %v5293_v3 = vpop.permute.xlu0 %5292 }
 0x55f   : > { %v5610_v7 = vmul.f32 %v5293_v3, %v5226_v48  ;;  %v5308_v33 = vpop.permute.xlu1 %5307 }
 0x560   : > { %v5613_v21 = vmul.f32 %v5308_v33, %v5229_v62  ;;  %v5251_v33 = vld [vmem:[#allocation4 + $0xc8] sm:$0xff] }
 0x561   : > { %5674 = vst.msk [vmem:[%s8473_s29] sm:$0xff] %vm1564_vm2, %v5610_v7 }
 0x562   : > { %v5298_v5 = vpop.permute.xlu0 %5297  ;;  %5677 = vst.msk [vmem:[%s8473_s29 + $0x18] sm:$0xff] %vm1564_vm2, %v5613_v21  ;;  %v5250_v21 = vld [vmem:[#allocation4 + $0xc0] sm:$0xff] }
 0x563   : > { %v5611_v46 = vmul.f32 %v5298_v5, %v5227_v47  ;;  %v5318_v30 = vpop.permute.xlu1 %5317 }
 0x564   : > { %v5615_v61 = vmul.f32 %v5318_v30, %v5231_v12  ;;  %v5253_v30 = vld [vmem:[#allocation4 + $0xd8] sm:$0xff] }
 0x565   : > { %5675 = vst.msk [vmem:[%s8473_s29 + $0x8] sm:$0xff] %vm1564_vm2, %v5611_v46 }
 0x566   : > { %v5313_v32 = vpop.permute.xlu0 %5312  ;;  %5679 = vst.msk [vmem:[%s8473_s29 + $0x28] sm:$0xff] %vm1564_vm2, %v5615_v61  ;;  %v5252_v61 = vld [vmem:[#allocation4 + $0xd0] sm:$0xff] }
 0x567   : > { %v5614_v0 = vmul.f32 %v5313_v32, %v5230_v45  ;;  %v5328_v44 = vpop.permute.xlu1 %5327 }
 0x568   : > { %v5617_v37 = vmul.f32 %v5328_v44, %v5233_v24  ;;  %v5255_v44 = vld [vmem:[#allocation4 + $0xe8] sm:$0xff] }
 0x569   : > { %5678 = vst.msk [vmem:[%s8473_s29 + $0x20] sm:$0xff] %vm1564_vm2, %v5614_v0 }
 0x56a   : > { %v5323_v53 = vpop.permute.xlu0 %5322  ;;  %5681 = vst.msk [vmem:[%s8473_s29 + $0x38] sm:$0xff] %vm1564_vm2, %v5617_v37  ;;  %v5254_v37 = vld [vmem:[#allocation4 + $0xe0] sm:$0xff] }
 0x56b   : > { %v5616_v18 = vmul.f32 %v5323_v53, %v5232_v6  ;;  %v5338_v34 = vpop.permute.xlu1 %5337 }
 0x56c   : > { %v5619_v23 = vmul.f32 %v5338_v34, %v5235_v56  ;;  %v5257_v34 = vld [vmem:[#allocation4 + $0xf8] sm:$0xff] }
 0x56d   : > { %5680 = vst.msk [vmem:[%s8473_s29 + $0x30] sm:$0xff] %vm1564_vm2, %v5616_v18 }
 0x56e   : > { %v5333_v40 = vpop.permute.xlu0 %5332  ;;  %5683 = vst.msk [vmem:[%s8473_s29 + $0x48] sm:$0xff] %vm1564_vm2, %v5619_v23  ;;  %v5256_v23 = vld [vmem:[#allocation4 + $0xf0] sm:$0xff] }
 0x56f   : > { %v5618_v28 = vmul.f32 %v5333_v40, %v5234_v59  ;;  %v5348_v13 = vpop.permute.xlu1 %5347 }
 0x570   : > { %v5621_v10 = vmul.f32 %v5348_v13, %v5237_v26  ;;  %v5259_v13 = vld [vmem:[#allocation4 + $0x108] sm:$0xff] }
 0x571   : > { %5682 = vst.msk [vmem:[%s8473_s29 + $0x40] sm:$0xff] %vm1564_vm2, %v5618_v28 }
 0x572   : > { %v5343_v31 = vpop.permute.xlu0 %5342  ;;  %5685 = vst.msk [vmem:[%s8473_s29 + $0x58] sm:$0xff] %vm1564_vm2, %v5621_v10  ;;  %v5258_v10 = vld [vmem:[#allocation4 + $0x100] sm:$0xff] }
 0x573   : > { %v5620_v57 = vmul.f32 %v5343_v31, %v5236_v4  ;;  %v5358_v51 = vpop.permute.xlu1 %5357 }
 0x574   : > { %v5623_v15 = vmul.f32 %v5358_v51, %v5239_v60  ;;  %v5261_v51 = vld [vmem:[#allocation4 + $0x118] sm:$0xff] }
 0x575   : > { %5684 = vst.msk [vmem:[%s8473_s29 + $0x50] sm:$0xff] %vm1564_vm2, %v5620_v57 }
 0x576   : > { %v5353_v54 = vpop.permute.xlu0 %5352  ;;  %5687 = vst.msk [vmem:[%s8473_s29 + $0x68] sm:$0xff] %vm1564_vm2, %v5623_v15  ;;  %v5260_v15 = vld [vmem:[#allocation4 + $0x110] sm:$0xff] }
 0x577   : > { %v5622_v2 = vmul.f32 %v5353_v54, %v5238_v36  ;;  %v5368_v41 = vpop.permute.xlu1 %5367 }
 0x578   : > { %v5625_v49 = vmul.f32 %v5368_v41, %v5241_v42  ;;  %v5263_v41 = vld [vmem:[#allocation4 + $0x128] sm:$0xff] }
 0x579   : > { %5686 = vst.msk [vmem:[%s8473_s29 + $0x60] sm:$0xff] %vm1564_vm2, %v5622_v2 }
 0x57a   : > { %v5363_v25 = vpop.permute.xlu0 %5362  ;;  %5689 = vst.msk [vmem:[%s8473_s29 + $0x78] sm:$0xff] %vm1564_vm2, %v5625_v49  ;;  %v5262_v49 = vld [vmem:[#allocation4 + $0x120] sm:$0xff] }
 0x57b   : > { %v5624_v38 = vmul.f32 %v5363_v25, %v5240_v1  ;;  %v5378_v58 = vpop.permute.xlu1 %5377 }
 0x57c   : > { %v5627_v29 = vmul.f32 %v5378_v58, %v5243_v52  ;;  %v5265_v58 = vld [vmem:[#allocation4 + $0x138] sm:$0xff] }
 0x57d   : > { %5688 = vst.msk [vmem:[%s8473_s29 + $0x70] sm:$0xff] %vm1564_vm2, %v5624_v38 }
 0x57e   : > { %v5373_v55 = vpop.permute.xlu0 %5372  ;;  %5691 = vst.msk [vmem:[%s8473_s29 + $0x88] sm:$0xff] %vm1564_vm2, %v5627_v29  ;;  %v5264_v29 = vld [vmem:[#allocation4 + $0x130] sm:$0xff] }
 0x57f   : > { %v5626_v43 = vmul.f32 %v5373_v55, %v5242_v11  ;;  %v5388_v39 = vpop.permute.xlu1 %5387 }
 0x580   : > { %v5629_v9 = vmul.f32 %v5388_v39, %v5245_v14  ;;  %v5267_v39 = vld [vmem:[#allocation4 + $0x148] sm:$0xff] }
 0x581   : > { %5690 = vst.msk [vmem:[%s8473_s29 + $0x80] sm:$0xff] %vm1564_vm2, %v5626_v43 }
 0x582   : > { %v5383_v35 = vpop.permute.xlu0 %5382  ;;  %5693 = vst.msk [vmem:[%s8473_s29 + $0x98] sm:$0xff] %vm1564_vm2, %v5629_v9  ;;  %v5266_v9 = vld [vmem:[#allocation4 + $0x140] sm:$0xff] }
 0x583   : > { %v5628_v20 = vmul.f32 %v5383_v35, %v5244_v16  ;;  %v5398_v63 = vpop.permute.xlu1 %5397 }
 0x584   : > { %v5631_v27 = vmul.f32 %v5398_v63, %v5247_v50  ;;  %v5269_v63 = vld [vmem:[#allocation4 + $0x158] sm:$0xff] }
 0x585   : > { %5692 = vst.msk [vmem:[%s8473_s29 + $0x90] sm:$0xff] %vm1564_vm2, %v5628_v20 }
 0x586   : > { %v5393_v19 = vpop.permute.xlu0 %5392  ;;  %5695 = vst.msk [vmem:[%s8473_s29 + $0xa8] sm:$0xff] %vm1564_vm2, %v5631_v27  ;;  %v5268_v27 = vld [vmem:[#allocation4 + $0x150] sm:$0xff] }
 0x587   : > { %v5630_v48 = vmul.f32 %v5393_v19, %v5246_v17  ;;  %v5408_v3 = vpop.permute.xlu1 %5407 }
 0x588   : > { %v5633_v7 = vmul.f32 %v5408_v3, %v5249_v22  ;;  %v5271_v3 = vld [vmem:[#allocation4 + $0x168] sm:$0xff] }
 0x589   : > { %5694 = vst.msk [vmem:[%s8473_s29 + $0xa0] sm:$0xff] %vm1564_vm2, %v5630_v48 }
 0x58a   : > { %v5403_v62 = vpop.permute.xlu0 %5402  ;;  %5697 = vst.msk [vmem:[%s8473_s29 + $0xb8] sm:$0xff] %vm1564_vm2, %v5633_v7  ;;  %v5270_v7 = vld [vmem:[#allocation4 + $0x160] sm:$0xff] }
 0x58b   : > { %v5632_v47 = vmul.f32 %v5403_v62, %v5248_v8  ;;  %v5418_v5 = vpop.permute.xlu1 %5417 }
 0x58c   : > { %v5635_v46 = vmul.f32 %v5418_v5, %v5251_v33  ;;  %v5273_v5 = vld [vmem:[#allocation4 + $0x178] sm:$0xff] }
 0x58d   : > { %5696 = vst.msk [vmem:[%s8473_s29 + $0xb0] sm:$0xff] %vm1564_vm2, %v5632_v47 }
 0x58e   : > { %v5413_v12 = vpop.permute.xlu0 %5412  ;;  %5699 = vst.msk [vmem:[%s8473_s29 + $0xc8] sm:$0xff] %vm1564_vm2, %v5635_v46  ;;  %v5272_v46 = vld [vmem:[#allocation4 + $0x170] sm:$0xff] }
 0x58f   : > { %v5634_v45 = vmul.f32 %v5413_v12, %v5250_v21  ;;  %v5428_v32 = vpop.permute.xlu1 %5427 }
 0x590   : > { %v5637_v0 = vmul.f32 %v5428_v32, %v5253_v30  ;;  %v5275_v32 = vld [vmem:[#allocation4 + $0x188] sm:$0xff] }
 0x591   : > { %5698 = vst.msk [vmem:[%s8473_s29 + $0xc0] sm:$0xff] %vm1564_vm2, %v5634_v45 }
 0x592   : > { %v5423_v24 = vpop.permute.xlu0 %5422  ;;  %5701 = vst.msk [vmem:[%s8473_s29 + $0xd8] sm:$0xff] %vm1564_vm2, %v5637_v0  ;;  %v5274_v0 = vld [vmem:[#allocation4 + $0x180] sm:$0xff] }
 0x593   : > { %v5636_v6 = vmul.f32 %v5423_v24, %v5252_v61  ;;  %v5438_v53 = vpop.permute.xlu1 %5437 }
 0x594   : > { %v5639_v18 = vmul.f32 %v5438_v53, %v5255_v44  ;;  %v5277_v53 = vld [vmem:[#allocation4 + $0x198] sm:$0xff] }
 0x595   : > { %5700 = vst.msk [vmem:[%s8473_s29 + $0xd0] sm:$0xff] %vm1564_vm2, %v5636_v6 }
 0x596   : > { %v5433_v56 = vpop.permute.xlu0 %5432  ;;  %5703 = vst.msk [vmem:[%s8473_s29 + $0xe8] sm:$0xff] %vm1564_vm2, %v5639_v18  ;;  %v5276_v18 = vld [vmem:[#allocation4 + $0x190] sm:$0xff] }
 0x597   : > { %v5638_v59 = vmul.f32 %v5433_v56, %v5254_v37  ;;  %v5448_v40 = vpop.permute.xlu1 %5447 }
 0x598   : > { %v5641_v28 = vmul.f32 %v5448_v40, %v5257_v34  ;;  %v5279_v40 = vld [vmem:[#allocation4 + $0x1a8] sm:$0xff] }
 0x599   : > { %5702 = vst.msk [vmem:[%s8473_s29 + $0xe0] sm:$0xff] %vm1564_vm2, %v5638_v59 }
 0x59a   : > { %v5443_v26 = vpop.permute.xlu0 %5442  ;;  %5705 = vst.msk [vmem:[%s8473_s29 + $0xf8] sm:$0xff] %vm1564_vm2, %v5641_v28  ;;  %v5278_v28 = vld [vmem:[#allocation4 + $0x1a0] sm:$0xff] }
 0x59b   : > { %v5640_v4 = vmul.f32 %v5443_v26, %v5256_v23  ;;  %v5458_v31 = vpop.permute.xlu1 %5457 }
 0x59c   : > { %v5643_v57 = vmul.f32 %v5458_v31, %v5259_v13  ;;  %v5281_v31 = vld [vmem:[#allocation4 + $0x1b8] sm:$0xff] }
 0x59d   : > { %5704 = vst.msk [vmem:[%s8473_s29 + $0xf0] sm:$0xff] %vm1564_vm2, %v5640_v4 }
 0x59e   : > { %v5453_v60 = vpop.permute.xlu0 %5452  ;;  %5707 = vst.msk [vmem:[%s8473_s29 + $0x108] sm:$0xff] %vm1564_vm2, %v5643_v57  ;;  %v5280_v57 = vld [vmem:[#allocation4 + $0x1b0] sm:$0xff] }
 0x59f   : > { %v5642_v36 = vmul.f32 %v5453_v60, %v5258_v10  ;;  %v5468_v54 = vpop.permute.xlu1 %5467 }
 0x5a0   : > { %v5645_v2 = vmul.f32 %v5468_v54, %v5261_v51  ;;  %v5283_v54 = vld [vmem:[#allocation4 + $0x1c8] sm:$0xff] }
 0x5a1   : > { %5706 = vst.msk [vmem:[%s8473_s29 + $0x100] sm:$0xff] %vm1564_vm2, %v5642_v36 }
 0x5a2   : > { %v5463_v42 = vpop.permute.xlu0 %5462  ;;  %5709 = vst.msk [vmem:[%s8473_s29 + $0x118] sm:$0xff] %vm1564_vm2, %v5645_v2  ;;  %v5282_v2 = vld [vmem:[#allocation4 + $0x1c0] sm:$0xff] }
 0x5a3   : > { %v5644_v1 = vmul.f32 %v5463_v42, %v5260_v15  ;;  %v5478_v25 = vpop.permute.xlu1 %5477 }
 0x5a4   : > { %v5647_v38 = vmul.f32 %v5478_v25, %v5263_v41  ;;  %v5285_v25 = vld [vmem:[#allocation4 + $0x1d8] sm:$0xff] }
 0x5a5   : > { %5708 = vst.msk [vmem:[%s8473_s29 + $0x110] sm:$0xff] %vm1564_vm2, %v5644_v1 }
 0x5a6   : > { %v5473_v52 = vpop.permute.xlu0 %5472  ;;  %5711 = vst.msk [vmem:[%s8473_s29 + $0x128] sm:$0xff] %vm1564_vm2, %v5647_v38  ;;  %v5284_v38 = vld [vmem:[#allocation4 + $0x1d0] sm:$0xff] }
 0x5a7   : > { %v5646_v11 = vmul.f32 %v5473_v52, %v5262_v49  ;;  %v5488_v55 = vpop.permute.xlu1 %5487 }
 0x5a8   : > { %v5649_v43 = vmul.f32 %v5488_v55, %v5265_v58  ;;  %v5287_v55 = vld [vmem:[#allocation4 + $0x1e8] sm:$0xff] }
 0x5a9   : > { %5710 = vst.msk [vmem:[%s8473_s29 + $0x120] sm:$0xff] %vm1564_vm2, %v5646_v11 }
 0x5aa   : > { %v5483_v14 = vpop.permute.xlu0 %5482  ;;  %5713 = vst.msk [vmem:[%s8473_s29 + $0x138] sm:$0xff] %vm1564_vm2, %v5649_v43  ;;  %v5286_v43 = vld [vmem:[#allocation4 + $0x1e0] sm:$0xff] }
 0x5ab   : > { %v5648_v16 = vmul.f32 %v5483_v14, %v5264_v29  ;;  %v5498_v35 = vpop.permute.xlu1 %5497 }
 0x5ac   : > { %v5651_v20 = vmul.f32 %v5498_v35, %v5267_v39  ;;  %v5289_v35 = vld [vmem:[#allocation4 + $0x1f8] sm:$0xff] }
 0x5ad   : > { %5712 = vst.msk [vmem:[%s8473_s29 + $0x130] sm:$0xff] %vm1564_vm2, %v5648_v16 }
 0x5ae   : > { %v5493_v50 = vpop.permute.xlu0 %5492  ;;  %5715 = vst.msk [vmem:[%s8473_s29 + $0x148] sm:$0xff] %vm1564_vm2, %v5651_v20  ;;  %v5288_v20 = vld [vmem:[#allocation4 + $0x1f0] sm:$0xff] }
 0x5af   : > { %v5650_v17 = vmul.f32 %v5493_v50, %v5266_v9  ;;  %v5508_v19 = vpop.permute.xlu1 %5507 }
 0x5b0   : > { %v5653_v48 = vmul.f32 %v5508_v19, %v5269_v63 }
 0x5b1   : > { %5714 = vst.msk [vmem:[%s8473_s29 + $0x140] sm:$0xff] %vm1564_vm2, %v5650_v17 }
 0x5b2   : > { %v5503_v22 = vpop.permute.xlu0 %5502  ;;  %5717 = vst.msk [vmem:[%s8473_s29 + $0x158] sm:$0xff] %vm1564_vm2, %v5653_v48 }
 0x5b3   : > { %v5652_v8 = vmul.f32 %v5503_v22, %v5268_v27  ;;  %v5518_v62 = vpop.permute.xlu1 %5517 }
 0x5b4   : > { %v5655_v47 = vmul.f32 %v5518_v62, %v5271_v3 }
 0x5b5   : > { %5716 = vst.msk [vmem:[%s8473_s29 + $0x150] sm:$0xff] %vm1564_vm2, %v5652_v8 }
 0x5b6   : > { %v5513_v33 = vpop.permute.xlu0 %5512  ;;  %5719 = vst.msk [vmem:[%s8473_s29 + $0x168] sm:$0xff] %vm1564_vm2, %v5655_v47 }
 0x5b7   : > { %v5654_v21 = vmul.f32 %v5513_v33, %v5270_v7  ;;  %v5528_v12 = vpop.permute.xlu1 %5527 }
 0x5b8   : > { %v5657_v45 = vmul.f32 %v5528_v12, %v5273_v5 }
 0x5b9   : > { %5718 = vst.msk [vmem:[%s8473_s29 + $0x160] sm:$0xff] %vm1564_vm2, %v5654_v21 }
 0x5ba   : > { %v5523_v30 = vpop.permute.xlu0 %5522  ;;  %5721 = vst.msk [vmem:[%s8473_s29 + $0x178] sm:$0xff] %vm1564_vm2, %v5657_v45 }
 0x5bb   : > { %v5656_v61 = vmul.f32 %v5523_v30, %v5272_v46  ;;  %v5538_v24 = vpop.permute.xlu1 %5537 }
 0x5bc   : > { %v5659_v6 = vmul.f32 %v5538_v24, %v5275_v32 }
 0x5bd   : > { %5720 = vst.msk [vmem:[%s8473_s29 + $0x170] sm:$0xff] %vm1564_vm2, %v5656_v61 }
 0x5be   : > { %v5533_v44 = vpop.permute.xlu0 %5532  ;;  %5723 = vst.msk [vmem:[%s8473_s29 + $0x188] sm:$0xff] %vm1564_vm2, %v5659_v6 }
 0x5bf   : > { %v5658_v37 = vmul.f32 %v5533_v44, %v5274_v0  ;;  %v5548_v56 = vpop.permute.xlu1 %5547 }
 0x5c0   : > { %v5661_v59 = vmul.f32 %v5548_v56, %v5277_v53 }
 0x5c1   : > { %5722 = vst.msk [vmem:[%s8473_s29 + $0x180] sm:$0xff] %vm1564_vm2, %v5658_v37 }
 0x5c2   : > { %v5543_v34 = vpop.permute.xlu0 %5542  ;;  %5725 = vst.msk [vmem:[%s8473_s29 + $0x198] sm:$0xff] %vm1564_vm2, %v5661_v59 }
 0x5c3   : > { %v5660_v23 = vmul.f32 %v5543_v34, %v5276_v18  ;;  %v5558_v26 = vpop.permute.xlu1 %5557 }
 0x5c4   : > { %v5663_v4 = vmul.f32 %v5558_v26, %v5279_v40 }
 0x5c5   : > { %5724 = vst.msk [vmem:[%s8473_s29 + $0x190] sm:$0xff] %vm1564_vm2, %v5660_v23 }
 0x5c6   : > { %v5553_v13 = vpop.permute.xlu0 %5552  ;;  %5727 = vst.msk [vmem:[%s8473_s29 + $0x1a8] sm:$0xff] %vm1564_vm2, %v5663_v4 }
 0x5c7   : > { %v5662_v10 = vmul.f32 %v5553_v13, %v5278_v28  ;;  %v5568_v60 = vpop.permute.xlu1 %5567 }
 0x5c8   : > { %v5665_v36 = vmul.f32 %v5568_v60, %v5281_v31 }
 0x5c9   : > { %5726 = vst.msk [vmem:[%s8473_s29 + $0x1a0] sm:$0xff] %vm1564_vm2, %v5662_v10 }
 0x5ca   : > { %v5563_v51 = vpop.permute.xlu0 %5562  ;;  %5729 = vst.msk [vmem:[%s8473_s29 + $0x1b8] sm:$0xff] %vm1564_vm2, %v5665_v36 }
 0x5cb   : > { %v5664_v15 = vmul.f32 %v5563_v51, %v5280_v57  ;;  %v5578_v42 = vpop.permute.xlu1 %5577 }
 0x5cc   : > { %v5667_v1 = vmul.f32 %v5578_v42, %v5283_v54 }
 0x5cd   : > { %5728 = vst.msk [vmem:[%s8473_s29 + $0x1b0] sm:$0xff] %vm1564_vm2, %v5664_v15 }
 0x5ce   : > { %v5573_v41 = vpop.permute.xlu0 %5572  ;;  %5731 = vst.msk [vmem:[%s8473_s29 + $0x1c8] sm:$0xff] %vm1564_vm2, %v5667_v1 }
 0x5cf   : > { %v5666_v49 = vmul.f32 %v5573_v41, %v5282_v2  ;;  %v5588_v52 = vpop.permute.xlu1 %5587 }
 0x5d0   : > { %v5669_v11 = vmul.f32 %v5588_v52, %v5285_v25 }
 0x5d1   : > { %5730 = vst.msk [vmem:[%s8473_s29 + $0x1c0] sm:$0xff] %vm1564_vm2, %v5666_v49 }
 0x5d2   : > { %v5583_v58 = vpop.permute.xlu0 %5582  ;;  %5733 = vst.msk [vmem:[%s8473_s29 + $0x1d8] sm:$0xff] %vm1564_vm2, %v5669_v11 }
 0x5d3   : > { %v5668_v29 = vmul.f32 %v5583_v58, %v5284_v38  ;;  %v5598_v14 = vpop.permute.xlu1 %5597 }
 0x5d4   : > { %v5671_v16 = vmul.f32 %v5598_v14, %v5287_v55 }
 0x5d5   : > { %5732 = vst.msk [vmem:[%s8473_s29 + $0x1d0] sm:$0xff] %vm1564_vm2, %v5668_v29 }
 0x5d6   : > { %v5593_v39 = vpop.permute.xlu0 %5592  ;;  %5735 = vst.msk [vmem:[%s8473_s29 + $0x1e8] sm:$0xff] %vm1564_vm2, %v5671_v16 }
 0x5d7   : > { %v5670_v9 = vmul.f32 %v5593_v39, %v5286_v43  ;;  %v5608_v50 = vpop.permute.xlu1 %5607 }
 0x5d8   : > { %v5673_v17 = vmul.f32 %v5608_v50, %v5289_v35 }
 0x5d9   : > { %5734 = vst.msk [vmem:[%s8473_s29 + $0x1e0] sm:$0xff] %vm1564_vm2, %v5670_v9 }
 0x5da   : > { %v5603_v63 = vpop.permute.xlu0 %5602  ;;  %5737 = vst.msk [vmem:[%s8473_s29 + $0x1f8] sm:$0xff] %vm1564_vm2, %v5673_v17 }
 0x5db   : > { %v5672_v27 = vmul.f32 %v5603_v63, %v5288_v20 }
 0x5dd   : > { %5736 = vst.msk [vmem:[%s8473_s29 + $0x1f0] sm:$0xff] %vm1564_vm2, %v5672_v27 }
 0x5de PF: > { %5744 = sbr.rel (!%p8029_p9) target bundleno = 1539 (0x603), region = 158  ;;  %s6313_s12 = sshll.u32 (%p8029_p9), %s7892_s17, 4  ;;  %v5904_v19 = vld [vmem:[%s8473_s29] sm:$0xff] (%p8029_p9)  ;;  %v5906_v48 = vld [vmem:[%s8473_s29 + $0x8] sm:$0xff] (%p8029_p9)  ;;  %v5908_v22 = vld [vmem:[%s8473_s29 + $0x10] sm:$0xff] (%p8029_p9) }
 0x5df   : > { %s6321_s14 = sshll.u32 (%p8029_p9), %s7896_s18, 7  ;;  %v5910_v8 = vld [vmem:[%s8473_s29 + $0x18] sm:$0xff] (%p8029_p9)  ;;  %v5912_v3 = vld [vmem:[%s8473_s29 + $0x20] sm:$0xff] (%p8029_p9)  ;;  %v5914_v7 = vld [vmem:[%s8473_s29 + $0x28] sm:$0xff] (%p8029_p9) }
 0x5e0   : > { %s5748_s16 = sadd.s32 (%p8029_p9), %s6321_s14, %s6313_s12  ;;  %v5916_v62 = vld [vmem:[%s8473_s29 + $0x30] sm:$0xff] (%p8029_p9)  ;;  %v5918_v47 = vld [vmem:[%s8473_s29 + $0x38] sm:$0xff] (%p8029_p9)  ;;  %v5920_v33 = vld [vmem:[%s8473_s29 + $0x40] sm:$0xff] (%p8029_p9) }
 0x5e1   : > { %s6315_s5 = sshll.u32 (%p8029_p9), %s5748_s16, 3  ;;  %v5922_v21 = vld [vmem:[%s8473_s29 + $0x48] sm:$0xff] (%p8029_p9)  ;;  %v5924_v5 = vld [vmem:[%s8473_s29 + $0x50] sm:$0xff] (%p8029_p9)  ;;  %v5926_v46 = vld [vmem:[%s8473_s29 + $0x58] sm:$0xff] (%p8029_p9) }
 0x5e2   : > { %s11194_s8 = scalar_lea.vmem (%p8029_p9), %s11351_s3, %s6315_s5  ;;  %v5928_v12 = vld [vmem:[%s8473_s29 + $0x60] sm:$0xff] (%p8029_p9)  ;;  %v5930_v45 = vld [vmem:[%s8473_s29 + $0x68] sm:$0xff] (%p8029_p9)  ;;  %v5932_v30 = vld [vmem:[%s8473_s29 + $0x70] sm:$0xff] (%p8029_p9) }
 0x5e3   : > { %5905 = vst [vmem:[%s11194_s8] sm:$0xff] (%p8029_p9), %v5904_v19  ;;  %5907 = vst [vmem:[%s11194_s8 + $0x8] sm:$0xff] (%p8029_p9), %v5906_v48  ;;  %v5934_v61 = vld [vmem:[%s8473_s29 + $0x78] sm:$0xff] (%p8029_p9)  ;;  %v5936_v32 = vld [vmem:[%s8473_s29 + $0x80] sm:$0xff] (%p8029_p9) }
 0x5e4   : > { %5909 = vst [vmem:[%s11194_s8 + $0x10] sm:$0xff] (%p8029_p9), %v5908_v22  ;;  %5911 = vst [vmem:[%s11194_s8 + $0x18] sm:$0xff] (%p8029_p9), %v5910_v8  ;;  %v5938_v0 = vld [vmem:[%s8473_s29 + $0x88] sm:$0xff] (%p8029_p9)  ;;  %v5940_v24 = vld [vmem:[%s8473_s29 + $0x90] sm:$0xff] (%p8029_p9) }
 0x5e5   : > { %5913 = vst [vmem:[%s11194_s8 + $0x20] sm:$0xff] %v5912_v3  ;;  %5915 = vst [vmem:[%s11194_s8 + $0x28] sm:$0xff] %v5914_v7  ;;  %v5942_v6 = vld [vmem:[%s8473_s29 + $0x98] sm:$0xff]  ;;  %v5944_v44 = vld [vmem:[%s8473_s29 + $0xa0] sm:$0xff] }
 0x5e6   : > { %5917 = vst [vmem:[%s11194_s8 + $0x30] sm:$0xff] %v5916_v62  ;;  %5919 = vst [vmem:[%s11194_s8 + $0x38] sm:$0xff] %v5918_v47  ;;  %v5946_v37 = vld [vmem:[%s8473_s29 + $0xa8] sm:$0xff]  ;;  %v5948_v53 = vld [vmem:[%s8473_s29 + $0xb0] sm:$0xff] }
 0x5e7   : > { %5921 = vst [vmem:[%s11194_s8 + $0x40] sm:$0xff] %v5920_v33  ;;  %5923 = vst [vmem:[%s11194_s8 + $0x48] sm:$0xff] %v5922_v21  ;;  %v5950_v18 = vld [vmem:[%s8473_s29 + $0xb8] sm:$0xff]  ;;  %v5952_v56 = vld [vmem:[%s8473_s29 + $0xc0] sm:$0xff] }
 0x5e8   : > { %5925 = vst [vmem:[%s11194_s8 + $0x50] sm:$0xff] %v5924_v5  ;;  %5927 = vst [vmem:[%s11194_s8 + $0x58] sm:$0xff] %v5926_v46  ;;  %v5954_v59 = vld [vmem:[%s8473_s29 + $0xc8] sm:$0xff]  ;;  %v5956_v34 = vld [vmem:[%s8473_s29 + $0xd0] sm:$0xff] }
 0x5e9   : > { %5929 = vst [vmem:[%s11194_s8 + $0x60] sm:$0xff] %v5928_v12  ;;  %5931 = vst [vmem:[%s11194_s8 + $0x68] sm:$0xff] %v5930_v45  ;;  %v5958_v23 = vld [vmem:[%s8473_s29 + $0xd8] sm:$0xff]  ;;  %v5960_v40 = vld [vmem:[%s8473_s29 + $0xe0] sm:$0xff] }
 0x5ea   : > { %5933 = vst [vmem:[%s11194_s8 + $0x70] sm:$0xff] %v5932_v30  ;;  %5935 = vst [vmem:[%s11194_s8 + $0x78] sm:$0xff] %v5934_v61  ;;  %v5962_v28 = vld [vmem:[%s8473_s29 + $0xe8] sm:$0xff]  ;;  %v5964_v26 = vld [vmem:[%s8473_s29 + $0xf0] sm:$0xff] }
 0x5eb   : > { %5937 = vst [vmem:[%s11194_s8 + $0x100] sm:$0xff] %v5936_v32  ;;  %5939 = vst [vmem:[%s11194_s8 + $0x108] sm:$0xff] %v5938_v0  ;;  %v5966_v4 = vld [vmem:[%s8473_s29 + $0xf8] sm:$0xff]  ;;  %v5968_v13 = vld [vmem:[%s8473_s29 + $0x100] sm:$0xff] }
 0x5ec   : > { %5941 = vst [vmem:[%s11194_s8 + $0x110] sm:$0xff] %v5940_v24  ;;  %5943 = vst [vmem:[%s11194_s8 + $0x118] sm:$0xff] %v5942_v6  ;;  %v5970_v10 = vld [vmem:[%s8473_s29 + $0x108] sm:$0xff]  ;;  %v5972_v31 = vld [vmem:[%s8473_s29 + $0x110] sm:$0xff] }
 0x5ed   : > { %5945 = vst [vmem:[%s11194_s8 + $0x120] sm:$0xff] %v5944_v44  ;;  %5947 = vst [vmem:[%s11194_s8 + $0x128] sm:$0xff] %v5946_v37  ;;  %v5974_v57 = vld [vmem:[%s8473_s29 + $0x118] sm:$0xff]  ;;  %v5976_v60 = vld [vmem:[%s8473_s29 + $0x120] sm:$0xff] }
 0x5ee   : > { %5949 = vst [vmem:[%s11194_s8 + $0x130] sm:$0xff] %v5948_v53  ;;  %5951 = vst [vmem:[%s11194_s8 + $0x138] sm:$0xff] %v5950_v18  ;;  %v5978_v36 = vld [vmem:[%s8473_s29 + $0x128] sm:$0xff]  ;;  %v5980_v51 = vld [vmem:[%s8473_s29 + $0x130] sm:$0xff] }
 0x5ef   : > { %5953 = vst [vmem:[%s11194_s8 + $0x140] sm:$0xff] %v5952_v56  ;;  %5955 = vst [vmem:[%s11194_s8 + $0x148] sm:$0xff] %v5954_v59  ;;  %v5982_v15 = vld [vmem:[%s8473_s29 + $0x138] sm:$0xff]  ;;  %v5984_v54 = vld [vmem:[%s8473_s29 + $0x140] sm:$0xff] }
 0x5f0   : > { %5957 = vst [vmem:[%s11194_s8 + $0x150] sm:$0xff] %v5956_v34  ;;  %5959 = vst [vmem:[%s11194_s8 + $0x158] sm:$0xff] %v5958_v23  ;;  %v5986_v2 = vld [vmem:[%s8473_s29 + $0x148] sm:$0xff]  ;;  %v5988_v42 = vld [vmem:[%s8473_s29 + $0x150] sm:$0xff] }
 0x5f1   : > { %5961 = vst [vmem:[%s11194_s8 + $0x160] sm:$0xff] %v5960_v40  ;;  %5963 = vst [vmem:[%s11194_s8 + $0x168] sm:$0xff] %v5962_v28  ;;  %v5990_v1 = vld [vmem:[%s8473_s29 + $0x158] sm:$0xff]  ;;  %v5992_v41 = vld [vmem:[%s8473_s29 + $0x160] sm:$0xff] }
 0x5f2   : > { %5965 = vst [vmem:[%s11194_s8 + $0x170] sm:$0xff] %v5964_v26  ;;  %5967 = vst [vmem:[%s11194_s8 + $0x178] sm:$0xff] %v5966_v4  ;;  %v5994_v49 = vld [vmem:[%s8473_s29 + $0x168] sm:$0xff]  ;;  %v5996_v25 = vld [vmem:[%s8473_s29 + $0x170] sm:$0xff] }
 0x5f3   : > { %5969 = vst [vmem:[%s11194_s8 + $0x200] sm:$0xff] %v5968_v13  ;;  %5971 = vst [vmem:[%s11194_s8 + $0x208] sm:$0xff] %v5970_v10  ;;  %v5998_v38 = vld [vmem:[%s8473_s29 + $0x178] sm:$0xff]  ;;  %v6000_v52 = vld [vmem:[%s8473_s29 + $0x180] sm:$0xff] }
 0x5f4   : > { %5973 = vst [vmem:[%s11194_s8 + $0x210] sm:$0xff] %v5972_v31  ;;  %5975 = vst [vmem:[%s11194_s8 + $0x218] sm:$0xff] %v5974_v57  ;;  %v6002_v11 = vld [vmem:[%s8473_s29 + $0x188] sm:$0xff]  ;;  %v6004_v58 = vld [vmem:[%s8473_s29 + $0x190] sm:$0xff] }
 0x5f5   : > { %5977 = vst [vmem:[%s11194_s8 + $0x220] sm:$0xff] %v5976_v60  ;;  %5979 = vst [vmem:[%s11194_s8 + $0x228] sm:$0xff] %v5978_v36  ;;  %v6006_v29 = vld [vmem:[%s8473_s29 + $0x198] sm:$0xff]  ;;  %v6008_v55 = vld [vmem:[%s8473_s29 + $0x1a0] sm:$0xff] }
 0x5f6   : > { %5981 = vst [vmem:[%s11194_s8 + $0x230] sm:$0xff] %v5980_v51  ;;  %5983 = vst [vmem:[%s11194_s8 + $0x238] sm:$0xff] %v5982_v15  ;;  %v6010_v43 = vld [vmem:[%s8473_s29 + $0x1a8] sm:$0xff]  ;;  %v6012_v14 = vld [vmem:[%s8473_s29 + $0x1b0] sm:$0xff] }
 0x5f7   : > { %5985 = vst [vmem:[%s11194_s8 + $0x240] sm:$0xff] %v5984_v54  ;;  %5987 = vst [vmem:[%s11194_s8 + $0x248] sm:$0xff] %v5986_v2  ;;  %v6014_v16 = vld [vmem:[%s8473_s29 + $0x1b8] sm:$0xff]  ;;  %v6016_v39 = vld [vmem:[%s8473_s29 + $0x1c0] sm:$0xff] }
 0x5f8   : > { %5989 = vst [vmem:[%s11194_s8 + $0x250] sm:$0xff] %v5988_v42  ;;  %5991 = vst [vmem:[%s11194_s8 + $0x258] sm:$0xff] %v5990_v1  ;;  %v6018_v9 = vld [vmem:[%s8473_s29 + $0x1c8] sm:$0xff]  ;;  %v6020_v35 = vld [vmem:[%s8473_s29 + $0x1d0] sm:$0xff] }
 0x5f9   : > { %5993 = vst [vmem:[%s11194_s8 + $0x260] sm:$0xff] %v5992_v41  ;;  %5995 = vst [vmem:[%s11194_s8 + $0x268] sm:$0xff] %v5994_v49  ;;  %v6022_v20 = vld [vmem:[%s8473_s29 + $0x1d8] sm:$0xff]  ;;  %v6024_v50 = vld [vmem:[%s8473_s29 + $0x1e0] sm:$0xff] }
 0x5fa   : > { %5997 = vst [vmem:[%s11194_s8 + $0x270] sm:$0xff] %v5996_v25  ;;  %5999 = vst [vmem:[%s11194_s8 + $0x278] sm:$0xff] %v5998_v38  ;;  %v6026_v17 = vld [vmem:[%s8473_s29 + $0x1e8] sm:$0xff]  ;;  %v6028_v63 = vld [vmem:[%s8473_s29 + $0x1f0] sm:$0xff] }
 0x5fb   : > { %6001 = vst [vmem:[%s11194_s8 + $0x300] sm:$0xff] %v6000_v52  ;;  %6003 = vst [vmem:[%s11194_s8 + $0x308] sm:$0xff] %v6002_v11  ;;  %v6030_v27 = vld [vmem:[%s8473_s29 + $0x1f8] sm:$0xff] }
 0x5fc   : > { %6005 = vst [vmem:[%s11194_s8 + $0x310] sm:$0xff] %v6004_v58  ;;  %6007 = vst [vmem:[%s11194_s8 + $0x318] sm:$0xff] %v6006_v29 }
 0x5fd   : > { %6009 = vst [vmem:[%s11194_s8 + $0x320] sm:$0xff] %v6008_v55  ;;  %6011 = vst [vmem:[%s11194_s8 + $0x328] sm:$0xff] %v6010_v43 }
 0x5fe   : > { %6013 = vst [vmem:[%s11194_s8 + $0x330] sm:$0xff] %v6012_v14  ;;  %6015 = vst [vmem:[%s11194_s8 + $0x338] sm:$0xff] %v6014_v16 }
 0x5ff   : > { %6017 = vst [vmem:[%s11194_s8 + $0x340] sm:$0xff] %v6016_v39  ;;  %6019 = vst [vmem:[%s11194_s8 + $0x348] sm:$0xff] %v6018_v9 }
 0x600   : > { %6021 = vst [vmem:[%s11194_s8 + $0x350] sm:$0xff] %v6020_v35  ;;  %6023 = vst [vmem:[%s11194_s8 + $0x358] sm:$0xff] %v6022_v20 }
 0x601   : > { %6025 = vst [vmem:[%s11194_s8 + $0x360] sm:$0xff] %v6024_v50  ;;  %6027 = vst [vmem:[%s11194_s8 + $0x368] sm:$0xff] %v6026_v17 }
 0x602   : > { %6029 = vst [vmem:[%s11194_s8 + $0x370] sm:$0xff] %v6028_v63  ;;  %6031 = vst [vmem:[%s11194_s8 + $0x378] sm:$0xff] %v6030_v27 }
 0x603 PF: > { %s13_s22 = sadd.s32 1, %s7912_s22   ;;  %s11864_s30 = sld [smem:[#allocation9_spill]] }
 0x604   : > { %p10_p4 = scmp.ge.s32.totalorder %s13_s22, 10   ;;  %s11865_s4 = sld [smem:[#allocation10_spill]] }
 0x605   : > { %s11866_s12 = smov %s7876_s13  ;;  %s11867_s13 = smov %s8040_s11 }
 0x606   : > { %s11868_s14 = smov %s7884_s15  ;;  %s11869_s15 = smov %s8037_s10 }
 0x607   : > { %s11870_s16 = smov %s7900_s19  ;;  %s11871_s17 = smov %s7904_s20 }
 0x608   : > { %s11872_s18 = smov %s7908_s21  ;;  %s11873_s19 = smov %s11877_s23 }
 0x609   : > { %s11874_s20 = smov %s11864_s30  ;;  %12 = sbr.rel (!%p10_p4) target bundleno = 6 (0x6), region = 243 }
 0x60a   : > { %s11875_s21 = smov %s11865_s4 }

</bundles_post_ra>
